<compile_context>
chip_gen: v7x
topology: tpu7x:2x2x1
jax: 0.10.0
libtpu: 0.0.40
codegen_flags: <defaults>
</compile_context>

<pallas_src>
import jax
import jax.numpy as jnp
from jax.experimental import pallas as pl
from jax.experimental.pallas import tpu as pltpu

# Padded network geometry.
KPAD = 4096          # padded K and N of every hidden layer (4000 -> 4096)
TK = 1024            # K tile streamed per grid step
NK = KPAD // TK      # 4 K tiles per layer
OUT_PAD = 128        # fc10 output padded 9 -> 128 (lane-dense store)
N_OUT = 9            # true fc10 output width

_LAYER_DIMS = [(4096, 4000)] + [(4000, 4000)] * 8 + [(4000, 9)]


def _fused_mlp_kernel(x_ref, w_ref, b_ref, o_ref, act_ref, acc_ref):
    """Grid = (layer, k_tile).  acc += act[:, k_tile] @ W[layer, k_tile]."""
    l = pl.program_id(0)
    k = pl.program_id(1)
    nl = pl.num_programs(0)

    # Seed the resident activation with the flattened (bf16) network input.
    @pl.when((l == 0) & (k == 0))
    def _():
        act_ref[...] = x_ref[...].astype(act_ref.dtype)

    # Fresh f32 accumulator at the start of every layer.
    @pl.when(k == 0)
    def _():
        acc_ref[...] = jnp.zeros_like(acc_ref)

    # Select the K-tile of the resident activation that matches this W tile.
    # Static slices + selects (avoids dynamic lane-dim slicing of the scratch);
    # the activation is tiny (2 x 4096 bf16) so this is free vs. the W DMA.
    x_tile = act_ref[:, 0:TK]
    for kk in range(1, NK):
        x_tile = jnp.where(k == kk, act_ref[:, kk * TK:(kk + 1) * TK], x_tile)

    acc_ref[...] += jnp.dot(
        x_tile, w_ref[...], preferred_element_type=jnp.float32
    )

    # Layer epilogue: bias + ReLU, write back into the resident activation.
    @pl.when(k == NK - 1)
    def _():
        h = jnp.maximum(acc_ref[...] + b_ref[...], 0.0)
        act_ref[...] = h.astype(act_ref.dtype)

        @pl.when(l == nl - 1)
        def _():
            # Final layer: original model applies ReLU to fc10 as well.
            o_ref[...] = h[:, :OUT_PAD].astype(o_ref.dtype)


@jax.jit
def net_forward(x_nchw, w_stack, b_stack):
    """Forward pass of `Net` (inference; dropout = identity)."""
    B = x_nchw.shape[0]
    x = x_nchw.reshape(B, -1).astype(jnp.bfloat16)  # torch.flatten(input, 1)
    assert x.shape[1] == KPAD, x.shape

    L = w_stack.shape[0]
    out_pad = pl.pallas_call(
        _fused_mlp_kernel,
        out_shape=jax.ShapeDtypeStruct((B, OUT_PAD), jnp.float32),
        grid_spec=pltpu.PrefetchScalarGridSpec(
            num_scalar_prefetch=0,
            grid=(L, NK),
            in_specs=[
                # Network input: resident, DMA'd once.
                pl.BlockSpec((B, KPAD), lambda l, k: (0, 0)),
                # Stacked bf16 weights [L, KPAD, KPAD]: stream (TK, KPAD) tiles.
                pl.BlockSpec((None, TK, KPAD), lambda l, k: (l, k, 0)),
                # Stacked f32 biases [L, 1, KPAD]: one row per layer.
                pl.BlockSpec((None, 1, KPAD), lambda l, k: (l, 0, 0)),
            ],
            out_specs=pl.BlockSpec((B, OUT_PAD), lambda l, k: (0, 0)),
            scratch_shapes=[
                pltpu.VMEM((B, KPAD), jnp.bfloat16),  # activation across layers
                pltpu.VMEM((B, KPAD), jnp.float32),   # f32 accumulator
            ],
        ),
        compiler_params=pltpu.CompilerParams(
            dimension_semantics=("arbitrary", "arbitrary"),
            vmem_limit_bytes=48 * 1024 * 1024,  # 2x 8 MiB W tile + slack
        ),
    )(x, w_stack, b_stack)

    return out_pad[:, :N_OUT]


def init_params(key):
    """Deterministic PyTorch-style init, zero-padded to [L, 4096, 4096] bf16."""
    ws, bs = [], []
    for fan_in, fan_out in _LAYER_DIMS:
        key, kw, kb = jax.random.split(key, 3)
        bound = 1.0 / float(fan_in) ** 0.5
        w = jax.random.uniform(kw, (fan_in, fan_out), jnp.float32, -bound, bound)
        b = jax.random.uniform(kb, (fan_out,), jnp.float32, -bound, bound)
        # Stored as [K_in, N_out]; zero-pad so padded rows/cols contribute 0.
        w_pad = jnp.zeros((KPAD, KPAD), jnp.float32).at[:fan_in, :fan_out].set(w)
        b_pad = jnp.zeros((1, KPAD), jnp.float32).at[0, :fan_out].set(b)
        ws.append(w_pad.astype(jnp.bfloat16))
        bs.append(b_pad)
    return jnp.stack(ws), jnp.stack(bs)


if __name__ == "__main__":
    key = jax.random.PRNGKey(0)
    key, kx = jax.random.split(key)

    # Flattened feature size must match fc1's 4096 inputs: 4 * 32 * 32 = 4096.
    x = jax.random.normal(kx, (2, 4, 32, 32), jnp.float32)

    w_stack, b_stack = init_params(key)

    out = net_forward(x, w_stack, b_stack)
    jax.block_until_ready(out)

    assert out.shape == (2, N_OUT), out.shape
    assert bool(jnp.all(out >= 0.0))  # final ReLU (as in the reference model)

    print("KERNEL_OK")
</pallas_src>

<mosaic_0001>
module attributes {stable_mosaic.version = 11 : i64} {
  func.func @_fused_mlp_kernel(%arg0: i32, %arg1: i32, %arg2: memref<2x4096xbf16, #tpu.memory_space<vmem>>, %arg3: memref<1x1024x4096xbf16, #tpu.memory_space<vmem>>, %arg4: memref<1x1x4096xf32, #tpu.memory_space<vmem>>, %arg5: memref<2x128xf32, #tpu.memory_space<vmem>>, %arg6: memref<2x4096xbf16, #tpu.memory_space<vmem>>, %arg7: memref<2x4096xf32, #tpu.memory_space<vmem>>) attributes {dimension_semantics = [#tpu.dimension_semantics<arbitrary>, #tpu.dimension_semantics<arbitrary>], iteration_bounds = array<i64: 10, 4>, scalar_prefetch = 0 : i64, scratch_operands = 2 : i64, tpu.core_type = #tpu.core_type<tc>, window_params = [{pipeline_mode = #tpu.pipeline_mode<synchronous>, transform_indices = @transform_0, window_bounds = array<i64: 2, 4096>}, {transform_indices = @transform_1, window_bounds = array<i64: 1, 1024, 4096>}, {transform_indices = @transform_2, window_bounds = array<i64: 1, 1, 4096>}, {pipeline_mode = #tpu.pipeline_mode<synchronous>, transform_indices = @transform_3, window_bounds = array<i64: 2, 128>}]} {
    %c0_i32 = arith.constant 0 : i32
    %0 = arith.cmpi eq, %arg0, %c0_i32 : i32
    %c0_i32_0 = arith.constant 0 : i32
    %1 = arith.cmpi eq, %arg1, %c0_i32_0 : i32
    %2 = arith.andi %0, %1 : i1
    %3 = arith.extui %2 : i1 to i32
    %c0_i32_1 = arith.constant 0 : i32
    %4 = arith.cmpi ne, %3, %c0_i32_1 : i32
    scf.if %4 {
      %c0_17 = arith.constant 0 : index
      %c0_18 = arith.constant 0 : index
      %27 = vector.load %arg2[%c0_17, %c0_18] : memref<2x4096xbf16, #tpu.memory_space<vmem>>, vector<2x4096xbf16>
      %c0_19 = arith.constant 0 : index
      %c0_20 = arith.constant 0 : index
      %28 = vector.load %arg6[%c0_19, %c0_20] : memref<2x4096xbf16, #tpu.memory_space<vmem>>, vector<2x4096xbf16>
      tpu.vector_store %arg6[%c0_19, %c0_20], %27 {strides = array<i32>} : memref<2x4096xbf16, #tpu.memory_space<vmem>>, vector<2x4096xbf16>,
    } else {
    }
    %c0_i32_2 = arith.constant 0 : i32
    %5 = arith.cmpi eq, %arg1, %c0_i32_2 : i32
    %6 = arith.extui %5 : i1 to i32
    %c0_i32_3 = arith.constant 0 : i32
    %7 = arith.cmpi ne, %6, %c0_i32_3 : i32
    scf.if %7 {
      %cst_17 = arith.constant 0.000000e+00 : f32
      %27 = vector.broadcast %cst_17 : f32 to vector<2x4096xf32>
      %c0_18 = arith.constant 0 : index
      %c0_19 = arith.constant 0 : index
      %28 = vector.load %arg7[%c0_18, %c0_19] : memref<2x4096xf32, #tpu.memory_space<vmem>>, vector<2x4096xf32>
      tpu.vector_store %arg7[%c0_18, %c0_19], %27 {strides = array<i32>} : memref<2x4096xf32, #tpu.memory_space<vmem>>, vector<2x4096xf32>,
    } else {
    }
    %c0 = arith.constant 0 : index
    %c0_4 = arith.constant 0 : index
    %8 = vector.load %arg6[%c0, %c0_4] : memref<2x4096xbf16, #tpu.memory_space<vmem>>, vector<2x1024xbf16>
    %c1_i32 = arith.constant 1 : i32
    %9 = arith.cmpi eq, %arg1, %c1_i32 : i32
    %c0_5 = arith.constant 0 : index
    %c1024 = arith.constant 1024 : index
    %10 = vector.load %arg6[%c0_5, %c1024] : memref<2x4096xbf16, #tpu.memory_space<vmem>>, vector<2x1024xbf16>
    %11 = arith.select %9, %10, %8 : vector<2x1024xbf16>
    %c2_i32 = arith.constant 2 : i32
    %12 = arith.cmpi eq, %arg1, %c2_i32 : i32
    %c0_6 = arith.constant 0 : index
    %c2048 = arith.constant 2048 : index
    %13 = vector.load %arg6[%c0_6, %c2048] : memref<2x4096xbf16, #tpu.memory_space<vmem>>, vector<2x1024xbf16>
    %14 = arith.select %12, %13, %11 : vector<2x1024xbf16>
    %c3_i32 = arith.constant 3 : i32
    %15 = arith.cmpi eq, %arg1, %c3_i32 : i32
    %c0_7 = arith.constant 0 : index
    %c3072 = arith.constant 3072 : index
    %16 = vector.load %arg6[%c0_7, %c3072] : memref<2x4096xbf16, #tpu.memory_space<vmem>>, vector<2x1024xbf16>
    %17 = arith.select %15, %16, %14 : vector<2x1024xbf16>
    %c0_8 = arith.constant 0 : index
    %c0_9 = arith.constant 0 : index
    %18 = vector.load %arg7[%c0_8, %c0_9] : memref<2x4096xf32, #tpu.memory_space<vmem>>, vector<2x4096xf32>
    %c0_10 = arith.constant 0 : index
    %c0_11 = arith.constant 0 : index
    %c0_12 = arith.constant 0 : index
    %19 = vector.load %arg3[%c0_10, %c0_11, %c0_12] : memref<1x1024x4096xbf16, #tpu.memory_space<vmem>>, vector<1x1024x4096xbf16>
    %20 = vector.shape_cast %19 : vector<1x1024x4096xbf16> to vector<1024x4096xbf16>
    %cst = arith.constant dense<0.000000e+00> : vector<2x4096xf32>
    %21 = tpu.matmul %17, %20, %cst {dimension_numbers = #tpu.dot_dimension_numbers<[1], [0], [0], [1], [0, 0, 1, 1], [], []>} : vector<2x1024xbf16>, vector<1024x4096xbf16>, vector<2x4096xf32> -> vector<2x4096xf32>
    %22 = arith.addf %18, %21 : vector<2x4096xf32>
    %c0_13 = arith.constant 0 : index
    %c0_14 = arith.constant 0 : index
    %23 = vector.load %arg7[%c0_13, %c0_14] : memref<2x4096xf32, #tpu.memory_space<vmem>>, vector<2x4096xf32>
    tpu.vector_store %arg7[%c0_13, %c0_14], %22 {strides = array<i32>} : memref<2x4096xf32, #tpu.memory_space<vmem>>, vector<2x4096xf32>,
    %c3_i32_15 = arith.constant 3 : i32
    %24 = arith.cmpi eq, %arg1, %c3_i32_15 : i32
    %25 = arith.extui %24 : i1 to i32
    %c0_i32_16 = arith.constant 0 : i32
    %26 = arith.cmpi ne, %25, %c0_i32_16 : i32
    scf.if %26 {
      %c0_17 = arith.constant 0 : index
      %c0_18 = arith.constant 0 : index
      %27 = vector.load %arg7[%c0_17, %c0_18] : memref<2x4096xf32, #tpu.memory_space<vmem>>, vector<2x4096xf32>
      %c0_19 = arith.constant 0 : index
      %c0_20 = arith.constant 0 : index
      %c0_21 = arith.constant 0 : index
      %28 = vector.load %arg4[%c0_19, %c0_20, %c0_21] : memref<1x1x4096xf32, #tpu.memory_space<vmem>>, vector<1x1x4096xf32>
      %29 = vector.shape_cast %28 : vector<1x1x4096xf32> to vector<1x4096xf32>
      %30 = vector.broadcast %29 : vector<1x4096xf32> to vector<2x4096xf32>
      %31 = arith.addf %27, %30 : vector<2x4096xf32>
      %cst_22 = arith.constant 0.000000e+00 : f32
      %32 = vector.broadcast %cst_22 : f32 to vector<2x4096xf32>
      %33 = arith.maximumf %31, %32 : vector<2x4096xf32>
      %34 = arith.truncf %33 : vector<2x4096xf32> to vector<2x4096xbf16>
      %c0_23 = arith.constant 0 : index
      %c0_24 = arith.constant 0 : index
      %35 = vector.load %arg6[%c0_23, %c0_24] : memref<2x4096xbf16, #tpu.memory_space<vmem>>, vector<2x4096xbf16>
      tpu.vector_store %arg6[%c0_23, %c0_24], %34 {strides = array<i32>} : memref<2x4096xbf16, #tpu.memory_space<vmem>>, vector<2x4096xbf16>,
      %c9_i32 = arith.constant 9 : i32
      %36 = arith.cmpi eq, %arg0, %c9_i32 : i32
      %37 = arith.extui %36 : i1 to i32
      %c0_i32_25 = arith.constant 0 : i32
      %38 = arith.cmpi ne, %37, %c0_i32_25 : i32
      scf.if %38 {
        %39 = vector.extract_strided_slice %33 {offsets = [0, 0], sizes = [2, 128], strides = [1, 1]} : vector<2x4096xf32> to vector<2x128xf32>
        %c0_26 = arith.constant 0 : index
        %c0_27 = arith.constant 0 : index
        %40 = vector.load %arg5[%c0_26, %c0_27] : memref<2x128xf32, #tpu.memory_space<vmem>>, vector<2x128xf32>
        tpu.vector_store %arg5[%c0_26, %c0_27], %39 {strides = array<i32>} : memref<2x128xf32, #tpu.memory_space<vmem>>, vector<2x128xf32>,
      } else {
      }
    } else {
    }
    return
  }
  func.func @transform_0(%arg0: i32, %arg1: i32) -> (i32, i32) {
    %c0_i32 = arith.constant 0 : i32
    %c0_i32_0 = arith.constant 0 : i32
    %c0_i32_1 = arith.constant 0 : i32
    return %c0_i32, %c0_i32_0 : i32, i32
  }
  func.func @transform_1(%arg0: i32, %arg1: i32) -> (i32, i32, i32) {
    %c0_i32 = arith.constant 0 : i32
    %c0_i32_0 = arith.constant 0 : i32
    return %arg0, %arg1, %c0_i32 : i32, i32, i32
  }
  func.func @transform_2(%arg0: i32, %arg1: i32) -> (i32, i32, i32) {
    %c0_i32 = arith.constant 0 : i32
    %c0_i32_0 = arith.constant 0 : i32
    %c0_i32_1 = arith.constant 0 : i32
    return %arg0, %c0_i32, %c0_i32_0 : i32, i32, i32
  }
  func.func @transform_3(%arg0: i32, %arg1: i32) -> (i32, i32) {
    %c0_i32 = arith.constant 0 : i32
    %c0_i32_0 = arith.constant 0 : i32
    %c0_i32_1 = arith.constant 0 : i32
    return %c0_i32, %c0_i32_0 : i32, i32
  }
}

</mosaic_0001>

<bundles_post_ra>
// kernel: net_forward.1
= control target key start
LH: loop header
LB: loop body
LE: loop exit
PB: predicated region body
PF: predicated region fallthrough
CT: control target
= control target key end

     0   :  { %8 = vsyncpa [#allocation5], 0  ;;  %s21602_s0 = inlined_call_operand.vmem [shape: bf16[2,4096], index: 0, kind: input, shape index: {}]   ;;  %s21603_s1 = inlined_call_operand.hbm [shape: bf16[10,4096,4096], index: 1, kind: input, shape index: {}]   ;;  %s21604_s2 = inlined_call_operand.hbm [shape: f32[10,1,4096], index: 2, kind: input, shape index: {}]   ;;  %s21605_s3 = inlined_call_operand.hbm [shape: f32[2,128], index: 3, kind: output, shape index: {}]  }
   0x1   :  { %10 = vsyncpa [#allocation5 + $0x1], 0 }
   0x2   :  { %11 = vsyncpa [#allocation8], 0 }
   0x3   :  { %13 = vsyncpa [#allocation8 + $0x1], 0 }
   0x4   :  { %14 = vsyncpa [#allocation6], 0  ;;  %s18915_s12 = smov 0   ;;  %s18917_s13 = smov 0  }
   0x5   :  { %s18919_s14 = smov 0   ;;  %s18921_s15 = smov 0  }
   0x6   :  { %s18923_s16 = smov 0   ;;  %s18925_s17 = smov 0  }
   0x7   :  { %s18927_s18 = smov 0   ;;  %s18929_s19 = smov 0  }
   0x8   :  { %s18931_s20 = smov 0   ;;  %s18933_s21 = smov 0  }
   0x9   :  { %s18935_s22 = smov 0  }
   0xa LB: > { %21613 = sst [smem:[#allocation13_spill]] %s18876_s20  ;;  %s29_s23 = sadd.s32 1, %s18876_s20  ;;  %s18884_s22 = sphi %s18935_s22, %s20_s22   ;;  %s18880_s21 = sphi %s18933_s21, %s21641_s21   ;;  %s18876_s20 = sphi %s18931_s20, %s21632_s20   ;;  %s18872_s19 = sphi %s18929_s19, %s21640_s19   ;;  %s18868_s18 = sphi %s18927_s18, %s21631_s18   ;;  %s18864_s17 = sphi %s18925_s17, %s21639_s17   ;;  %s18860_s16 = sphi %s18923_s16, %s21638_s16   ;;  %s18856_s15 = sphi %s18921_s15, %s21637_s15   ;;  %s18852_s14 = sphi %s18919_s14, %s21636_s14   ;;  %s18848_s13 = sphi %s18917_s13, %s21635_s13   ;;  %s18844_s12 = sphi %s18915_s12, %s21634_s12  }
   0xb   : > { %s32_s24 = sadd.s32 1, %s18880_s21  ;;  %p30_p0 = scmp.ge.s32.totalorder %s29_s23, 4 }
   0xc   : > { %s62_s25 = sadd.s32 1, %s18864_s17  ;;  %p69_p1 = scmp.ne.s32.totalorder %s18864_s17, %s18860_s16 }
   0xd   : > { %p21610_p2 = scmp.eq.s32.totalorder %s18884_s22, 0  ;;  %s21643_s23 = smov (%p30_p0, %s29_s23), 0 }
   0xe   : > { %21614 = sst [smem:[#allocation14_spill]] %s21643_s23  ;;  %s21645_s24 = smov (!%p30_p0, %s32_s24), %s18880_s21 }
   0xf   : > { %s58_s26 = ssub.s32 %s18876_s20, %s21643_s23  ;;  %p18983_p3 = por %p21610_p2, %p69_p1 }
  0x10   : > { %p34_p4 = scmp.ge.s32.totalorder %s21645_s24, 10  ;;  %p75_p5 = scmp.ne.s32.totalorder %s18860_s16, %s18856_s15 }
  0x11   : > { %p21609_p6 = scmp.lt.s32.totalorder %s18884_s22, 40  ;;  %s149_s28 = sand.u32 1, %s18864_s17  }
  0x12   : > { %s21647_s24 = smov (%p34_p4, %s21645_s24), 0  ;;  %s18393_s29 = sshll.u32 %s18876_s20, 12 }
  0x13   : > { %21616 = sst [smem:[#allocation15_spill]] %s21647_s24  ;;  %s18996_s30 = ssub.s32 %s18880_s21, %s21647_s24 }
  0x14   : > { %s59_s4 = sor.u32 %s58_s26, %s18996_s30  ;;  %s16311_s5 = sshll.u32 %s149_s28, 14 }
  0x15   : > { %p60_p7 = scmp.eq.s32.totalorder %s59_s4, 0  ;;  %s16314_s6 = sshll.u32 %s18880_s21, 14 }
  0x16   : > { %s153_s7 = scalar_lea.vmem [#allocation4], %s16311_s5  ;;  %s160_s10 = sadd.s32 %s18393_s29, %s16314_s6 }
  0x17   : > { %s163_s8 = sshll.u32 %s153_s7, 4  ;;  %s16315_s11 = sshll.u32 %s160_s10, 6  ;;  %s19003_s8 = int_to_ptr.vmem [resolvable:$true] %s163_s8 }
  0x18   : > { %s19001_s9 = scalar_select %p60_p7, %s18864_s17, %s62_s25  }
  0x19   : > { %p19009_p8 = pnand %p21609_p6, %p18983_p3  ;;  %s19016_s26 = scalar_lea.hbm %s21603_s1, %s16315_s11 }
  0x1a   : > { %s19018_s25 = scalar_lea.sflag [#allocation5], %s149_s28  ;;  %s18700_s29 = scalar_lea.hbm %s19016_s26, 262144 }
  0x1b   : > { %p18701_p9 = scmp.ne.s32.totalorder %s19016_s26, %s18700_s29  ;;  %p18702_p10 = pneg %p19009_p8 }
  0x1c   : > { %s18705_s24 = scalar_lea.hbm %s21603_s1, 10485760  ;;  %p18706_p13 = scmp.lt.u32.totalorder %s19016_s26, %s21603_s1 }
  0x1d   : > { %p18703_p11 = pnand %p18702_p10, %p18701_p9  ;;  %p18707_p0 = scmp.lt.u32.totalorder %s18705_s24, %s18700_s29 }
  0x1e   : > { %p18709_p3 = scmp.lt.u32.totalorder %s18700_s29, %s19016_s26 }
  0x1f   : > { %p18704_p12 = pneg %p18703_p11  ;;  %p18708_p1 = por %p18707_p0, %p18706_p13 }
  0x21   : > { %p18710_p4 = por %p18709_p3, %p18708_p1 }
  0x23   : > { %p18711_p7 = pnand %p18710_p4, %p18704_p12 }
  0x25   : > { %18714 = shalt.err (!%p18711_p7)
}
  0x26   : > { %s18715_s28 = scalar_lea.vmem %s19003_s8, 262144  ;;  %s18886_s6 = smov [#allocation4]  }
  0x27   : > { %p18716_p9 = scmp.ne.s32.totalorder %s19003_s8, %s18715_s28  ;;  %s18720_s7 = sshll.u32 %s18886_s6, 4  ;;  %s18721_s7 = int_to_ptr.vmem [resolvable:$false] %s18720_s7 }
  0x28   : > { %s18722_s10 = scalar_lea.vmem %s18721_s7, 524288  ;;  %p18723_p2 = scmp.lt.s32.totalorder %s19003_s8, %s18721_s7 }
  0x29   : > { %p18718_p11 = pnand %p18716_p9, %p18702_p10  ;;  %p18724_p13 = scmp.lt.s32.totalorder %s18722_s10, %s18715_s28 }
  0x2b   : > { %p18719_p6 = pneg %p18718_p11  ;;  %p18725_p0 = por %p18724_p13, %p18723_p2 }
  0x2d   : > { %p18726_p1 = pnand %p18725_p0, %p18719_p6 }
  0x2f   : > { %18729 = shalt.err (!%p18726_p1)
}
  0x30   : > { %s18887_s11 = smov 2048   ;;  %s18888_s29 = smov 128  }
  0x31   : > { %18598 = dma.hbm_to_vmem [thread:$0]  (!%p19009_p8), %s19016_s26, 262144, %s19003_s8, %s19018_s25, %s18887_s11, %s18887_s11, %s18888_s29  }
  0x32   : > { %p16319_p2 = scmp.ge.s32.totalorder %s18884_s22, 1  ;;  %p190_p6 = scmp.lt.s32.totalorder %s18884_s22, 41 }
  0x33   : > { %s16308_s20 = sadd.s32 4294967295, %s18884_s22   ;;  %p86_p3 = scmp.eq.s32.totalorder %s18996_s30, 0 }
  0x34   : > { %p19048_p10 = pnand %p16319_p2, %p190_p6  ;;  %p76_p12 = scmp.eq.s32.totalorder %s16308_s20, 0 }
  0x35   : > { %s88_s24 = sadd.s32 1, %s18852_s14  ;;  %p95_p4 = scmp.ne.s32.totalorder %s18852_s14, %s18848_s13 }
  0x36   : > { %p19062_p7 = por %p76_p12, %p75_p5  ;;  %p101_p9 = scmp.ne.s32.totalorder %s18848_s13, %s18844_s12 }
  0x37   : > { %s19069_s23 = scalar_select %p86_p3, %s18852_s14, %s88_s24  }
  0x38   : > { %s21619_s4 = scalar_select %p19062_p7, 1, 0 }
  0x39   : > { %p21620_p8 = scmp.eq.s32.totalorder %s18884_s22, 0  ;;  %p19073_p13 = por %p101_p9, %p76_p12 }
  0x3a   : > { %s173_s26 = sand.u32 1, %s18852_s14   ;;  %s18394_s25 = sshll.u32 %s18880_s21, 9 }
  0x3b   : > { %p97_p11 = por %p95_p4, %p21620_p8  ;;  %s16316_s5 = sshll.u32 %s173_s26, 5 }
  0x3c   : > { %s21621_s8 = scalar_select %p19073_p13, 1, 0 }
  0x3d   : > { %s19082_s15 = scalar_lea.hbm %s21604_s2, %s18394_s25  ;;  %s177_s12 = scalar_lea.vmem [#allocation7], %s16316_s5 }
  0x3e   : > { %s185_s6 = sshll.u32 %s177_s12, 4  ;;  %p21622_p5 = scmp.lt.s32.totalorder %s18884_s22, 40  ;;  %s19090_s6 = int_to_ptr.vmem [resolvable:$true] %s185_s6 }
  0x3f   : > { %s174_s10 = scalar_lea.sflag [#allocation8], %s173_s26  ;;  %s18730_s11 = scalar_lea.hbm %s19082_s15, 512 }
  0x40   : > { %p19086_p0 = pnand %p21622_p5, %p97_p11  ;;  %p18731_p1 = scmp.ne.s32.totalorder %s19082_s15, %s18730_s11 }
  0x41   : > { %s18735_s25 = scalar_lea.hbm %s21604_s2, 5120  ;;  %p18736_p3 = scmp.lt.u32.totalorder %s19082_s15, %s21604_s2 }
  0x42   : > { %p18732_p2 = pneg %p19086_p0  ;;  %p18737_p4 = scmp.lt.u32.totalorder %s18735_s25, %s18730_s11 }
  0x43   : > { %p18739_p8 = scmp.lt.u32.totalorder %s18730_s11, %s19082_s15 }
  0x44   : > { %p18733_p6 = pnand %p18732_p2, %p18731_p1  ;;  %p18738_p9 = por %p18737_p4, %p18736_p3 }
  0x46   : > { %p18734_p12 = pneg %p18733_p6  ;;  %p18740_p11 = por %p18739_p8, %p18738_p9 }
  0x48   : > { %p18741_p5 = pnand %p18740_p11, %p18734_p12 }
  0x4a   : > { %18744 = shalt.err (!%p18741_p5)
}
  0x4b   : > { %s18745_s26 = scalar_lea.vmem %s19090_s6, 512  ;;  %s18889_s28 = smov [#allocation7]  }
  0x4c   : > { %p18746_p1 = scmp.ne.s32.totalorder %s19090_s6, %s18745_s26  ;;  %s18750_s12 = sshll.u32 %s18889_s28, 4  ;;  %s18751_s12 = int_to_ptr.vmem [resolvable:$false] %s18750_s12 }
  0x4d   : > { %s18752_s29 = scalar_lea.vmem %s18751_s12, 1024  ;;  %p18753_p7 = scmp.lt.s32.totalorder %s19090_s6, %s18751_s12 }
  0x4e   : > { %p18748_p6 = pnand %p18746_p1, %p18732_p2  ;;  %p18754_p3 = scmp.lt.s32.totalorder %s18752_s29, %s18745_s26 }
  0x50   : > { %p18749_p13 = pneg %p18748_p6  ;;  %p18755_p4 = por %p18754_p3, %p18753_p7 }
  0x52   : > { %p18756_p9 = pnand %p18755_p4, %p18749_p13 }
  0x54   : > { %18759 = shalt.err (!%p18756_p9)
}
  0x55   : > { %18601 = dma.hbm_to_vmem [thread:$0]  (!%p19086_p0), %s19082_s15, 512, %s19090_s6, %s174_s10  }
  0x56   : > { %194 = sbr.rel (%p19048_p10) target bundleno = 2462 (0x99e), region = 32  ;;  %s196_s11 = sand.u32 (!%p19048_p10), 1, %s18860_s16  }
  0x57   : > { %s16320_s24 = sshll.u32 (!%p19048_p10), %s196_s11, 14  ;;  %s197_s25 = scalar_lea.sflag (!%p19048_p10), [#allocation5], %s196_s11 }
  0x58   : > { %s19120_s5 = scalar_lea.vmem (!%p19048_p10), [#allocation4], %s16320_s24  ;;  %p21624_p2 = scmp.ne.s32.totalorder (!%p19048_p10), %s21619_s4, 0 }
  0x5d   : > { %18831 = dma.done.wait (%p21624_p2), %s197_s25, 262144  }
  0x5e   : > { %18833 = vsyncadd (%p21624_p2), %s197_s25, 4294705152  ;;  %s205_s7 = sand.u32 1, %s18848_s13   ;;  %p21625_p10 = scmp.ne.s32.totalorder %s21621_s8, 0 }
  0x5f   : > { %s16321_s30 = sshll.u32 %s205_s7, 5  ;;  %s206_s15 = scalar_lea.sflag [#allocation8], %s205_s7 }
  0x60   : > { %s19127_s6 = scalar_lea.vmem [#allocation7], %s16321_s30 }
  0x61   : > { %18835 = dma.done.wait (%p21625_p10), %s206_s15, 512  }
  0x62   : > { %18837 = vsyncadd (%p21625_p10), %s206_s15, 4294966784  ;;  %p234_p7 = scmp.eq.s32.totalorder %s18872_s19, 0  ;;  %p235_p13 = scmp.eq.s32.totalorder %s18868_s18, 0 }
  0x64   : > { %p236_p0 = pnand %p235_p13, %p234_p7 }
  0x65   : > { %v240_v0 = vld [vmem:[%s21602_s0] sm:$0xff] (!%p236_p0)  ;;  %v241_v1 = vld [vmem:[%s21602_s0 + $0x8] sm:$0xff] (!%p236_p0)  ;;  %v242_v2 = vld [vmem:[%s21602_s0 + $0x10] sm:$0xff] (!%p236_p0) }
  0x66   : > { %239 = sbr.rel (%p236_p0) target bundleno = 109 (0x6d), region = 44  ;;  %244 = vst [vmem:[#allocation2] sm:$0xff] (!%p236_p0), %v240_v0  ;;  %245 = vst [vmem:[#allocation2 + $0x8] sm:$0xff] (!%p236_p0), %v241_v1  ;;  %v243_v3 = vld [vmem:[%s21602_s0 + $0x18] sm:$0xff] (!%p236_p0) }
  0x67   : > { %246 = vst [vmem:[#allocation2 + $0x10] sm:$0xff] (!%p236_p0), %v242_v2  ;;  %247 = vst [vmem:[#allocation2 + $0x18] sm:$0xff] (!%p236_p0), %v243_v3 }
  0x6d PF: > { %p16322_p12 = scmp.ne.s32.totalorder %s18868_s18, 0 }
  0x6e   : > { %v18890_v4 = vmov (!%p16322_p12), 0.0  }
  0x6f   : > { %250 = sbr.rel (%p16322_p12) target bundleno = 118 (0x76), region = 48  ;;  %251 = vst [vmem:[#allocation3] sm:$0xff] (!%p16322_p12), %v18890_v4  ;;  %252 = vst [vmem:[#allocation3 + $0x8] sm:$0xff] (!%p16322_p12), %v18890_v4 }
  0x70   : > { %253 = vst [vmem:[#allocation3 + $0x10] sm:$0xff] (!%p16322_p12), %v18890_v4  ;;  %254 = vst [vmem:[#allocation3 + $0x18] sm:$0xff] (!%p16322_p12), %v18890_v4 }
  0x71   : > { %255 = vst [vmem:[#allocation3 + $0x20] sm:$0xff] (!%p16322_p12), %v18890_v4  ;;  %256 = vst [vmem:[#allocation3 + $0x28] sm:$0xff] (!%p16322_p12), %v18890_v4 }
  0x72   : > { %257 = vst [vmem:[#allocation3 + $0x30] sm:$0xff] (!%p16322_p12), %v18890_v4  ;;  %258 = vst [vmem:[#allocation3 + $0x38] sm:$0xff] (!%p16322_p12), %v18890_v4 }
  0x76 PF: > { %v295_v5 = vld [vmem:[%s19120_s5] sm:$0xff]  ;;  %v296_v7 = vld [vmem:[%s19120_s5 + $0x8] sm:$0xff]  ;;  %p260_p8 = scmp.eq.s32.totalorder %s18868_s18, 1  ;;  %p269_p11 = scmp.eq.s32.totalorder %s18868_s18, 2  ;;  %v18891_v42 = vmov 0   ;;  %v2348_v46 = vlaneseq }
  0x77   : > { %v311_v6 = vld [vmem:[%s19120_s5 + $0x80] sm:$0xff]  ;;  %v312_v9 = vld [vmem:[%s19120_s5 + $0x88] sm:$0xff]  ;;  %p278_p5 = scmp.eq.s32.totalorder %s18868_s18, 3  ;;  %v18892_v44 = vmov 1966171168   ;;  %p18371_p1 = scmp.ne.s32.totalorder %s18868_s18, 3 }
  0x78   : > { %v16324_v8 = vcombine.high %v295_v5, %v311_v6  ;;  %v16323_v10 = vcombine.low %v295_v5, %v311_v6  ;;  %v327_v11 = vld [vmem:[%s19120_s5 + $0x100] sm:$0xff]  ;;  %v16326_v13 = vcombine.high %v296_v7, %v312_v9  ;;  %v16325_v14 = vcombine.low %v296_v7, %v312_v9  ;;  %v328_v16 = vld [vmem:[%s19120_s5 + $0x108] sm:$0xff]  ;;  %s262_s11 = scalar_select %p260_p8, 1, 0 }
  0x79   : > { %v343_v12 = vld [vmem:[%s19120_s5 + $0x180] sm:$0xff]  ;;  %v344_v17 = vld [vmem:[%s19120_s5 + $0x188] sm:$0xff]  ;;  %s271_s24 = scalar_select %p269_p11, 1, 0  ;;  %v2346_v45 = vunpack.c.l.s4 %v18892_v44  ;;  %v19179_v59 = vshrl.u32 %v2348_v46, 7 }
  0x7a   : > { %v16356_v15 = vcombine.high %v327_v11, %v343_v12  ;;  %v359_v18 = vld [vmem:[%s19120_s5 + $0x200] sm:$0xff]  ;;  %12641 = vmatprep.subr.bf16.mxu0 %v16324_v8  ;;  %v16358_v19 = vcombine.high %v328_v16, %v344_v17  ;;  %v360_v21 = vld [vmem:[%s19120_s5 + $0x208] sm:$0xff]  ;;  %12805 = vmatprep.subr.bf16.mxu1 %v16326_v13  ;;  %v16355_v23 = vcombine.low %v327_v11, %v343_v12  ;;  %v263_v29 = vstv %s262_s11  ;;  %s280_s25 = scalar_select %p278_p5, 1, 0 }
  0x7b   : > { %v375_v20 = vld [vmem:[%s19120_s5 + $0x280] sm:$0xff]  ;;  %v376_v22 = vld [vmem:[%s19120_s5 + $0x288] sm:$0xff]  ;;  %12642 = vmatpush1.bf16.msra.mxu0 %v16323_v10  ;;  %12806 = vmatpush1.bf16.msra.mxu1 %v16325_v14  ;;  %v16357_v24 = vcombine.low %v328_v16, %v344_v17  ;;  %v272_v32 = vstv %s271_s24  ;;  %vm264_vm0 = vcmp.eq.s32.totalorder %v263_v29, 1  ;;  %v2347_v63 = vunpack.c.0.s8 %v2346_v45  ;;  %p18388_p6 = scmp.ne.s32.totalorder (!%p18371_p1), %s18872_s19, 9 }
  0x7c   : > { %12643 = vmatprep.subr.bf16.mxu0 %v16356_v15  ;;  %v16388_v25 = vcombine.high %v359_v18, %v375_v20  ;;  %12807 = vmatprep.subr.bf16.mxu1 %v16358_v19  ;;  %v16390_v26 = vcombine.high %v360_v21, %v376_v22  ;;  %v391_v27 = vld [vmem:[%s19120_s5 + $0x300] sm:$0xff]  ;;  %v392_v30 = vld [vmem:[%s19120_s5 + $0x308] sm:$0xff]  ;;  %v16387_v33 = vcombine.low %v359_v18, %v375_v20  ;;  %vm273_vm1 = vcmp.eq.s32.totalorder %v272_v32, 1  ;;  %v270_v18 = vld [vmem:[#allocation2 + $0x10] sm:$0xff] }
  0x7d   : > { %v407_v28 = vld [vmem:[%s19120_s5 + $0x380] sm:$0xff]  ;;  %v408_v31 = vld [vmem:[%s19120_s5 + $0x388] sm:$0xff]  ;;  %v16389_v34 = vcombine.low %v360_v21, %v376_v22  ;;  %v265_v43 = vsel %vm264_vm0, 1, %v18891_v42  ;;  %v274_v49 = vsel %vm273_vm1, 1, %v18891_v42  ;;  %v281_v50 = vstv %s280_s25  ;;  %v279_v19 = vld [vmem:[#allocation2 + $0x18] sm:$0xff] }
  0x7e   : > { %v16420_v35 = vcombine.high %v391_v27, %v407_v28  ;;  %v16422_v36 = vcombine.high %v392_v30, %v408_v31  ;;  %v423_v37 = vld [vmem:[%s19120_s5 + $0x400] sm:$0xff]  ;;  %v424_v39 = vld [vmem:[%s19120_s5 + $0x408] sm:$0xff]  ;;  %v16419_v41 = vcombine.low %v391_v27, %v407_v28  ;;  %v16421_v47 = vcombine.low %v392_v30, %v408_v31 }
  0x7f   : > { %12644 = vmatpush1.bf16.msra.mxu0 %v16355_v23  ;;  %12808 = vmatpush1.bf16.msra.mxu1 %v16357_v24  ;;  %v439_v38 = vld [vmem:[%s19120_s5 + $0x480] sm:$0xff]  ;;  %v440_v40 = vld [vmem:[%s19120_s5 + $0x488] sm:$0xff]  ;;  %v266_v56 = vpack.c.b16 %v265_v43, %v265_v43  ;;  %vm282_vm2 = vcmp.eq.s32.totalorder %v281_v50, 1  ;;  %v275_v58 = vpack.c.b16 %v274_v49, %v274_v49  ;;  %v19195_v14 = vsub.s32 %v2347_v63, %v19179_v59 }
  0x80   : > { %12645 = vmatprep.subr.bf16.mxu0 %v16388_v25  ;;  %12809 = vmatprep.subr.bf16.mxu1 %v16390_v26  ;;  %v16452_v48 = vcombine.high %v423_v37, %v439_v38  ;;  %v16454_v51 = vcombine.high %v424_v39, %v440_v40  ;;  %v455_v52 = vld [vmem:[%s19120_s5 + $0x500] sm:$0xff]  ;;  %v456_v54 = vld [vmem:[%s19120_s5 + $0x508] sm:$0xff]  ;;  %v16451_v57 = vcombine.low %v423_v37, %v439_v38  ;;  %v283_v62 = vsel %vm282_vm2, 1, %v18891_v42 }
  0x81   : > { %v471_v53 = vld [vmem:[%s19120_s5 + $0x580] sm:$0xff]  ;;  %v472_v55 = vld [vmem:[%s19120_s5 + $0x588] sm:$0xff]  ;;  %v16453_v60 = vcombine.low %v424_v39, %v440_v40  ;;  %vm19185_vm3 = vcmp.ne.s16.totalorder %v266_v56, 0  ;;  %v284_v6 = vpack.c.b16 %v283_v62, %v283_v62  ;;  %vm19189_vm4 = vcmp.ne.s16.totalorder %v275_v58, 0 }
  0x82   : > { %v16484_v61 = vcombine.high %v455_v52, %v471_v53  ;;  %v16486_v0 = vcombine.high %v456_v54, %v472_v55  ;;  %v487_v1 = vld [vmem:[%s19120_s5 + $0x600] sm:$0xff]  ;;  %v488_v3 = vld [vmem:[%s19120_s5 + $0x608] sm:$0xff]  ;;  %v16483_v7 = vcombine.low %v455_v52, %v471_v53  ;;  %v16485_v9 = vcombine.low %v456_v54, %v472_v55 }
  0x83   : > { %12646 = vmatpush1.bf16.msra.mxu0 %v16387_v33  ;;  %12810 = vmatpush1.bf16.msra.mxu1 %v16389_v34  ;;  %v503_v2 = vld [vmem:[%s19120_s5 + $0x680] sm:$0xff]  ;;  %v504_v4 = vld [vmem:[%s19120_s5 + $0x688] sm:$0xff]  ;;  %vm285_vm5 = vcmp.ne.s16.totalorder %v284_v6, 0 }
  0x84   : > { %12647 = vmatprep.subr.bf16.mxu0 %v16420_v35  ;;  %12811 = vmatprep.subr.bf16.mxu1 %v16422_v36  ;;  %v16516_v10 = vcombine.high %v487_v1, %v503_v2  ;;  %v519_v11 = vld [vmem:[%s19120_s5 + $0x700] sm:$0xff]  ;;  %v261_v13 = vld [vmem:[#allocation2 + $0x8] sm:$0xff]  ;;  %v16518_v15 = vcombine.high %v488_v3, %v504_v4  ;;  %v16515_v23 = vcombine.low %v487_v1, %v503_v2 }
  0x85   : > { %v259_v12 = vld [vmem:[#allocation2] sm:$0xff]  ;;  %v520_v20 = vld [vmem:[%s19120_s5 + $0x708] sm:$0xff]  ;;  %v16517_v25 = vcombine.low %v488_v3, %v504_v4 }
  0x86   : > { %v535_v16 = vld [vmem:[%s19120_s5 + $0x780] sm:$0xff]  ;;  %v268_v17 = vsel %vm19185_vm3, %v261_v13, %v259_v12  ;;  %v536_v21 = vld [vmem:[%s19120_s5 + $0x788] sm:$0xff] }
  0x87   : > { %12648 = vmatpush1.bf16.msra.mxu0 %v16419_v41  ;;  %12812 = vmatpush1.bf16.msra.mxu1 %v16421_v47  ;;  %v277_v22 = vsel %vm19189_vm4, %v270_v18, %v268_v17  ;;  %v16548_v26 = vcombine.high %v519_v11, %v535_v16  ;;  %v16550_v28 = vcombine.high %v520_v20, %v536_v21  ;;  %v551_v29 = vld [vmem:[%s19120_s5 + $0x800] sm:$0xff]  ;;  %v552_v31 = vld [vmem:[%s19120_s5 + $0x808] sm:$0xff] }
  0x88   : > { %12649 = vmatprep.subr.bf16.mxu0 %v16452_v48  ;;  %12813 = vmatprep.subr.bf16.mxu1 %v16454_v51  ;;  %v19204_v24 = vsel %vm285_vm5, %v279_v19, %v277_v22  ;;  %v567_v30 = vld [vmem:[%s19120_s5 + $0x880] sm:$0xff]  ;;  %v568_v32 = vld [vmem:[%s19120_s5 + $0x888] sm:$0xff]  ;;  %v16547_v34 = vcombine.low %v519_v11, %v535_v16  ;;  %v16549_v35 = vcombine.low %v520_v20, %v536_v21 }
  0x89   : > { %v19208_v27 = vrot.slane %v19204_v24, %v19195_v14  ;;  %v16580_v36 = vcombine.high %v551_v29, %v567_v30  ;;  %v16582_v38 = vcombine.high %v552_v31, %v568_v32  ;;  %v583_v39 = vld [vmem:[%s19120_s5 + $0x900] sm:$0xff]  ;;  %v584_v41 = vld [vmem:[%s19120_s5 + $0x908] sm:$0xff]  ;;  %v16579_v43 = vcombine.low %v551_v29, %v567_v30 }
  0x8a   : > { %v599_v40 = vld [vmem:[%s19120_s5 + $0x980] sm:$0xff]  ;;  %v600_v42 = vld [vmem:[%s19120_s5 + $0x988] sm:$0xff]  ;;  %v16581_v44 = vcombine.low %v552_v31, %v568_v32 }
  0x8b   : > { %12650 = vmatpush1.bf16.msra.mxu0 %v16451_v57  ;;  %12814 = vmatpush1.bf16.msra.mxu1 %v16453_v60  ;;  %v2359_v33 = vcombine.high %v19208_v27, %v19208_v27  ;;  %v16612_v45 = vcombine.high %v583_v39, %v599_v40  ;;  %v16614_v46 = vcombine.high %v584_v41, %v600_v42  ;;  %v615_v47 = vld [vmem:[%s19120_s5 + $0xa00] sm:$0xff]  ;;  %v616_v49 = vld [vmem:[%s19120_s5 + $0xa08] sm:$0xff] }
  0x8c   : > { %12651 = vmatprep.subr.bf16.mxu0 %v16484_v61  ;;  %12815 = vmatprep.subr.bf16.mxu1 %v16486_v0  ;;  %v631_v48 = vld [vmem:[%s19120_s5 + $0xa80] sm:$0xff]  ;;  %v632_v50 = vld [vmem:[%s19120_s5 + $0xa88] sm:$0xff]  ;;  %v16611_v51 = vcombine.low %v583_v39, %v599_v40  ;;  %v16613_v52 = vcombine.low %v584_v41, %v600_v42 }
  0x8d   : > { %v19217_v37 = vrot.slane %v2359_v33, %v19195_v14  ;;  %v16644_v53 = vcombine.high %v615_v47, %v631_v48  ;;  %v16646_v54 = vcombine.high %v616_v49, %v632_v50  ;;  %v647_v55 = vld [vmem:[%s19120_s5 + $0xb00] sm:$0xff]  ;;  %v648_v57 = vld [vmem:[%s19120_s5 + $0xb08] sm:$0xff]  ;;  %v16643_v60 = vcombine.low %v615_v47, %v631_v48 }
  0x8e   : > { %v663_v56 = vld [vmem:[%s19120_s5 + $0xb80] sm:$0xff]  ;;  %v664_v58 = vld [vmem:[%s19120_s5 + $0xb88] sm:$0xff]  ;;  %v16645_v61 = vcombine.low %v616_v49, %v632_v50  ;;  %v19259_v47 = vrot.slane %v19208_v27, %v19195_v14 }
  0x8f   : > { %12652 = vmatpush1.bf16.msra.mxu0 %v16483_v7  ;;  %12816 = vmatpush1.bf16.msra.mxu1 %v16485_v9  ;;  %v16676_v62 = vcombine.high %v647_v55, %v663_v56  ;;  %v16678_v63 = vcombine.high %v648_v57, %v664_v58  ;;  %v679_v0 = vld [vmem:[%s19120_s5 + $0xc00] sm:$0xff]  ;;  %v680_v2 = vld [vmem:[%s19120_s5 + $0xc08] sm:$0xff]  ;;  %v16675_v4 = vcombine.low %v647_v55, %v663_v56 }
  0x90   : > { %12653 = vmatprep.subr.bf16.mxu0 %v16516_v10  ;;  %12817 = vmatprep.subr.bf16.mxu1 %v16518_v15  ;;  %v695_v1 = vld [vmem:[%s19120_s5 + $0xc80] sm:$0xff]  ;;  %v696_v3 = vld [vmem:[%s19120_s5 + $0xc88] sm:$0xff]  ;;  %v16677_v5 = vcombine.low %v648_v57, %v664_v58  ;;  %v19268_v27 = vcombine.high %v19217_v37, %v19217_v37 }
  0x91   : > { %12673 = vmatprep.mubr.bf16.mxu0 %v19217_v37  ;;  %12837 = vmatprep.mubr.bf16.mxu1 %v19217_v37  ;;  %v16708_v6 = vcombine.high %v679_v0, %v695_v1  ;;  %v16710_v7 = vcombine.high %v680_v2, %v696_v3  ;;  %v711_v8 = vld [vmem:[%s19120_s5 + $0xd00] sm:$0xff]  ;;  %v712_v10 = vld [vmem:[%s19120_s5 + $0xd08] sm:$0xff]  ;;  %v16707_v12 = vcombine.low %v679_v0, %v695_v1 }
  0x92   : > { %v727_v9 = vld [vmem:[%s19120_s5 + $0xd80] sm:$0xff]  ;;  %v728_v11 = vld [vmem:[%s19120_s5 + $0xd88] sm:$0xff]  ;;  %v16709_v13 = vcombine.low %v680_v2, %v696_v3 }
  0x93   : > { %12654 = vmatpush1.bf16.msra.mxu0 %v16515_v23  ;;  %12818 = vmatpush1.bf16.msra.mxu1 %v16517_v25  ;;  %v16740_v15 = vcombine.high %v711_v8, %v727_v9  ;;  %v16742_v16 = vcombine.high %v712_v10, %v728_v11  ;;  %v743_v17 = vld [vmem:[%s19120_s5 + $0xe00] sm:$0xff]  ;;  %v744_v19 = vld [vmem:[%s19120_s5 + $0xe08] sm:$0xff]  ;;  %v16739_v21 = vcombine.low %v711_v8, %v727_v9 }
  0x94   : > { %12655 = vmatprep.subr.bf16.mxu0 %v16548_v26  ;;  %12819 = vmatprep.subr.bf16.mxu1 %v16550_v28  ;;  %v759_v18 = vld [vmem:[%s19120_s5 + $0xe80] sm:$0xff]  ;;  %v760_v20 = vld [vmem:[%s19120_s5 + $0xe88] sm:$0xff]  ;;  %v16741_v22 = vcombine.low %v712_v10, %v728_v11 }
  0x95   : > { %v16772_v23 = vcombine.high %v743_v17, %v759_v18  ;;  %v16774_v25 = vcombine.high %v744_v19, %v760_v20  ;;  %v775_v26 = vld [vmem:[%s19120_s5 + $0xf00] sm:$0xff]  ;;  %v776_v29 = vld [vmem:[%s19120_s5 + $0xf08] sm:$0xff]  ;;  %v16771_v31 = vcombine.low %v743_v17, %v759_v18  ;;  %v16773_v32 = vcombine.low %v744_v19, %v760_v20 }
  0x96   : > { %v791_v28 = vld [vmem:[%s19120_s5 + $0xf80] sm:$0xff]  ;;  %v792_v30 = vld [vmem:[%s19120_s5 + $0xf88] sm:$0xff] }
  0x97   : > { %12656 = vmatpush1.bf16.msra.mxu0 %v16547_v34  ;;  %12820 = vmatpush1.bf16.msra.mxu1 %v16549_v35  ;;  %v16804_v33 = vcombine.high %v775_v26, %v791_v28  ;;  %v16806_v34 = vcombine.high %v776_v29, %v792_v30  ;;  %v807_v35 = vld [vmem:[%s19120_s5 + $0x1000] sm:$0xff]  ;;  %v824_v39 = vld [vmem:[%s19120_s5 + $0x1088] sm:$0xff]  ;;  %v16803_v40 = vcombine.low %v775_v26, %v791_v28 }
  0x98   : > { %12657 = vmatprep.subr.bf16.mxu0 %v16580_v36  ;;  %12821 = vmatprep.subr.bf16.mxu1 %v16582_v38  ;;  %v823_v36 = vld [vmem:[%s19120_s5 + $0x1080] sm:$0xff]  ;;  %v808_v38 = vld [vmem:[%s19120_s5 + $0x1008] sm:$0xff]  ;;  %v16805_v41 = vcombine.low %v776_v29, %v792_v30 }
  0x99   : > { %v16836_v42 = vcombine.high %v807_v35, %v823_v36  ;;  %v840_v48 = vld [vmem:[%s19120_s5 + $0x1108] sm:$0xff]  ;;  %v871_v55 = vld [vmem:[%s19120_s5 + $0x1200] sm:$0xff] }
  0x9a   : > { %v856_v49 = vld [vmem:[%s19120_s5 + $0x1188] sm:$0xff]  ;;  %v887_v56 = vld [vmem:[%s19120_s5 + $0x1280] sm:$0xff] }
  0x9b   : > { %12658 = vmatpush1.bf16.msra.mxu0 %v16579_v43  ;;  %12822 = vmatpush1.bf16.msra.mxu1 %v16581_v44  ;;  %v2344_v43 = vcombine.high %v19204_v24, %v19204_v24  ;;  %v16838_v44 = vcombine.high %v808_v38, %v824_v39  ;;  %v16837_v24 = vcombine.low %v808_v38, %v824_v39  ;;  %v872_v57 = vld [vmem:[%s19120_s5 + $0x1208] sm:$0xff]  ;;  %v903_v2 = vld [vmem:[%s19120_s5 + $0x1300] sm:$0xff] }
  0x9c   : > { %12659 = vmatprep.subr.bf16.mxu0 %v16612_v45  ;;  %12823 = vmatprep.subr.bf16.mxu1 %v16614_v46  ;;  %v839_v45 = vld [vmem:[%s19120_s5 + $0x1100] sm:$0xff]  ;;  %v888_v58 = vld [vmem:[%s19120_s5 + $0x1288] sm:$0xff]  ;;  %v16900_v0 = vcombine.high %v871_v55, %v887_v56 }
  0x9d   : > { %v855_v46 = vld [vmem:[%s19120_s5 + $0x1180] sm:$0xff]  ;;  %v2358_v50 = vrot.slane %v2344_v43, %v19195_v14  ;;  %v16902_v1 = vcombine.high %v872_v57, %v888_v58 }
  0x9e   : > { %v919_v3 = vld [vmem:[%s19120_s5 + $0x1380] sm:$0xff] }
  0x9f   : > { %12660 = vmatpush1.bf16.msra.mxu0 %v16611_v51  ;;  %12824 = vmatpush1.bf16.msra.mxu1 %v16613_v52  ;;  %v16835_v51 = vcombine.low %v807_v35, %v823_v36  ;;  %v16868_v52 = vcombine.high %v839_v45, %v855_v46  ;;  %v16932_v8 = vcombine.high %v903_v2, %v919_v3  ;;  %v935_v10 = vld [vmem:[%s19120_s5 + $0x1400] sm:$0xff] }
  0xa0   : > { %12661 = vmatprep.subr.bf16.mxu0 %v16644_v53  ;;  %12825 = vmatprep.subr.bf16.mxu1 %v16646_v54  ;;  %v2360_v53 = vcombine.high %v2358_v50, %v2358_v50  ;;  %v16870_v54 = vcombine.high %v840_v48, %v856_v49  ;;  %v951_v11 = vld [vmem:[%s19120_s5 + $0x1480] sm:$0xff] }
  0xa1   : > { %v16964_v17 = vcombine.high %v935_v10, %v951_v11  ;;  %v967_v19 = vld [vmem:[%s19120_s5 + $0x1500] sm:$0xff] }
  0xa2   : > { %v983_v20 = vld [vmem:[%s19120_s5 + $0x1580] sm:$0xff] }
  0xa3   : > { %12662 = vmatpush1.bf16.msra.mxu0 %v16643_v60  ;;  %12826 = vmatpush1.bf16.msra.mxu1 %v16645_v61  ;;  %v19274_v60 = vrot.slane %v2360_v53, %v19195_v14  ;;  %v19277_v61 = vrot.slane %v2358_v50, %v19195_v14  ;;  %v16996_v26 = vcombine.high %v967_v19, %v983_v20  ;;  %v999_v29 = vld [vmem:[%s19120_s5 + $0x1600] sm:$0xff]  ;;  %v1080_v50 = vld [vmem:[%s19120_s5 + $0x1888] sm:$0xff] }
  0xa4   : > { %12663 = vmatprep.subr.bf16.mxu0 %v16676_v62  ;;  %12827 = vmatprep.subr.bf16.mxu1 %v16678_v63  ;;  %v16867_v62 = vcombine.low %v839_v45, %v855_v46  ;;  %v16869_v63 = vcombine.low %v840_v48, %v856_v49  ;;  %v1015_v30 = vld [vmem:[%s19120_s5 + $0x1680] sm:$0xff]  ;;  %v1064_v49 = vld [vmem:[%s19120_s5 + $0x1808] sm:$0xff] }
  0xa5   : > { %v17028_v35 = vcombine.high %v999_v29, %v1015_v30  ;;  %v1031_v38 = vld [vmem:[%s19120_s5 + $0x1700] sm:$0xff]  ;;  %v17094_v53 = vcombine.high %v1064_v49, %v1080_v50 }
  0xa6   : > { %v1047_v39 = vld [vmem:[%s19120_s5 + $0x1780] sm:$0xff] }
  0xa7   : > { %12664 = vmatpush1.bf16.msra.mxu0 %v16675_v4  ;;  %12828 = vmatpush1.bf16.msra.mxu1 %v16677_v5  ;;  %v904_v4 = vld [vmem:[%s19120_s5 + $0x1308] sm:$0xff]  ;;  %v1063_v46 = vld [vmem:[%s19120_s5 + $0x1800] sm:$0xff] }
  0xa8   : > { %12665 = vmatprep.subr.bf16.mxu0 %v16708_v6  ;;  %12829 = vmatprep.subr.bf16.mxu1 %v16710_v7  ;;  %v920_v5 = vld [vmem:[%s19120_s5 + $0x1388] sm:$0xff]  ;;  %v16899_v6 = vcombine.low %v871_v55, %v887_v56  ;;  %v16901_v7 = vcombine.low %v872_v57, %v888_v58  ;;  %v1079_v48 = vld [vmem:[%s19120_s5 + $0x1880] sm:$0xff] }
  0xa9   : > { %v16934_v9 = vcombine.high %v904_v4, %v920_v5  ;;  %v1111_v55 = vld [vmem:[%s19120_s5 + $0x1980] sm:$0xff]  ;;  %v1096_v56 = vld [vmem:[%s19120_s5 + $0x1908] sm:$0xff]  ;;  %v17091_v58 = vcombine.low %v1063_v46, %v1079_v48 }
  0xaa   : > { %v1112_v57 = vld [vmem:[%s19120_s5 + $0x1988] sm:$0xff] }
  0xab   : > { %12666 = vmatpush1.bf16.msra.mxu0 %v16707_v12  ;;  %12830 = vmatpush1.bf16.msra.mxu1 %v16709_v13  ;;  %v936_v12 = vld [vmem:[%s19120_s5 + $0x1408] sm:$0xff] }
  0xac   : > { %12667 = vmatprep.subr.bf16.mxu0 %v16740_v15  ;;  %12831 = vmatprep.subr.bf16.mxu1 %v16742_v16  ;;  %v952_v13 = vld [vmem:[%s19120_s5 + $0x1488] sm:$0xff]  ;;  %v16931_v15 = vcombine.low %v903_v2, %v919_v3  ;;  %v16933_v16 = vcombine.low %v904_v4, %v920_v5  ;;  %v1143_v2 = vld [vmem:[%s19120_s5 + $0x1a80] sm:$0xff] }
  0xad   : > { %v16966_v18 = vcombine.high %v936_v12, %v952_v13  ;;  %v1128_v3 = vld [vmem:[%s19120_s5 + $0x1a08] sm:$0xff] }
  0xae   : > { %v1144_v4 = vld [vmem:[%s19120_s5 + $0x1a88] sm:$0xff] }
  0xaf   : > { %12668 = vmatpush1.bf16.msra.mxu0 %v16739_v21  ;;  %12832 = vmatpush1.bf16.msra.mxu1 %v16741_v22  ;;  %v968_v21 = vld [vmem:[%s19120_s5 + $0x1508] sm:$0xff] }
  0xb0   : > { %12669 = vmatprep.subr.bf16.mxu0 %v16772_v23  ;;  %12833 = vmatprep.subr.bf16.mxu1 %v16774_v25  ;;  %v984_v22 = vld [vmem:[%s19120_s5 + $0x1588] sm:$0xff]  ;;  %v16963_v23 = vcombine.low %v935_v10, %v951_v11  ;;  %v16965_v25 = vcombine.low %v936_v12, %v952_v13  ;;  %v1175_v10 = vld [vmem:[%s19120_s5 + $0x1b80] sm:$0xff] }
  0xb1   : > { %v16998_v28 = vcombine.high %v968_v21, %v984_v22  ;;  %v1160_v11 = vld [vmem:[%s19120_s5 + $0x1b08] sm:$0xff] }
  0xb2   : > { %v1176_v12 = vld [vmem:[%s19120_s5 + $0x1b88] sm:$0xff] }
  0xb3   : > { %12670 = vmatpush1.bf16.msra.mxu0 %v16771_v31  ;;  %12834 = vmatpush1.bf16.msra.mxu1 %v16773_v32  ;;  %v1000_v31 = vld [vmem:[%s19120_s5 + $0x1608] sm:$0xff] }
  0xb4   : > { %12671 = vmatprep.subr.bf16.mxu0 %v16804_v33  ;;  %12835 = vmatprep.subr.bf16.mxu1 %v16806_v34  ;;  %v1016_v32 = vld [vmem:[%s19120_s5 + $0x1688] sm:$0xff]  ;;  %v16995_v33 = vcombine.low %v967_v19, %v983_v20  ;;  %v16997_v34 = vcombine.low %v968_v21, %v984_v22  ;;  %v1207_v19 = vld [vmem:[%s19120_s5 + $0x1c80] sm:$0xff] }
  0xb5   : > { %v17030_v36 = vcombine.high %v1000_v31, %v1016_v32  ;;  %v17029_v43 = vcombine.low %v1000_v31, %v1016_v32  ;;  %v1192_v20 = vld [vmem:[%s19120_s5 + $0x1c08] sm:$0xff] }
  0xb6   : > { %v1208_v21 = vld [vmem:[%s19120_s5 + $0x1c88] sm:$0xff] }
  0xb7   : > { %12672 = vmatpush1.bf16.msra.mxu0 %v16803_v40  ;;  %12836 = vmatpush1.bf16.msra.mxu1 %v16805_v41  ;;  %v1032_v40 = vld [vmem:[%s19120_s5 + $0x1708] sm:$0xff] }
  0xb8   : > { %12682 = vmatprep.subr.bf16.mxu0 %v16836_v42  ;;  %12846 = vmatprep.subr.bf16.mxu1 %v16838_v44  ;;  %v1048_v41 = vld [vmem:[%s19120_s5 + $0x1788] sm:$0xff]  ;;  %v17027_v42 = vcombine.low %v999_v29, %v1015_v30  ;;  %v17060_v44 = vcombine.high %v1031_v38, %v1047_v39  ;;  %v1239_v29 = vld [vmem:[%s19120_s5 + $0x1d80] sm:$0xff] }
  0xb9   : > { %v17062_v45 = vcombine.high %v1032_v40, %v1048_v41  ;;  %v1224_v30 = vld [vmem:[%s19120_s5 + $0x1d08] sm:$0xff] }
  0xba   : > { %12674 = vmatmul.mubr.bf16.vlgmr.msra.gmra.mrb[0].mxu0 %v19259_v47  ;;  %12838 = vmatmul.mubr.bf16.vlgmr.msra.gmra.mrb[0].mxu1 %v19259_v47  ;;  %v1240_v31 = vld [vmem:[%s19120_s5 + $0x1d88] sm:$0xff] }
  0xbb   : > { %12683 = vmatpush1.bf16.msra.mxu0 %v16835_v51  ;;  %12847 = vmatpush1.bf16.msra.mxu1 %v16837_v24  ;;  %v17059_v51 = vcombine.low %v1031_v38, %v1047_v39  ;;  %v17061_v24 = vcombine.low %v1032_v40, %v1048_v41  ;;  %v1271_v38 = vld [vmem:[%s19120_s5 + $0x1e80] sm:$0xff]  ;;  %v1256_v39 = vld [vmem:[%s19120_s5 + $0x1e08] sm:$0xff] }
  0xbc   : > { %12684 = vmatprep.subr.bf16.mxu0 %v16868_v52  ;;  %12848 = vmatprep.subr.bf16.mxu1 %v16870_v54  ;;  %v17092_v52 = vcombine.high %v1063_v46, %v1079_v48  ;;  %v1095_v54 = vld [vmem:[%s19120_s5 + $0x1900] sm:$0xff]  ;;  %v1272_v40 = vld [vmem:[%s19120_s5 + $0x1e88] sm:$0xff] }
  0xbd   : > { %12714 = vmatprep.mubr.bf16.mxu0 %v19268_v27  ;;  %12878 = vmatprep.mubr.bf16.mxu1 %v19268_v27  ;;  %v17123_v5 = vcombine.low %v1095_v54, %v1111_v55  ;;  %v1303_v46 = vld [vmem:[%s19120_s5 + $0x1f80] sm:$0xff]  ;;  %v1288_v48 = vld [vmem:[%s19120_s5 + $0x1f08] sm:$0xff] }
  0xbf   : > { %12685 = vmatpush1.bf16.msra.mxu0 %v16867_v62  ;;  %12849 = vmatpush1.bf16.msra.mxu1 %v16869_v63  ;;  %v17093_v62 = vcombine.low %v1064_v49, %v1080_v50  ;;  %v17124_v63 = vcombine.high %v1095_v54, %v1111_v55  ;;  %v1304_v49 = vld [vmem:[%s19120_s5 + $0x1f88] sm:$0xff]  ;;  %v1335_v54 = vld [vmem:[%s19120_s5 + $0x2080] sm:$0xff] }
  0xc0   : > { %12686 = vmatprep.subr.bf16.mxu0 %v16900_v0  ;;  %12850 = vmatprep.subr.bf16.mxu1 %v16902_v1  ;;  %v17126_v0 = vcombine.high %v1096_v56, %v1112_v57  ;;  %v1127_v1 = vld [vmem:[%s19120_s5 + $0x1a00] sm:$0xff]  ;;  %v1320_v55 = vld [vmem:[%s19120_s5 + $0x2008] sm:$0xff] }
  0xc1   : > { %v17155_v13 = vcombine.low %v1127_v1, %v1143_v2 }
  0xc3   : > { %12687 = vmatpush1.bf16.msra.mxu0 %v16899_v6  ;;  %12851 = vmatpush1.bf16.msra.mxu1 %v16901_v7  ;;  %v17125_v6 = vcombine.low %v1096_v56, %v1112_v57  ;;  %v17156_v7 = vcombine.high %v1127_v1, %v1143_v2  ;;  %v1336_v56 = vld [vmem:[%s19120_s5 + $0x2088] sm:$0xff]  ;;  %v1367_v1 = vld [vmem:[%s19120_s5 + $0x2180] sm:$0xff]  ;;  %v19342_v2 = vcombine.high %v19259_v47, %v19259_v47 }
  0xc4   : > { %12688 = vmatprep.subr.bf16.mxu0 %v16932_v8  ;;  %12852 = vmatprep.subr.bf16.mxu1 %v16934_v9  ;;  %v17158_v8 = vcombine.high %v1128_v3, %v1144_v4  ;;  %v1159_v9 = vld [vmem:[%s19120_s5 + $0x1b00] sm:$0xff] }
  0xc5   : > { %v17187_v22 = vcombine.low %v1159_v9, %v1175_v10 }
  0xc7   : > { %12689 = vmatpush1.bf16.msra.mxu0 %v16931_v15  ;;  %12853 = vmatpush1.bf16.msra.mxu1 %v16933_v16  ;;  %v17157_v15 = vcombine.low %v1128_v3, %v1144_v4  ;;  %v17188_v16 = vcombine.high %v1159_v9, %v1175_v10  ;;  %v1352_v3 = vld [vmem:[%s19120_s5 + $0x2108] sm:$0xff]  ;;  %v1383_v9 = vld [vmem:[%s19120_s5 + $0x2200] sm:$0xff] }
  0xc8   : > { %12690 = vmatprep.subr.bf16.mxu0 %v16964_v17  ;;  %12854 = vmatprep.subr.bf16.mxu1 %v16966_v18  ;;  %v17190_v17 = vcombine.high %v1160_v11, %v1176_v12  ;;  %v1191_v18 = vld [vmem:[%s19120_s5 + $0x1c00] sm:$0xff]  ;;  %v1368_v4 = vld [vmem:[%s19120_s5 + $0x2188] sm:$0xff] }
  0xc9   : > { %v17219_v32 = vcombine.low %v1191_v18, %v1207_v19  ;;  %v1399_v10 = vld [vmem:[%s19120_s5 + $0x2280] sm:$0xff] }
  0xcb   : > { %12691 = vmatpush1.bf16.msra.mxu0 %v16963_v23  ;;  %12855 = vmatpush1.bf16.msra.mxu1 %v16965_v25  ;;  %v17189_v23 = vcombine.low %v1160_v11, %v1176_v12  ;;  %v17220_v25 = vcombine.high %v1191_v18, %v1207_v19  ;;  %v1384_v11 = vld [vmem:[%s19120_s5 + $0x2208] sm:$0xff]  ;;  %v1415_v18 = vld [vmem:[%s19120_s5 + $0x2300] sm:$0xff] }
  0xcc   : > { %12692 = vmatprep.subr.bf16.mxu0 %v16996_v26  ;;  %12856 = vmatprep.subr.bf16.mxu1 %v16998_v28  ;;  %v17222_v26 = vcombine.high %v1192_v20, %v1208_v21  ;;  %v1223_v28 = vld [vmem:[%s19120_s5 + $0x1d00] sm:$0xff]  ;;  %v1400_v12 = vld [vmem:[%s19120_s5 + $0x2288] sm:$0xff] }
  0xcd   : > { %v17251_v41 = vcombine.low %v1223_v28, %v1239_v29  ;;  %v1431_v19 = vld [vmem:[%s19120_s5 + $0x2380] sm:$0xff] }
  0xcf   : > { %12693 = vmatpush1.bf16.msra.mxu0 %v16995_v33  ;;  %12857 = vmatpush1.bf16.msra.mxu1 %v16997_v34  ;;  %v17221_v33 = vcombine.low %v1192_v20, %v1208_v21  ;;  %v17252_v34 = vcombine.high %v1223_v28, %v1239_v29  ;;  %v1416_v20 = vld [vmem:[%s19120_s5 + $0x2308] sm:$0xff]  ;;  %v1447_v28 = vld [vmem:[%s19120_s5 + $0x2400] sm:$0xff] }
  0xd0   : > { %12694 = vmatprep.subr.bf16.mxu0 %v17028_v35  ;;  %12858 = vmatprep.subr.bf16.mxu1 %v17030_v36  ;;  %v17254_v35 = vcombine.high %v1224_v30, %v1240_v31  ;;  %v1255_v36 = vld [vmem:[%s19120_s5 + $0x1e00] sm:$0xff]  ;;  %v1432_v21 = vld [vmem:[%s19120_s5 + $0x2388] sm:$0xff] }
  0xd1   : > { %v17283_v50 = vcombine.low %v1255_v36, %v1271_v38  ;;  %v1463_v29 = vld [vmem:[%s19120_s5 + $0x2480] sm:$0xff] }
  0xd3   : > { %12695 = vmatpush1.bf16.msra.mxu0 %v17027_v42  ;;  %12859 = vmatpush1.bf16.msra.mxu1 %v17029_v43  ;;  %v17253_v42 = vcombine.low %v1224_v30, %v1240_v31  ;;  %v17284_v43 = vcombine.high %v1255_v36, %v1271_v38  ;;  %v1448_v30 = vld [vmem:[%s19120_s5 + $0x2408] sm:$0xff]  ;;  %v1479_v36 = vld [vmem:[%s19120_s5 + $0x2500] sm:$0xff] }
  0xd4   : > { %12696 = vmatprep.subr.bf16.mxu0 %v17060_v44  ;;  %12860 = vmatprep.subr.bf16.mxu1 %v17062_v45  ;;  %v17286_v44 = vcombine.high %v1256_v39, %v1272_v40  ;;  %v1287_v45 = vld [vmem:[%s19120_s5 + $0x1f00] sm:$0xff]  ;;  %v1464_v31 = vld [vmem:[%s19120_s5 + $0x2488] sm:$0xff] }
  0xd5   : > { %v17315_v57 = vcombine.low %v1287_v45, %v1303_v46  ;;  %v1495_v38 = vld [vmem:[%s19120_s5 + $0x2580] sm:$0xff] }
  0xd7   : > { %12697 = vmatpush1.bf16.msra.mxu0 %v17059_v51  ;;  %12861 = vmatpush1.bf16.msra.mxu1 %v17061_v24  ;;  %v17285_v51 = vcombine.low %v1256_v39, %v1272_v40  ;;  %v17316_v24 = vcombine.high %v1287_v45, %v1303_v46  ;;  %v1480_v39 = vld [vmem:[%s19120_s5 + $0x2508] sm:$0xff]  ;;  %v1511_v45 = vld [vmem:[%s19120_s5 + $0x2600] sm:$0xff] }
  0xd8   : > { %12698 = vmatprep.subr.bf16.mxu0 %v17092_v52  ;;  %12862 = vmatprep.subr.bf16.mxu1 %v17094_v53  ;;  %v17318_v52 = vcombine.high %v1288_v48, %v1304_v49  ;;  %v1319_v53 = vld [vmem:[%s19120_s5 + $0x2000] sm:$0xff]  ;;  %v1496_v40 = vld [vmem:[%s19120_s5 + $0x2588] sm:$0xff] }
  0xd9   : > { %v1527_v46 = vld [vmem:[%s19120_s5 + $0x2680] sm:$0xff] }
  0xdb   : > { %12699 = vmatpush1.bf16.msra.mxu0 %v17091_v58  ;;  %12863 = vmatpush1.bf16.msra.mxu1 %v17093_v62  ;;  %v17317_v58 = vcombine.low %v1288_v48, %v1304_v49  ;;  %v17348_v62 = vcombine.high %v1319_v53, %v1335_v54  ;;  %v1512_v48 = vld [vmem:[%s19120_s5 + $0x2608] sm:$0xff] }
  0xdc   : > { %12700 = vmatprep.subr.bf16.mxu0 %v17124_v63  ;;  %12864 = vmatprep.subr.bf16.mxu1 %v17126_v0  ;;  %v17350_v63 = vcombine.high %v1320_v55, %v1336_v56  ;;  %v1351_v0 = vld [vmem:[%s19120_s5 + $0x2100] sm:$0xff]  ;;  %v1528_v49 = vld [vmem:[%s19120_s5 + $0x2688] sm:$0xff] }
  0xdf   : > { %12701 = vmatpush1.bf16.msra.mxu0 %v17123_v5  ;;  %12865 = vmatpush1.bf16.msra.mxu1 %v17125_v6  ;;  %v17347_v5 = vcombine.low %v1319_v53, %v1335_v54  ;;  %v17349_v6 = vcombine.low %v1320_v55, %v1336_v56  ;;  %v1543_v53 = vld [vmem:[%s19120_s5 + $0x2700] sm:$0xff]  ;;  %v1544_v55 = vld [vmem:[%s19120_s5 + $0x2708] sm:$0xff] }
  0xe0   : > { %12702 = vmatprep.subr.bf16.mxu0 %v17156_v7  ;;  %12866 = vmatprep.subr.bf16.mxu1 %v17158_v8  ;;  %v17380_v7 = vcombine.high %v1351_v0, %v1367_v1  ;;  %v17382_v8 = vcombine.high %v1352_v3, %v1368_v4  ;;  %v1559_v54 = vld [vmem:[%s19120_s5 + $0x2780] sm:$0xff]  ;;  %v1560_v56 = vld [vmem:[%s19120_s5 + $0x2788] sm:$0xff] }
  0xe3   : > { %12703 = vmatpush1.bf16.msra.mxu0 %v17155_v13  ;;  %12867 = vmatpush1.bf16.msra.mxu1 %v17157_v15  ;;  %v17379_v13 = vcombine.low %v1351_v0, %v1367_v1  ;;  %v17381_v15 = vcombine.low %v1352_v3, %v1368_v4  ;;  %v1575_v0 = vld [vmem:[%s19120_s5 + $0x2800] sm:$0xff]  ;;  %v1576_v3 = vld [vmem:[%s19120_s5 + $0x2808] sm:$0xff] }
  0xe4   : > { %12704 = vmatprep.subr.bf16.mxu0 %v17188_v16  ;;  %12868 = vmatprep.subr.bf16.mxu1 %v17190_v17  ;;  %v17412_v16 = vcombine.high %v1383_v9, %v1399_v10  ;;  %v17414_v17 = vcombine.high %v1384_v11, %v1400_v12  ;;  %v1591_v1 = vld [vmem:[%s19120_s5 + $0x2880] sm:$0xff]  ;;  %v1592_v4 = vld [vmem:[%s19120_s5 + $0x2888] sm:$0xff] }
  0xe7   : > { %12705 = vmatpush1.bf16.msra.mxu0 %v17187_v22  ;;  %12869 = vmatpush1.bf16.msra.mxu1 %v17189_v23  ;;  %v17411_v22 = vcombine.low %v1383_v9, %v1399_v10  ;;  %v17413_v23 = vcombine.low %v1384_v11, %v1400_v12  ;;  %v1607_v9 = vld [vmem:[%s19120_s5 + $0x2900] sm:$0xff]  ;;  %v1608_v11 = vld [vmem:[%s19120_s5 + $0x2908] sm:$0xff] }
  0xe8   : > { %12706 = vmatprep.subr.bf16.mxu0 %v17220_v25  ;;  %12870 = vmatprep.subr.bf16.mxu1 %v17222_v26  ;;  %v17444_v25 = vcombine.high %v1415_v18, %v1431_v19  ;;  %v17446_v26 = vcombine.high %v1416_v20, %v1432_v21  ;;  %v1623_v10 = vld [vmem:[%s19120_s5 + $0x2980] sm:$0xff]  ;;  %v1624_v12 = vld [vmem:[%s19120_s5 + $0x2988] sm:$0xff] }
  0xeb   : > { %12707 = vmatpush1.bf16.msra.mxu0 %v17219_v32  ;;  %12871 = vmatpush1.bf16.msra.mxu1 %v17221_v33  ;;  %v17443_v32 = vcombine.low %v1415_v18, %v1431_v19  ;;  %v17445_v33 = vcombine.low %v1416_v20, %v1432_v21  ;;  %v1639_v18 = vld [vmem:[%s19120_s5 + $0x2a00] sm:$0xff]  ;;  %v1640_v20 = vld [vmem:[%s19120_s5 + $0x2a08] sm:$0xff] }
  0xec   : > { %12708 = vmatprep.subr.bf16.mxu0 %v17252_v34  ;;  %12872 = vmatprep.subr.bf16.mxu1 %v17254_v35  ;;  %v17476_v34 = vcombine.high %v1447_v28, %v1463_v29  ;;  %v17478_v35 = vcombine.high %v1448_v30, %v1464_v31  ;;  %v1655_v19 = vld [vmem:[%s19120_s5 + $0x2a80] sm:$0xff]  ;;  %v1656_v21 = vld [vmem:[%s19120_s5 + $0x2a88] sm:$0xff] }
  0xef   : > { %12709 = vmatpush1.bf16.msra.mxu0 %v17251_v41  ;;  %12873 = vmatpush1.bf16.msra.mxu1 %v17253_v42  ;;  %v17475_v41 = vcombine.low %v1447_v28, %v1463_v29  ;;  %v17477_v42 = vcombine.low %v1448_v30, %v1464_v31  ;;  %v1671_v28 = vld [vmem:[%s19120_s5 + $0x2b00] sm:$0xff]  ;;  %v1672_v30 = vld [vmem:[%s19120_s5 + $0x2b08] sm:$0xff] }
  0xf0   : > { %12710 = vmatprep.subr.bf16.mxu0 %v17284_v43  ;;  %12874 = vmatprep.subr.bf16.mxu1 %v17286_v44  ;;  %v17508_v43 = vcombine.high %v1479_v36, %v1495_v38  ;;  %v17510_v44 = vcombine.high %v1480_v39, %v1496_v40  ;;  %v1687_v29 = vld [vmem:[%s19120_s5 + $0x2b80] sm:$0xff]  ;;  %v1688_v31 = vld [vmem:[%s19120_s5 + $0x2b88] sm:$0xff] }
  0xf3   : > { %12711 = vmatpush1.bf16.msra.mxu0 %v17283_v50  ;;  %12875 = vmatpush1.bf16.msra.mxu1 %v17285_v51  ;;  %v17507_v50 = vcombine.low %v1479_v36, %v1495_v38  ;;  %v17509_v51 = vcombine.low %v1480_v39, %v1496_v40  ;;  %v1703_v36 = vld [vmem:[%s19120_s5 + $0x2c00] sm:$0xff]  ;;  %v1704_v39 = vld [vmem:[%s19120_s5 + $0x2c08] sm:$0xff] }
  0xf4   : > { %12712 = vmatprep.subr.bf16.mxu0 %v17316_v24  ;;  %12876 = vmatprep.subr.bf16.mxu1 %v17318_v52  ;;  %v17540_v24 = vcombine.high %v1511_v45, %v1527_v46  ;;  %v17542_v52 = vcombine.high %v1512_v48, %v1528_v49  ;;  %v1719_v38 = vld [vmem:[%s19120_s5 + $0x2c80] sm:$0xff]  ;;  %v1720_v40 = vld [vmem:[%s19120_s5 + $0x2c88] sm:$0xff] }
  0xf7   : > { %12713 = vmatpush1.bf16.msra.mxu0 %v17315_v57  ;;  %12877 = vmatpush1.bf16.msra.mxu1 %v17317_v58  ;;  %v17539_v57 = vcombine.low %v1511_v45, %v1527_v46  ;;  %v17541_v58 = vcombine.low %v1512_v48, %v1528_v49  ;;  %v1735_v45 = vld [vmem:[%s19120_s5 + $0x2d00] sm:$0xff]  ;;  %v1736_v48 = vld [vmem:[%s19120_s5 + $0x2d08] sm:$0xff] }
  0xf8   : > { %12723 = vmatprep.subr.bf16.mxu0 %v17348_v62  ;;  %12887 = vmatprep.subr.bf16.mxu1 %v17350_v63  ;;  %v17572_v62 = vcombine.high %v1543_v53, %v1559_v54  ;;  %v17574_v63 = vcombine.high %v1544_v55, %v1560_v56  ;;  %v1751_v46 = vld [vmem:[%s19120_s5 + $0x2d80] sm:$0xff]  ;;  %v1752_v49 = vld [vmem:[%s19120_s5 + $0x2d88] sm:$0xff] }
  0xfa   : > { %12715 = vmatmul.mubr.bf16.vlgmr.msra.gmra.mrb[0].mxu0 %v19342_v2  ;;  %12879 = vmatmul.mubr.bf16.vlgmr.msra.gmra.mrb[0].mxu1 %v19342_v2 }
  0xfb   : > { %12724 = vmatpush1.bf16.msra.mxu0 %v17347_v5  ;;  %12888 = vmatpush1.bf16.msra.mxu1 %v17349_v6  ;;  %v17571_v5 = vcombine.low %v1543_v53, %v1559_v54  ;;  %v17573_v6 = vcombine.low %v1544_v55, %v1560_v56  ;;  %v1767_v53 = vld [vmem:[%s19120_s5 + $0x2e00] sm:$0xff]  ;;  %v1768_v55 = vld [vmem:[%s19120_s5 + $0x2e08] sm:$0xff] }
  0xfc   : > { %12725 = vmatprep.subr.bf16.mxu0 %v17380_v7  ;;  %12889 = vmatprep.subr.bf16.mxu1 %v17382_v8  ;;  %v17604_v7 = vcombine.high %v1575_v0, %v1591_v1  ;;  %v17606_v8 = vcombine.high %v1576_v3, %v1592_v4  ;;  %v1783_v54 = vld [vmem:[%s19120_s5 + $0x2e80] sm:$0xff]  ;;  %v1784_v56 = vld [vmem:[%s19120_s5 + $0x2e88] sm:$0xff] }
  0xfd   : > { %12755 = vmatprep.mubr.bf16.mxu0 %v19274_v60  ;;  %12919 = vmatprep.mubr.bf16.mxu1 %v19274_v60 }
  0xff   : > { %12726 = vmatpush1.bf16.msra.mxu0 %v17379_v13  ;;  %12890 = vmatpush1.bf16.msra.mxu1 %v17381_v15  ;;  %v17603_v13 = vcombine.low %v1575_v0, %v1591_v1  ;;  %v17605_v15 = vcombine.low %v1576_v3, %v1592_v4  ;;  %v1799_v0 = vld [vmem:[%s19120_s5 + $0x2f00] sm:$0xff]  ;;  %v1800_v3 = vld [vmem:[%s19120_s5 + $0x2f08] sm:$0xff] }
 0x100   : > { %12727 = vmatprep.subr.bf16.mxu0 %v17412_v16  ;;  %12891 = vmatprep.subr.bf16.mxu1 %v17414_v17  ;;  %v17636_v16 = vcombine.high %v1607_v9, %v1623_v10  ;;  %v17638_v17 = vcombine.high %v1608_v11, %v1624_v12  ;;  %v1815_v1 = vld [vmem:[%s19120_s5 + $0x2f80] sm:$0xff]  ;;  %v1816_v4 = vld [vmem:[%s19120_s5 + $0x2f88] sm:$0xff] }
 0x103   : > { %12728 = vmatpush1.bf16.msra.mxu0 %v17411_v22  ;;  %12892 = vmatpush1.bf16.msra.mxu1 %v17413_v23  ;;  %v17635_v22 = vcombine.low %v1607_v9, %v1623_v10  ;;  %v17637_v23 = vcombine.low %v1608_v11, %v1624_v12  ;;  %v1831_v9 = vld [vmem:[%s19120_s5 + $0x3000] sm:$0xff]  ;;  %v1832_v11 = vld [vmem:[%s19120_s5 + $0x3008] sm:$0xff] }
 0x104   : > { %12729 = vmatprep.subr.bf16.mxu0 %v17444_v25  ;;  %12893 = vmatprep.subr.bf16.mxu1 %v17446_v26  ;;  %v17668_v25 = vcombine.high %v1639_v18, %v1655_v19  ;;  %v17670_v26 = vcombine.high %v1640_v20, %v1656_v21  ;;  %v1847_v10 = vld [vmem:[%s19120_s5 + $0x3080] sm:$0xff]  ;;  %v1848_v12 = vld [vmem:[%s19120_s5 + $0x3088] sm:$0xff] }
 0x107   : > { %12730 = vmatpush1.bf16.msra.mxu0 %v17443_v32  ;;  %12894 = vmatpush1.bf16.msra.mxu1 %v17445_v33  ;;  %v17667_v32 = vcombine.low %v1639_v18, %v1655_v19  ;;  %v17669_v33 = vcombine.low %v1640_v20, %v1656_v21  ;;  %v1863_v18 = vld [vmem:[%s19120_s5 + $0x3100] sm:$0xff]  ;;  %v1864_v20 = vld [vmem:[%s19120_s5 + $0x3108] sm:$0xff] }
 0x108   : > { %12731 = vmatprep.subr.bf16.mxu0 %v17476_v34  ;;  %12895 = vmatprep.subr.bf16.mxu1 %v17478_v35  ;;  %v17700_v34 = vcombine.high %v1671_v28, %v1687_v29  ;;  %v17702_v35 = vcombine.high %v1672_v30, %v1688_v31  ;;  %v1879_v19 = vld [vmem:[%s19120_s5 + $0x3180] sm:$0xff]  ;;  %v1880_v21 = vld [vmem:[%s19120_s5 + $0x3188] sm:$0xff] }
 0x10b   : > { %12732 = vmatpush1.bf16.msra.mxu0 %v17475_v41  ;;  %12896 = vmatpush1.bf16.msra.mxu1 %v17477_v42  ;;  %v17699_v41 = vcombine.low %v1671_v28, %v1687_v29  ;;  %v17701_v42 = vcombine.low %v1672_v30, %v1688_v31  ;;  %v1895_v28 = vld [vmem:[%s19120_s5 + $0x3200] sm:$0xff]  ;;  %v19418_v30 = vcombine.high %v19274_v60, %v19274_v60  ;;  %v1896_v31 = vld [vmem:[%s19120_s5 + $0x3208] sm:$0xff] }
 0x10c   : > { %12733 = vmatprep.subr.bf16.mxu0 %v17508_v43  ;;  %12897 = vmatprep.subr.bf16.mxu1 %v17510_v44  ;;  %v17732_v43 = vcombine.high %v1703_v36, %v1719_v38  ;;  %v17734_v44 = vcombine.high %v1704_v39, %v1720_v40  ;;  %v1911_v29 = vld [vmem:[%s19120_s5 + $0x3280] sm:$0xff] }
 0x10f   : > { %12734 = vmatpush1.bf16.msra.mxu0 %v17507_v50  ;;  %12898 = vmatpush1.bf16.msra.mxu1 %v17509_v51  ;;  %v17731_v50 = vcombine.low %v1703_v36, %v1719_v38  ;;  %v17733_v51 = vcombine.low %v1704_v39, %v1720_v40  ;;  %v1927_v38 = vld [vmem:[%s19120_s5 + $0x3300] sm:$0xff]  ;;  %v1928_v40 = vld [vmem:[%s19120_s5 + $0x3308] sm:$0xff] }
 0x110   : > { %12735 = vmatprep.subr.bf16.mxu0 %v17540_v24  ;;  %12899 = vmatprep.subr.bf16.mxu1 %v17542_v52  ;;  %v17764_v24 = vcombine.high %v1735_v45, %v1751_v46  ;;  %v17766_v52 = vcombine.high %v1736_v48, %v1752_v49  ;;  %v1943_v39 = vld [vmem:[%s19120_s5 + $0x3380] sm:$0xff] }
 0x113   : > { %12736 = vmatpush1.bf16.msra.mxu0 %v17539_v57  ;;  %12900 = vmatpush1.bf16.msra.mxu1 %v17541_v58  ;;  %v17763_v57 = vcombine.low %v1735_v45, %v1751_v46  ;;  %v17765_v58 = vcombine.low %v1736_v48, %v1752_v49  ;;  %v1959_v46 = vld [vmem:[%s19120_s5 + $0x3400] sm:$0xff]  ;;  %v1960_v49 = vld [vmem:[%s19120_s5 + $0x3408] sm:$0xff] }
 0x114   : > { %12737 = vmatprep.subr.bf16.mxu0 %v17572_v62  ;;  %12901 = vmatprep.subr.bf16.mxu1 %v17574_v63  ;;  %v17796_v62 = vcombine.high %v1767_v53, %v1783_v54  ;;  %v17798_v63 = vcombine.high %v1768_v55, %v1784_v56  ;;  %v1975_v48 = vld [vmem:[%s19120_s5 + $0x3480] sm:$0xff] }
 0x117   : > { %12738 = vmatpush1.bf16.msra.mxu0 %v17571_v5  ;;  %12902 = vmatpush1.bf16.msra.mxu1 %v17573_v6  ;;  %v17795_v5 = vcombine.low %v1767_v53, %v1783_v54  ;;  %v17797_v6 = vcombine.low %v1768_v55, %v1784_v56  ;;  %v1991_v54 = vld [vmem:[%s19120_s5 + $0x3500] sm:$0xff]  ;;  %v1992_v56 = vld [vmem:[%s19120_s5 + $0x3508] sm:$0xff] }
 0x118   : > { %12739 = vmatprep.subr.bf16.mxu0 %v17604_v7  ;;  %12903 = vmatprep.subr.bf16.mxu1 %v17606_v8  ;;  %v17828_v7 = vcombine.high %v1799_v0, %v1815_v1  ;;  %v17830_v8 = vcombine.high %v1800_v3, %v1816_v4  ;;  %v2007_v55 = vld [vmem:[%s19120_s5 + $0x3580] sm:$0xff] }
 0x11b   : > { %12740 = vmatpush1.bf16.msra.mxu0 %v17603_v13  ;;  %12904 = vmatpush1.bf16.msra.mxu1 %v17605_v15  ;;  %v17827_v13 = vcombine.low %v1799_v0, %v1815_v1  ;;  %v17829_v15 = vcombine.low %v1800_v3, %v1816_v4  ;;  %v2023_v1 = vld [vmem:[%s19120_s5 + $0x3600] sm:$0xff]  ;;  %v2024_v4 = vld [vmem:[%s19120_s5 + $0x3608] sm:$0xff] }
 0x11c   : > { %12741 = vmatprep.subr.bf16.mxu0 %v17636_v16  ;;  %12905 = vmatprep.subr.bf16.mxu1 %v17638_v17  ;;  %v17860_v16 = vcombine.high %v1831_v9, %v1847_v10  ;;  %v17862_v17 = vcombine.high %v1832_v11, %v1848_v12  ;;  %v2039_v3 = vld [vmem:[%s19120_s5 + $0x3680] sm:$0xff] }
 0x11f   : > { %12742 = vmatpush1.bf16.msra.mxu0 %v17635_v22  ;;  %12906 = vmatpush1.bf16.msra.mxu1 %v17637_v23  ;;  %v17859_v22 = vcombine.low %v1831_v9, %v1847_v10  ;;  %v17861_v23 = vcombine.low %v1832_v11, %v1848_v12  ;;  %v2055_v10 = vld [vmem:[%s19120_s5 + $0x3700] sm:$0xff]  ;;  %v2056_v12 = vld [vmem:[%s19120_s5 + $0x3708] sm:$0xff] }
 0x120   : > { %12743 = vmatprep.subr.bf16.mxu0 %v17668_v25  ;;  %12907 = vmatprep.subr.bf16.mxu1 %v17670_v26  ;;  %v17892_v25 = vcombine.high %v1863_v18, %v1879_v19  ;;  %v17894_v26 = vcombine.high %v1864_v20, %v1880_v21  ;;  %v2071_v11 = vld [vmem:[%s19120_s5 + $0x3780] sm:$0xff] }
 0x123   : > { %12744 = vmatpush1.bf16.msra.mxu0 %v17667_v32  ;;  %12908 = vmatpush1.bf16.msra.mxu1 %v17669_v33  ;;  %v1912_v32 = vld [vmem:[%s19120_s5 + $0x3288] sm:$0xff]  ;;  %v17891_v33 = vcombine.low %v1863_v18, %v1879_v19  ;;  %v2087_v19 = vld [vmem:[%s19120_s5 + $0x3800] sm:$0xff] }
 0x124   : > { %12745 = vmatprep.subr.bf16.mxu0 %v17700_v34  ;;  %12909 = vmatprep.subr.bf16.mxu1 %v17702_v35  ;;  %v17893_v34 = vcombine.low %v1864_v20, %v1880_v21  ;;  %v17924_v35 = vcombine.high %v1895_v28, %v1911_v29  ;;  %v17926_v36 = vcombine.high %v1896_v31, %v1912_v32  ;;  %v2103_v20 = vld [vmem:[%s19120_s5 + $0x3880] sm:$0xff]  ;;  %v2088_v21 = vld [vmem:[%s19120_s5 + $0x3808] sm:$0xff] }
 0x127   : > { %12746 = vmatpush1.bf16.msra.mxu0 %v17699_v41  ;;  %12910 = vmatpush1.bf16.msra.mxu1 %v17701_v42  ;;  %v1944_v41 = vld [vmem:[%s19120_s5 + $0x3388] sm:$0xff]  ;;  %v17923_v42 = vcombine.low %v1895_v28, %v1911_v29  ;;  %v2119_v29 = vld [vmem:[%s19120_s5 + $0x3900] sm:$0xff] }
 0x128   : > { %12747 = vmatprep.subr.bf16.mxu0 %v17732_v43  ;;  %12911 = vmatprep.subr.bf16.mxu1 %v17734_v44  ;;  %v17925_v43 = vcombine.low %v1896_v31, %v1912_v32  ;;  %v17956_v44 = vcombine.high %v1927_v38, %v1943_v39  ;;  %v17958_v45 = vcombine.high %v1928_v40, %v1944_v41  ;;  %v2135_v31 = vld [vmem:[%s19120_s5 + $0x3980] sm:$0xff]  ;;  %v2120_v32 = vld [vmem:[%s19120_s5 + $0x3908] sm:$0xff] }
 0x12b   : > { %12748 = vmatpush1.bf16.msra.mxu0 %v17731_v50  ;;  %12912 = vmatpush1.bf16.msra.mxu1 %v17733_v51  ;;  %v1976_v50 = vld [vmem:[%s19120_s5 + $0x3488] sm:$0xff]  ;;  %v17955_v51 = vcombine.low %v1927_v38, %v1943_v39  ;;  %v2151_v39 = vld [vmem:[%s19120_s5 + $0x3a00] sm:$0xff] }
 0x12c   : > { %12749 = vmatprep.subr.bf16.mxu0 %v17764_v24  ;;  %12913 = vmatprep.subr.bf16.mxu1 %v17766_v52  ;;  %v17957_v24 = vcombine.low %v1928_v40, %v1944_v41  ;;  %v17988_v52 = vcombine.high %v1959_v46, %v1975_v48  ;;  %v17990_v53 = vcombine.high %v1960_v49, %v1976_v50  ;;  %v2167_v40 = vld [vmem:[%s19120_s5 + $0x3a80] sm:$0xff]  ;;  %v2152_v41 = vld [vmem:[%s19120_s5 + $0x3a08] sm:$0xff] }
 0x12f   : > { %12750 = vmatpush1.bf16.msra.mxu0 %v17763_v57  ;;  %12914 = vmatpush1.bf16.msra.mxu1 %v17765_v58  ;;  %v2008_v57 = vld [vmem:[%s19120_s5 + $0x3588] sm:$0xff]  ;;  %v17987_v58 = vcombine.low %v1959_v46, %v1975_v48  ;;  %v2183_v48 = vld [vmem:[%s19120_s5 + $0x3b00] sm:$0xff] }
 0x130   : > { %12751 = vmatprep.subr.bf16.mxu0 %v17796_v62  ;;  %12915 = vmatprep.subr.bf16.mxu1 %v17798_v63  ;;  %v17989_v62 = vcombine.low %v1960_v49, %v1976_v50  ;;  %v18020_v63 = vcombine.high %v1991_v54, %v2007_v55  ;;  %v18022_v0 = vcombine.high %v1992_v56, %v2008_v57  ;;  %v2199_v49 = vld [vmem:[%s19120_s5 + $0x3b80] sm:$0xff]  ;;  %v2184_v50 = vld [vmem:[%s19120_s5 + $0x3b08] sm:$0xff] }
 0x133   : > { %12752 = vmatpush1.bf16.msra.mxu0 %v17795_v5  ;;  %12916 = vmatpush1.bf16.msra.mxu1 %v17797_v6  ;;  %v2040_v5 = vld [vmem:[%s19120_s5 + $0x3688] sm:$0xff]  ;;  %v18019_v6 = vcombine.low %v1991_v54, %v2007_v55  ;;  %v2215_v55 = vld [vmem:[%s19120_s5 + $0x3c00] sm:$0xff] }
 0x134   : > { %12753 = vmatprep.subr.bf16.mxu0 %v17828_v7  ;;  %12917 = vmatprep.subr.bf16.mxu1 %v17830_v8  ;;  %v18021_v7 = vcombine.low %v1992_v56, %v2008_v57  ;;  %v18052_v8 = vcombine.high %v2023_v1, %v2039_v3  ;;  %v18054_v9 = vcombine.high %v2024_v4, %v2040_v5  ;;  %v2231_v56 = vld [vmem:[%s19120_s5 + $0x3c80] sm:$0xff]  ;;  %v2216_v57 = vld [vmem:[%s19120_s5 + $0x3c08] sm:$0xff] }
 0x137   : > { %12754 = vmatpush1.bf16.msra.mxu0 %v17827_v13  ;;  %12918 = vmatpush1.bf16.msra.mxu1 %v17829_v15  ;;  %v2072_v13 = vld [vmem:[%s19120_s5 + $0x3788] sm:$0xff]  ;;  %v18051_v15 = vcombine.low %v2023_v1, %v2039_v3  ;;  %v2247_v3 = vld [vmem:[%s19120_s5 + $0x3d00] sm:$0xff] }
 0x138   : > { %12764 = vmatprep.subr.bf16.mxu0 %v17860_v16  ;;  %12928 = vmatprep.subr.bf16.mxu1 %v17862_v17  ;;  %v18053_v16 = vcombine.low %v2024_v4, %v2040_v5  ;;  %v18084_v17 = vcombine.high %v2055_v10, %v2071_v11  ;;  %v18086_v18 = vcombine.high %v2056_v12, %v2072_v13  ;;  %v2263_v4 = vld [vmem:[%s19120_s5 + $0x3d80] sm:$0xff]  ;;  %v2248_v5 = vld [vmem:[%s19120_s5 + $0x3d08] sm:$0xff] }
 0x13a   : > { %12756 = vmatmul.mubr.bf16.vlgmr.msra.gmra.mrb[0].mxu0 %v19277_v61  ;;  %12920 = vmatmul.mubr.bf16.vlgmr.msra.gmra.mrb[0].mxu1 %v19277_v61 }
 0x13b   : > { %12765 = vmatpush1.bf16.msra.mxu0 %v17859_v22  ;;  %12929 = vmatpush1.bf16.msra.mxu1 %v17861_v23  ;;  %v2104_v22 = vld [vmem:[%s19120_s5 + $0x3888] sm:$0xff]  ;;  %v18083_v23 = vcombine.low %v2055_v10, %v2071_v11  ;;  %v2279_v11 = vld [vmem:[%s19120_s5 + $0x3e00] sm:$0xff] }
 0x13c   : > { %12766 = vmatprep.subr.bf16.mxu0 %v17892_v25  ;;  %12930 = vmatprep.subr.bf16.mxu1 %v17894_v26  ;;  %v18085_v25 = vcombine.low %v2056_v12, %v2072_v13  ;;  %v18116_v26 = vcombine.high %v2087_v19, %v2103_v20  ;;  %v18118_v28 = vcombine.high %v2088_v21, %v2104_v22  ;;  %v2295_v12 = vld [vmem:[%s19120_s5 + $0x3e80] sm:$0xff]  ;;  %v2280_v13 = vld [vmem:[%s19120_s5 + $0x3e08] sm:$0xff] }
 0x13d   : > { %12796 = vmatprep.mubr.bf16.mxu0 %v19418_v30  ;;  %12960 = vmatprep.mubr.bf16.mxu1 %v19418_v30 }
 0x13f   : > { %12767 = vmatpush1.bf16.msra.mxu0 %v17891_v33  ;;  %12931 = vmatpush1.bf16.msra.mxu1 %v17893_v34  ;;  %v2136_v33 = vld [vmem:[%s19120_s5 + $0x3988] sm:$0xff]  ;;  %v18115_v34 = vcombine.low %v2087_v19, %v2103_v20  ;;  %v2311_v20 = vld [vmem:[%s19120_s5 + $0x3f00] sm:$0xff] }
 0x140   : > { %12768 = vmatprep.subr.bf16.mxu0 %v17924_v35  ;;  %12932 = vmatprep.subr.bf16.mxu1 %v17926_v36  ;;  %v18117_v35 = vcombine.low %v2088_v21, %v2104_v22  ;;  %v18148_v36 = vcombine.high %v2119_v29, %v2135_v31  ;;  %v18150_v38 = vcombine.high %v2120_v32, %v2136_v33  ;;  %v2327_v21 = vld [vmem:[%s19120_s5 + $0x3f80] sm:$0xff]  ;;  %v2312_v22 = vld [vmem:[%s19120_s5 + $0x3f08] sm:$0xff] }
 0x143   : > { %12769 = vmatpush1.bf16.msra.mxu0 %v17923_v42  ;;  %12933 = vmatpush1.bf16.msra.mxu1 %v17925_v43  ;;  %v2168_v42 = vld [vmem:[%s19120_s5 + $0x3a88] sm:$0xff]  ;;  %v18147_v43 = vcombine.low %v2119_v29, %v2135_v31  ;;  %v297_v31 = vld [vmem:[%s19120_s5 + $0x10] sm:$0xff] }
 0x144   : > { %12770 = vmatprep.subr.bf16.mxu0 %v17956_v44  ;;  %12934 = vmatprep.subr.bf16.mxu1 %v17958_v45  ;;  %v18149_v44 = vcombine.low %v2120_v32, %v2136_v33  ;;  %v18180_v45 = vcombine.high %v2151_v39, %v2167_v40  ;;  %v18182_v46 = vcombine.high %v2152_v41, %v2168_v42  ;;  %v313_v32 = vld [vmem:[%s19120_s5 + $0x90] sm:$0xff]  ;;  %v298_v33 = vld [vmem:[%s19120_s5 + $0x18] sm:$0xff] }
 0x147   : > { %12771 = vmatpush1.bf16.msra.mxu0 %v17955_v51  ;;  %12935 = vmatpush1.bf16.msra.mxu1 %v17957_v24  ;;  %v2200_v51 = vld [vmem:[%s19120_s5 + $0x3b88] sm:$0xff]  ;;  %v18179_v24 = vcombine.low %v2151_v39, %v2167_v40  ;;  %v329_v40 = vld [vmem:[%s19120_s5 + $0x110] sm:$0xff] }
 0x148   : > { %12772 = vmatprep.subr.bf16.mxu0 %v17988_v52  ;;  %12936 = vmatprep.subr.bf16.mxu1 %v17990_v53  ;;  %v18181_v52 = vcombine.low %v2152_v41, %v2168_v42  ;;  %v18212_v53 = vcombine.high %v2183_v48, %v2199_v49  ;;  %v18214_v54 = vcombine.high %v2184_v50, %v2200_v51  ;;  %v345_v41 = vld [vmem:[%s19120_s5 + $0x190] sm:$0xff] }
 0x149   : > { %v19486_v42 = vcombine.high %v19277_v61, %v19277_v61 }
 0x14b   : > { %12773 = vmatpush1.bf16.msra.mxu0 %v17987_v58  ;;  %12937 = vmatpush1.bf16.msra.mxu1 %v17989_v62  ;;  %v2232_v58 = vld [vmem:[%s19120_s5 + $0x3c88] sm:$0xff]  ;;  %v18211_v62 = vcombine.low %v2183_v48, %v2199_v49  ;;  %v16360_v48 = vcombine.high %v329_v40, %v345_v41 }
 0x14c   : > { %12774 = vmatprep.subr.bf16.mxu0 %v18020_v63  ;;  %12938 = vmatprep.subr.bf16.mxu1 %v18022_v0  ;;  %v18213_v63 = vcombine.low %v2184_v50, %v2200_v51  ;;  %v18244_v0 = vcombine.high %v2215_v55, %v2231_v56  ;;  %v18246_v1 = vcombine.high %v2216_v57, %v2232_v58  ;;  %v361_v50 = vld [vmem:[%s19120_s5 + $0x210] sm:$0xff] }
 0x14d   : > { %v377_v51 = vld [vmem:[%s19120_s5 + $0x290] sm:$0xff] }
 0x14f   : > { %12775 = vmatpush1.bf16.msra.mxu0 %v18019_v6  ;;  %12939 = vmatpush1.bf16.msra.mxu1 %v18021_v7  ;;  %v2264_v6 = vld [vmem:[%s19120_s5 + $0x3d88] sm:$0xff]  ;;  %v18243_v7 = vcombine.low %v2215_v55, %v2231_v56  ;;  %v16392_v55 = vcombine.high %v361_v50, %v377_v51 }
 0x150   : > { %12776 = vmatprep.subr.bf16.mxu0 %v18052_v8  ;;  %12940 = vmatprep.subr.bf16.mxu1 %v18054_v9  ;;  %v18245_v8 = vcombine.low %v2216_v57, %v2232_v58  ;;  %v18276_v9 = vcombine.high %v2247_v3, %v2263_v4  ;;  %v18278_v10 = vcombine.high %v2248_v5, %v2264_v6  ;;  %v393_v57 = vld [vmem:[%s19120_s5 + $0x310] sm:$0xff] }
 0x151   : > { %v409_v58 = vld [vmem:[%s19120_s5 + $0x390] sm:$0xff] }
 0x153   : > { %12777 = vmatpush1.bf16.msra.mxu0 %v18051_v15  ;;  %12941 = vmatpush1.bf16.msra.mxu1 %v18053_v16  ;;  %v2296_v15 = vld [vmem:[%s19120_s5 + $0x3e88] sm:$0xff]  ;;  %v18275_v16 = vcombine.low %v2247_v3, %v2263_v4  ;;  %v16424_v3 = vcombine.high %v393_v57, %v409_v58 }
 0x154   : > { %12778 = vmatprep.subr.bf16.mxu0 %v18084_v17  ;;  %12942 = vmatprep.subr.bf16.mxu1 %v18086_v18  ;;  %v18277_v17 = vcombine.low %v2248_v5, %v2264_v6  ;;  %v18308_v18 = vcombine.high %v2279_v11, %v2295_v12  ;;  %v18310_v19 = vcombine.high %v2280_v13, %v2296_v15  ;;  %v425_v5 = vld [vmem:[%s19120_s5 + $0x410] sm:$0xff] }
 0x155   : > { %v441_v6 = vld [vmem:[%s19120_s5 + $0x490] sm:$0xff] }
 0x157   : > { %12779 = vmatpush1.bf16.msra.mxu0 %v18083_v23  ;;  %12943 = vmatpush1.bf16.msra.mxu1 %v18085_v25  ;;  %v2328_v23 = vld [vmem:[%s19120_s5 + $0x3f88] sm:$0xff]  ;;  %v18307_v25 = vcombine.low %v2279_v11, %v2295_v12  ;;  %v16456_v11 = vcombine.high %v425_v5, %v441_v6 }
 0x158   : > { %12780 = vmatprep.subr.bf16.mxu0 %v18116_v26  ;;  %12944 = vmatprep.subr.bf16.mxu1 %v18118_v28  ;;  %v18309_v26 = vcombine.low %v2280_v13, %v2296_v15  ;;  %v18340_v28 = vcombine.high %v2311_v20, %v2327_v21  ;;  %v18342_v29 = vcombine.high %v2312_v22, %v2328_v23  ;;  %v457_v13 = vld [vmem:[%s19120_s5 + $0x510] sm:$0xff] }
 0x159   : > { %v473_v15 = vld [vmem:[%s19120_s5 + $0x590] sm:$0xff] }
 0x15b   : > { %12781 = vmatpush1.bf16.msra.mxu0 %v18115_v34  ;;  %12945 = vmatpush1.bf16.msra.mxu1 %v18117_v35  ;;  %v314_v34 = vld [vmem:[%s19120_s5 + $0x98] sm:$0xff]  ;;  %v18339_v35 = vcombine.low %v2311_v20, %v2327_v21  ;;  %v16488_v20 = vcombine.high %v457_v13, %v473_v15 }
 0x15c   : > { %12782 = vmatprep.subr.bf16.mxu0 %v18148_v36  ;;  %12946 = vmatprep.subr.bf16.mxu1 %v18150_v38  ;;  %v18341_v36 = vcombine.low %v2312_v22, %v2328_v23  ;;  %v16328_v38 = vcombine.high %v297_v31, %v313_v32  ;;  %v16330_v39 = vcombine.high %v298_v33, %v314_v34  ;;  %v489_v22 = vld [vmem:[%s19120_s5 + $0x610] sm:$0xff] }
 0x15d   : > { %v505_v23 = vld [vmem:[%s19120_s5 + $0x690] sm:$0xff] }
 0x15f   : > { %12783 = vmatpush1.bf16.msra.mxu0 %v18147_v43  ;;  %12947 = vmatpush1.bf16.msra.mxu1 %v18149_v44  ;;  %v330_v43 = vld [vmem:[%s19120_s5 + $0x118] sm:$0xff] }
 0x160   : > { %12784 = vmatprep.subr.bf16.mxu0 %v18180_v45  ;;  %12948 = vmatprep.subr.bf16.mxu1 %v18182_v46  ;;  %v346_v44 = vld [vmem:[%s19120_s5 + $0x198] sm:$0xff]  ;;  %v16327_v45 = vcombine.low %v297_v31, %v313_v32  ;;  %v16329_v46 = vcombine.low %v298_v33, %v314_v34  ;;  %v16520_v31 = vcombine.high %v489_v22, %v505_v23  ;;  %v521_v33 = vld [vmem:[%s19120_s5 + $0x710] sm:$0xff] }
 0x161   : > { %v16362_v49 = vcombine.high %v330_v43, %v346_v44  ;;  %v537_v34 = vld [vmem:[%s19120_s5 + $0x790] sm:$0xff] }
 0x163   : > { %12785 = vmatpush1.bf16.msra.mxu0 %v18179_v24  ;;  %12949 = vmatpush1.bf16.msra.mxu1 %v18181_v52  ;;  %v362_v24 = vld [vmem:[%s19120_s5 + $0x218] sm:$0xff] }
 0x164   : > { %12786 = vmatprep.subr.bf16.mxu0 %v18212_v53  ;;  %12950 = vmatprep.subr.bf16.mxu1 %v18214_v54  ;;  %v378_v52 = vld [vmem:[%s19120_s5 + $0x298] sm:$0xff]  ;;  %v16359_v53 = vcombine.low %v329_v40, %v345_v41  ;;  %v16361_v54 = vcombine.low %v330_v43, %v346_v44  ;;  %v16552_v40 = vcombine.high %v521_v33, %v537_v34  ;;  %v553_v43 = vld [vmem:[%s19120_s5 + $0x810] sm:$0xff] }
 0x165   : > { %v16394_v56 = vcombine.high %v362_v24, %v378_v52  ;;  %v569_v44 = vld [vmem:[%s19120_s5 + $0x890] sm:$0xff] }
 0x167   : > { %12787 = vmatpush1.bf16.msra.mxu0 %v18211_v62  ;;  %12951 = vmatpush1.bf16.msra.mxu1 %v18213_v63  ;;  %v394_v62 = vld [vmem:[%s19120_s5 + $0x318] sm:$0xff] }
 0x168   : > { %12788 = vmatprep.subr.bf16.mxu0 %v18244_v0  ;;  %12952 = vmatprep.subr.bf16.mxu1 %v18246_v1  ;;  %v410_v63 = vld [vmem:[%s19120_s5 + $0x398] sm:$0xff]  ;;  %v16391_v0 = vcombine.low %v361_v50, %v377_v51  ;;  %v16393_v1 = vcombine.low %v362_v24, %v378_v52  ;;  %v16584_v50 = vcombine.high %v553_v43, %v569_v44  ;;  %v585_v24 = vld [vmem:[%s19120_s5 + $0x910] sm:$0xff] }
 0x169   : > { %v16426_v4 = vcombine.high %v394_v62, %v410_v63  ;;  %v601_v52 = vld [vmem:[%s19120_s5 + $0x990] sm:$0xff] }
 0x16b   : > { %12789 = vmatpush1.bf16.msra.mxu0 %v18243_v7  ;;  %12953 = vmatpush1.bf16.msra.mxu1 %v18245_v8  ;;  %v426_v7 = vld [vmem:[%s19120_s5 + $0x418] sm:$0xff] }
 0x16c   : > { %12790 = vmatprep.subr.bf16.mxu0 %v18276_v9  ;;  %12954 = vmatprep.subr.bf16.mxu1 %v18278_v10  ;;  %v442_v8 = vld [vmem:[%s19120_s5 + $0x498] sm:$0xff]  ;;  %v16423_v9 = vcombine.low %v393_v57, %v409_v58  ;;  %v16425_v10 = vcombine.low %v394_v62, %v410_v63  ;;  %v16616_v57 = vcombine.high %v585_v24, %v601_v52  ;;  %v617_v62 = vld [vmem:[%s19120_s5 + $0xa10] sm:$0xff] }
 0x16d   : > { %v16458_v12 = vcombine.high %v426_v7, %v442_v8  ;;  %v633_v63 = vld [vmem:[%s19120_s5 + $0xa90] sm:$0xff] }
 0x16f   : > { %12791 = vmatpush1.bf16.msra.mxu0 %v18275_v16  ;;  %12955 = vmatpush1.bf16.msra.mxu1 %v18277_v17  ;;  %v458_v16 = vld [vmem:[%s19120_s5 + $0x518] sm:$0xff] }
 0x170   : > { %12792 = vmatprep.subr.bf16.mxu0 %v18308_v18  ;;  %12956 = vmatprep.subr.bf16.mxu1 %v18310_v19  ;;  %v474_v17 = vld [vmem:[%s19120_s5 + $0x598] sm:$0xff]  ;;  %v16455_v18 = vcombine.low %v425_v5, %v441_v6  ;;  %v16457_v19 = vcombine.low %v426_v7, %v442_v8  ;;  %v16648_v5 = vcombine.high %v617_v62, %v633_v63  ;;  %v649_v7 = vld [vmem:[%s19120_s5 + $0xb10] sm:$0xff] }
 0x171   : > { %v16490_v21 = vcombine.high %v458_v16, %v474_v17  ;;  %v665_v8 = vld [vmem:[%s19120_s5 + $0xb90] sm:$0xff] }
 0x173   : > { %12793 = vmatpush1.bf16.msra.mxu0 %v18307_v25  ;;  %12957 = vmatpush1.bf16.msra.mxu1 %v18309_v26  ;;  %v490_v25 = vld [vmem:[%s19120_s5 + $0x618] sm:$0xff] }
 0x174   : > { %12794 = vmatprep.subr.bf16.mxu0 %v18340_v28  ;;  %12958 = vmatprep.subr.bf16.mxu1 %v18342_v29  ;;  %v506_v26 = vld [vmem:[%s19120_s5 + $0x698] sm:$0xff]  ;;  %v16487_v28 = vcombine.low %v457_v13, %v473_v15  ;;  %v16489_v29 = vcombine.low %v458_v16, %v474_v17  ;;  %v16680_v13 = vcombine.high %v649_v7, %v665_v8  ;;  %v681_v16 = vld [vmem:[%s19120_s5 + $0xc10] sm:$0xff] }
 0x175   : > { %v16522_v32 = vcombine.high %v490_v25, %v506_v26  ;;  %v697_v17 = vld [vmem:[%s19120_s5 + $0xc90] sm:$0xff] }
 0x177   : > { %12795 = vmatpush1.bf16.msra.mxu0 %v18339_v35  ;;  %12959 = vmatpush1.bf16.msra.mxu1 %v18341_v36  ;;  %v522_v35 = vld [vmem:[%s19120_s5 + $0x718] sm:$0xff] }
 0x178   : > { %12969 = vmatprep.subr.bf16.mxu0 %v16328_v38  ;;  %13133 = vmatprep.subr.bf16.mxu1 %v16330_v39  ;;  %v538_v36 = vld [vmem:[%s19120_s5 + $0x798] sm:$0xff]  ;;  %v16519_v38 = vcombine.low %v489_v22, %v505_v23  ;;  %v16521_v39 = vcombine.low %v490_v25, %v506_v26  ;;  %v16712_v22 = vcombine.high %v681_v16, %v697_v17  ;;  %v713_v25 = vld [vmem:[%s19120_s5 + $0xd10] sm:$0xff] }
 0x179   : > { %v16554_v41 = vcombine.high %v522_v35, %v538_v36  ;;  %v729_v26 = vld [vmem:[%s19120_s5 + $0xd90] sm:$0xff] }
 0x17a   : > { %12797 = vmatmul.mubr.bf16.vlgmr.msra.gmra.mrb[0].mxu0 %v19486_v42  ;;  %12961 = vmatmul.mubr.bf16.vlgmr.msra.gmra.mrb[0].mxu1 %v19486_v42 }
 0x17b   : > { %12970 = vmatpush1.bf16.msra.mxu0 %v16327_v45  ;;  %13134 = vmatpush1.bf16.msra.mxu1 %v16329_v46  ;;  %v554_v45 = vld [vmem:[%s19120_s5 + $0x818] sm:$0xff] }
 0x17c   : > { %12971 = vmatprep.subr.bf16.mxu0 %v16360_v48  ;;  %13135 = vmatprep.subr.bf16.mxu1 %v16362_v49  ;;  %v570_v46 = vld [vmem:[%s19120_s5 + $0x898] sm:$0xff]  ;;  %v16551_v48 = vcombine.low %v521_v33, %v537_v34  ;;  %v16553_v49 = vcombine.low %v522_v35, %v538_v36  ;;  %v16744_v33 = vcombine.high %v713_v25, %v729_v26  ;;  %v745_v35 = vld [vmem:[%s19120_s5 + $0xe10] sm:$0xff] }
 0x17d   : > { %13001 = vmatprep.mubr.bf16.mxu0 %v19217_v37  ;;  %13165 = vmatprep.mubr.bf16.mxu1 %v19217_v37  ;;  %v16586_v51 = vcombine.high %v554_v45, %v570_v46  ;;  %v761_v36 = vld [vmem:[%s19120_s5 + $0xe90] sm:$0xff] }
 0x17f   : > { %12972 = vmatpush1.bf16.msra.mxu0 %v16359_v53  ;;  %13136 = vmatpush1.bf16.msra.mxu1 %v16361_v54  ;;  %v586_v53 = vld [vmem:[%s19120_s5 + $0x918] sm:$0xff] }
 0x180   : > { %12973 = vmatprep.subr.bf16.mxu0 %v16392_v55  ;;  %13137 = vmatprep.subr.bf16.mxu1 %v16394_v56  ;;  %v602_v54 = vld [vmem:[%s19120_s5 + $0x998] sm:$0xff]  ;;  %v16583_v55 = vcombine.low %v553_v43, %v569_v44  ;;  %v16585_v56 = vcombine.low %v554_v45, %v570_v46  ;;  %v16776_v43 = vcombine.high %v745_v35, %v761_v36  ;;  %v777_v45 = vld [vmem:[%s19120_s5 + $0xf10] sm:$0xff] }
 0x181   : > { %v16618_v58 = vcombine.high %v586_v53, %v602_v54  ;;  %v793_v46 = vld [vmem:[%s19120_s5 + $0xf90] sm:$0xff] }
 0x183   : > { %12974 = vmatpush1.bf16.msra.mxu0 %v16391_v0  ;;  %13138 = vmatpush1.bf16.msra.mxu1 %v16393_v1  ;;  %v618_v0 = vld [vmem:[%s19120_s5 + $0xa18] sm:$0xff] }
 0x184   : > { %12975 = vmatprep.subr.bf16.mxu0 %v16424_v3  ;;  %13139 = vmatprep.subr.bf16.mxu1 %v16426_v4  ;;  %v634_v1 = vld [vmem:[%s19120_s5 + $0xa98] sm:$0xff]  ;;  %v16615_v3 = vcombine.low %v585_v24, %v601_v52  ;;  %v16617_v4 = vcombine.low %v586_v53, %v602_v54  ;;  %v16808_v24 = vcombine.high %v777_v45, %v793_v46  ;;  %v809_v53 = vld [vmem:[%s19120_s5 + $0x1010] sm:$0xff] }
 0x185   : > { %v16650_v6 = vcombine.high %v618_v0, %v634_v1  ;;  %v825_v54 = vld [vmem:[%s19120_s5 + $0x1090] sm:$0xff] }
 0x187   : > { %12976 = vmatpush1.bf16.msra.mxu0 %v16423_v9  ;;  %13140 = vmatpush1.bf16.msra.mxu1 %v16425_v10  ;;  %v650_v9 = vld [vmem:[%s19120_s5 + $0xb18] sm:$0xff] }
 0x188   : > { %12977 = vmatprep.subr.bf16.mxu0 %v16456_v11  ;;  %13141 = vmatprep.subr.bf16.mxu1 %v16458_v12  ;;  %v666_v10 = vld [vmem:[%s19120_s5 + $0xb98] sm:$0xff]  ;;  %v16647_v11 = vcombine.low %v617_v62, %v633_v63  ;;  %v16649_v12 = vcombine.low %v618_v0, %v634_v1  ;;  %v16840_v62 = vcombine.high %v809_v53, %v825_v54  ;;  %v841_v0 = vld [vmem:[%s19120_s5 + $0x1110] sm:$0xff] }
 0x189   : > { %v16682_v15 = vcombine.high %v650_v9, %v666_v10  ;;  %v857_v1 = vld [vmem:[%s19120_s5 + $0x1190] sm:$0xff] }
 0x18b   : > { %12978 = vmatpush1.bf16.msra.mxu0 %v16455_v18  ;;  %13142 = vmatpush1.bf16.msra.mxu1 %v16457_v19  ;;  %v682_v18 = vld [vmem:[%s19120_s5 + $0xc18] sm:$0xff] }
 0x18c   : > { %12979 = vmatprep.subr.bf16.mxu0 %v16488_v20  ;;  %13143 = vmatprep.subr.bf16.mxu1 %v16490_v21  ;;  %v698_v19 = vld [vmem:[%s19120_s5 + $0xc98] sm:$0xff]  ;;  %v16679_v20 = vcombine.low %v649_v7, %v665_v8  ;;  %v16681_v21 = vcombine.low %v650_v9, %v666_v10  ;;  %v16872_v7 = vcombine.high %v841_v0, %v857_v1  ;;  %v873_v9 = vld [vmem:[%s19120_s5 + $0x1210] sm:$0xff] }
 0x18d   : > { %v16714_v23 = vcombine.high %v682_v18, %v698_v19  ;;  %v889_v10 = vld [vmem:[%s19120_s5 + $0x1290] sm:$0xff] }
 0x18f   : > { %12980 = vmatpush1.bf16.msra.mxu0 %v16487_v28  ;;  %13144 = vmatpush1.bf16.msra.mxu1 %v16489_v29  ;;  %v714_v28 = vld [vmem:[%s19120_s5 + $0xd18] sm:$0xff] }
 0x190   : > { %12981 = vmatprep.subr.bf16.mxu0 %v16520_v31  ;;  %13145 = vmatprep.subr.bf16.mxu1 %v16522_v32  ;;  %v730_v29 = vld [vmem:[%s19120_s5 + $0xd98] sm:$0xff]  ;;  %v16711_v31 = vcombine.low %v681_v16, %v697_v17  ;;  %v16713_v32 = vcombine.low %v682_v18, %v698_v19  ;;  %v16904_v16 = vcombine.high %v873_v9, %v889_v10  ;;  %v905_v18 = vld [vmem:[%s19120_s5 + $0x1310] sm:$0xff] }
 0x191   : > { %v16746_v34 = vcombine.high %v714_v28, %v730_v29  ;;  %v921_v19 = vld [vmem:[%s19120_s5 + $0x1390] sm:$0xff] }
 0x193   : > { %12982 = vmatpush1.bf16.msra.mxu0 %v16519_v38  ;;  %13146 = vmatpush1.bf16.msra.mxu1 %v16521_v39  ;;  %v746_v38 = vld [vmem:[%s19120_s5 + $0xe18] sm:$0xff] }
 0x194   : > { %12983 = vmatprep.subr.bf16.mxu0 %v16552_v40  ;;  %13147 = vmatprep.subr.bf16.mxu1 %v16554_v41  ;;  %v762_v39 = vld [vmem:[%s19120_s5 + $0xe98] sm:$0xff]  ;;  %v16743_v40 = vcombine.low %v713_v25, %v729_v26  ;;  %v16745_v41 = vcombine.low %v714_v28, %v730_v29  ;;  %v16936_v25 = vcombine.high %v905_v18, %v921_v19  ;;  %v937_v28 = vld [vmem:[%s19120_s5 + $0x1410] sm:$0xff] }
 0x195   : > { %v16778_v44 = vcombine.high %v746_v38, %v762_v39  ;;  %v953_v29 = vld [vmem:[%s19120_s5 + $0x1490] sm:$0xff] }
 0x197   : > { %12984 = vmatpush1.bf16.msra.mxu0 %v16551_v48  ;;  %13148 = vmatpush1.bf16.msra.mxu1 %v16553_v49  ;;  %v778_v48 = vld [vmem:[%s19120_s5 + $0xf18] sm:$0xff] }
 0x198   : > { %12985 = vmatprep.subr.bf16.mxu0 %v16584_v50  ;;  %13149 = vmatprep.subr.bf16.mxu1 %v16586_v51  ;;  %v794_v49 = vld [vmem:[%s19120_s5 + $0xf98] sm:$0xff]  ;;  %v16775_v50 = vcombine.low %v745_v35, %v761_v36  ;;  %v16777_v51 = vcombine.low %v746_v38, %v762_v39  ;;  %v16968_v35 = vcombine.high %v937_v28, %v953_v29  ;;  %v969_v38 = vld [vmem:[%s19120_s5 + $0x1510] sm:$0xff] }
 0x199   : > { %v16810_v52 = vcombine.high %v778_v48, %v794_v49  ;;  %v985_v39 = vld [vmem:[%s19120_s5 + $0x1590] sm:$0xff] }
 0x19b   : > { %12986 = vmatpush1.bf16.msra.mxu0 %v16583_v55  ;;  %13150 = vmatpush1.bf16.msra.mxu1 %v16585_v56  ;;  %v810_v55 = vld [vmem:[%s19120_s5 + $0x1018] sm:$0xff] }
 0x19c   : > { %12987 = vmatprep.subr.bf16.mxu0 %v16616_v57  ;;  %13151 = vmatprep.subr.bf16.mxu1 %v16618_v58  ;;  %v826_v56 = vld [vmem:[%s19120_s5 + $0x1098] sm:$0xff]  ;;  %v16807_v57 = vcombine.low %v777_v45, %v793_v46  ;;  %v16809_v58 = vcombine.low %v778_v48, %v794_v49  ;;  %v17000_v45 = vcombine.high %v969_v38, %v985_v39  ;;  %v1001_v48 = vld [vmem:[%s19120_s5 + $0x1610] sm:$0xff] }
 0x19d   : > { %v16842_v63 = vcombine.high %v810_v55, %v826_v56  ;;  %v1017_v49 = vld [vmem:[%s19120_s5 + $0x1690] sm:$0xff] }
 0x19f   : > { %12988 = vmatpush1.bf16.msra.mxu0 %v16615_v3  ;;  %13152 = vmatpush1.bf16.msra.mxu1 %v16617_v4  ;;  %v842_v3 = vld [vmem:[%s19120_s5 + $0x1118] sm:$0xff] }
 0x1a0   : > { %12989 = vmatprep.subr.bf16.mxu0 %v16648_v5  ;;  %13153 = vmatprep.subr.bf16.mxu1 %v16650_v6  ;;  %v858_v4 = vld [vmem:[%s19120_s5 + $0x1198] sm:$0xff]  ;;  %v16839_v5 = vcombine.low %v809_v53, %v825_v54  ;;  %v16841_v6 = vcombine.low %v810_v55, %v826_v56  ;;  %v17032_v53 = vcombine.high %v1001_v48, %v1017_v49  ;;  %v1033_v55 = vld [vmem:[%s19120_s5 + $0x1710] sm:$0xff] }
 0x1a1   : > { %v16874_v8 = vcombine.high %v842_v3, %v858_v4  ;;  %v1049_v56 = vld [vmem:[%s19120_s5 + $0x1790] sm:$0xff] }
 0x1a3   : > { %12990 = vmatpush1.bf16.msra.mxu0 %v16647_v11  ;;  %13154 = vmatpush1.bf16.msra.mxu1 %v16649_v12  ;;  %v874_v11 = vld [vmem:[%s19120_s5 + $0x1218] sm:$0xff] }
 0x1a4   : > { %12991 = vmatprep.subr.bf16.mxu0 %v16680_v13  ;;  %13155 = vmatprep.subr.bf16.mxu1 %v16682_v15  ;;  %v890_v12 = vld [vmem:[%s19120_s5 + $0x1298] sm:$0xff]  ;;  %v16871_v13 = vcombine.low %v841_v0, %v857_v1  ;;  %v16873_v15 = vcombine.low %v842_v3, %v858_v4  ;;  %v17064_v0 = vcombine.high %v1033_v55, %v1049_v56  ;;  %v1065_v3 = vld [vmem:[%s19120_s5 + $0x1810] sm:$0xff] }
 0x1a5   : > { %v16906_v17 = vcombine.high %v874_v11, %v890_v12  ;;  %v1081_v4 = vld [vmem:[%s19120_s5 + $0x1890] sm:$0xff] }
 0x1a7   : > { %12992 = vmatpush1.bf16.msra.mxu0 %v16679_v20  ;;  %13156 = vmatpush1.bf16.msra.mxu1 %v16681_v21  ;;  %v906_v20 = vld [vmem:[%s19120_s5 + $0x1318] sm:$0xff] }
 0x1a8   : > { %12993 = vmatprep.subr.bf16.mxu0 %v16712_v22  ;;  %13157 = vmatprep.subr.bf16.mxu1 %v16714_v23  ;;  %v922_v21 = vld [vmem:[%s19120_s5 + $0x1398] sm:$0xff]  ;;  %v16903_v22 = vcombine.low %v873_v9, %v889_v10  ;;  %v16905_v23 = vcombine.low %v874_v11, %v890_v12  ;;  %v17096_v9 = vcombine.high %v1065_v3, %v1081_v4  ;;  %v1097_v11 = vld [vmem:[%s19120_s5 + $0x1910] sm:$0xff] }
 0x1a9   : > { %v16938_v26 = vcombine.high %v906_v20, %v922_v21  ;;  %v1113_v12 = vld [vmem:[%s19120_s5 + $0x1990] sm:$0xff] }
 0x1ab   : > { %12994 = vmatpush1.bf16.msra.mxu0 %v16711_v31  ;;  %13158 = vmatpush1.bf16.msra.mxu1 %v16713_v32  ;;  %v938_v31 = vld [vmem:[%s19120_s5 + $0x1418] sm:$0xff] }
 0x1ac   : > { %12995 = vmatprep.subr.bf16.mxu0 %v16744_v33  ;;  %13159 = vmatprep.subr.bf16.mxu1 %v16746_v34  ;;  %v954_v32 = vld [vmem:[%s19120_s5 + $0x1498] sm:$0xff]  ;;  %v16935_v33 = vcombine.low %v905_v18, %v921_v19  ;;  %v16937_v34 = vcombine.low %v906_v20, %v922_v21  ;;  %v17128_v18 = vcombine.high %v1097_v11, %v1113_v12  ;;  %v1129_v20 = vld [vmem:[%s19120_s5 + $0x1a10] sm:$0xff] }
 0x1ad   : > { %v16970_v36 = vcombine.high %v938_v31, %v954_v32  ;;  %v1145_v21 = vld [vmem:[%s19120_s5 + $0x1a90] sm:$0xff] }
 0x1af   : > { %12996 = vmatpush1.bf16.msra.mxu0 %v16743_v40  ;;  %13160 = vmatpush1.bf16.msra.mxu1 %v16745_v41  ;;  %v970_v40 = vld [vmem:[%s19120_s5 + $0x1518] sm:$0xff] }
 0x1b0   : > { %12997 = vmatprep.subr.bf16.mxu0 %v16776_v43  ;;  %13161 = vmatprep.subr.bf16.mxu1 %v16778_v44  ;;  %v986_v41 = vld [vmem:[%s19120_s5 + $0x1598] sm:$0xff]  ;;  %v16967_v43 = vcombine.low %v937_v28, %v953_v29  ;;  %v16969_v44 = vcombine.low %v938_v31, %v954_v32  ;;  %v17160_v28 = vcombine.high %v1129_v20, %v1145_v21  ;;  %v1161_v31 = vld [vmem:[%s19120_s5 + $0x1b10] sm:$0xff] }
 0x1b1   : > { %v17002_v46 = vcombine.high %v970_v40, %v986_v41  ;;  %v1177_v32 = vld [vmem:[%s19120_s5 + $0x1b90] sm:$0xff] }
 0x1b3   : > { %12998 = vmatpush1.bf16.msra.mxu0 %v16775_v50  ;;  %13162 = vmatpush1.bf16.msra.mxu1 %v16777_v51  ;;  %v1002_v50 = vld [vmem:[%s19120_s5 + $0x1618] sm:$0xff] }
 0x1b4   : > { %12999 = vmatprep.subr.bf16.mxu0 %v16808_v24  ;;  %13163 = vmatprep.subr.bf16.mxu1 %v16810_v52  ;;  %v1018_v51 = vld [vmem:[%s19120_s5 + $0x1698] sm:$0xff]  ;;  %v16999_v24 = vcombine.low %v969_v38, %v985_v39  ;;  %v17001_v52 = vcombine.low %v970_v40, %v986_v41  ;;  %v17192_v38 = vcombine.high %v1161_v31, %v1177_v32  ;;  %v1193_v40 = vld [vmem:[%s19120_s5 + $0x1c10] sm:$0xff] }
 0x1b5   : > { %v17034_v54 = vcombine.high %v1002_v50, %v1018_v51  ;;  %v1209_v41 = vld [vmem:[%s19120_s5 + $0x1c90] sm:$0xff] }
 0x1b7   : > { %13000 = vmatpush1.bf16.msra.mxu0 %v16807_v57  ;;  %13164 = vmatpush1.bf16.msra.mxu1 %v16809_v58  ;;  %v1034_v57 = vld [vmem:[%s19120_s5 + $0x1718] sm:$0xff] }
 0x1b8   : > { %13010 = vmatprep.subr.bf16.mxu0 %v16840_v62  ;;  %13174 = vmatprep.subr.bf16.mxu1 %v16842_v63  ;;  %v1050_v58 = vld [vmem:[%s19120_s5 + $0x1798] sm:$0xff]  ;;  %v17031_v62 = vcombine.low %v1001_v48, %v1017_v49  ;;  %v17033_v63 = vcombine.low %v1002_v50, %v1018_v51  ;;  %v17224_v48 = vcombine.high %v1193_v40, %v1209_v41  ;;  %v1225_v50 = vld [vmem:[%s19120_s5 + $0x1d10] sm:$0xff] }
 0x1b9   : > { %v17066_v1 = vcombine.high %v1034_v57, %v1050_v58  ;;  %v1241_v51 = vld [vmem:[%s19120_s5 + $0x1d90] sm:$0xff] }
 0x1ba   : > { %13002 = vmatmul.mubr.bf16.vlgmr.msra.gmra.mrb[4].mxu0 %v19259_v47  ;;  %13166 = vmatmul.mubr.bf16.vlgmr.msra.gmra.mrb[4].mxu1 %v19259_v47 }
 0x1bb   : > { %13011 = vmatpush1.bf16.msra.mxu0 %v16839_v5  ;;  %13175 = vmatpush1.bf16.msra.mxu1 %v16841_v6  ;;  %v1066_v5 = vld [vmem:[%s19120_s5 + $0x1818] sm:$0xff] }
 0x1bc   : > { %13012 = vmatprep.subr.bf16.mxu0 %v16872_v7  ;;  %13176 = vmatprep.subr.bf16.mxu1 %v16874_v8  ;;  %v1082_v6 = vld [vmem:[%s19120_s5 + $0x1898] sm:$0xff]  ;;  %v17063_v7 = vcombine.low %v1033_v55, %v1049_v56  ;;  %v17065_v8 = vcombine.low %v1034_v57, %v1050_v58  ;;  %v17256_v55 = vcombine.high %v1225_v50, %v1241_v51  ;;  %v1257_v57 = vld [vmem:[%s19120_s5 + $0x1e10] sm:$0xff] }
 0x1bd   : > { %13042 = vmatprep.mubr.bf16.mxu0 %v19268_v27  ;;  %13206 = vmatprep.mubr.bf16.mxu1 %v19268_v27  ;;  %v17098_v10 = vcombine.high %v1066_v5, %v1082_v6  ;;  %v1273_v58 = vld [vmem:[%s19120_s5 + $0x1e90] sm:$0xff] }
 0x1bf   : > { %13013 = vmatpush1.bf16.msra.mxu0 %v16871_v13  ;;  %13177 = vmatpush1.bf16.msra.mxu1 %v16873_v15  ;;  %v1098_v13 = vld [vmem:[%s19120_s5 + $0x1918] sm:$0xff] }
 0x1c0   : > { %13014 = vmatprep.subr.bf16.mxu0 %v16904_v16  ;;  %13178 = vmatprep.subr.bf16.mxu1 %v16906_v17  ;;  %v1114_v15 = vld [vmem:[%s19120_s5 + $0x1998] sm:$0xff]  ;;  %v17095_v16 = vcombine.low %v1065_v3, %v1081_v4  ;;  %v17097_v17 = vcombine.low %v1066_v5, %v1082_v6  ;;  %v17288_v3 = vcombine.high %v1257_v57, %v1273_v58  ;;  %v1289_v5 = vld [vmem:[%s19120_s5 + $0x1f10] sm:$0xff] }
 0x1c1   : > { %v17130_v19 = vcombine.high %v1098_v13, %v1114_v15  ;;  %v1305_v6 = vld [vmem:[%s19120_s5 + $0x1f90] sm:$0xff] }
 0x1c3   : > { %13015 = vmatpush1.bf16.msra.mxu0 %v16903_v22  ;;  %13179 = vmatpush1.bf16.msra.mxu1 %v16905_v23  ;;  %v1130_v22 = vld [vmem:[%s19120_s5 + $0x1a18] sm:$0xff] }
 0x1c4   : > { %13016 = vmatprep.subr.bf16.mxu0 %v16936_v25  ;;  %13180 = vmatprep.subr.bf16.mxu1 %v16938_v26  ;;  %v1146_v23 = vld [vmem:[%s19120_s5 + $0x1a98] sm:$0xff]  ;;  %v17127_v25 = vcombine.low %v1097_v11, %v1113_v12  ;;  %v17129_v26 = vcombine.low %v1098_v13, %v1114_v15  ;;  %v17320_v11 = vcombine.high %v1289_v5, %v1305_v6  ;;  %v1321_v13 = vld [vmem:[%s19120_s5 + $0x2010] sm:$0xff] }
 0x1c5   : > { %v17162_v29 = vcombine.high %v1130_v22, %v1146_v23  ;;  %v1337_v15 = vld [vmem:[%s19120_s5 + $0x2090] sm:$0xff] }
 0x1c7   : > { %13017 = vmatpush1.bf16.msra.mxu0 %v16935_v33  ;;  %13181 = vmatpush1.bf16.msra.mxu1 %v16937_v34  ;;  %v1162_v33 = vld [vmem:[%s19120_s5 + $0x1b18] sm:$0xff] }
 0x1c8   : > { %13018 = vmatprep.subr.bf16.mxu0 %v16968_v35  ;;  %13182 = vmatprep.subr.bf16.mxu1 %v16970_v36  ;;  %v1178_v34 = vld [vmem:[%s19120_s5 + $0x1b98] sm:$0xff]  ;;  %v17159_v35 = vcombine.low %v1129_v20, %v1145_v21  ;;  %v17161_v36 = vcombine.low %v1130_v22, %v1146_v23  ;;  %v17352_v20 = vcombine.high %v1321_v13, %v1337_v15  ;;  %v1353_v22 = vld [vmem:[%s19120_s5 + $0x2110] sm:$0xff] }
 0x1c9   : > { %v17194_v39 = vcombine.high %v1162_v33, %v1178_v34  ;;  %v1369_v23 = vld [vmem:[%s19120_s5 + $0x2190] sm:$0xff] }
 0x1cb   : > { %13019 = vmatpush1.bf16.msra.mxu0 %v16967_v43  ;;  %13183 = vmatpush1.bf16.msra.mxu1 %v16969_v44  ;;  %v1194_v43 = vld [vmem:[%s19120_s5 + $0x1c18] sm:$0xff] }
 0x1cc   : > { %13020 = vmatprep.subr.bf16.mxu0 %v17000_v45  ;;  %13184 = vmatprep.subr.bf16.mxu1 %v17002_v46  ;;  %v1210_v44 = vld [vmem:[%s19120_s5 + $0x1c98] sm:$0xff]  ;;  %v17191_v45 = vcombine.low %v1161_v31, %v1177_v32  ;;  %v17193_v46 = vcombine.low %v1162_v33, %v1178_v34  ;;  %v17384_v31 = vcombine.high %v1353_v22, %v1369_v23  ;;  %v1385_v33 = vld [vmem:[%s19120_s5 + $0x2210] sm:$0xff] }
 0x1cd   : > { %v17226_v49 = vcombine.high %v1194_v43, %v1210_v44  ;;  %v1401_v34 = vld [vmem:[%s19120_s5 + $0x2290] sm:$0xff] }
 0x1cf   : > { %13021 = vmatpush1.bf16.msra.mxu0 %v16999_v24  ;;  %13185 = vmatpush1.bf16.msra.mxu1 %v17001_v52  ;;  %v1226_v24 = vld [vmem:[%s19120_s5 + $0x1d18] sm:$0xff] }
 0x1d0   : > { %13022 = vmatprep.subr.bf16.mxu0 %v17032_v53  ;;  %13186 = vmatprep.subr.bf16.mxu1 %v17034_v54  ;;  %v1242_v52 = vld [vmem:[%s19120_s5 + $0x1d98] sm:$0xff]  ;;  %v17223_v53 = vcombine.low %v1193_v40, %v1209_v41  ;;  %v17225_v54 = vcombine.low %v1194_v43, %v1210_v44  ;;  %v17416_v40 = vcombine.high %v1385_v33, %v1401_v34  ;;  %v1417_v43 = vld [vmem:[%s19120_s5 + $0x2310] sm:$0xff] }
 0x1d1   : > { %v17258_v56 = vcombine.high %v1226_v24, %v1242_v52  ;;  %v1433_v44 = vld [vmem:[%s19120_s5 + $0x2390] sm:$0xff] }
 0x1d3   : > { %13023 = vmatpush1.bf16.msra.mxu0 %v17031_v62  ;;  %13187 = vmatpush1.bf16.msra.mxu1 %v17033_v63  ;;  %v1258_v62 = vld [vmem:[%s19120_s5 + $0x1e18] sm:$0xff] }
 0x1d4   : > { %13024 = vmatprep.subr.bf16.mxu0 %v17064_v0  ;;  %13188 = vmatprep.subr.bf16.mxu1 %v17066_v1  ;;  %v1274_v63 = vld [vmem:[%s19120_s5 + $0x1e98] sm:$0xff]  ;;  %v17255_v0 = vcombine.low %v1225_v50, %v1241_v51  ;;  %v17257_v1 = vcombine.low %v1226_v24, %v1242_v52  ;;  %v17448_v50 = vcombine.high %v1417_v43, %v1433_v44  ;;  %v1449_v24 = vld [vmem:[%s19120_s5 + $0x2410] sm:$0xff] }
 0x1d5   : > { %v17290_v4 = vcombine.high %v1258_v62, %v1274_v63  ;;  %v1465_v52 = vld [vmem:[%s19120_s5 + $0x2490] sm:$0xff] }
 0x1d7   : > { %13025 = vmatpush1.bf16.msra.mxu0 %v17063_v7  ;;  %13189 = vmatpush1.bf16.msra.mxu1 %v17065_v8  ;;  %v1290_v7 = vld [vmem:[%s19120_s5 + $0x1f18] sm:$0xff] }
 0x1d8   : > { %13026 = vmatprep.subr.bf16.mxu0 %v17096_v9  ;;  %13190 = vmatprep.subr.bf16.mxu1 %v17098_v10  ;;  %v1306_v8 = vld [vmem:[%s19120_s5 + $0x1f98] sm:$0xff]  ;;  %v17287_v9 = vcombine.low %v1257_v57, %v1273_v58  ;;  %v17289_v10 = vcombine.low %v1258_v62, %v1274_v63  ;;  %v17480_v57 = vcombine.high %v1449_v24, %v1465_v52  ;;  %v1481_v62 = vld [vmem:[%s19120_s5 + $0x2510] sm:$0xff] }
 0x1d9   : > { %v17322_v12 = vcombine.high %v1290_v7, %v1306_v8  ;;  %v1497_v63 = vld [vmem:[%s19120_s5 + $0x2590] sm:$0xff] }
 0x1db   : > { %13027 = vmatpush1.bf16.msra.mxu0 %v17095_v16  ;;  %13191 = vmatpush1.bf16.msra.mxu1 %v17097_v17  ;;  %v1322_v16 = vld [vmem:[%s19120_s5 + $0x2018] sm:$0xff] }
 0x1dc   : > { %13028 = vmatprep.subr.bf16.mxu0 %v17128_v18  ;;  %13192 = vmatprep.subr.bf16.mxu1 %v17130_v19  ;;  %v1338_v17 = vld [vmem:[%s19120_s5 + $0x2098] sm:$0xff]  ;;  %v17319_v18 = vcombine.low %v1289_v5, %v1305_v6  ;;  %v17321_v19 = vcombine.low %v1290_v7, %v1306_v8  ;;  %v17512_v5 = vcombine.high %v1481_v62, %v1497_v63  ;;  %v1513_v7 = vld [vmem:[%s19120_s5 + $0x2610] sm:$0xff] }
 0x1dd   : > { %v17354_v21 = vcombine.high %v1322_v16, %v1338_v17  ;;  %v1529_v8 = vld [vmem:[%s19120_s5 + $0x2690] sm:$0xff] }
 0x1df   : > { %13029 = vmatpush1.bf16.msra.mxu0 %v17127_v25  ;;  %13193 = vmatpush1.bf16.msra.mxu1 %v17129_v26  ;;  %v1354_v25 = vld [vmem:[%s19120_s5 + $0x2118] sm:$0xff] }
 0x1e0   : > { %13030 = vmatprep.subr.bf16.mxu0 %v17160_v28  ;;  %13194 = vmatprep.subr.bf16.mxu1 %v17162_v29  ;;  %v1370_v26 = vld [vmem:[%s19120_s5 + $0x2198] sm:$0xff]  ;;  %v17351_v28 = vcombine.low %v1321_v13, %v1337_v15  ;;  %v17353_v29 = vcombine.low %v1322_v16, %v1338_v17  ;;  %v17544_v13 = vcombine.high %v1513_v7, %v1529_v8  ;;  %v1545_v16 = vld [vmem:[%s19120_s5 + $0x2710] sm:$0xff] }
 0x1e1   : > { %v17386_v32 = vcombine.high %v1354_v25, %v1370_v26  ;;  %v1561_v17 = vld [vmem:[%s19120_s5 + $0x2790] sm:$0xff] }
 0x1e3   : > { %13031 = vmatpush1.bf16.msra.mxu0 %v17159_v35  ;;  %13195 = vmatpush1.bf16.msra.mxu1 %v17161_v36  ;;  %v1386_v35 = vld [vmem:[%s19120_s5 + $0x2218] sm:$0xff] }
 0x1e4   : > { %13032 = vmatprep.subr.bf16.mxu0 %v17192_v38  ;;  %13196 = vmatprep.subr.bf16.mxu1 %v17194_v39  ;;  %v1402_v36 = vld [vmem:[%s19120_s5 + $0x2298] sm:$0xff]  ;;  %v17383_v38 = vcombine.low %v1353_v22, %v1369_v23  ;;  %v17385_v39 = vcombine.low %v1354_v25, %v1370_v26  ;;  %v17576_v22 = vcombine.high %v1545_v16, %v1561_v17  ;;  %v1577_v25 = vld [vmem:[%s19120_s5 + $0x2810] sm:$0xff] }
 0x1e5   : > { %v17418_v41 = vcombine.high %v1386_v35, %v1402_v36  ;;  %v1593_v26 = vld [vmem:[%s19120_s5 + $0x2890] sm:$0xff] }
 0x1e7   : > { %13033 = vmatpush1.bf16.msra.mxu0 %v17191_v45  ;;  %13197 = vmatpush1.bf16.msra.mxu1 %v17193_v46  ;;  %v1418_v45 = vld [vmem:[%s19120_s5 + $0x2318] sm:$0xff] }
 0x1e8   : > { %13034 = vmatprep.subr.bf16.mxu0 %v17224_v48  ;;  %13198 = vmatprep.subr.bf16.mxu1 %v17226_v49  ;;  %v1434_v46 = vld [vmem:[%s19120_s5 + $0x2398] sm:$0xff]  ;;  %v17415_v48 = vcombine.low %v1385_v33, %v1401_v34  ;;  %v17417_v49 = vcombine.low %v1386_v35, %v1402_v36  ;;  %v17608_v33 = vcombine.high %v1577_v25, %v1593_v26  ;;  %v1609_v35 = vld [vmem:[%s19120_s5 + $0x2910] sm:$0xff] }
 0x1e9   : > { %v17450_v51 = vcombine.high %v1418_v45, %v1434_v46  ;;  %v1625_v36 = vld [vmem:[%s19120_s5 + $0x2990] sm:$0xff] }
 0x1eb   : > { %13035 = vmatpush1.bf16.msra.mxu0 %v17223_v53  ;;  %13199 = vmatpush1.bf16.msra.mxu1 %v17225_v54  ;;  %v1450_v53 = vld [vmem:[%s19120_s5 + $0x2418] sm:$0xff] }
 0x1ec   : > { %13036 = vmatprep.subr.bf16.mxu0 %v17256_v55  ;;  %13200 = vmatprep.subr.bf16.mxu1 %v17258_v56  ;;  %v1466_v54 = vld [vmem:[%s19120_s5 + $0x2498] sm:$0xff]  ;;  %v17447_v55 = vcombine.low %v1417_v43, %v1433_v44  ;;  %v17449_v56 = vcombine.low %v1418_v45, %v1434_v46  ;;  %v17640_v43 = vcombine.high %v1609_v35, %v1625_v36  ;;  %v1641_v45 = vld [vmem:[%s19120_s5 + $0x2a10] sm:$0xff] }
 0x1ed   : > { %v17482_v58 = vcombine.high %v1450_v53, %v1466_v54  ;;  %v1657_v46 = vld [vmem:[%s19120_s5 + $0x2a90] sm:$0xff] }
 0x1ef   : > { %13037 = vmatpush1.bf16.msra.mxu0 %v17255_v0  ;;  %13201 = vmatpush1.bf16.msra.mxu1 %v17257_v1  ;;  %v1482_v0 = vld [vmem:[%s19120_s5 + $0x2518] sm:$0xff] }
 0x1f0   : > { %13038 = vmatprep.subr.bf16.mxu0 %v17288_v3  ;;  %13202 = vmatprep.subr.bf16.mxu1 %v17290_v4  ;;  %v1498_v1 = vld [vmem:[%s19120_s5 + $0x2598] sm:$0xff]  ;;  %v17479_v3 = vcombine.low %v1449_v24, %v1465_v52  ;;  %v17481_v4 = vcombine.low %v1450_v53, %v1466_v54  ;;  %v17672_v24 = vcombine.high %v1641_v45, %v1657_v46  ;;  %v1673_v53 = vld [vmem:[%s19120_s5 + $0x2b10] sm:$0xff] }
 0x1f1   : > { %v17514_v6 = vcombine.high %v1482_v0, %v1498_v1  ;;  %v1689_v54 = vld [vmem:[%s19120_s5 + $0x2b90] sm:$0xff] }
 0x1f3   : > { %13039 = vmatpush1.bf16.msra.mxu0 %v17287_v9  ;;  %13203 = vmatpush1.bf16.msra.mxu1 %v17289_v10  ;;  %v1514_v9 = vld [vmem:[%s19120_s5 + $0x2618] sm:$0xff] }
 0x1f4   : > { %13040 = vmatprep.subr.bf16.mxu0 %v17320_v11  ;;  %13204 = vmatprep.subr.bf16.mxu1 %v17322_v12  ;;  %v1530_v10 = vld [vmem:[%s19120_s5 + $0x2698] sm:$0xff]  ;;  %v17511_v11 = vcombine.low %v1481_v62, %v1497_v63  ;;  %v17513_v12 = vcombine.low %v1482_v0, %v1498_v1  ;;  %v17704_v62 = vcombine.high %v1673_v53, %v1689_v54  ;;  %v1705_v0 = vld [vmem:[%s19120_s5 + $0x2c10] sm:$0xff] }
 0x1f5   : > { %v17546_v15 = vcombine.high %v1514_v9, %v1530_v10  ;;  %v1721_v1 = vld [vmem:[%s19120_s5 + $0x2c90] sm:$0xff] }
 0x1f7   : > { %13041 = vmatpush1.bf16.msra.mxu0 %v17319_v18  ;;  %13205 = vmatpush1.bf16.msra.mxu1 %v17321_v19  ;;  %v1546_v18 = vld [vmem:[%s19120_s5 + $0x2718] sm:$0xff] }
 0x1f8   : > { %13051 = vmatprep.subr.bf16.mxu0 %v17352_v20  ;;  %13215 = vmatprep.subr.bf16.mxu1 %v17354_v21  ;;  %v1562_v19 = vld [vmem:[%s19120_s5 + $0x2798] sm:$0xff]  ;;  %v17543_v20 = vcombine.low %v1513_v7, %v1529_v8  ;;  %v17545_v21 = vcombine.low %v1514_v9, %v1530_v10  ;;  %v17736_v7 = vcombine.high %v1705_v0, %v1721_v1  ;;  %v1737_v9 = vld [vmem:[%s19120_s5 + $0x2d10] sm:$0xff] }
 0x1f9   : > { %v17578_v23 = vcombine.high %v1546_v18, %v1562_v19  ;;  %v1753_v10 = vld [vmem:[%s19120_s5 + $0x2d90] sm:$0xff] }
 0x1fa   : > { %13043 = vmatmul.mubr.bf16.vlgmr.msra.gmra.mrb[4].mxu0 %v19342_v2  ;;  %13207 = vmatmul.mubr.bf16.vlgmr.msra.gmra.mrb[4].mxu1 %v19342_v2 }
 0x1fb   : > { %13052 = vmatpush1.bf16.msra.mxu0 %v17351_v28  ;;  %13216 = vmatpush1.bf16.msra.mxu1 %v17353_v29  ;;  %v1578_v28 = vld [vmem:[%s19120_s5 + $0x2818] sm:$0xff] }
 0x1fc   : > { %13053 = vmatprep.subr.bf16.mxu0 %v17384_v31  ;;  %13217 = vmatprep.subr.bf16.mxu1 %v17386_v32  ;;  %v1594_v29 = vld [vmem:[%s19120_s5 + $0x2898] sm:$0xff]  ;;  %v17575_v31 = vcombine.low %v1545_v16, %v1561_v17  ;;  %v17577_v32 = vcombine.low %v1546_v18, %v1562_v19  ;;  %v17768_v16 = vcombine.high %v1737_v9, %v1753_v10  ;;  %v1769_v18 = vld [vmem:[%s19120_s5 + $0x2e10] sm:$0xff] }
 0x1fd   : > { %13083 = vmatprep.mubr.bf16.mxu0 %v19274_v60  ;;  %13247 = vmatprep.mubr.bf16.mxu1 %v19274_v60  ;;  %v17610_v34 = vcombine.high %v1578_v28, %v1594_v29  ;;  %v1785_v19 = vld [vmem:[%s19120_s5 + $0x2e90] sm:$0xff] }
 0x1ff   : > { %13054 = vmatpush1.bf16.msra.mxu0 %v17383_v38  ;;  %13218 = vmatpush1.bf16.msra.mxu1 %v17385_v39  ;;  %v1610_v38 = vld [vmem:[%s19120_s5 + $0x2918] sm:$0xff] }
 0x200   : > { %13055 = vmatprep.subr.bf16.mxu0 %v17416_v40  ;;  %13219 = vmatprep.subr.bf16.mxu1 %v17418_v41  ;;  %v1626_v39 = vld [vmem:[%s19120_s5 + $0x2998] sm:$0xff]  ;;  %v17607_v40 = vcombine.low %v1577_v25, %v1593_v26  ;;  %v17609_v41 = vcombine.low %v1578_v28, %v1594_v29  ;;  %v17800_v25 = vcombine.high %v1769_v18, %v1785_v19  ;;  %v1801_v28 = vld [vmem:[%s19120_s5 + $0x2f10] sm:$0xff] }
 0x201   : > { %v17642_v44 = vcombine.high %v1610_v38, %v1626_v39  ;;  %v1817_v29 = vld [vmem:[%s19120_s5 + $0x2f90] sm:$0xff] }
 0x203   : > { %13056 = vmatpush1.bf16.msra.mxu0 %v17415_v48  ;;  %13220 = vmatpush1.bf16.msra.mxu1 %v17417_v49  ;;  %v1642_v48 = vld [vmem:[%s19120_s5 + $0x2a18] sm:$0xff] }
 0x204   : > { %13057 = vmatprep.subr.bf16.mxu0 %v17448_v50  ;;  %13221 = vmatprep.subr.bf16.mxu1 %v17450_v51  ;;  %v1658_v49 = vld [vmem:[%s19120_s5 + $0x2a98] sm:$0xff]  ;;  %v17639_v50 = vcombine.low %v1609_v35, %v1625_v36  ;;  %v17641_v51 = vcombine.low %v1610_v38, %v1626_v39  ;;  %v17832_v35 = vcombine.high %v1801_v28, %v1817_v29  ;;  %v1833_v38 = vld [vmem:[%s19120_s5 + $0x3010] sm:$0xff] }
 0x205   : > { %v17674_v52 = vcombine.high %v1642_v48, %v1658_v49  ;;  %v1849_v39 = vld [vmem:[%s19120_s5 + $0x3090] sm:$0xff] }
 0x207   : > { %13058 = vmatpush1.bf16.msra.mxu0 %v17447_v55  ;;  %13222 = vmatpush1.bf16.msra.mxu1 %v17449_v56  ;;  %v1674_v55 = vld [vmem:[%s19120_s5 + $0x2b18] sm:$0xff] }
 0x208   : > { %13059 = vmatprep.subr.bf16.mxu0 %v17480_v57  ;;  %13223 = vmatprep.subr.bf16.mxu1 %v17482_v58  ;;  %v1690_v56 = vld [vmem:[%s19120_s5 + $0x2b98] sm:$0xff]  ;;  %v17671_v57 = vcombine.low %v1641_v45, %v1657_v46  ;;  %v17673_v58 = vcombine.low %v1642_v48, %v1658_v49  ;;  %v17864_v45 = vcombine.high %v1833_v38, %v1849_v39  ;;  %v1865_v48 = vld [vmem:[%s19120_s5 + $0x3110] sm:$0xff] }
 0x209   : > { %v17706_v63 = vcombine.high %v1674_v55, %v1690_v56  ;;  %v1881_v49 = vld [vmem:[%s19120_s5 + $0x3190] sm:$0xff] }
 0x20b   : > { %13060 = vmatpush1.bf16.msra.mxu0 %v17479_v3  ;;  %13224 = vmatpush1.bf16.msra.mxu1 %v17481_v4  ;;  %v1706_v3 = vld [vmem:[%s19120_s5 + $0x2c18] sm:$0xff] }
 0x20c   : > { %13061 = vmatprep.subr.bf16.mxu0 %v17512_v5  ;;  %13225 = vmatprep.subr.bf16.mxu1 %v17514_v6  ;;  %v1722_v4 = vld [vmem:[%s19120_s5 + $0x2c98] sm:$0xff]  ;;  %v17703_v5 = vcombine.low %v1673_v53, %v1689_v54  ;;  %v17705_v6 = vcombine.low %v1674_v55, %v1690_v56  ;;  %v17896_v53 = vcombine.high %v1865_v48, %v1881_v49  ;;  %v1897_v55 = vld [vmem:[%s19120_s5 + $0x3210] sm:$0xff] }
 0x20d   : > { %v17738_v8 = vcombine.high %v1706_v3, %v1722_v4  ;;  %v1913_v56 = vld [vmem:[%s19120_s5 + $0x3290] sm:$0xff] }
 0x20f   : > { %13062 = vmatpush1.bf16.msra.mxu0 %v17511_v11  ;;  %13226 = vmatpush1.bf16.msra.mxu1 %v17513_v12  ;;  %v1738_v11 = vld [vmem:[%s19120_s5 + $0x2d18] sm:$0xff] }
 0x210   : > { %13063 = vmatprep.subr.bf16.mxu0 %v17544_v13  ;;  %13227 = vmatprep.subr.bf16.mxu1 %v17546_v15  ;;  %v1754_v12 = vld [vmem:[%s19120_s5 + $0x2d98] sm:$0xff]  ;;  %v17735_v13 = vcombine.low %v1705_v0, %v1721_v1  ;;  %v17737_v15 = vcombine.low %v1706_v3, %v1722_v4  ;;  %v17928_v0 = vcombine.high %v1897_v55, %v1913_v56  ;;  %v1929_v3 = vld [vmem:[%s19120_s5 + $0x3310] sm:$0xff] }
 0x211   : > { %v17770_v17 = vcombine.high %v1738_v11, %v1754_v12  ;;  %v1945_v4 = vld [vmem:[%s19120_s5 + $0x3390] sm:$0xff] }
 0x213   : > { %13064 = vmatpush1.bf16.msra.mxu0 %v17543_v20  ;;  %13228 = vmatpush1.bf16.msra.mxu1 %v17545_v21  ;;  %v1770_v20 = vld [vmem:[%s19120_s5 + $0x2e18] sm:$0xff] }
 0x214   : > { %13065 = vmatprep.subr.bf16.mxu0 %v17576_v22  ;;  %13229 = vmatprep.subr.bf16.mxu1 %v17578_v23  ;;  %v1786_v21 = vld [vmem:[%s19120_s5 + $0x2e98] sm:$0xff]  ;;  %v17767_v22 = vcombine.low %v1737_v9, %v1753_v10  ;;  %v17769_v23 = vcombine.low %v1738_v11, %v1754_v12  ;;  %v17960_v9 = vcombine.high %v1929_v3, %v1945_v4  ;;  %v1961_v11 = vld [vmem:[%s19120_s5 + $0x3410] sm:$0xff] }
 0x215   : > { %v17802_v26 = vcombine.high %v1770_v20, %v1786_v21  ;;  %v1977_v12 = vld [vmem:[%s19120_s5 + $0x3490] sm:$0xff] }
 0x217   : > { %13066 = vmatpush1.bf16.msra.mxu0 %v17575_v31  ;;  %13230 = vmatpush1.bf16.msra.mxu1 %v17577_v32  ;;  %v1802_v31 = vld [vmem:[%s19120_s5 + $0x2f18] sm:$0xff] }
 0x218   : > { %13067 = vmatprep.subr.bf16.mxu0 %v17608_v33  ;;  %13231 = vmatprep.subr.bf16.mxu1 %v17610_v34  ;;  %v1818_v32 = vld [vmem:[%s19120_s5 + $0x2f98] sm:$0xff]  ;;  %v17799_v33 = vcombine.low %v1769_v18, %v1785_v19  ;;  %v17801_v34 = vcombine.low %v1770_v20, %v1786_v21  ;;  %v17992_v18 = vcombine.high %v1961_v11, %v1977_v12  ;;  %v18893_v20 = vmov 1983009808  }
 0x219   : > { %v17834_v36 = vcombine.high %v1802_v31, %v1818_v32  ;;  %v15300_v21 = vunpack.c.l.s4 %v18893_v20  ;;  %v2138_v20 = vld [vmem:[%s19120_s5 + $0x3998] sm:$0xff] }
 0x21b   : > { %13068 = vmatpush1.bf16.msra.mxu0 %v17607_v40  ;;  %13232 = vmatpush1.bf16.msra.mxu1 %v17609_v41  ;;  %v1834_v40 = vld [vmem:[%s19120_s5 + $0x3018] sm:$0xff] }
 0x21c   : > { %13069 = vmatprep.subr.bf16.mxu0 %v17640_v43  ;;  %13233 = vmatprep.subr.bf16.mxu1 %v17642_v44  ;;  %v1850_v41 = vld [vmem:[%s19120_s5 + $0x3098] sm:$0xff]  ;;  %v17831_v43 = vcombine.low %v1801_v28, %v1817_v29  ;;  %v17833_v44 = vcombine.low %v1802_v31, %v1818_v32  ;;  %v17991_v28 = vcombine.low %v1961_v11, %v1977_v12  ;;  %v15301_v32 = vunpack.c.0.s8 %v15300_v21 }
 0x21d   : > { %v17866_v46 = vcombine.high %v1834_v40, %v1850_v41 }
 0x21f   : > { %13070 = vmatpush1.bf16.msra.mxu0 %v17639_v50  ;;  %13234 = vmatpush1.bf16.msra.mxu1 %v17641_v51  ;;  %v1866_v50 = vld [vmem:[%s19120_s5 + $0x3118] sm:$0xff] }
 0x220   : > { %13071 = vmatprep.subr.bf16.mxu0 %v17672_v24  ;;  %13235 = vmatprep.subr.bf16.mxu1 %v17674_v52  ;;  %v1882_v51 = vld [vmem:[%s19120_s5 + $0x3198] sm:$0xff]  ;;  %v17863_v24 = vcombine.low %v1833_v38, %v1849_v39  ;;  %v17865_v52 = vcombine.low %v1834_v40, %v1850_v41 }
 0x221   : > { %v17898_v54 = vcombine.high %v1866_v50, %v1882_v51  ;;  %v2042_v38 = vld [vmem:[%s19120_s5 + $0x3698] sm:$0xff] }
 0x223   : > { %13072 = vmatpush1.bf16.msra.mxu0 %v17671_v57  ;;  %13236 = vmatpush1.bf16.msra.mxu1 %v17673_v58  ;;  %v1898_v57 = vld [vmem:[%s19120_s5 + $0x3218] sm:$0xff] }
 0x224   : > { %13073 = vmatprep.subr.bf16.mxu0 %v17704_v62  ;;  %13237 = vmatprep.subr.bf16.mxu1 %v17706_v63  ;;  %v1914_v58 = vld [vmem:[%s19120_s5 + $0x3298] sm:$0xff]  ;;  %v17895_v62 = vcombine.low %v1865_v48, %v1881_v49  ;;  %v17897_v63 = vcombine.low %v1866_v50, %v1882_v51  ;;  %v2073_v48 = vld [vmem:[%s19120_s5 + $0x3790] sm:$0xff] }
 0x225   : > { %v17930_v1 = vcombine.high %v1898_v57, %v1914_v58  ;;  %v2058_v51 = vld [vmem:[%s19120_s5 + $0x3718] sm:$0xff] }
 0x227   : > { %13074 = vmatpush1.bf16.msra.mxu0 %v17703_v5  ;;  %13238 = vmatpush1.bf16.msra.mxu1 %v17705_v6  ;;  %v1930_v5 = vld [vmem:[%s19120_s5 + $0x3318] sm:$0xff] }
 0x228   : > { %13075 = vmatprep.subr.bf16.mxu0 %v17736_v7  ;;  %13239 = vmatprep.subr.bf16.mxu1 %v17738_v8  ;;  %v1946_v6 = vld [vmem:[%s19120_s5 + $0x3398] sm:$0xff]  ;;  %v17927_v7 = vcombine.low %v1897_v55, %v1913_v56  ;;  %v17929_v8 = vcombine.low %v1898_v57, %v1914_v58 }
 0x229   : > { %v17962_v10 = vcombine.high %v1930_v5, %v1946_v6 }
 0x22b   : > { %13076 = vmatpush1.bf16.msra.mxu0 %v17735_v13  ;;  %13240 = vmatpush1.bf16.msra.mxu1 %v17737_v15  ;;  %v1962_v13 = vld [vmem:[%s19120_s5 + $0x3418] sm:$0xff] }
 0x22c   : > { %13077 = vmatprep.subr.bf16.mxu0 %v17768_v16  ;;  %13241 = vmatprep.subr.bf16.mxu1 %v17770_v17  ;;  %v1978_v15 = vld [vmem:[%s19120_s5 + $0x3498] sm:$0xff]  ;;  %v17959_v16 = vcombine.low %v1929_v3, %v1945_v4  ;;  %v17961_v17 = vcombine.low %v1930_v5, %v1946_v6  ;;  %v2089_v4 = vld [vmem:[%s19120_s5 + $0x3810] sm:$0xff] }
 0x22d   : > { %v17994_v19 = vcombine.high %v1962_v13, %v1978_v15  ;;  %v17993_v29 = vcombine.low %v1962_v13, %v1978_v15  ;;  %v2105_v5 = vld [vmem:[%s19120_s5 + $0x3890] sm:$0xff] }
 0x22e   : > { %v18120_v13 = vcombine.high %v2089_v4, %v2105_v5  ;;  %v18119_v21 = vcombine.low %v2089_v4, %v2105_v5  ;;  %v2297_v4 = vld [vmem:[%s19120_s5 + $0x3e90] sm:$0xff]  ;;  %v2282_v5 = vld [vmem:[%s19120_s5 + $0x3e18] sm:$0xff] }
 0x22f   : > { %13078 = vmatpush1.bf16.msra.mxu0 %v17767_v22  ;;  %13242 = vmatpush1.bf16.msra.mxu1 %v17769_v23  ;;  %v1993_v22 = vld [vmem:[%s19120_s5 + $0x3510] sm:$0xff] }
 0x230   : > { %13079 = vmatprep.subr.bf16.mxu0 %v17800_v25  ;;  %13243 = vmatprep.subr.bf16.mxu1 %v17802_v26  ;;  %v2009_v23 = vld [vmem:[%s19120_s5 + $0x3590] sm:$0xff]  ;;  %v1994_v25 = vld [vmem:[%s19120_s5 + $0x3518] sm:$0xff] }
 0x231   : > { %v2010_v26 = vld [vmem:[%s19120_s5 + $0x3598] sm:$0xff]  ;;  %v18024_v31 = vcombine.high %v1993_v22, %v2009_v23  ;;  %v18023_v39 = vcombine.low %v1993_v22, %v2009_v23 }
 0x232   : > { %v18025_v40 = vcombine.low %v1994_v25, %v2010_v26 }
 0x233   : > { %13080 = vmatpush1.bf16.msra.mxu0 %v17799_v33  ;;  %13244 = vmatpush1.bf16.msra.mxu1 %v17801_v34  ;;  %v18026_v33 = vcombine.high %v1994_v25, %v2010_v26  ;;  %v2025_v34 = vld [vmem:[%s19120_s5 + $0x3610] sm:$0xff] }
 0x234   : > { %13081 = vmatprep.subr.bf16.mxu0 %v17832_v35  ;;  %13245 = vmatprep.subr.bf16.mxu1 %v17834_v36  ;;  %v2041_v35 = vld [vmem:[%s19120_s5 + $0x3690] sm:$0xff]  ;;  %v2026_v36 = vld [vmem:[%s19120_s5 + $0x3618] sm:$0xff] }
 0x235   : > { %v18056_v41 = vcombine.high %v2025_v34, %v2041_v35  ;;  %v18055_v55 = vcombine.low %v2025_v34, %v2041_v35  ;;  %v2153_v26 = vld [vmem:[%s19120_s5 + $0x3a10] sm:$0xff] }
 0x237   : > { %13082 = vmatpush1.bf16.msra.mxu0 %v17831_v43  ;;  %13246 = vmatpush1.bf16.msra.mxu1 %v17833_v44  ;;  %v19719_v44 = vsub.s32 %v15301_v32, %v19179_v59 }
 0x238   : > { %13092 = vmatprep.subr.bf16.mxu0 %v17864_v45  ;;  %13256 = vmatprep.subr.bf16.mxu1 %v17866_v46  ;;  %v18058_v45 = vcombine.high %v2026_v36, %v2042_v38  ;;  %v2057_v46 = vld [vmem:[%s19120_s5 + $0x3710] sm:$0xff] }
 0x23a   : > { %13084 = vmatmul.mubr.bf16.vlgmr.msra.gmra.mrb[4].mxu0 %v19277_v61  ;;  %13248 = vmatmul.mubr.bf16.vlgmr.msra.gmra.mrb[4].mxu1 %v19277_v61 }
 0x23b   : > { %13093 = vmatpush1.bf16.msra.mxu0 %v17863_v24  ;;  %13257 = vmatpush1.bf16.msra.mxu1 %v17865_v52  ;;  %v2074_v24 = vld [vmem:[%s19120_s5 + $0x3798] sm:$0xff] }
 0x23c   : > { %13094 = vmatprep.subr.bf16.mxu0 %v17896_v53  ;;  %13258 = vmatprep.subr.bf16.mxu1 %v17898_v54  ;;  %v18090_v3 = vcombine.high %v2058_v51, %v2074_v24  ;;  %v18089_v12 = vcombine.low %v2058_v51, %v2074_v24  ;;  %v2234_v51 = vld [vmem:[%s19120_s5 + $0x3c98] sm:$0xff] }
 0x23d   : > { %13124 = vmatprep.mubr.bf16.mxu0 %v19418_v30  ;;  %13288 = vmatprep.mubr.bf16.mxu1 %v19418_v30 }
 0x23f   : > { %13095 = vmatpush1.bf16.msra.mxu0 %v17895_v62  ;;  %13259 = vmatpush1.bf16.msra.mxu1 %v17897_v63  ;;  %v18057_v62 = vcombine.low %v2026_v36, %v2042_v38  ;;  %v18088_v63 = vcombine.high %v2057_v46, %v2073_v48  ;;  %v2185_v36 = vld [vmem:[%s19120_s5 + $0x3b10] sm:$0xff] }
 0x240   : > { %13096 = vmatprep.subr.bf16.mxu0 %v17928_v0  ;;  %13260 = vmatprep.subr.bf16.mxu1 %v17930_v1  ;;  %v2201_v38 = vld [vmem:[%s19120_s5 + $0x3b90] sm:$0xff] }
 0x241   : > { %v18215_v24 = vcombine.low %v2185_v36, %v2201_v38 }
 0x243   : > { %13097 = vmatpush1.bf16.msra.mxu0 %v17927_v7  ;;  %13261 = vmatpush1.bf16.msra.mxu1 %v17929_v8  ;;  %v2090_v7 = vld [vmem:[%s19120_s5 + $0x3818] sm:$0xff] }
 0x244   : > { %13098 = vmatprep.subr.bf16.mxu0 %v17960_v9  ;;  %13262 = vmatprep.subr.bf16.mxu1 %v17962_v10  ;;  %v2106_v8 = vld [vmem:[%s19120_s5 + $0x3898] sm:$0xff]  ;;  %v287_v9 = vld [vmem:[#allocation3] sm:$0xff]  ;;  %v18087_v10 = vcombine.low %v2057_v46, %v2073_v48  ;;  %v2217_v48 = vld [vmem:[%s19120_s5 + $0x3c10] sm:$0xff] }
 0x245   : > { %v18122_v15 = vcombine.high %v2090_v7, %v2106_v8  ;;  %v18121_v22 = vcombine.low %v2090_v7, %v2106_v8 }
 0x247   : > { %13099 = vmatpush1.bf16.msra.mxu0 %v17959_v16  ;;  %13263 = vmatpush1.bf16.msra.mxu1 %v17961_v17  ;;  %v2121_v16 = vld [vmem:[%s19120_s5 + $0x3910] sm:$0xff] }
 0x248   : > { %13100 = vmatprep.subr.bf16.mxu0 %v17992_v18  ;;  %13264 = vmatprep.subr.bf16.mxu1 %v17994_v19  ;;  %v2137_v17 = vld [vmem:[%s19120_s5 + $0x3990] sm:$0xff]  ;;  %v2122_v19 = vld [vmem:[%s19120_s5 + $0x3918] sm:$0xff] }
 0x249   : > { %v18152_v23 = vcombine.high %v2121_v16, %v2137_v17  ;;  %v18154_v25 = vcombine.high %v2122_v19, %v2138_v20  ;;  %v18151_v32 = vcombine.low %v2121_v16, %v2137_v17 }
 0x24b   : > { %13101 = vmatpush1.bf16.msra.mxu0 %v17991_v28  ;;  %13265 = vmatpush1.bf16.msra.mxu1 %v17993_v29  ;;  %v2169_v28 = vld [vmem:[%s19120_s5 + $0x3a90] sm:$0xff]  ;;  %v2154_v29 = vld [vmem:[%s19120_s5 + $0x3a18] sm:$0xff] }
 0x24c   : > { %13102 = vmatprep.subr.bf16.mxu0 %v18024_v31  ;;  %13266 = vmatprep.subr.bf16.mxu1 %v18026_v33  ;;  %v2170_v31 = vld [vmem:[%s19120_s5 + $0x3a98] sm:$0xff]  ;;  %v18153_v33 = vcombine.low %v2122_v19, %v2138_v20  ;;  %v18184_v34 = vcombine.high %v2153_v26, %v2169_v28  ;;  %v299_v20 = vld [vmem:[%s19120_s5 + $0x20] sm:$0xff] }
 0x24d   : > { %v12798_v43 = vpop.f32.mrb[0].mxu0  ;;  %v12962_v49 = vpop.f32.mrb[0].mxu1  ;;  %v18186_v35 = vcombine.high %v2154_v29, %v2170_v31 }
 0x24e   : > { %v12800_v50 = vpop.f32.mrb[1].mxu0  ;;  %v12964_v53 = vpop.f32.mrb[1].mxu1 }
 0x24f   : > { %v15297_v52 = vcombine.low %v12798_v43, %v12800_v50  ;;  %v12802_v54 = vpop.f32.mrb[2].mxu0  ;;  %13103 = vmatpush1.bf16.msra.mxu0 %v18023_v39  ;;  %v15298_v56 = vcombine.low %v12962_v49, %v12964_v53  ;;  %v12966_v57 = vpop.f32.mrb[2].mxu1  ;;  %13267 = vmatpush1.bf16.msra.mxu1 %v18025_v40  ;;  %v2186_v39 = vld [vmem:[%s19120_s5 + $0x3b18] sm:$0xff]  ;;  %v18185_v43 = vcombine.low %v2154_v29, %v2170_v31  ;;  %v2233_v49 = vld [vmem:[%s19120_s5 + $0x3c90] sm:$0xff]  ;;  %v331_v31 = vld [vmem:[%s19120_s5 + $0x120] sm:$0xff] }
 0x250   : > { %v12803_v58 = vpop.f32.mrb[3].mxu0  ;;  %13104 = vmatprep.subr.bf16.mxu0 %v18056_v41  ;;  %v12967_v1 = vpop.f32.mrb[3].mxu1  ;;  %13268 = vmatprep.subr.bf16.mxu1 %v18058_v45  ;;  %v2202_v40 = vld [vmem:[%s19120_s5 + $0x3b98] sm:$0xff]  ;;  %v18183_v41 = vcombine.low %v2153_v26, %v2169_v28  ;;  %v18216_v45 = vcombine.high %v2185_v36, %v2201_v38  ;;  %v18248_v53 = vcombine.high %v2217_v48, %v2233_v49 }
 0x251   : > { %v15305_v0 = vrot.slane %v15297_v52, %v19719_v44  ;;  %v15312_v6 = vrot.slane %v15298_v56, %v19719_v44  ;;  %v18218_v46 = vcombine.high %v2186_v39, %v2202_v40  ;;  %v2218_v50 = vld [vmem:[%s19120_s5 + $0x3c18] sm:$0xff]  ;;  %v18217_v52 = vcombine.low %v2186_v39, %v2202_v40  ;;  %v2265_v56 = vld [vmem:[%s19120_s5 + $0x3d90] sm:$0xff]  ;;  %v363_v40 = vld [vmem:[%s19120_s5 + $0x220] sm:$0xff] }
 0x252   : > { %v18250_v54 = vcombine.high %v2218_v50, %v2234_v51  ;;  %v2250_v57 = vld [vmem:[%s19120_s5 + $0x3d18] sm:$0xff] }
 0x253   : > { %13105 = vmatpush1.bf16.msra.mxu0 %v18055_v55  ;;  %v15313_v11 = vcombine.low %v15305_v0, %v15312_v6  ;;  %13269 = vmatpush1.bf16.msra.mxu1 %v18057_v62  ;;  %v2249_v55 = vld [vmem:[%s19120_s5 + $0x3d10] sm:$0xff]  ;;  %v2266_v58 = vld [vmem:[%s19120_s5 + $0x3d98] sm:$0xff]  ;;  %v18247_v62 = vcombine.low %v2217_v48, %v2233_v49 }
 0x254   : > { %13106 = vmatprep.subr.bf16.mxu0 %v18088_v63  ;;  %13270 = vmatprep.subr.bf16.mxu1 %v18090_v3  ;;  %v18249_v63 = vcombine.low %v2218_v50, %v2234_v51  ;;  %v18280_v0 = vcombine.high %v2249_v55, %v2265_v56  ;;  %v18282_v1 = vcombine.high %v2250_v57, %v2266_v58  ;;  %v2281_v3 = vld [vmem:[%s19120_s5 + $0x3e10] sm:$0xff]  ;;  %v2298_v6 = vld [vmem:[%s19120_s5 + $0x3e98] sm:$0xff]  ;;  %v395_v51 = vld [vmem:[%s19120_s5 + $0x320] sm:$0xff] }
 0x255   : > { %v15441_v18 = vadd.f32 %v15313_v11, %v287_v9  ;;  %v18279_v7 = vcombine.low %v2249_v55, %v2265_v56  ;;  %v18281_v8 = vcombine.low %v2250_v57, %v2266_v58  ;;  %v18312_v9 = vcombine.high %v2281_v3, %v2297_v4  ;;  %v2313_v11 = vld [vmem:[%s19120_s5 + $0x3f10] sm:$0xff]  ;;  %v427_v58 = vld [vmem:[%s19120_s5 + $0x420] sm:$0xff] }
 0x256   : > { %v18311_v16 = vcombine.low %v2281_v3, %v2297_v4  ;;  %v18313_v17 = vcombine.low %v2282_v5, %v2298_v6 }
 0x257   : > { %13107 = vmatpush1.bf16.msra.mxu0 %v18087_v10  ;;  %15449 = vst [vmem:[#allocation3] sm:$0xff] %v15441_v18  ;;  %13271 = vmatpush1.bf16.msra.mxu1 %v18089_v12  ;;  %v18314_v10 = vcombine.high %v2282_v5, %v2298_v6  ;;  %v2329_v12 = vld [vmem:[%s19120_s5 + $0x3f90] sm:$0xff]  ;;  %v459_v6 = vld [vmem:[%s19120_s5 + $0x520] sm:$0xff] }
 0x258   : > { %13108 = vmatprep.subr.bf16.mxu0 %v18120_v13  ;;  %13272 = vmatprep.subr.bf16.mxu1 %v18122_v15  ;;  %v2314_v13 = vld [vmem:[%s19120_s5 + $0x3f18] sm:$0xff]  ;;  %v18344_v18 = vcombine.high %v2313_v11, %v2329_v12 }
 0x259   : > { %v2330_v15 = vld [vmem:[%s19120_s5 + $0x3f98] sm:$0xff] }
 0x25a   : > { %v18346_v19 = vcombine.high %v2314_v13, %v2330_v15  ;;  %v18345_v26 = vcombine.low %v2314_v13, %v2330_v15  ;;  %v491_v15 = vld [vmem:[%s19120_s5 + $0x620] sm:$0xff] }
 0x25b   : > { %13109 = vmatpush1.bf16.msra.mxu0 %v18119_v21  ;;  %13273 = vmatpush1.bf16.msra.mxu1 %v18121_v22  ;;  %v315_v21 = vld [vmem:[%s19120_s5 + $0xa0] sm:$0xff]  ;;  %v300_v22 = vld [vmem:[%s19120_s5 + $0x28] sm:$0xff] }
 0x25c   : > { %13110 = vmatprep.subr.bf16.mxu0 %v18152_v23  ;;  %13274 = vmatprep.subr.bf16.mxu1 %v18154_v25  ;;  %v316_v23 = vld [vmem:[%s19120_s5 + $0xa8] sm:$0xff]  ;;  %v18343_v25 = vcombine.low %v2313_v11, %v2329_v12  ;;  %v16332_v28 = vcombine.high %v299_v20, %v315_v21 }
 0x25d   : > { %v16334_v29 = vcombine.high %v300_v22, %v316_v23  ;;  %v16333_v36 = vcombine.low %v300_v22, %v316_v23  ;;  %v523_v23 = vld [vmem:[%s19120_s5 + $0x720] sm:$0xff] }
 0x25f   : > { %13111 = vmatpush1.bf16.msra.mxu0 %v18151_v32  ;;  %13275 = vmatpush1.bf16.msra.mxu1 %v18153_v33  ;;  %v347_v32 = vld [vmem:[%s19120_s5 + $0x1a0] sm:$0xff]  ;;  %v332_v33 = vld [vmem:[%s19120_s5 + $0x128] sm:$0xff] }
 0x260   : > { %13112 = vmatprep.subr.bf16.mxu0 %v18184_v34  ;;  %13276 = vmatprep.subr.bf16.mxu1 %v18186_v35  ;;  %v348_v34 = vld [vmem:[%s19120_s5 + $0x1a8] sm:$0xff]  ;;  %v16331_v35 = vcombine.low %v299_v20, %v315_v21  ;;  %v16364_v38 = vcombine.high %v331_v31, %v347_v32 }
 0x261   : > { %v16366_v39 = vcombine.high %v332_v33, %v348_v34  ;;  %v16365_v48 = vcombine.low %v332_v33, %v348_v34  ;;  %v555_v34 = vld [vmem:[%s19120_s5 + $0x820] sm:$0xff] }
 0x263   : > { %13113 = vmatpush1.bf16.msra.mxu0 %v18183_v41  ;;  %13277 = vmatpush1.bf16.msra.mxu1 %v18185_v43  ;;  %v379_v41 = vld [vmem:[%s19120_s5 + $0x2a0] sm:$0xff]  ;;  %v364_v43 = vld [vmem:[%s19120_s5 + $0x228] sm:$0xff] }
 0x264   : > { %13114 = vmatprep.subr.bf16.mxu0 %v18216_v45  ;;  %13278 = vmatprep.subr.bf16.mxu1 %v18218_v46  ;;  %v380_v45 = vld [vmem:[%s19120_s5 + $0x2a8] sm:$0xff]  ;;  %v16363_v46 = vcombine.low %v331_v31, %v347_v32  ;;  %v16396_v49 = vcombine.high %v363_v40, %v379_v41 }
 0x265   : > { %v16398_v50 = vcombine.high %v364_v43, %v380_v45  ;;  %v16397_v55 = vcombine.low %v364_v43, %v380_v45  ;;  %v587_v45 = vld [vmem:[%s19120_s5 + $0x920] sm:$0xff] }
 0x267   : > { %13115 = vmatpush1.bf16.msra.mxu0 %v18215_v24  ;;  %13279 = vmatpush1.bf16.msra.mxu1 %v18217_v52  ;;  %v411_v24 = vld [vmem:[%s19120_s5 + $0x3a0] sm:$0xff]  ;;  %v396_v52 = vld [vmem:[%s19120_s5 + $0x328] sm:$0xff] }
 0x268   : > { %13116 = vmatprep.subr.bf16.mxu0 %v18248_v53  ;;  %13280 = vmatprep.subr.bf16.mxu1 %v18250_v54  ;;  %v412_v53 = vld [vmem:[%s19120_s5 + $0x3a8] sm:$0xff]  ;;  %v16395_v54 = vcombine.low %v363_v40, %v379_v41  ;;  %v16428_v56 = vcombine.high %v395_v51, %v411_v24 }
 0x269   : > { %v16430_v57 = vcombine.high %v396_v52, %v412_v53  ;;  %v16429_v3 = vcombine.low %v396_v52, %v412_v53  ;;  %v619_v53 = vld [vmem:[%s19120_s5 + $0xa20] sm:$0xff] }
 0x26b   : > { %13117 = vmatpush1.bf16.msra.mxu0 %v18247_v62  ;;  %13281 = vmatpush1.bf16.msra.mxu1 %v18249_v63  ;;  %v443_v62 = vld [vmem:[%s19120_s5 + $0x4a0] sm:$0xff]  ;;  %v428_v63 = vld [vmem:[%s19120_s5 + $0x428] sm:$0xff] }
 0x26c   : > { %13118 = vmatprep.subr.bf16.mxu0 %v18280_v0  ;;  %13282 = vmatprep.subr.bf16.mxu1 %v18282_v1  ;;  %v444_v0 = vld [vmem:[%s19120_s5 + $0x4a8] sm:$0xff]  ;;  %v16427_v1 = vcombine.low %v395_v51, %v411_v24  ;;  %v16460_v4 = vcombine.high %v427_v58, %v443_v62 }
 0x26d   : > { %v16462_v5 = vcombine.high %v428_v63, %v444_v0  ;;  %v16461_v11 = vcombine.low %v428_v63, %v444_v0  ;;  %v651_v0 = vld [vmem:[%s19120_s5 + $0xb20] sm:$0xff] }
 0x26f   : > { %13119 = vmatpush1.bf16.msra.mxu0 %v18279_v7  ;;  %13283 = vmatpush1.bf16.msra.mxu1 %v18281_v8  ;;  %v475_v7 = vld [vmem:[%s19120_s5 + $0x5a0] sm:$0xff]  ;;  %v460_v8 = vld [vmem:[%s19120_s5 + $0x528] sm:$0xff] }
 0x270   : > { %13120 = vmatprep.subr.bf16.mxu0 %v18312_v9  ;;  %13284 = vmatprep.subr.bf16.mxu1 %v18314_v10  ;;  %v476_v9 = vld [vmem:[%s19120_s5 + $0x5a8] sm:$0xff]  ;;  %v16459_v10 = vcombine.low %v427_v58, %v443_v62  ;;  %v16492_v12 = vcombine.high %v459_v6, %v475_v7 }
 0x271   : > { %v16494_v13 = vcombine.high %v460_v8, %v476_v9  ;;  %v16493_v20 = vcombine.low %v460_v8, %v476_v9  ;;  %v683_v9 = vld [vmem:[%s19120_s5 + $0xc20] sm:$0xff] }
 0x273   : > { %13121 = vmatpush1.bf16.msra.mxu0 %v18311_v16  ;;  %13285 = vmatpush1.bf16.msra.mxu1 %v18313_v17  ;;  %v507_v16 = vld [vmem:[%s19120_s5 + $0x6a0] sm:$0xff]  ;;  %v492_v17 = vld [vmem:[%s19120_s5 + $0x628] sm:$0xff] }
 0x274   : > { %13122 = vmatprep.subr.bf16.mxu0 %v18344_v18  ;;  %13286 = vmatprep.subr.bf16.mxu1 %v18346_v19  ;;  %v508_v18 = vld [vmem:[%s19120_s5 + $0x6a8] sm:$0xff]  ;;  %v16491_v19 = vcombine.low %v459_v6, %v475_v7  ;;  %v16524_v21 = vcombine.high %v491_v15, %v507_v16 }
 0x275   : > { %v16526_v22 = vcombine.high %v492_v17, %v508_v18  ;;  %v16525_v31 = vcombine.low %v492_v17, %v508_v18  ;;  %v715_v18 = vld [vmem:[%s19120_s5 + $0xd20] sm:$0xff] }
 0x277   : > { %13123 = vmatpush1.bf16.msra.mxu0 %v18343_v25  ;;  %13287 = vmatpush1.bf16.msra.mxu1 %v18345_v26  ;;  %v539_v25 = vld [vmem:[%s19120_s5 + $0x7a0] sm:$0xff]  ;;  %v524_v26 = vld [vmem:[%s19120_s5 + $0x728] sm:$0xff] }
 0x278   : > { %13297 = vmatprep.subr.bf16.mxu0 %v16332_v28  ;;  %13461 = vmatprep.subr.bf16.mxu1 %v16334_v29  ;;  %v540_v28 = vld [vmem:[%s19120_s5 + $0x7a8] sm:$0xff]  ;;  %v16523_v29 = vcombine.low %v491_v15, %v507_v16  ;;  %v16556_v32 = vcombine.high %v523_v23, %v539_v25 }
 0x279   : > { %v16558_v33 = vcombine.high %v524_v26, %v540_v28  ;;  %v16557_v40 = vcombine.low %v524_v26, %v540_v28  ;;  %v747_v28 = vld [vmem:[%s19120_s5 + $0xe20] sm:$0xff] }
 0x27a   : > { %13125 = vmatmul.mubr.bf16.vlgmr.msra.gmra.mrb[4].mxu0 %v19486_v42  ;;  %13289 = vmatmul.mubr.bf16.vlgmr.msra.gmra.mrb[4].mxu1 %v19486_v42 }
 0x27b   : > { %13298 = vmatpush1.bf16.msra.mxu0 %v16331_v35  ;;  %13462 = vmatpush1.bf16.msra.mxu1 %v16333_v36  ;;  %v571_v35 = vld [vmem:[%s19120_s5 + $0x8a0] sm:$0xff]  ;;  %v556_v36 = vld [vmem:[%s19120_s5 + $0x828] sm:$0xff] }
 0x27c   : > { %13299 = vmatprep.subr.bf16.mxu0 %v16364_v38  ;;  %13463 = vmatprep.subr.bf16.mxu1 %v16366_v39  ;;  %v572_v38 = vld [vmem:[%s19120_s5 + $0x8a8] sm:$0xff]  ;;  %v16555_v39 = vcombine.low %v523_v23, %v539_v25  ;;  %v16588_v41 = vcombine.high %v555_v34, %v571_v35 }
 0x27d   : > { %13329 = vmatprep.mubr.bf16.mxu0 %v19217_v37  ;;  %13493 = vmatprep.mubr.bf16.mxu1 %v19217_v37  ;;  %v16590_v43 = vcombine.high %v556_v36, %v572_v38  ;;  %v16589_v51 = vcombine.low %v556_v36, %v572_v38  ;;  %v779_v38 = vld [vmem:[%s19120_s5 + $0xf20] sm:$0xff] }
 0x27f   : > { %13300 = vmatpush1.bf16.msra.mxu0 %v16363_v46  ;;  %13464 = vmatpush1.bf16.msra.mxu1 %v16365_v48  ;;  %v603_v46 = vld [vmem:[%s19120_s5 + $0x9a0] sm:$0xff]  ;;  %v588_v48 = vld [vmem:[%s19120_s5 + $0x928] sm:$0xff] }
 0x280   : > { %13301 = vmatprep.subr.bf16.mxu0 %v16396_v49  ;;  %13465 = vmatprep.subr.bf16.mxu1 %v16398_v50  ;;  %v604_v49 = vld [vmem:[%s19120_s5 + $0x9a8] sm:$0xff]  ;;  %v16587_v50 = vcombine.low %v555_v34, %v571_v35  ;;  %v16620_v24 = vcombine.high %v587_v45, %v603_v46 }
 0x281   : > { %v16622_v52 = vcombine.high %v588_v48, %v604_v49  ;;  %v16621_v58 = vcombine.low %v588_v48, %v604_v49  ;;  %v811_v49 = vld [vmem:[%s19120_s5 + $0x1020] sm:$0xff] }
 0x283   : > { %13302 = vmatpush1.bf16.msra.mxu0 %v16395_v54  ;;  %13466 = vmatpush1.bf16.msra.mxu1 %v16397_v55  ;;  %v635_v54 = vld [vmem:[%s19120_s5 + $0xaa0] sm:$0xff]  ;;  %v620_v55 = vld [vmem:[%s19120_s5 + $0xa28] sm:$0xff] }
 0x284   : > { %13303 = vmatprep.subr.bf16.mxu0 %v16428_v56  ;;  %13467 = vmatprep.subr.bf16.mxu1 %v16430_v57  ;;  %v636_v56 = vld [vmem:[%s19120_s5 + $0xaa8] sm:$0xff]  ;;  %v16619_v57 = vcombine.low %v587_v45, %v603_v46  ;;  %v16652_v62 = vcombine.high %v619_v53, %v635_v54 }
 0x285   : > { %v16654_v63 = vcombine.high %v620_v55, %v636_v56  ;;  %v16653_v6 = vcombine.low %v620_v55, %v636_v56  ;;  %v843_v56 = vld [vmem:[%s19120_s5 + $0x1120] sm:$0xff] }
 0x287   : > { %13304 = vmatpush1.bf16.msra.mxu0 %v16427_v1  ;;  %13468 = vmatpush1.bf16.msra.mxu1 %v16429_v3  ;;  %v667_v1 = vld [vmem:[%s19120_s5 + $0xba0] sm:$0xff]  ;;  %v652_v3 = vld [vmem:[%s19120_s5 + $0xb28] sm:$0xff] }
 0x288   : > { %13305 = vmatprep.subr.bf16.mxu0 %v16460_v4  ;;  %13469 = vmatprep.subr.bf16.mxu1 %v16462_v5  ;;  %v668_v4 = vld [vmem:[%s19120_s5 + $0xba8] sm:$0xff]  ;;  %v16651_v5 = vcombine.low %v619_v53, %v635_v54  ;;  %v16684_v7 = vcombine.high %v651_v0, %v667_v1 }
 0x289   : > { %v16686_v8 = vcombine.high %v652_v3, %v668_v4  ;;  %v16685_v15 = vcombine.low %v652_v3, %v668_v4  ;;  %v875_v4 = vld [vmem:[%s19120_s5 + $0x1220] sm:$0xff] }
 0x28b   : > { %13306 = vmatpush1.bf16.msra.mxu0 %v16459_v10  ;;  %13470 = vmatpush1.bf16.msra.mxu1 %v16461_v11  ;;  %v699_v10 = vld [vmem:[%s19120_s5 + $0xca0] sm:$0xff]  ;;  %v684_v11 = vld [vmem:[%s19120_s5 + $0xc28] sm:$0xff] }
 0x28c   : > { %13307 = vmatprep.subr.bf16.mxu0 %v16492_v12  ;;  %13471 = vmatprep.subr.bf16.mxu1 %v16494_v13  ;;  %v700_v12 = vld [vmem:[%s19120_s5 + $0xca8] sm:$0xff]  ;;  %v16683_v13 = vcombine.low %v651_v0, %v667_v1  ;;  %v16716_v16 = vcombine.high %v683_v9, %v699_v10 }
 0x28d   : > { %v16718_v17 = vcombine.high %v684_v11, %v700_v12  ;;  %v16717_v23 = vcombine.low %v684_v11, %v700_v12  ;;  %v907_v12 = vld [vmem:[%s19120_s5 + $0x1320] sm:$0xff] }
 0x28f   : > { %13308 = vmatpush1.bf16.msra.mxu0 %v16491_v19  ;;  %13472 = vmatpush1.bf16.msra.mxu1 %v16493_v20  ;;  %v731_v19 = vld [vmem:[%s19120_s5 + $0xda0] sm:$0xff]  ;;  %v716_v20 = vld [vmem:[%s19120_s5 + $0xd28] sm:$0xff] }
 0x290   : > { %13309 = vmatprep.subr.bf16.mxu0 %v16524_v21  ;;  %13473 = vmatprep.subr.bf16.mxu1 %v16526_v22  ;;  %v732_v21 = vld [vmem:[%s19120_s5 + $0xda8] sm:$0xff]  ;;  %v16715_v22 = vcombine.low %v683_v9, %v699_v10  ;;  %v16748_v25 = vcombine.high %v715_v18, %v731_v19 }
 0x291   : > { %v16750_v26 = vcombine.high %v716_v20, %v732_v21  ;;  %v16749_v34 = vcombine.low %v716_v20, %v732_v21  ;;  %v939_v21 = vld [vmem:[%s19120_s5 + $0x1420] sm:$0xff] }
 0x293   : > { %13310 = vmatpush1.bf16.msra.mxu0 %v16523_v29  ;;  %13474 = vmatpush1.bf16.msra.mxu1 %v16525_v31  ;;  %v763_v29 = vld [vmem:[%s19120_s5 + $0xea0] sm:$0xff]  ;;  %v748_v31 = vld [vmem:[%s19120_s5 + $0xe28] sm:$0xff] }
 0x294   : > { %13311 = vmatprep.subr.bf16.mxu0 %v16556_v32  ;;  %13475 = vmatprep.subr.bf16.mxu1 %v16558_v33  ;;  %v764_v32 = vld [vmem:[%s19120_s5 + $0xea8] sm:$0xff]  ;;  %v16747_v33 = vcombine.low %v715_v18, %v731_v19  ;;  %v16780_v35 = vcombine.high %v747_v28, %v763_v29 }
 0x295   : > { %v16782_v36 = vcombine.high %v748_v31, %v764_v32  ;;  %v16781_v45 = vcombine.low %v748_v31, %v764_v32  ;;  %v971_v32 = vld [vmem:[%s19120_s5 + $0x1520] sm:$0xff] }
 0x297   : > { %13312 = vmatpush1.bf16.msra.mxu0 %v16555_v39  ;;  %13476 = vmatpush1.bf16.msra.mxu1 %v16557_v40  ;;  %v795_v39 = vld [vmem:[%s19120_s5 + $0xfa0] sm:$0xff]  ;;  %v780_v40 = vld [vmem:[%s19120_s5 + $0xf28] sm:$0xff] }
 0x298   : > { %13313 = vmatprep.subr.bf16.mxu0 %v16588_v41  ;;  %13477 = vmatprep.subr.bf16.mxu1 %v16590_v43  ;;  %v796_v41 = vld [vmem:[%s19120_s5 + $0xfa8] sm:$0xff]  ;;  %v16779_v43 = vcombine.low %v747_v28, %v763_v29  ;;  %v16812_v46 = vcombine.high %v779_v38, %v795_v39 }
 0x299   : > { %v16814_v48 = vcombine.high %v780_v40, %v796_v41  ;;  %v16813_v53 = vcombine.low %v780_v40, %v796_v41  ;;  %v1003_v41 = vld [vmem:[%s19120_s5 + $0x1620] sm:$0xff] }
 0x29b   : > { %13314 = vmatpush1.bf16.msra.mxu0 %v16587_v50  ;;  %13478 = vmatpush1.bf16.msra.mxu1 %v16589_v51  ;;  %v827_v50 = vld [vmem:[%s19120_s5 + $0x10a0] sm:$0xff]  ;;  %v812_v51 = vld [vmem:[%s19120_s5 + $0x1028] sm:$0xff] }
 0x29c   : > { %13315 = vmatprep.subr.bf16.mxu0 %v16620_v24  ;;  %13479 = vmatprep.subr.bf16.mxu1 %v16622_v52  ;;  %v828_v24 = vld [vmem:[%s19120_s5 + $0x10a8] sm:$0xff]  ;;  %v16811_v52 = vcombine.low %v779_v38, %v795_v39  ;;  %v16844_v54 = vcombine.high %v811_v49, %v827_v50 }
 0x29d   : > { %v16846_v55 = vcombine.high %v812_v51, %v828_v24  ;;  %v16845_v0 = vcombine.low %v812_v51, %v828_v24  ;;  %v1035_v24 = vld [vmem:[%s19120_s5 + $0x1720] sm:$0xff] }
 0x29f   : > { %13316 = vmatpush1.bf16.msra.mxu0 %v16619_v57  ;;  %13480 = vmatpush1.bf16.msra.mxu1 %v16621_v58  ;;  %v859_v57 = vld [vmem:[%s19120_s5 + $0x11a0] sm:$0xff]  ;;  %v844_v58 = vld [vmem:[%s19120_s5 + $0x1128] sm:$0xff] }
 0x2a0   : > { %13317 = vmatprep.subr.bf16.mxu0 %v16652_v62  ;;  %13481 = vmatprep.subr.bf16.mxu1 %v16654_v63  ;;  %v860_v62 = vld [vmem:[%s19120_s5 + $0x11a8] sm:$0xff]  ;;  %v16843_v63 = vcombine.low %v811_v49, %v827_v50  ;;  %v16876_v1 = vcombine.high %v843_v56, %v859_v57 }
 0x2a1   : > { %v16878_v3 = vcombine.high %v844_v58, %v860_v62  ;;  %v16877_v9 = vcombine.low %v844_v58, %v860_v62  ;;  %v1067_v62 = vld [vmem:[%s19120_s5 + $0x1820] sm:$0xff] }
 0x2a3   : > { %13318 = vmatpush1.bf16.msra.mxu0 %v16651_v5  ;;  %13482 = vmatpush1.bf16.msra.mxu1 %v16653_v6  ;;  %v891_v5 = vld [vmem:[%s19120_s5 + $0x12a0] sm:$0xff]  ;;  %v876_v6 = vld [vmem:[%s19120_s5 + $0x1228] sm:$0xff] }
 0x2a4   : > { %13319 = vmatprep.subr.bf16.mxu0 %v16684_v7  ;;  %13483 = vmatprep.subr.bf16.mxu1 %v16686_v8  ;;  %v892_v7 = vld [vmem:[%s19120_s5 + $0x12a8] sm:$0xff]  ;;  %v16875_v8 = vcombine.low %v843_v56, %v859_v57  ;;  %v16908_v10 = vcombine.high %v875_v4, %v891_v5 }
 0x2a5   : > { %v16910_v11 = vcombine.high %v876_v6, %v892_v7  ;;  %v16909_v18 = vcombine.low %v876_v6, %v892_v7  ;;  %v1099_v7 = vld [vmem:[%s19120_s5 + $0x1920] sm:$0xff] }
 0x2a7   : > { %13320 = vmatpush1.bf16.msra.mxu0 %v16683_v13  ;;  %13484 = vmatpush1.bf16.msra.mxu1 %v16685_v15  ;;  %v923_v13 = vld [vmem:[%s19120_s5 + $0x13a0] sm:$0xff]  ;;  %v908_v15 = vld [vmem:[%s19120_s5 + $0x1328] sm:$0xff] }
 0x2a8   : > { %13321 = vmatprep.subr.bf16.mxu0 %v16716_v16  ;;  %13485 = vmatprep.subr.bf16.mxu1 %v16718_v17  ;;  %v924_v16 = vld [vmem:[%s19120_s5 + $0x13a8] sm:$0xff]  ;;  %v16907_v17 = vcombine.low %v875_v4, %v891_v5  ;;  %v16940_v19 = vcombine.high %v907_v12, %v923_v13 }
 0x2a9   : > { %v16942_v20 = vcombine.high %v908_v15, %v924_v16  ;;  %v16941_v28 = vcombine.low %v908_v15, %v924_v16  ;;  %v1131_v16 = vld [vmem:[%s19120_s5 + $0x1a20] sm:$0xff] }
 0x2ab   : > { %13322 = vmatpush1.bf16.msra.mxu0 %v16715_v22  ;;  %13486 = vmatpush1.bf16.msra.mxu1 %v16717_v23  ;;  %v955_v22 = vld [vmem:[%s19120_s5 + $0x14a0] sm:$0xff]  ;;  %v940_v23 = vld [vmem:[%s19120_s5 + $0x1428] sm:$0xff] }
 0x2ac   : > { %13323 = vmatprep.subr.bf16.mxu0 %v16748_v25  ;;  %13487 = vmatprep.subr.bf16.mxu1 %v16750_v26  ;;  %v956_v25 = vld [vmem:[%s19120_s5 + $0x14a8] sm:$0xff]  ;;  %v16939_v26 = vcombine.low %v907_v12, %v923_v13  ;;  %v16972_v29 = vcombine.high %v939_v21, %v955_v22 }
 0x2ad   : > { %v16974_v31 = vcombine.high %v940_v23, %v956_v25  ;;  %v16973_v38 = vcombine.low %v940_v23, %v956_v25  ;;  %v1163_v25 = vld [vmem:[%s19120_s5 + $0x1b20] sm:$0xff] }
 0x2af   : > { %13324 = vmatpush1.bf16.msra.mxu0 %v16747_v33  ;;  %13488 = vmatpush1.bf16.msra.mxu1 %v16749_v34  ;;  %v987_v33 = vld [vmem:[%s19120_s5 + $0x15a0] sm:$0xff]  ;;  %v972_v34 = vld [vmem:[%s19120_s5 + $0x1528] sm:$0xff] }
 0x2b0   : > { %13325 = vmatprep.subr.bf16.mxu0 %v16780_v35  ;;  %13489 = vmatprep.subr.bf16.mxu1 %v16782_v36  ;;  %v988_v35 = vld [vmem:[%s19120_s5 + $0x15a8] sm:$0xff]  ;;  %v16971_v36 = vcombine.low %v939_v21, %v955_v22  ;;  %v17004_v39 = vcombine.high %v971_v32, %v987_v33 }
 0x2b1   : > { %v17006_v40 = vcombine.high %v972_v34, %v988_v35  ;;  %v17005_v49 = vcombine.low %v972_v34, %v988_v35  ;;  %v1195_v35 = vld [vmem:[%s19120_s5 + $0x1c20] sm:$0xff] }
 0x2b3   : > { %13326 = vmatpush1.bf16.msra.mxu0 %v16779_v43  ;;  %13490 = vmatpush1.bf16.msra.mxu1 %v16781_v45  ;;  %v1019_v43 = vld [vmem:[%s19120_s5 + $0x16a0] sm:$0xff]  ;;  %v1004_v45 = vld [vmem:[%s19120_s5 + $0x1628] sm:$0xff] }
 0x2b4   : > { %13327 = vmatprep.subr.bf16.mxu0 %v16812_v46  ;;  %13491 = vmatprep.subr.bf16.mxu1 %v16814_v48  ;;  %v1020_v46 = vld [vmem:[%s19120_s5 + $0x16a8] sm:$0xff]  ;;  %v17003_v48 = vcombine.low %v971_v32, %v987_v33  ;;  %v17036_v50 = vcombine.high %v1003_v41, %v1019_v43 }
 0x2b5   : > { %v17038_v51 = vcombine.high %v1004_v45, %v1020_v46  ;;  %v17037_v56 = vcombine.low %v1004_v45, %v1020_v46  ;;  %v1227_v46 = vld [vmem:[%s19120_s5 + $0x1d20] sm:$0xff] }
 0x2b7   : > { %13328 = vmatpush1.bf16.msra.mxu0 %v16811_v52  ;;  %13492 = vmatpush1.bf16.msra.mxu1 %v16813_v53  ;;  %v1051_v52 = vld [vmem:[%s19120_s5 + $0x17a0] sm:$0xff]  ;;  %v1036_v53 = vld [vmem:[%s19120_s5 + $0x1728] sm:$0xff] }
 0x2b8   : > { %13338 = vmatprep.subr.bf16.mxu0 %v16844_v54  ;;  %13502 = vmatprep.subr.bf16.mxu1 %v16846_v55  ;;  %v1052_v54 = vld [vmem:[%s19120_s5 + $0x17a8] sm:$0xff]  ;;  %v17035_v55 = vcombine.low %v1003_v41, %v1019_v43  ;;  %v17068_v57 = vcombine.high %v1035_v24, %v1051_v52 }
 0x2b9   : > { %v17070_v58 = vcombine.high %v1036_v53, %v1052_v54  ;;  %v17069_v4 = vcombine.low %v1036_v53, %v1052_v54  ;;  %v1259_v54 = vld [vmem:[%s19120_s5 + $0x1e20] sm:$0xff] }
 0x2ba   : > { %13330 = vmatmul.mubr.bf16.vlgmr.msra.gmra.mrb[8].mxu0 %v19259_v47  ;;  %13494 = vmatmul.mubr.bf16.vlgmr.msra.gmra.mrb[8].mxu1 %v19259_v47 }
 0x2bb   : > { %13339 = vmatpush1.bf16.msra.mxu0 %v16843_v63  ;;  %13503 = vmatpush1.bf16.msra.mxu1 %v16845_v0  ;;  %v1083_v63 = vld [vmem:[%s19120_s5 + $0x18a0] sm:$0xff]  ;;  %v1068_v0 = vld [vmem:[%s19120_s5 + $0x1828] sm:$0xff] }
 0x2bc   : > { %13340 = vmatprep.subr.bf16.mxu0 %v16876_v1  ;;  %13504 = vmatprep.subr.bf16.mxu1 %v16878_v3  ;;  %v1084_v1 = vld [vmem:[%s19120_s5 + $0x18a8] sm:$0xff]  ;;  %v17067_v3 = vcombine.low %v1035_v24, %v1051_v52  ;;  %v17100_v5 = vcombine.high %v1067_v62, %v1083_v63 }
 0x2bd   : > { %13370 = vmatprep.mubr.bf16.mxu0 %v19268_v27  ;;  %13534 = vmatprep.mubr.bf16.mxu1 %v19268_v27  ;;  %v17102_v6 = vcombine.high %v1068_v0, %v1084_v1  ;;  %v17101_v12 = vcombine.low %v1068_v0, %v1084_v1  ;;  %v1291_v1 = vld [vmem:[%s19120_s5 + $0x1f20] sm:$0xff] }
 0x2bf   : > { %13341 = vmatpush1.bf16.msra.mxu0 %v16875_v8  ;;  %13505 = vmatpush1.bf16.msra.mxu1 %v16877_v9  ;;  %v1115_v8 = vld [vmem:[%s19120_s5 + $0x19a0] sm:$0xff]  ;;  %v1100_v9 = vld [vmem:[%s19120_s5 + $0x1928] sm:$0xff] }
 0x2c0   : > { %13342 = vmatprep.subr.bf16.mxu0 %v16908_v10  ;;  %13506 = vmatprep.subr.bf16.mxu1 %v16910_v11  ;;  %v1116_v10 = vld [vmem:[%s19120_s5 + $0x19a8] sm:$0xff]  ;;  %v17099_v11 = vcombine.low %v1067_v62, %v1083_v63  ;;  %v17132_v13 = vcombine.high %v1099_v7, %v1115_v8 }
 0x2c1   : > { %v17134_v15 = vcombine.high %v1100_v9, %v1116_v10  ;;  %v17133_v21 = vcombine.low %v1100_v9, %v1116_v10  ;;  %v1323_v10 = vld [vmem:[%s19120_s5 + $0x2020] sm:$0xff] }
 0x2c3   : > { %13343 = vmatpush1.bf16.msra.mxu0 %v16907_v17  ;;  %13507 = vmatpush1.bf16.msra.mxu1 %v16909_v18  ;;  %v1147_v17 = vld [vmem:[%s19120_s5 + $0x1aa0] sm:$0xff]  ;;  %v1132_v18 = vld [vmem:[%s19120_s5 + $0x1a28] sm:$0xff] }
 0x2c4   : > { %13344 = vmatprep.subr.bf16.mxu0 %v16940_v19  ;;  %13508 = vmatprep.subr.bf16.mxu1 %v16942_v20  ;;  %v1148_v19 = vld [vmem:[%s19120_s5 + $0x1aa8] sm:$0xff]  ;;  %v17131_v20 = vcombine.low %v1099_v7, %v1115_v8  ;;  %v17164_v22 = vcombine.high %v1131_v16, %v1147_v17 }
 0x2c5   : > { %v17166_v23 = vcombine.high %v1132_v18, %v1148_v19  ;;  %v17165_v32 = vcombine.low %v1132_v18, %v1148_v19  ;;  %v1355_v19 = vld [vmem:[%s19120_s5 + $0x2120] sm:$0xff] }
 0x2c7   : > { %13345 = vmatpush1.bf16.msra.mxu0 %v16939_v26  ;;  %13509 = vmatpush1.bf16.msra.mxu1 %v16941_v28  ;;  %v1179_v26 = vld [vmem:[%s19120_s5 + $0x1ba0] sm:$0xff]  ;;  %v1164_v28 = vld [vmem:[%s19120_s5 + $0x1b28] sm:$0xff] }
 0x2c8   : > { %13346 = vmatprep.subr.bf16.mxu0 %v16972_v29  ;;  %13510 = vmatprep.subr.bf16.mxu1 %v16974_v31  ;;  %v1180_v29 = vld [vmem:[%s19120_s5 + $0x1ba8] sm:$0xff]  ;;  %v17163_v31 = vcombine.low %v1131_v16, %v1147_v17  ;;  %v17196_v33 = vcombine.high %v1163_v25, %v1179_v26 }
 0x2c9   : > { %v17198_v34 = vcombine.high %v1164_v28, %v1180_v29  ;;  %v17197_v41 = vcombine.low %v1164_v28, %v1180_v29  ;;  %v1387_v29 = vld [vmem:[%s19120_s5 + $0x2220] sm:$0xff] }
 0x2cb   : > { %13347 = vmatpush1.bf16.msra.mxu0 %v16971_v36  ;;  %13511 = vmatpush1.bf16.msra.mxu1 %v16973_v38  ;;  %v1211_v36 = vld [vmem:[%s19120_s5 + $0x1ca0] sm:$0xff]  ;;  %v1196_v38 = vld [vmem:[%s19120_s5 + $0x1c28] sm:$0xff] }
 0x2cc   : > { %13348 = vmatprep.subr.bf16.mxu0 %v17004_v39  ;;  %13512 = vmatprep.subr.bf16.mxu1 %v17006_v40  ;;  %v1212_v39 = vld [vmem:[%s19120_s5 + $0x1ca8] sm:$0xff]  ;;  %v17195_v40 = vcombine.low %v1163_v25, %v1179_v26  ;;  %v17228_v43 = vcombine.high %v1195_v35, %v1211_v36 }
 0x2cd   : > { %v17230_v45 = vcombine.high %v1196_v38, %v1212_v39  ;;  %v17229_v24 = vcombine.low %v1196_v38, %v1212_v39  ;;  %v1419_v39 = vld [vmem:[%s19120_s5 + $0x2320] sm:$0xff] }
 0x2cf   : > { %13349 = vmatpush1.bf16.msra.mxu0 %v17003_v48  ;;  %13513 = vmatpush1.bf16.msra.mxu1 %v17005_v49  ;;  %v1243_v48 = vld [vmem:[%s19120_s5 + $0x1da0] sm:$0xff]  ;;  %v1228_v49 = vld [vmem:[%s19120_s5 + $0x1d28] sm:$0xff] }
 0x2d0   : > { %13350 = vmatprep.subr.bf16.mxu0 %v17036_v50  ;;  %13514 = vmatprep.subr.bf16.mxu1 %v17038_v51  ;;  %v1244_v50 = vld [vmem:[%s19120_s5 + $0x1da8] sm:$0xff]  ;;  %v17227_v51 = vcombine.low %v1195_v35, %v1211_v36  ;;  %v17260_v52 = vcombine.high %v1227_v46, %v1243_v48 }
 0x2d1   : > { %v17262_v53 = vcombine.high %v1228_v49, %v1244_v50  ;;  %v17261_v62 = vcombine.low %v1228_v49, %v1244_v50  ;;  %v1451_v50 = vld [vmem:[%s19120_s5 + $0x2420] sm:$0xff] }
 0x2d3   : > { %13351 = vmatpush1.bf16.msra.mxu0 %v17035_v55  ;;  %13515 = vmatpush1.bf16.msra.mxu1 %v17037_v56  ;;  %v1275_v55 = vld [vmem:[%s19120_s5 + $0x1ea0] sm:$0xff]  ;;  %v1260_v56 = vld [vmem:[%s19120_s5 + $0x1e28] sm:$0xff] }
 0x2d4   : > { %13352 = vmatprep.subr.bf16.mxu0 %v17068_v57  ;;  %13516 = vmatprep.subr.bf16.mxu1 %v17070_v58  ;;  %v1276_v57 = vld [vmem:[%s19120_s5 + $0x1ea8] sm:$0xff]  ;;  %v17259_v58 = vcombine.low %v1227_v46, %v1243_v48  ;;  %v17292_v63 = vcombine.high %v1259_v54, %v1275_v55 }
 0x2d5   : > { %v17294_v0 = vcombine.high %v1260_v56, %v1276_v57  ;;  %v17293_v7 = vcombine.low %v1260_v56, %v1276_v57  ;;  %v1483_v57 = vld [vmem:[%s19120_s5 + $0x2520] sm:$0xff] }
 0x2d7   : > { %13353 = vmatpush1.bf16.msra.mxu0 %v17067_v3  ;;  %13517 = vmatpush1.bf16.msra.mxu1 %v17069_v4  ;;  %v1307_v3 = vld [vmem:[%s19120_s5 + $0x1fa0] sm:$0xff]  ;;  %v1292_v4 = vld [vmem:[%s19120_s5 + $0x1f28] sm:$0xff] }
 0x2d8   : > { %13354 = vmatprep.subr.bf16.mxu0 %v17100_v5  ;;  %13518 = vmatprep.subr.bf16.mxu1 %v17102_v6  ;;  %v1308_v5 = vld [vmem:[%s19120_s5 + $0x1fa8] sm:$0xff]  ;;  %v17291_v6 = vcombine.low %v1259_v54, %v1275_v55  ;;  %v17324_v8 = vcombine.high %v1291_v1, %v1307_v3 }
 0x2d9   : > { %v17326_v9 = vcombine.high %v1292_v4, %v1308_v5  ;;  %v17325_v16 = vcombine.low %v1292_v4, %v1308_v5  ;;  %v1515_v5 = vld [vmem:[%s19120_s5 + $0x2620] sm:$0xff] }
 0x2db   : > { %13355 = vmatpush1.bf16.msra.mxu0 %v17099_v11  ;;  %13519 = vmatpush1.bf16.msra.mxu1 %v17101_v12  ;;  %v1339_v11 = vld [vmem:[%s19120_s5 + $0x20a0] sm:$0xff]  ;;  %v1324_v12 = vld [vmem:[%s19120_s5 + $0x2028] sm:$0xff] }
 0x2dc   : > { %13356 = vmatprep.subr.bf16.mxu0 %v17132_v13  ;;  %13520 = vmatprep.subr.bf16.mxu1 %v17134_v15  ;;  %v1340_v13 = vld [vmem:[%s19120_s5 + $0x20a8] sm:$0xff]  ;;  %v17323_v15 = vcombine.low %v1291_v1, %v1307_v3  ;;  %v17356_v17 = vcombine.high %v1323_v10, %v1339_v11 }
 0x2dd   : > { %v17358_v18 = vcombine.high %v1324_v12, %v1340_v13  ;;  %v17357_v25 = vcombine.low %v1324_v12, %v1340_v13  ;;  %v1547_v13 = vld [vmem:[%s19120_s5 + $0x2720] sm:$0xff] }
 0x2df   : > { %13357 = vmatpush1.bf16.msra.mxu0 %v17131_v20  ;;  %13521 = vmatpush1.bf16.msra.mxu1 %v17133_v21  ;;  %v1371_v20 = vld [vmem:[%s19120_s5 + $0x21a0] sm:$0xff]  ;;  %v1356_v21 = vld [vmem:[%s19120_s5 + $0x2128] sm:$0xff] }
 0x2e0   : > { %13358 = vmatprep.subr.bf16.mxu0 %v17164_v22  ;;  %13522 = vmatprep.subr.bf16.mxu1 %v17166_v23  ;;  %v1372_v22 = vld [vmem:[%s19120_s5 + $0x21a8] sm:$0xff]  ;;  %v17355_v23 = vcombine.low %v1323_v10, %v1339_v11  ;;  %v17388_v26 = vcombine.high %v1355_v19, %v1371_v20 }
 0x2e1   : > { %v17390_v28 = vcombine.high %v1356_v21, %v1372_v22  ;;  %v17389_v35 = vcombine.low %v1356_v21, %v1372_v22  ;;  %v1579_v22 = vld [vmem:[%s19120_s5 + $0x2820] sm:$0xff] }
 0x2e3   : > { %13359 = vmatpush1.bf16.msra.mxu0 %v17163_v31  ;;  %13523 = vmatpush1.bf16.msra.mxu1 %v17165_v32  ;;  %v1403_v31 = vld [vmem:[%s19120_s5 + $0x22a0] sm:$0xff]  ;;  %v1388_v32 = vld [vmem:[%s19120_s5 + $0x2228] sm:$0xff] }
 0x2e4   : > { %13360 = vmatprep.subr.bf16.mxu0 %v17196_v33  ;;  %13524 = vmatprep.subr.bf16.mxu1 %v17198_v34  ;;  %v1404_v33 = vld [vmem:[%s19120_s5 + $0x22a8] sm:$0xff]  ;;  %v17387_v34 = vcombine.low %v1355_v19, %v1371_v20  ;;  %v17420_v36 = vcombine.high %v1387_v29, %v1403_v31 }
 0x2e5   : > { %v17422_v38 = vcombine.high %v1388_v32, %v1404_v33  ;;  %v17421_v46 = vcombine.low %v1388_v32, %v1404_v33  ;;  %v1611_v33 = vld [vmem:[%s19120_s5 + $0x2920] sm:$0xff] }
 0x2e7   : > { %13361 = vmatpush1.bf16.msra.mxu0 %v17195_v40  ;;  %13525 = vmatpush1.bf16.msra.mxu1 %v17197_v41  ;;  %v1435_v40 = vld [vmem:[%s19120_s5 + $0x23a0] sm:$0xff]  ;;  %v1420_v41 = vld [vmem:[%s19120_s5 + $0x2328] sm:$0xff] }
 0x2e8   : > { %13362 = vmatprep.subr.bf16.mxu0 %v17228_v43  ;;  %13526 = vmatprep.subr.bf16.mxu1 %v17230_v45  ;;  %v1436_v43 = vld [vmem:[%s19120_s5 + $0x23a8] sm:$0xff]  ;;  %v17419_v45 = vcombine.low %v1387_v29, %v1403_v31  ;;  %v17452_v48 = vcombine.high %v1419_v39, %v1435_v40 }
 0x2e9   : > { %v17454_v49 = vcombine.high %v1420_v41, %v1436_v43  ;;  %v17453_v54 = vcombine.low %v1420_v41, %v1436_v43  ;;  %v1643_v43 = vld [vmem:[%s19120_s5 + $0x2a20] sm:$0xff] }
 0x2eb   : > { %13363 = vmatpush1.bf16.msra.mxu0 %v17227_v51  ;;  %13527 = vmatpush1.bf16.msra.mxu1 %v17229_v24  ;;  %v1467_v51 = vld [vmem:[%s19120_s5 + $0x24a0] sm:$0xff]  ;;  %v1452_v24 = vld [vmem:[%s19120_s5 + $0x2428] sm:$0xff] }
 0x2ec   : > { %13364 = vmatprep.subr.bf16.mxu0 %v17260_v52  ;;  %13528 = vmatprep.subr.bf16.mxu1 %v17262_v53  ;;  %v1468_v52 = vld [vmem:[%s19120_s5 + $0x24a8] sm:$0xff]  ;;  %v17451_v53 = vcombine.low %v1419_v39, %v1435_v40  ;;  %v17484_v55 = vcombine.high %v1451_v50, %v1467_v51 }
 0x2ed   : > { %v17486_v56 = vcombine.high %v1452_v24, %v1468_v52  ;;  %v17485_v1 = vcombine.low %v1452_v24, %v1468_v52  ;;  %v1675_v52 = vld [vmem:[%s19120_s5 + $0x2b20] sm:$0xff] }
 0x2ef   : > { %13365 = vmatpush1.bf16.msra.mxu0 %v17259_v58  ;;  %13529 = vmatpush1.bf16.msra.mxu1 %v17261_v62  ;;  %v1499_v58 = vld [vmem:[%s19120_s5 + $0x25a0] sm:$0xff]  ;;  %v1484_v62 = vld [vmem:[%s19120_s5 + $0x2528] sm:$0xff] }
 0x2f0   : > { %13366 = vmatprep.subr.bf16.mxu0 %v17292_v63  ;;  %13530 = vmatprep.subr.bf16.mxu1 %v17294_v0  ;;  %v1500_v63 = vld [vmem:[%s19120_s5 + $0x25a8] sm:$0xff]  ;;  %v17483_v0 = vcombine.low %v1451_v50, %v1467_v51  ;;  %v17516_v3 = vcombine.high %v1483_v57, %v1499_v58 }
 0x2f1   : > { %v17518_v4 = vcombine.high %v1484_v62, %v1500_v63  ;;  %v17517_v10 = vcombine.low %v1484_v62, %v1500_v63  ;;  %v1707_v63 = vld [vmem:[%s19120_s5 + $0x2c20] sm:$0xff] }
 0x2f3   : > { %13367 = vmatpush1.bf16.msra.mxu0 %v17291_v6  ;;  %13531 = vmatpush1.bf16.msra.mxu1 %v17293_v7  ;;  %v1531_v6 = vld [vmem:[%s19120_s5 + $0x26a0] sm:$0xff]  ;;  %v1516_v7 = vld [vmem:[%s19120_s5 + $0x2628] sm:$0xff] }
 0x2f4   : > { %13368 = vmatprep.subr.bf16.mxu0 %v17324_v8  ;;  %13532 = vmatprep.subr.bf16.mxu1 %v17326_v9  ;;  %v1532_v8 = vld [vmem:[%s19120_s5 + $0x26a8] sm:$0xff]  ;;  %v17515_v9 = vcombine.low %v1483_v57, %v1499_v58  ;;  %v17548_v11 = vcombine.high %v1515_v5, %v1531_v6 }
 0x2f5   : > { %v17550_v12 = vcombine.high %v1516_v7, %v1532_v8  ;;  %v17549_v19 = vcombine.low %v1516_v7, %v1532_v8  ;;  %v1739_v8 = vld [vmem:[%s19120_s5 + $0x2d20] sm:$0xff] }
 0x2f7   : > { %13369 = vmatpush1.bf16.msra.mxu0 %v17323_v15  ;;  %13533 = vmatpush1.bf16.msra.mxu1 %v17325_v16  ;;  %v1563_v15 = vld [vmem:[%s19120_s5 + $0x27a0] sm:$0xff]  ;;  %v1548_v16 = vld [vmem:[%s19120_s5 + $0x2728] sm:$0xff] }
 0x2f8   : > { %13379 = vmatprep.subr.bf16.mxu0 %v17356_v17  ;;  %13543 = vmatprep.subr.bf16.mxu1 %v17358_v18  ;;  %v1564_v17 = vld [vmem:[%s19120_s5 + $0x27a8] sm:$0xff]  ;;  %v17547_v18 = vcombine.low %v1515_v5, %v1531_v6  ;;  %v17580_v20 = vcombine.high %v1547_v13, %v1563_v15 }
 0x2f9   : > { %v17582_v21 = vcombine.high %v1548_v16, %v1564_v17  ;;  %v17581_v29 = vcombine.low %v1548_v16, %v1564_v17  ;;  %v1771_v17 = vld [vmem:[%s19120_s5 + $0x2e20] sm:$0xff] }
 0x2fa   : > { %13371 = vmatmul.mubr.bf16.vlgmr.msra.gmra.mrb[8].mxu0 %v19342_v2  ;;  %13535 = vmatmul.mubr.bf16.vlgmr.msra.gmra.mrb[8].mxu1 %v19342_v2 }
 0x2fb   : > { %13380 = vmatpush1.bf16.msra.mxu0 %v17355_v23  ;;  %13544 = vmatpush1.bf16.msra.mxu1 %v17357_v25  ;;  %v1595_v23 = vld [vmem:[%s19120_s5 + $0x28a0] sm:$0xff]  ;;  %v1580_v25 = vld [vmem:[%s19120_s5 + $0x2828] sm:$0xff] }
 0x2fc   : > { %13381 = vmatprep.subr.bf16.mxu0 %v17388_v26  ;;  %13545 = vmatprep.subr.bf16.mxu1 %v17390_v28  ;;  %v1596_v26 = vld [vmem:[%s19120_s5 + $0x28a8] sm:$0xff]  ;;  %v17579_v28 = vcombine.low %v1547_v13, %v1563_v15  ;;  %v17612_v31 = vcombine.high %v1579_v22, %v1595_v23 }
 0x2fd   : > { %13411 = vmatprep.mubr.bf16.mxu0 %v19274_v60  ;;  %13575 = vmatprep.mubr.bf16.mxu1 %v19274_v60  ;;  %v17614_v32 = vcombine.high %v1580_v25, %v1596_v26  ;;  %v17613_v39 = vcombine.low %v1580_v25, %v1596_v26  ;;  %v1803_v26 = vld [vmem:[%s19120_s5 + $0x2f20] sm:$0xff] }
 0x2ff   : > { %13382 = vmatpush1.bf16.msra.mxu0 %v17387_v34  ;;  %13546 = vmatpush1.bf16.msra.mxu1 %v17389_v35  ;;  %v1627_v34 = vld [vmem:[%s19120_s5 + $0x29a0] sm:$0xff]  ;;  %v1612_v35 = vld [vmem:[%s19120_s5 + $0x2928] sm:$0xff] }
 0x300   : > { %13383 = vmatprep.subr.bf16.mxu0 %v17420_v36  ;;  %13547 = vmatprep.subr.bf16.mxu1 %v17422_v38  ;;  %v1628_v36 = vld [vmem:[%s19120_s5 + $0x29a8] sm:$0xff]  ;;  %v17611_v38 = vcombine.low %v1579_v22, %v1595_v23  ;;  %v17644_v40 = vcombine.high %v1611_v33, %v1627_v34 }
 0x301   : > { %v17646_v41 = vcombine.high %v1612_v35, %v1628_v36  ;;  %v17645_v50 = vcombine.low %v1612_v35, %v1628_v36  ;;  %v1835_v36 = vld [vmem:[%s19120_s5 + $0x3020] sm:$0xff] }
 0x303   : > { %13384 = vmatpush1.bf16.msra.mxu0 %v17419_v45  ;;  %13548 = vmatpush1.bf16.msra.mxu1 %v17421_v46  ;;  %v1659_v45 = vld [vmem:[%s19120_s5 + $0x2aa0] sm:$0xff]  ;;  %v1644_v46 = vld [vmem:[%s19120_s5 + $0x2a28] sm:$0xff] }
 0x304   : > { %13385 = vmatprep.subr.bf16.mxu0 %v17452_v48  ;;  %13549 = vmatprep.subr.bf16.mxu1 %v17454_v49  ;;  %v1660_v48 = vld [vmem:[%s19120_s5 + $0x2aa8] sm:$0xff]  ;;  %v17643_v49 = vcombine.low %v1611_v33, %v1627_v34  ;;  %v17676_v51 = vcombine.high %v1643_v43, %v1659_v45 }
 0x305   : > { %v17678_v24 = vcombine.high %v1644_v46, %v1660_v48  ;;  %v17677_v57 = vcombine.low %v1644_v46, %v1660_v48  ;;  %v1867_v48 = vld [vmem:[%s19120_s5 + $0x3120] sm:$0xff] }
 0x307   : > { %13386 = vmatpush1.bf16.msra.mxu0 %v17451_v53  ;;  %13550 = vmatpush1.bf16.msra.mxu1 %v17453_v54  ;;  %v1691_v53 = vld [vmem:[%s19120_s5 + $0x2ba0] sm:$0xff]  ;;  %v1676_v54 = vld [vmem:[%s19120_s5 + $0x2b28] sm:$0xff] }
 0x308   : > { %13387 = vmatprep.subr.bf16.mxu0 %v17484_v55  ;;  %13551 = vmatprep.subr.bf16.mxu1 %v17486_v56  ;;  %v1692_v55 = vld [vmem:[%s19120_s5 + $0x2ba8] sm:$0xff]  ;;  %v17675_v56 = vcombine.low %v1643_v43, %v1659_v45  ;;  %v17708_v58 = vcombine.high %v1675_v52, %v1691_v53 }
 0x309   : > { %v17710_v62 = vcombine.high %v1676_v54, %v1692_v55  ;;  %v17709_v5 = vcombine.low %v1676_v54, %v1692_v55  ;;  %v1899_v55 = vld [vmem:[%s19120_s5 + $0x3220] sm:$0xff] }
 0x30b   : > { %13388 = vmatpush1.bf16.msra.mxu0 %v17483_v0  ;;  %13552 = vmatpush1.bf16.msra.mxu1 %v17485_v1  ;;  %v1723_v0 = vld [vmem:[%s19120_s5 + $0x2ca0] sm:$0xff]  ;;  %v1708_v1 = vld [vmem:[%s19120_s5 + $0x2c28] sm:$0xff] }
 0x30c   : > { %13389 = vmatprep.subr.bf16.mxu0 %v17516_v3  ;;  %13553 = vmatprep.subr.bf16.mxu1 %v17518_v4  ;;  %v1724_v3 = vld [vmem:[%s19120_s5 + $0x2ca8] sm:$0xff]  ;;  %v17707_v4 = vcombine.low %v1675_v52, %v1691_v53  ;;  %v17740_v6 = vcombine.high %v1707_v63, %v1723_v0 }
 0x30d   : > { %v17742_v7 = vcombine.high %v1708_v1, %v1724_v3  ;;  %v17741_v13 = vcombine.low %v1708_v1, %v1724_v3  ;;  %v1931_v3 = vld [vmem:[%s19120_s5 + $0x3320] sm:$0xff] }
 0x30f   : > { %13390 = vmatpush1.bf16.msra.mxu0 %v17515_v9  ;;  %13554 = vmatpush1.bf16.msra.mxu1 %v17517_v10  ;;  %v1755_v9 = vld [vmem:[%s19120_s5 + $0x2da0] sm:$0xff]  ;;  %v1740_v10 = vld [vmem:[%s19120_s5 + $0x2d28] sm:$0xff] }
 0x310   : > { %13391 = vmatprep.subr.bf16.mxu0 %v17548_v11  ;;  %13555 = vmatprep.subr.bf16.mxu1 %v17550_v12  ;;  %v1756_v11 = vld [vmem:[%s19120_s5 + $0x2da8] sm:$0xff]  ;;  %v17739_v12 = vcombine.low %v1707_v63, %v1723_v0  ;;  %v17772_v15 = vcombine.high %v1739_v8, %v1755_v9 }
 0x311   : > { %v17774_v16 = vcombine.high %v1740_v10, %v1756_v11  ;;  %v17773_v22 = vcombine.low %v1740_v10, %v1756_v11  ;;  %v1963_v11 = vld [vmem:[%s19120_s5 + $0x3420] sm:$0xff] }
 0x313   : > { %13392 = vmatpush1.bf16.msra.mxu0 %v17547_v18  ;;  %13556 = vmatpush1.bf16.msra.mxu1 %v17549_v19  ;;  %v1787_v18 = vld [vmem:[%s19120_s5 + $0x2ea0] sm:$0xff]  ;;  %v1772_v19 = vld [vmem:[%s19120_s5 + $0x2e28] sm:$0xff] }
 0x314   : > { %13393 = vmatprep.subr.bf16.mxu0 %v17580_v20  ;;  %13557 = vmatprep.subr.bf16.mxu1 %v17582_v21  ;;  %v1788_v20 = vld [vmem:[%s19120_s5 + $0x2ea8] sm:$0xff]  ;;  %v17771_v21 = vcombine.low %v1739_v8, %v1755_v9  ;;  %v17804_v23 = vcombine.high %v1771_v17, %v1787_v18 }
 0x315   : > { %v17806_v25 = vcombine.high %v1772_v19, %v1788_v20  ;;  %v17805_v33 = vcombine.low %v1772_v19, %v1788_v20  ;;  %v1995_v20 = vld [vmem:[%s19120_s5 + $0x3520] sm:$0xff] }
 0x317   : > { %13394 = vmatpush1.bf16.msra.mxu0 %v17579_v28  ;;  %13558 = vmatpush1.bf16.msra.mxu1 %v17581_v29  ;;  %v1819_v28 = vld [vmem:[%s19120_s5 + $0x2fa0] sm:$0xff]  ;;  %v1804_v29 = vld [vmem:[%s19120_s5 + $0x2f28] sm:$0xff] }
 0x318   : > { %13395 = vmatprep.subr.bf16.mxu0 %v17612_v31  ;;  %13559 = vmatprep.subr.bf16.mxu1 %v17614_v32  ;;  %v1820_v31 = vld [vmem:[%s19120_s5 + $0x2fa8] sm:$0xff]  ;;  %v17803_v32 = vcombine.low %v1771_v17, %v1787_v18  ;;  %v17836_v34 = vcombine.high %v1803_v26, %v1819_v28 }
 0x319   : > { %v17838_v35 = vcombine.high %v1804_v29, %v1820_v31  ;;  %v17837_v43 = vcombine.low %v1804_v29, %v1820_v31  ;;  %v2027_v31 = vld [vmem:[%s19120_s5 + $0x3620] sm:$0xff] }
 0x31b   : > { %13396 = vmatpush1.bf16.msra.mxu0 %v17611_v38  ;;  %13560 = vmatpush1.bf16.msra.mxu1 %v17613_v39  ;;  %v1851_v38 = vld [vmem:[%s19120_s5 + $0x30a0] sm:$0xff]  ;;  %v1836_v39 = vld [vmem:[%s19120_s5 + $0x3028] sm:$0xff] }
 0x31c   : > { %13397 = vmatprep.subr.bf16.mxu0 %v17644_v40  ;;  %13561 = vmatprep.subr.bf16.mxu1 %v17646_v41  ;;  %v1852_v40 = vld [vmem:[%s19120_s5 + $0x30a8] sm:$0xff]  ;;  %v17835_v41 = vcombine.low %v1803_v26, %v1819_v28  ;;  %v17868_v45 = vcombine.high %v1835_v36, %v1851_v38 }
 0x31d   : > { %v17870_v46 = vcombine.high %v1836_v39, %v1852_v40  ;;  %v17869_v52 = vcombine.low %v1836_v39, %v1852_v40 }
 0x31f   : > { %13398 = vmatpush1.bf16.msra.mxu0 %v17643_v49  ;;  %13562 = vmatpush1.bf16.msra.mxu1 %v17645_v50  ;;  %v1883_v49 = vld [vmem:[%s19120_s5 + $0x31a0] sm:$0xff]  ;;  %v1868_v50 = vld [vmem:[%s19120_s5 + $0x3128] sm:$0xff] }
 0x320   : > { %13399 = vmatprep.subr.bf16.mxu0 %v17676_v51  ;;  %13563 = vmatprep.subr.bf16.mxu1 %v17678_v24  ;;  %v1884_v51 = vld [vmem:[%s19120_s5 + $0x31a8] sm:$0xff]  ;;  %v17867_v24 = vcombine.low %v1835_v36, %v1851_v38  ;;  %v17900_v53 = vcombine.high %v1867_v48, %v1883_v49 }
 0x321   : > { %v17902_v54 = vcombine.high %v1868_v50, %v1884_v51  ;;  %v17901_v63 = vcombine.low %v1868_v50, %v1884_v51 }
 0x323   : > { %13400 = vmatpush1.bf16.msra.mxu0 %v17675_v56  ;;  %13564 = vmatpush1.bf16.msra.mxu1 %v17677_v57  ;;  %v1915_v56 = vld [vmem:[%s19120_s5 + $0x32a0] sm:$0xff]  ;;  %v1900_v57 = vld [vmem:[%s19120_s5 + $0x3228] sm:$0xff] }
 0x324   : > { %13401 = vmatprep.subr.bf16.mxu0 %v17708_v58  ;;  %13565 = vmatprep.subr.bf16.mxu1 %v17710_v62  ;;  %v1916_v58 = vld [vmem:[%s19120_s5 + $0x32a8] sm:$0xff]  ;;  %v17899_v62 = vcombine.low %v1867_v48, %v1883_v49  ;;  %v17932_v0 = vcombine.high %v1899_v55, %v1915_v56 }
 0x325   : > { %v17934_v1 = vcombine.high %v1900_v57, %v1916_v58  ;;  %v17933_v8 = vcombine.low %v1900_v57, %v1916_v58  ;;  %v2060_v48 = vld [vmem:[%s19120_s5 + $0x3728] sm:$0xff] }
 0x326   : > { %v2076_v49 = vld [vmem:[%s19120_s5 + $0x37a8] sm:$0xff] }
 0x327   : > { %13402 = vmatpush1.bf16.msra.mxu0 %v17707_v4  ;;  %13566 = vmatpush1.bf16.msra.mxu1 %v17709_v5  ;;  %v1947_v4 = vld [vmem:[%s19120_s5 + $0x33a0] sm:$0xff]  ;;  %v1932_v5 = vld [vmem:[%s19120_s5 + $0x3328] sm:$0xff] }
 0x328   : > { %13403 = vmatprep.subr.bf16.mxu0 %v17740_v6  ;;  %13567 = vmatprep.subr.bf16.mxu1 %v17742_v7  ;;  %v1948_v6 = vld [vmem:[%s19120_s5 + $0x33a8] sm:$0xff]  ;;  %v17931_v7 = vcombine.low %v1899_v55, %v1915_v56  ;;  %v17964_v9 = vcombine.high %v1931_v3, %v1947_v4 }
 0x329   : > { %v17966_v10 = vcombine.high %v1932_v5, %v1948_v6  ;;  %v17965_v17 = vcombine.low %v1932_v5, %v1948_v6  ;;  %v2108_v5 = vld [vmem:[%s19120_s5 + $0x38a8] sm:$0xff] }
 0x32a   : > { %v288_v6 = vld [vmem:[#allocation3 + $0x8] sm:$0xff] }
 0x32b   : > { %13404 = vmatpush1.bf16.msra.mxu0 %v17739_v12  ;;  %13568 = vmatpush1.bf16.msra.mxu1 %v17741_v13  ;;  %v1979_v12 = vld [vmem:[%s19120_s5 + $0x34a0] sm:$0xff]  ;;  %v1964_v13 = vld [vmem:[%s19120_s5 + $0x3428] sm:$0xff] }
 0x32c   : > { %13405 = vmatprep.subr.bf16.mxu0 %v17772_v15  ;;  %13569 = vmatprep.subr.bf16.mxu1 %v17774_v16  ;;  %v1980_v15 = vld [vmem:[%s19120_s5 + $0x34a8] sm:$0xff]  ;;  %v17963_v16 = vcombine.low %v1931_v3, %v1947_v4  ;;  %v17996_v18 = vcombine.high %v1963_v11, %v1979_v12 }
 0x32d   : > { %v17998_v19 = vcombine.high %v1964_v13, %v1980_v15  ;;  %v17997_v26 = vcombine.low %v1964_v13, %v1980_v15  ;;  %v2092_v4 = vld [vmem:[%s19120_s5 + $0x3828] sm:$0xff]  ;;  %v2139_v13 = vld [vmem:[%s19120_s5 + $0x39a0] sm:$0xff] }
 0x32f   : > { %13406 = vmatpush1.bf16.msra.mxu0 %v17771_v21  ;;  %13570 = vmatpush1.bf16.msra.mxu1 %v17773_v22  ;;  %v2011_v21 = vld [vmem:[%s19120_s5 + $0x35a0] sm:$0xff]  ;;  %v1996_v22 = vld [vmem:[%s19120_s5 + $0x3528] sm:$0xff] }
 0x330   : > { %13407 = vmatprep.subr.bf16.mxu0 %v17804_v23  ;;  %13571 = vmatprep.subr.bf16.mxu1 %v17806_v25  ;;  %v2012_v23 = vld [vmem:[%s19120_s5 + $0x35a8] sm:$0xff]  ;;  %v17995_v25 = vcombine.low %v1963_v11, %v1979_v12  ;;  %v18028_v28 = vcombine.high %v1995_v20, %v2011_v21  ;;  %v18126_v11 = vcombine.high %v2092_v4, %v2108_v5  ;;  %v2123_v12 = vld [vmem:[%s19120_s5 + $0x3920] sm:$0xff] }
 0x331   : > { %v18030_v29 = vcombine.high %v1996_v22, %v2012_v23  ;;  %v18029_v36 = vcombine.low %v1996_v22, %v2012_v23  ;;  %v2155_v22 = vld [vmem:[%s19120_s5 + $0x3a20] sm:$0xff] }
 0x332   : > { %v2171_v23 = vld [vmem:[%s19120_s5 + $0x3aa0] sm:$0xff] }
 0x333   : > { %13408 = vmatpush1.bf16.msra.mxu0 %v17803_v32  ;;  %13572 = vmatpush1.bf16.msra.mxu1 %v17805_v33  ;;  %v2043_v32 = vld [vmem:[%s19120_s5 + $0x36a0] sm:$0xff]  ;;  %v2028_v33 = vld [vmem:[%s19120_s5 + $0x3628] sm:$0xff] }
 0x334   : > { %13409 = vmatprep.subr.bf16.mxu0 %v17836_v34  ;;  %13573 = vmatprep.subr.bf16.mxu1 %v17838_v35  ;;  %v2044_v34 = vld [vmem:[%s19120_s5 + $0x36a8] sm:$0xff]  ;;  %v18027_v35 = vcombine.low %v1995_v20, %v2011_v21  ;;  %v18060_v38 = vcombine.high %v2027_v31, %v2043_v32  ;;  %v18156_v20 = vcombine.high %v2123_v12, %v2139_v13 }
 0x335   : > { %v18062_v40 = vcombine.high %v2028_v33, %v2044_v34  ;;  %v18061_v56 = vcombine.low %v2028_v33, %v2044_v34  ;;  %v2187_v33 = vld [vmem:[%s19120_s5 + $0x3b20] sm:$0xff] }
 0x336   : > { %v2203_v34 = vld [vmem:[%s19120_s5 + $0x3ba0] sm:$0xff] }
 0x337   : > { %13410 = vmatpush1.bf16.msra.mxu0 %v17835_v41  ;;  %13574 = vmatpush1.bf16.msra.mxu1 %v17837_v43  ;;  %v2059_v41 = vld [vmem:[%s19120_s5 + $0x3720] sm:$0xff] }
 0x338   : > { %13420 = vmatprep.subr.bf16.mxu0 %v17868_v45  ;;  %13584 = vmatprep.subr.bf16.mxu1 %v17870_v46  ;;  %v2075_v43 = vld [vmem:[%s19120_s5 + $0x37a0] sm:$0xff] }
 0x339   : > { %v18092_v57 = vcombine.high %v2059_v41, %v2075_v43 }
 0x33a   : > { %13412 = vmatmul.mubr.bf16.vlgmr.msra.gmra.mrb[8].mxu0 %v19277_v61  ;;  %13576 = vmatmul.mubr.bf16.vlgmr.msra.gmra.mrb[8].mxu1 %v19277_v61 }
 0x33b   : > { %13421 = vmatpush1.bf16.msra.mxu0 %v17867_v24  ;;  %13585 = vmatpush1.bf16.msra.mxu1 %v17869_v52  ;;  %v18059_v52 = vcombine.low %v2027_v31, %v2043_v32  ;;  %v18188_v31 = vcombine.high %v2155_v22, %v2171_v23 }
 0x33c   : > { %13422 = vmatprep.subr.bf16.mxu0 %v17900_v53  ;;  %13586 = vmatprep.subr.bf16.mxu1 %v17902_v54 }
 0x33d   : > { %13452 = vmatprep.mubr.bf16.mxu0 %v19418_v30  ;;  %13616 = vmatprep.mubr.bf16.mxu1 %v19418_v30 }
 0x33f   : > { %13423 = vmatpush1.bf16.msra.mxu0 %v17899_v62  ;;  %13587 = vmatpush1.bf16.msra.mxu1 %v17901_v63  ;;  %v18094_v63 = vcombine.high %v2060_v48, %v2076_v49 }
 0x340   : > { %13424 = vmatprep.subr.bf16.mxu0 %v17932_v0  ;;  %13588 = vmatprep.subr.bf16.mxu1 %v17934_v1  ;;  %v2091_v0 = vld [vmem:[%s19120_s5 + $0x3820] sm:$0xff] }
 0x341   : > { %v2107_v1 = vld [vmem:[%s19120_s5 + $0x38a0] sm:$0xff] }
 0x343   : > { %13425 = vmatpush1.bf16.msra.mxu0 %v17931_v7  ;;  %13589 = vmatpush1.bf16.msra.mxu1 %v17933_v8  ;;  %v18091_v7 = vcombine.low %v2059_v41, %v2075_v43  ;;  %v2219_v43 = vld [vmem:[%s19120_s5 + $0x3c20] sm:$0xff] }
 0x344   : > { %13426 = vmatprep.subr.bf16.mxu0 %v17964_v9  ;;  %13590 = vmatprep.subr.bf16.mxu1 %v17966_v10  ;;  %v18093_v9 = vcombine.low %v2060_v48, %v2076_v49  ;;  %v18124_v10 = vcombine.high %v2091_v0, %v2107_v1  ;;  %v2236_v48 = vld [vmem:[%s19120_s5 + $0x3ca8] sm:$0xff]  ;;  %v18219_v49 = vcombine.low %v2187_v33, %v2203_v34 }
 0x347   : > { %13427 = vmatpush1.bf16.msra.mxu0 %v17963_v16  ;;  %13591 = vmatpush1.bf16.msra.mxu1 %v17965_v17  ;;  %v2124_v16 = vld [vmem:[%s19120_s5 + $0x3928] sm:$0xff] }
 0x348   : > { %13428 = vmatprep.subr.bf16.mxu0 %v17996_v18  ;;  %13592 = vmatprep.subr.bf16.mxu1 %v17998_v19  ;;  %v2140_v17 = vld [vmem:[%s19120_s5 + $0x39a8] sm:$0xff]  ;;  %v18123_v18 = vcombine.low %v2091_v0, %v2107_v1  ;;  %v18125_v19 = vcombine.low %v2092_v4, %v2108_v5  ;;  %v2299_v0 = vld [vmem:[%s19120_s5 + $0x3ea0] sm:$0xff] }
 0x349   : > { %v18158_v21 = vcombine.high %v2124_v16, %v2140_v17  ;;  %v2284_v1 = vld [vmem:[%s19120_s5 + $0x3e28] sm:$0xff] }
 0x34b   : > { %13429 = vmatpush1.bf16.msra.mxu0 %v17995_v25  ;;  %13593 = vmatpush1.bf16.msra.mxu1 %v17997_v26  ;;  %v2156_v25 = vld [vmem:[%s19120_s5 + $0x3a28] sm:$0xff] }
 0x34c   : > { %13430 = vmatprep.subr.bf16.mxu0 %v18028_v28  ;;  %13594 = vmatprep.subr.bf16.mxu1 %v18030_v29  ;;  %v2172_v26 = vld [vmem:[%s19120_s5 + $0x3aa8] sm:$0xff]  ;;  %v18155_v28 = vcombine.low %v2123_v12, %v2139_v13  ;;  %v18157_v29 = vcombine.low %v2124_v16, %v2140_v17  ;;  %v301_v17 = vld [vmem:[%s19120_s5 + $0x30] sm:$0xff] }
 0x34d   : > { %v13126_v39 = vpop.f32.mrb[4].mxu0  ;;  %v13290_v45 = vpop.f32.mrb[4].mxu1  ;;  %v18190_v32 = vcombine.high %v2156_v25, %v2172_v26 }
 0x34e   : > { %v13128_v46 = vpop.f32.mrb[5].mxu0  ;;  %v13292_v51 = vpop.f32.mrb[5].mxu1 }
 0x34f   : > { %v15314_v50 = vcombine.low %v13126_v39, %v13128_v46  ;;  %v13130_v24 = vpop.f32.mrb[6].mxu0  ;;  %13431 = vmatpush1.bf16.msra.mxu0 %v18027_v35  ;;  %v15315_v53 = vcombine.low %v13290_v45, %v13292_v51  ;;  %v13294_v54 = vpop.f32.mrb[6].mxu1  ;;  %13595 = vmatpush1.bf16.msra.mxu1 %v18029_v36  ;;  %v2188_v35 = vld [vmem:[%s19120_s5 + $0x3b28] sm:$0xff]  ;;  %v18189_v39 = vcombine.low %v2156_v25, %v2172_v26  ;;  %v2235_v45 = vld [vmem:[%s19120_s5 + $0x3ca0] sm:$0xff]  ;;  %v333_v26 = vld [vmem:[%s19120_s5 + $0x130] sm:$0xff] }
 0x350   : > { %v13131_v55 = vpop.f32.mrb[7].mxu0  ;;  %13432 = vmatprep.subr.bf16.mxu0 %v18060_v38  ;;  %v13295_v62 = vpop.f32.mrb[7].mxu1  ;;  %13596 = vmatprep.subr.bf16.mxu1 %v18062_v40  ;;  %v2204_v36 = vld [vmem:[%s19120_s5 + $0x3ba8] sm:$0xff]  ;;  %v18187_v38 = vcombine.low %v2155_v22, %v2171_v23  ;;  %v18220_v40 = vcombine.high %v2187_v33, %v2203_v34  ;;  %v18252_v51 = vcombine.high %v2219_v43, %v2235_v45 }
 0x351   : > { %v15322_v58 = vrot.slane %v15314_v50, %v19719_v44  ;;  %v15329_v3 = vrot.slane %v15315_v53, %v19719_v44  ;;  %v18222_v41 = vcombine.high %v2188_v35, %v2204_v36  ;;  %v2220_v46 = vld [vmem:[%s19120_s5 + $0x3c28] sm:$0xff]  ;;  %v18221_v50 = vcombine.low %v2188_v35, %v2204_v36  ;;  %v2267_v53 = vld [vmem:[%s19120_s5 + $0x3da0] sm:$0xff]  ;;  %v365_v36 = vld [vmem:[%s19120_s5 + $0x230] sm:$0xff] }
 0x352   : > { %v18254_v24 = vcombine.high %v2220_v46, %v2236_v48  ;;  %v2252_v54 = vld [vmem:[%s19120_s5 + $0x3d28] sm:$0xff] }
 0x353   : > { %13433 = vmatpush1.bf16.msra.mxu0 %v18059_v52  ;;  %v15330_v8 = vcombine.low %v15322_v58, %v15329_v3  ;;  %13597 = vmatpush1.bf16.msra.mxu1 %v18061_v56  ;;  %v2251_v52 = vld [vmem:[%s19120_s5 + $0x3d20] sm:$0xff]  ;;  %v2268_v55 = vld [vmem:[%s19120_s5 + $0x3da8] sm:$0xff]  ;;  %v18251_v56 = vcombine.low %v2219_v43, %v2235_v45 }
 0x354   : > { %13434 = vmatprep.subr.bf16.mxu0 %v18092_v57  ;;  %13598 = vmatprep.subr.bf16.mxu1 %v18094_v63  ;;  %v18253_v57 = vcombine.low %v2220_v46, %v2236_v48  ;;  %v18284_v58 = vcombine.high %v2251_v52, %v2267_v53  ;;  %v18286_v62 = vcombine.high %v2252_v54, %v2268_v55  ;;  %v2283_v63 = vld [vmem:[%s19120_s5 + $0x3e20] sm:$0xff]  ;;  %v2300_v3 = vld [vmem:[%s19120_s5 + $0x3ea8] sm:$0xff]  ;;  %v397_v48 = vld [vmem:[%s19120_s5 + $0x330] sm:$0xff] }
 0x355   : > { %v15442_v15 = vadd.f32 %v15330_v8, %v288_v6  ;;  %v18283_v4 = vcombine.low %v2251_v52, %v2267_v53  ;;  %v18285_v5 = vcombine.low %v2252_v54, %v2268_v55  ;;  %v18316_v6 = vcombine.high %v2283_v63, %v2299_v0  ;;  %v2315_v8 = vld [vmem:[%s19120_s5 + $0x3f20] sm:$0xff]  ;;  %v429_v55 = vld [vmem:[%s19120_s5 + $0x430] sm:$0xff] }
 0x356   : > { %v18315_v12 = vcombine.low %v2283_v63, %v2299_v0  ;;  %v18317_v13 = vcombine.low %v2284_v1, %v2300_v3 }
 0x357   : > { %13435 = vmatpush1.bf16.msra.mxu0 %v18091_v7  ;;  %15450 = vst [vmem:[#allocation3 + $0x8] sm:$0xff] %v15442_v15  ;;  %13599 = vmatpush1.bf16.msra.mxu1 %v18093_v9  ;;  %v18318_v7 = vcombine.high %v2284_v1, %v2300_v3  ;;  %v2331_v9 = vld [vmem:[%s19120_s5 + $0x3fa0] sm:$0xff]  ;;  %v461_v3 = vld [vmem:[%s19120_s5 + $0x530] sm:$0xff] }
 0x358   : > { %13436 = vmatprep.subr.bf16.mxu0 %v18124_v10  ;;  %13600 = vmatprep.subr.bf16.mxu1 %v18126_v11  ;;  %v2316_v10 = vld [vmem:[%s19120_s5 + $0x3f28] sm:$0xff]  ;;  %v18348_v15 = vcombine.high %v2315_v8, %v2331_v9 }
 0x359   : > { %v2332_v11 = vld [vmem:[%s19120_s5 + $0x3fa8] sm:$0xff] }
 0x35a   : > { %v18350_v16 = vcombine.high %v2316_v10, %v2332_v11  ;;  %v18349_v22 = vcombine.low %v2316_v10, %v2332_v11  ;;  %v493_v11 = vld [vmem:[%s19120_s5 + $0x630] sm:$0xff] }
 0x35b   : > { %13437 = vmatpush1.bf16.msra.mxu0 %v18123_v18  ;;  %13601 = vmatpush1.bf16.msra.mxu1 %v18125_v19  ;;  %v317_v18 = vld [vmem:[%s19120_s5 + $0xb0] sm:$0xff]  ;;  %v302_v19 = vld [vmem:[%s19120_s5 + $0x38] sm:$0xff] }
 0x35c   : > { %13438 = vmatprep.subr.bf16.mxu0 %v18156_v20  ;;  %13602 = vmatprep.subr.bf16.mxu1 %v18158_v21  ;;  %v318_v20 = vld [vmem:[%s19120_s5 + $0xb8] sm:$0xff]  ;;  %v18347_v21 = vcombine.low %v2315_v8, %v2331_v9  ;;  %v16336_v23 = vcombine.high %v301_v17, %v317_v18 }
 0x35d   : > { %v16338_v25 = vcombine.high %v302_v19, %v318_v20  ;;  %v16337_v33 = vcombine.low %v302_v19, %v318_v20  ;;  %v525_v20 = vld [vmem:[%s19120_s5 + $0x730] sm:$0xff] }
 0x35f   : > { %13439 = vmatpush1.bf16.msra.mxu0 %v18155_v28  ;;  %13603 = vmatpush1.bf16.msra.mxu1 %v18157_v29  ;;  %v349_v28 = vld [vmem:[%s19120_s5 + $0x1b0] sm:$0xff]  ;;  %v334_v29 = vld [vmem:[%s19120_s5 + $0x138] sm:$0xff] }
 0x360   : > { %13440 = vmatprep.subr.bf16.mxu0 %v18188_v31  ;;  %13604 = vmatprep.subr.bf16.mxu1 %v18190_v32  ;;  %v350_v31 = vld [vmem:[%s19120_s5 + $0x1b8] sm:$0xff]  ;;  %v16335_v32 = vcombine.low %v301_v17, %v317_v18  ;;  %v16368_v34 = vcombine.high %v333_v26, %v349_v28 }
 0x361   : > { %v16370_v35 = vcombine.high %v334_v29, %v350_v31  ;;  %v16369_v43 = vcombine.low %v334_v29, %v350_v31  ;;  %v557_v31 = vld [vmem:[%s19120_s5 + $0x830] sm:$0xff] }
 0x363   : > { %13441 = vmatpush1.bf16.msra.mxu0 %v18187_v38  ;;  %13605 = vmatpush1.bf16.msra.mxu1 %v18189_v39  ;;  %v381_v38 = vld [vmem:[%s19120_s5 + $0x2b0] sm:$0xff]  ;;  %v366_v39 = vld [vmem:[%s19120_s5 + $0x238] sm:$0xff] }
 0x364   : > { %13442 = vmatprep.subr.bf16.mxu0 %v18220_v40  ;;  %13606 = vmatprep.subr.bf16.mxu1 %v18222_v41  ;;  %v382_v40 = vld [vmem:[%s19120_s5 + $0x2b8] sm:$0xff]  ;;  %v16367_v41 = vcombine.low %v333_v26, %v349_v28  ;;  %v16400_v45 = vcombine.high %v365_v36, %v381_v38 }
 0x365   : > { %v16402_v46 = vcombine.high %v366_v39, %v382_v40  ;;  %v16401_v52 = vcombine.low %v366_v39, %v382_v40  ;;  %v589_v40 = vld [vmem:[%s19120_s5 + $0x930] sm:$0xff] }
 0x367   : > { %13443 = vmatpush1.bf16.msra.mxu0 %v18219_v49  ;;  %13607 = vmatpush1.bf16.msra.mxu1 %v18221_v50  ;;  %v413_v49 = vld [vmem:[%s19120_s5 + $0x3b0] sm:$0xff]  ;;  %v398_v50 = vld [vmem:[%s19120_s5 + $0x338] sm:$0xff] }
 0x368   : > { %13444 = vmatprep.subr.bf16.mxu0 %v18252_v51  ;;  %13608 = vmatprep.subr.bf16.mxu1 %v18254_v24  ;;  %v414_v51 = vld [vmem:[%s19120_s5 + $0x3b8] sm:$0xff]  ;;  %v16399_v24 = vcombine.low %v365_v36, %v381_v38  ;;  %v16432_v53 = vcombine.high %v397_v48, %v413_v49 }
 0x369   : > { %v16434_v54 = vcombine.high %v398_v50, %v414_v51  ;;  %v16433_v63 = vcombine.low %v398_v50, %v414_v51  ;;  %v621_v51 = vld [vmem:[%s19120_s5 + $0xa30] sm:$0xff] }
 0x36b   : > { %13445 = vmatpush1.bf16.msra.mxu0 %v18251_v56  ;;  %13609 = vmatpush1.bf16.msra.mxu1 %v18253_v57  ;;  %v445_v56 = vld [vmem:[%s19120_s5 + $0x4b0] sm:$0xff]  ;;  %v430_v57 = vld [vmem:[%s19120_s5 + $0x438] sm:$0xff] }
 0x36c   : > { %13446 = vmatprep.subr.bf16.mxu0 %v18284_v58  ;;  %13610 = vmatprep.subr.bf16.mxu1 %v18286_v62  ;;  %v446_v58 = vld [vmem:[%s19120_s5 + $0x4b8] sm:$0xff]  ;;  %v16431_v62 = vcombine.low %v397_v48, %v413_v49  ;;  %v16464_v0 = vcombine.high %v429_v55, %v445_v56 }
 0x36d   : > { %v16466_v1 = vcombine.high %v430_v57, %v446_v58  ;;  %v16465_v8 = vcombine.low %v430_v57, %v446_v58  ;;  %v653_v58 = vld [vmem:[%s19120_s5 + $0xb30] sm:$0xff] }
 0x36f   : > { %13447 = vmatpush1.bf16.msra.mxu0 %v18283_v4  ;;  %13611 = vmatpush1.bf16.msra.mxu1 %v18285_v5  ;;  %v477_v4 = vld [vmem:[%s19120_s5 + $0x5b0] sm:$0xff]  ;;  %v462_v5 = vld [vmem:[%s19120_s5 + $0x538] sm:$0xff] }
 0x370   : > { %13448 = vmatprep.subr.bf16.mxu0 %v18316_v6  ;;  %13612 = vmatprep.subr.bf16.mxu1 %v18318_v7  ;;  %v478_v6 = vld [vmem:[%s19120_s5 + $0x5b8] sm:$0xff]  ;;  %v16463_v7 = vcombine.low %v429_v55, %v445_v56  ;;  %v16496_v9 = vcombine.high %v461_v3, %v477_v4 }
 0x371   : > { %v16498_v10 = vcombine.high %v462_v5, %v478_v6  ;;  %v16497_v17 = vcombine.low %v462_v5, %v478_v6  ;;  %v685_v6 = vld [vmem:[%s19120_s5 + $0xc30] sm:$0xff] }
 0x373   : > { %13449 = vmatpush1.bf16.msra.mxu0 %v18315_v12  ;;  %13613 = vmatpush1.bf16.msra.mxu1 %v18317_v13  ;;  %v509_v12 = vld [vmem:[%s19120_s5 + $0x6b0] sm:$0xff]  ;;  %v494_v13 = vld [vmem:[%s19120_s5 + $0x638] sm:$0xff] }
 0x374   : > { %13450 = vmatprep.subr.bf16.mxu0 %v18348_v15  ;;  %13614 = vmatprep.subr.bf16.mxu1 %v18350_v16  ;;  %v510_v15 = vld [vmem:[%s19120_s5 + $0x6b8] sm:$0xff]  ;;  %v16495_v16 = vcombine.low %v461_v3, %v477_v4  ;;  %v16528_v18 = vcombine.high %v493_v11, %v509_v12 }
 0x375   : > { %v16530_v19 = vcombine.high %v494_v13, %v510_v15  ;;  %v16529_v26 = vcombine.low %v494_v13, %v510_v15  ;;  %v717_v15 = vld [vmem:[%s19120_s5 + $0xd30] sm:$0xff] }
 0x377   : > { %13451 = vmatpush1.bf16.msra.mxu0 %v18347_v21  ;;  %13615 = vmatpush1.bf16.msra.mxu1 %v18349_v22  ;;  %v541_v21 = vld [vmem:[%s19120_s5 + $0x7b0] sm:$0xff]  ;;  %v526_v22 = vld [vmem:[%s19120_s5 + $0x738] sm:$0xff] }
 0x378   : > { %13625 = vmatprep.subr.bf16.mxu0 %v16336_v23  ;;  %13789 = vmatprep.subr.bf16.mxu1 %v16338_v25  ;;  %v542_v23 = vld [vmem:[%s19120_s5 + $0x7b8] sm:$0xff]  ;;  %v16527_v25 = vcombine.low %v493_v11, %v509_v12  ;;  %v16560_v28 = vcombine.high %v525_v20, %v541_v21 }
 0x379   : > { %v16562_v29 = vcombine.high %v526_v22, %v542_v23  ;;  %v16561_v36 = vcombine.low %v526_v22, %v542_v23  ;;  %v749_v23 = vld [vmem:[%s19120_s5 + $0xe30] sm:$0xff] }
 0x37a   : > { %13453 = vmatmul.mubr.bf16.vlgmr.msra.gmra.mrb[8].mxu0 %v19486_v42  ;;  %13617 = vmatmul.mubr.bf16.vlgmr.msra.gmra.mrb[8].mxu1 %v19486_v42 }
 0x37b   : > { %13626 = vmatpush1.bf16.msra.mxu0 %v16335_v32  ;;  %13790 = vmatpush1.bf16.msra.mxu1 %v16337_v33  ;;  %v573_v32 = vld [vmem:[%s19120_s5 + $0x8b0] sm:$0xff]  ;;  %v558_v33 = vld [vmem:[%s19120_s5 + $0x838] sm:$0xff] }
 0x37c   : > { %13627 = vmatprep.subr.bf16.mxu0 %v16368_v34  ;;  %13791 = vmatprep.subr.bf16.mxu1 %v16370_v35  ;;  %v574_v34 = vld [vmem:[%s19120_s5 + $0x8b8] sm:$0xff]  ;;  %v16559_v35 = vcombine.low %v525_v20, %v541_v21  ;;  %v16592_v38 = vcombine.high %v557_v31, %v573_v32 }
 0x37d   : > { %13657 = vmatprep.mubr.bf16.mxu0 %v19217_v37  ;;  %13821 = vmatprep.mubr.bf16.mxu1 %v19217_v37  ;;  %v16594_v39 = vcombine.high %v558_v33, %v574_v34  ;;  %v16593_v48 = vcombine.low %v558_v33, %v574_v34  ;;  %v781_v34 = vld [vmem:[%s19120_s5 + $0xf30] sm:$0xff] }
 0x37f   : > { %13628 = vmatpush1.bf16.msra.mxu0 %v16367_v41  ;;  %13792 = vmatpush1.bf16.msra.mxu1 %v16369_v43  ;;  %v605_v41 = vld [vmem:[%s19120_s5 + $0x9b0] sm:$0xff]  ;;  %v590_v43 = vld [vmem:[%s19120_s5 + $0x938] sm:$0xff] }
 0x380   : > { %13629 = vmatprep.subr.bf16.mxu0 %v16400_v45  ;;  %13793 = vmatprep.subr.bf16.mxu1 %v16402_v46  ;;  %v606_v45 = vld [vmem:[%s19120_s5 + $0x9b8] sm:$0xff]  ;;  %v16591_v46 = vcombine.low %v557_v31, %v573_v32  ;;  %v16624_v49 = vcombine.high %v589_v40, %v605_v41 }
 0x381   : > { %v16626_v50 = vcombine.high %v590_v43, %v606_v45  ;;  %v16625_v55 = vcombine.low %v590_v43, %v606_v45  ;;  %v813_v45 = vld [vmem:[%s19120_s5 + $0x1030] sm:$0xff] }
 0x383   : > { %13630 = vmatpush1.bf16.msra.mxu0 %v16399_v24  ;;  %13794 = vmatpush1.bf16.msra.mxu1 %v16401_v52  ;;  %v637_v24 = vld [vmem:[%s19120_s5 + $0xab0] sm:$0xff]  ;;  %v622_v52 = vld [vmem:[%s19120_s5 + $0xa38] sm:$0xff] }
 0x384   : > { %13631 = vmatprep.subr.bf16.mxu0 %v16432_v53  ;;  %13795 = vmatprep.subr.bf16.mxu1 %v16434_v54  ;;  %v638_v53 = vld [vmem:[%s19120_s5 + $0xab8] sm:$0xff]  ;;  %v16623_v54 = vcombine.low %v589_v40, %v605_v41  ;;  %v16656_v56 = vcombine.high %v621_v51, %v637_v24 }
 0x385   : > { %v16658_v57 = vcombine.high %v622_v52, %v638_v53  ;;  %v16657_v3 = vcombine.low %v622_v52, %v638_v53  ;;  %v845_v53 = vld [vmem:[%s19120_s5 + $0x1130] sm:$0xff] }
 0x387   : > { %13632 = vmatpush1.bf16.msra.mxu0 %v16431_v62  ;;  %13796 = vmatpush1.bf16.msra.mxu1 %v16433_v63  ;;  %v669_v62 = vld [vmem:[%s19120_s5 + $0xbb0] sm:$0xff]  ;;  %v654_v63 = vld [vmem:[%s19120_s5 + $0xb38] sm:$0xff] }
 0x388   : > { %13633 = vmatprep.subr.bf16.mxu0 %v16464_v0  ;;  %13797 = vmatprep.subr.bf16.mxu1 %v16466_v1  ;;  %v670_v0 = vld [vmem:[%s19120_s5 + $0xbb8] sm:$0xff]  ;;  %v16655_v1 = vcombine.low %v621_v51, %v637_v24  ;;  %v16688_v4 = vcombine.high %v653_v58, %v669_v62 }
 0x389   : > { %v16690_v5 = vcombine.high %v654_v63, %v670_v0  ;;  %v16689_v11 = vcombine.low %v654_v63, %v670_v0  ;;  %v877_v0 = vld [vmem:[%s19120_s5 + $0x1230] sm:$0xff] }
 0x38b   : > { %13634 = vmatpush1.bf16.msra.mxu0 %v16463_v7  ;;  %13798 = vmatpush1.bf16.msra.mxu1 %v16465_v8  ;;  %v701_v7 = vld [vmem:[%s19120_s5 + $0xcb0] sm:$0xff]  ;;  %v686_v8 = vld [vmem:[%s19120_s5 + $0xc38] sm:$0xff] }
 0x38c   : > { %13635 = vmatprep.subr.bf16.mxu0 %v16496_v9  ;;  %13799 = vmatprep.subr.bf16.mxu1 %v16498_v10  ;;  %v702_v9 = vld [vmem:[%s19120_s5 + $0xcb8] sm:$0xff]  ;;  %v16687_v10 = vcombine.low %v653_v58, %v669_v62  ;;  %v16720_v12 = vcombine.high %v685_v6, %v701_v7 }
 0x38d   : > { %v16722_v13 = vcombine.high %v686_v8, %v702_v9  ;;  %v16721_v20 = vcombine.low %v686_v8, %v702_v9  ;;  %v909_v9 = vld [vmem:[%s19120_s5 + $0x1330] sm:$0xff] }
 0x38f   : > { %13636 = vmatpush1.bf16.msra.mxu0 %v16495_v16  ;;  %13800 = vmatpush1.bf16.msra.mxu1 %v16497_v17  ;;  %v733_v16 = vld [vmem:[%s19120_s5 + $0xdb0] sm:$0xff]  ;;  %v718_v17 = vld [vmem:[%s19120_s5 + $0xd38] sm:$0xff] }
 0x390   : > { %13637 = vmatprep.subr.bf16.mxu0 %v16528_v18  ;;  %13801 = vmatprep.subr.bf16.mxu1 %v16530_v19  ;;  %v734_v18 = vld [vmem:[%s19120_s5 + $0xdb8] sm:$0xff]  ;;  %v16719_v19 = vcombine.low %v685_v6, %v701_v7  ;;  %v16752_v21 = vcombine.high %v717_v15, %v733_v16 }
 0x391   : > { %v16754_v22 = vcombine.high %v718_v17, %v734_v18  ;;  %v16753_v31 = vcombine.low %v718_v17, %v734_v18  ;;  %v941_v18 = vld [vmem:[%s19120_s5 + $0x1430] sm:$0xff] }
 0x393   : > { %13638 = vmatpush1.bf16.msra.mxu0 %v16527_v25  ;;  %13802 = vmatpush1.bf16.msra.mxu1 %v16529_v26  ;;  %v765_v25 = vld [vmem:[%s19120_s5 + $0xeb0] sm:$0xff]  ;;  %v750_v26 = vld [vmem:[%s19120_s5 + $0xe38] sm:$0xff] }
 0x394   : > { %13639 = vmatprep.subr.bf16.mxu0 %v16560_v28  ;;  %13803 = vmatprep.subr.bf16.mxu1 %v16562_v29  ;;  %v766_v28 = vld [vmem:[%s19120_s5 + $0xeb8] sm:$0xff]  ;;  %v16751_v29 = vcombine.low %v717_v15, %v733_v16  ;;  %v16784_v32 = vcombine.high %v749_v23, %v765_v25 }
 0x395   : > { %v16786_v33 = vcombine.high %v750_v26, %v766_v28  ;;  %v16785_v40 = vcombine.low %v750_v26, %v766_v28  ;;  %v973_v28 = vld [vmem:[%s19120_s5 + $0x1530] sm:$0xff] }
 0x397   : > { %13640 = vmatpush1.bf16.msra.mxu0 %v16559_v35  ;;  %13804 = vmatpush1.bf16.msra.mxu1 %v16561_v36  ;;  %v797_v35 = vld [vmem:[%s19120_s5 + $0xfb0] sm:$0xff]  ;;  %v782_v36 = vld [vmem:[%s19120_s5 + $0xf38] sm:$0xff] }
 0x398   : > { %13641 = vmatprep.subr.bf16.mxu0 %v16592_v38  ;;  %13805 = vmatprep.subr.bf16.mxu1 %v16594_v39  ;;  %v798_v38 = vld [vmem:[%s19120_s5 + $0xfb8] sm:$0xff]  ;;  %v16783_v39 = vcombine.low %v749_v23, %v765_v25  ;;  %v16816_v41 = vcombine.high %v781_v34, %v797_v35 }
 0x399   : > { %v16818_v43 = vcombine.high %v782_v36, %v798_v38  ;;  %v16817_v51 = vcombine.low %v782_v36, %v798_v38  ;;  %v1005_v38 = vld [vmem:[%s19120_s5 + $0x1630] sm:$0xff] }
 0x39b   : > { %13642 = vmatpush1.bf16.msra.mxu0 %v16591_v46  ;;  %13806 = vmatpush1.bf16.msra.mxu1 %v16593_v48  ;;  %v829_v46 = vld [vmem:[%s19120_s5 + $0x10b0] sm:$0xff]  ;;  %v814_v48 = vld [vmem:[%s19120_s5 + $0x1038] sm:$0xff] }
 0x39c   : > { %13643 = vmatprep.subr.bf16.mxu0 %v16624_v49  ;;  %13807 = vmatprep.subr.bf16.mxu1 %v16626_v50  ;;  %v830_v49 = vld [vmem:[%s19120_s5 + $0x10b8] sm:$0xff]  ;;  %v16815_v50 = vcombine.low %v781_v34, %v797_v35  ;;  %v16848_v24 = vcombine.high %v813_v45, %v829_v46 }
 0x39d   : > { %v16850_v52 = vcombine.high %v814_v48, %v830_v49  ;;  %v16849_v58 = vcombine.low %v814_v48, %v830_v49  ;;  %v1037_v49 = vld [vmem:[%s19120_s5 + $0x1730] sm:$0xff] }
 0x39f   : > { %13644 = vmatpush1.bf16.msra.mxu0 %v16623_v54  ;;  %13808 = vmatpush1.bf16.msra.mxu1 %v16625_v55  ;;  %v861_v54 = vld [vmem:[%s19120_s5 + $0x11b0] sm:$0xff]  ;;  %v846_v55 = vld [vmem:[%s19120_s5 + $0x1138] sm:$0xff] }
 0x3a0   : > { %13645 = vmatprep.subr.bf16.mxu0 %v16656_v56  ;;  %13809 = vmatprep.subr.bf16.mxu1 %v16658_v57  ;;  %v862_v56 = vld [vmem:[%s19120_s5 + $0x11b8] sm:$0xff]  ;;  %v16847_v57 = vcombine.low %v813_v45, %v829_v46  ;;  %v16880_v62 = vcombine.high %v845_v53, %v861_v54 }
 0x3a1   : > { %v16882_v63 = vcombine.high %v846_v55, %v862_v56  ;;  %v16881_v6 = vcombine.low %v846_v55, %v862_v56  ;;  %v1069_v56 = vld [vmem:[%s19120_s5 + $0x1830] sm:$0xff] }
 0x3a3   : > { %13646 = vmatpush1.bf16.msra.mxu0 %v16655_v1  ;;  %13810 = vmatpush1.bf16.msra.mxu1 %v16657_v3  ;;  %v893_v1 = vld [vmem:[%s19120_s5 + $0x12b0] sm:$0xff]  ;;  %v878_v3 = vld [vmem:[%s19120_s5 + $0x1238] sm:$0xff] }
 0x3a4   : > { %13647 = vmatprep.subr.bf16.mxu0 %v16688_v4  ;;  %13811 = vmatprep.subr.bf16.mxu1 %v16690_v5  ;;  %v894_v4 = vld [vmem:[%s19120_s5 + $0x12b8] sm:$0xff]  ;;  %v16879_v5 = vcombine.low %v845_v53, %v861_v54  ;;  %v16912_v7 = vcombine.high %v877_v0, %v893_v1 }
 0x3a5   : > { %v16914_v8 = vcombine.high %v878_v3, %v894_v4  ;;  %v16913_v15 = vcombine.low %v878_v3, %v894_v4  ;;  %v1101_v4 = vld [vmem:[%s19120_s5 + $0x1930] sm:$0xff] }
 0x3a7   : > { %13648 = vmatpush1.bf16.msra.mxu0 %v16687_v10  ;;  %13812 = vmatpush1.bf16.msra.mxu1 %v16689_v11  ;;  %v925_v10 = vld [vmem:[%s19120_s5 + $0x13b0] sm:$0xff]  ;;  %v910_v11 = vld [vmem:[%s19120_s5 + $0x1338] sm:$0xff] }
 0x3a8   : > { %13649 = vmatprep.subr.bf16.mxu0 %v16720_v12  ;;  %13813 = vmatprep.subr.bf16.mxu1 %v16722_v13  ;;  %v926_v12 = vld [vmem:[%s19120_s5 + $0x13b8] sm:$0xff]  ;;  %v16911_v13 = vcombine.low %v877_v0, %v893_v1  ;;  %v16944_v16 = vcombine.high %v909_v9, %v925_v10 }
 0x3a9   : > { %v16946_v17 = vcombine.high %v910_v11, %v926_v12  ;;  %v16945_v23 = vcombine.low %v910_v11, %v926_v12  ;;  %v1133_v12 = vld [vmem:[%s19120_s5 + $0x1a30] sm:$0xff] }
 0x3ab   : > { %13650 = vmatpush1.bf16.msra.mxu0 %v16719_v19  ;;  %13814 = vmatpush1.bf16.msra.mxu1 %v16721_v20  ;;  %v957_v19 = vld [vmem:[%s19120_s5 + $0x14b0] sm:$0xff]  ;;  %v942_v20 = vld [vmem:[%s19120_s5 + $0x1438] sm:$0xff] }
 0x3ac   : > { %13651 = vmatprep.subr.bf16.mxu0 %v16752_v21  ;;  %13815 = vmatprep.subr.bf16.mxu1 %v16754_v22  ;;  %v958_v21 = vld [vmem:[%s19120_s5 + $0x14b8] sm:$0xff]  ;;  %v16943_v22 = vcombine.low %v909_v9, %v925_v10  ;;  %v16976_v25 = vcombine.high %v941_v18, %v957_v19 }
 0x3ad   : > { %v16978_v26 = vcombine.high %v942_v20, %v958_v21  ;;  %v16977_v34 = vcombine.low %v942_v20, %v958_v21  ;;  %v1165_v21 = vld [vmem:[%s19120_s5 + $0x1b30] sm:$0xff] }
 0x3af   : > { %13652 = vmatpush1.bf16.msra.mxu0 %v16751_v29  ;;  %13816 = vmatpush1.bf16.msra.mxu1 %v16753_v31  ;;  %v989_v29 = vld [vmem:[%s19120_s5 + $0x15b0] sm:$0xff]  ;;  %v974_v31 = vld [vmem:[%s19120_s5 + $0x1538] sm:$0xff] }
 0x3b0   : > { %13653 = vmatprep.subr.bf16.mxu0 %v16784_v32  ;;  %13817 = vmatprep.subr.bf16.mxu1 %v16786_v33  ;;  %v990_v32 = vld [vmem:[%s19120_s5 + $0x15b8] sm:$0xff]  ;;  %v16975_v33 = vcombine.low %v941_v18, %v957_v19  ;;  %v17008_v35 = vcombine.high %v973_v28, %v989_v29 }
 0x3b1   : > { %v17010_v36 = vcombine.high %v974_v31, %v990_v32  ;;  %v17009_v45 = vcombine.low %v974_v31, %v990_v32  ;;  %v1197_v32 = vld [vmem:[%s19120_s5 + $0x1c30] sm:$0xff] }
 0x3b3   : > { %13654 = vmatpush1.bf16.msra.mxu0 %v16783_v39  ;;  %13818 = vmatpush1.bf16.msra.mxu1 %v16785_v40  ;;  %v1021_v39 = vld [vmem:[%s19120_s5 + $0x16b0] sm:$0xff]  ;;  %v1006_v40 = vld [vmem:[%s19120_s5 + $0x1638] sm:$0xff] }
 0x3b4   : > { %13655 = vmatprep.subr.bf16.mxu0 %v16816_v41  ;;  %13819 = vmatprep.subr.bf16.mxu1 %v16818_v43  ;;  %v1022_v41 = vld [vmem:[%s19120_s5 + $0x16b8] sm:$0xff]  ;;  %v17007_v43 = vcombine.low %v973_v28, %v989_v29  ;;  %v17040_v46 = vcombine.high %v1005_v38, %v1021_v39 }
 0x3b5   : > { %v17042_v48 = vcombine.high %v1006_v40, %v1022_v41  ;;  %v17041_v53 = vcombine.low %v1006_v40, %v1022_v41  ;;  %v1229_v41 = vld [vmem:[%s19120_s5 + $0x1d30] sm:$0xff] }
 0x3b7   : > { %13656 = vmatpush1.bf16.msra.mxu0 %v16815_v50  ;;  %13820 = vmatpush1.bf16.msra.mxu1 %v16817_v51  ;;  %v1053_v50 = vld [vmem:[%s19120_s5 + $0x17b0] sm:$0xff]  ;;  %v1038_v51 = vld [vmem:[%s19120_s5 + $0x1738] sm:$0xff] }
 0x3b8   : > { %13666 = vmatprep.subr.bf16.mxu0 %v16848_v24  ;;  %13830 = vmatprep.subr.bf16.mxu1 %v16850_v52  ;;  %v1054_v24 = vld [vmem:[%s19120_s5 + $0x17b8] sm:$0xff]  ;;  %v17039_v52 = vcombine.low %v1005_v38, %v1021_v39  ;;  %v17072_v54 = vcombine.high %v1037_v49, %v1053_v50 }
 0x3b9   : > { %v17074_v55 = vcombine.high %v1038_v51, %v1054_v24  ;;  %v17073_v0 = vcombine.low %v1038_v51, %v1054_v24  ;;  %v1261_v24 = vld [vmem:[%s19120_s5 + $0x1e30] sm:$0xff] }
 0x3ba   : > { %13658 = vmatmul.mubr.bf16.vlgmr.msra.gmra.mrb[12].mxu0 %v19259_v47  ;;  %13822 = vmatmul.mubr.bf16.vlgmr.msra.gmra.mrb[12].mxu1 %v19259_v47 }
 0x3bb   : > { %13667 = vmatpush1.bf16.msra.mxu0 %v16847_v57  ;;  %13831 = vmatpush1.bf16.msra.mxu1 %v16849_v58  ;;  %v1085_v57 = vld [vmem:[%s19120_s5 + $0x18b0] sm:$0xff]  ;;  %v1070_v58 = vld [vmem:[%s19120_s5 + $0x1838] sm:$0xff] }
 0x3bc   : > { %13668 = vmatprep.subr.bf16.mxu0 %v16880_v62  ;;  %13832 = vmatprep.subr.bf16.mxu1 %v16882_v63  ;;  %v1086_v62 = vld [vmem:[%s19120_s5 + $0x18b8] sm:$0xff]  ;;  %v17071_v63 = vcombine.low %v1037_v49, %v1053_v50  ;;  %v17104_v1 = vcombine.high %v1069_v56, %v1085_v57 }
 0x3bd   : > { %13698 = vmatprep.mubr.bf16.mxu0 %v19268_v27  ;;  %13862 = vmatprep.mubr.bf16.mxu1 %v19268_v27  ;;  %v17106_v3 = vcombine.high %v1070_v58, %v1086_v62  ;;  %v17105_v9 = vcombine.low %v1070_v58, %v1086_v62  ;;  %v1293_v62 = vld [vmem:[%s19120_s5 + $0x1f30] sm:$0xff] }
 0x3bf   : > { %13669 = vmatpush1.bf16.msra.mxu0 %v16879_v5  ;;  %13833 = vmatpush1.bf16.msra.mxu1 %v16881_v6  ;;  %v1117_v5 = vld [vmem:[%s19120_s5 + $0x19b0] sm:$0xff]  ;;  %v1102_v6 = vld [vmem:[%s19120_s5 + $0x1938] sm:$0xff] }
 0x3c0   : > { %13670 = vmatprep.subr.bf16.mxu0 %v16912_v7  ;;  %13834 = vmatprep.subr.bf16.mxu1 %v16914_v8  ;;  %v1118_v7 = vld [vmem:[%s19120_s5 + $0x19b8] sm:$0xff]  ;;  %v17103_v8 = vcombine.low %v1069_v56, %v1085_v57  ;;  %v17136_v10 = vcombine.high %v1101_v4, %v1117_v5 }
 0x3c1   : > { %v17138_v11 = vcombine.high %v1102_v6, %v1118_v7  ;;  %v17137_v18 = vcombine.low %v1102_v6, %v1118_v7  ;;  %v1325_v7 = vld [vmem:[%s19120_s5 + $0x2030] sm:$0xff] }
 0x3c3   : > { %13671 = vmatpush1.bf16.msra.mxu0 %v16911_v13  ;;  %13835 = vmatpush1.bf16.msra.mxu1 %v16913_v15  ;;  %v1149_v13 = vld [vmem:[%s19120_s5 + $0x1ab0] sm:$0xff]  ;;  %v1134_v15 = vld [vmem:[%s19120_s5 + $0x1a38] sm:$0xff] }
 0x3c4   : > { %13672 = vmatprep.subr.bf16.mxu0 %v16944_v16  ;;  %13836 = vmatprep.subr.bf16.mxu1 %v16946_v17  ;;  %v1150_v16 = vld [vmem:[%s19120_s5 + $0x1ab8] sm:$0xff]  ;;  %v17135_v17 = vcombine.low %v1101_v4, %v1117_v5  ;;  %v17168_v19 = vcombine.high %v1133_v12, %v1149_v13 }
 0x3c5   : > { %v17170_v20 = vcombine.high %v1134_v15, %v1150_v16  ;;  %v17169_v28 = vcombine.low %v1134_v15, %v1150_v16  ;;  %v1357_v16 = vld [vmem:[%s19120_s5 + $0x2130] sm:$0xff] }
 0x3c7   : > { %13673 = vmatpush1.bf16.msra.mxu0 %v16943_v22  ;;  %13837 = vmatpush1.bf16.msra.mxu1 %v16945_v23  ;;  %v1181_v22 = vld [vmem:[%s19120_s5 + $0x1bb0] sm:$0xff]  ;;  %v1166_v23 = vld [vmem:[%s19120_s5 + $0x1b38] sm:$0xff] }
 0x3c8   : > { %13674 = vmatprep.subr.bf16.mxu0 %v16976_v25  ;;  %13838 = vmatprep.subr.bf16.mxu1 %v16978_v26  ;;  %v1182_v25 = vld [vmem:[%s19120_s5 + $0x1bb8] sm:$0xff]  ;;  %v17167_v26 = vcombine.low %v1133_v12, %v1149_v13  ;;  %v17200_v29 = vcombine.high %v1165_v21, %v1181_v22 }
 0x3c9   : > { %v17202_v31 = vcombine.high %v1166_v23, %v1182_v25  ;;  %v17201_v38 = vcombine.low %v1166_v23, %v1182_v25  ;;  %v1389_v25 = vld [vmem:[%s19120_s5 + $0x2230] sm:$0xff] }
 0x3cb   : > { %13675 = vmatpush1.bf16.msra.mxu0 %v16975_v33  ;;  %13839 = vmatpush1.bf16.msra.mxu1 %v16977_v34  ;;  %v1213_v33 = vld [vmem:[%s19120_s5 + $0x1cb0] sm:$0xff]  ;;  %v1198_v34 = vld [vmem:[%s19120_s5 + $0x1c38] sm:$0xff] }
 0x3cc   : > { %13676 = vmatprep.subr.bf16.mxu0 %v17008_v35  ;;  %13840 = vmatprep.subr.bf16.mxu1 %v17010_v36  ;;  %v1214_v35 = vld [vmem:[%s19120_s5 + $0x1cb8] sm:$0xff]  ;;  %v17199_v36 = vcombine.low %v1165_v21, %v1181_v22  ;;  %v17232_v39 = vcombine.high %v1197_v32, %v1213_v33 }
 0x3cd   : > { %v17234_v40 = vcombine.high %v1198_v34, %v1214_v35  ;;  %v17233_v49 = vcombine.low %v1198_v34, %v1214_v35  ;;  %v1421_v35 = vld [vmem:[%s19120_s5 + $0x2330] sm:$0xff] }
 0x3cf   : > { %13677 = vmatpush1.bf16.msra.mxu0 %v17007_v43  ;;  %13841 = vmatpush1.bf16.msra.mxu1 %v17009_v45  ;;  %v1245_v43 = vld [vmem:[%s19120_s5 + $0x1db0] sm:$0xff]  ;;  %v1230_v45 = vld [vmem:[%s19120_s5 + $0x1d38] sm:$0xff] }
 0x3d0   : > { %13678 = vmatprep.subr.bf16.mxu0 %v17040_v46  ;;  %13842 = vmatprep.subr.bf16.mxu1 %v17042_v48  ;;  %v1246_v46 = vld [vmem:[%s19120_s5 + $0x1db8] sm:$0xff]  ;;  %v17231_v48 = vcombine.low %v1197_v32, %v1213_v33  ;;  %v17264_v50 = vcombine.high %v1229_v41, %v1245_v43 }
 0x3d1   : > { %v17266_v51 = vcombine.high %v1230_v45, %v1246_v46  ;;  %v17265_v56 = vcombine.low %v1230_v45, %v1246_v46  ;;  %v1453_v46 = vld [vmem:[%s19120_s5 + $0x2430] sm:$0xff] }
 0x3d3   : > { %13679 = vmatpush1.bf16.msra.mxu0 %v17039_v52  ;;  %13843 = vmatpush1.bf16.msra.mxu1 %v17041_v53  ;;  %v1277_v52 = vld [vmem:[%s19120_s5 + $0x1eb0] sm:$0xff]  ;;  %v1262_v53 = vld [vmem:[%s19120_s5 + $0x1e38] sm:$0xff] }
 0x3d4   : > { %13680 = vmatprep.subr.bf16.mxu0 %v17072_v54  ;;  %13844 = vmatprep.subr.bf16.mxu1 %v17074_v55  ;;  %v1278_v54 = vld [vmem:[%s19120_s5 + $0x1eb8] sm:$0xff]  ;;  %v17263_v55 = vcombine.low %v1229_v41, %v1245_v43  ;;  %v17296_v57 = vcombine.high %v1261_v24, %v1277_v52 }
 0x3d5   : > { %v17298_v58 = vcombine.high %v1262_v53, %v1278_v54  ;;  %v17297_v4 = vcombine.low %v1262_v53, %v1278_v54  ;;  %v1485_v54 = vld [vmem:[%s19120_s5 + $0x2530] sm:$0xff] }
 0x3d7   : > { %13681 = vmatpush1.bf16.msra.mxu0 %v17071_v63  ;;  %13845 = vmatpush1.bf16.msra.mxu1 %v17073_v0  ;;  %v1309_v63 = vld [vmem:[%s19120_s5 + $0x1fb0] sm:$0xff]  ;;  %v1294_v0 = vld [vmem:[%s19120_s5 + $0x1f38] sm:$0xff] }
 0x3d8   : > { %13682 = vmatprep.subr.bf16.mxu0 %v17104_v1  ;;  %13846 = vmatprep.subr.bf16.mxu1 %v17106_v3  ;;  %v1310_v1 = vld [vmem:[%s19120_s5 + $0x1fb8] sm:$0xff]  ;;  %v17295_v3 = vcombine.low %v1261_v24, %v1277_v52  ;;  %v17328_v5 = vcombine.high %v1293_v62, %v1309_v63 }
 0x3d9   : > { %v17330_v6 = vcombine.high %v1294_v0, %v1310_v1  ;;  %v17329_v12 = vcombine.low %v1294_v0, %v1310_v1  ;;  %v1517_v1 = vld [vmem:[%s19120_s5 + $0x2630] sm:$0xff] }
 0x3db   : > { %13683 = vmatpush1.bf16.msra.mxu0 %v17103_v8  ;;  %13847 = vmatpush1.bf16.msra.mxu1 %v17105_v9  ;;  %v1341_v8 = vld [vmem:[%s19120_s5 + $0x20b0] sm:$0xff]  ;;  %v1326_v9 = vld [vmem:[%s19120_s5 + $0x2038] sm:$0xff] }
 0x3dc   : > { %13684 = vmatprep.subr.bf16.mxu0 %v17136_v10  ;;  %13848 = vmatprep.subr.bf16.mxu1 %v17138_v11  ;;  %v1342_v10 = vld [vmem:[%s19120_s5 + $0x20b8] sm:$0xff]  ;;  %v17327_v11 = vcombine.low %v1293_v62, %v1309_v63  ;;  %v17360_v13 = vcombine.high %v1325_v7, %v1341_v8 }
 0x3dd   : > { %v17362_v15 = vcombine.high %v1326_v9, %v1342_v10  ;;  %v17361_v21 = vcombine.low %v1326_v9, %v1342_v10  ;;  %v1549_v10 = vld [vmem:[%s19120_s5 + $0x2730] sm:$0xff] }
 0x3df   : > { %13685 = vmatpush1.bf16.msra.mxu0 %v17135_v17  ;;  %13849 = vmatpush1.bf16.msra.mxu1 %v17137_v18  ;;  %v1373_v17 = vld [vmem:[%s19120_s5 + $0x21b0] sm:$0xff]  ;;  %v1358_v18 = vld [vmem:[%s19120_s5 + $0x2138] sm:$0xff] }
 0x3e0   : > { %13686 = vmatprep.subr.bf16.mxu0 %v17168_v19  ;;  %13850 = vmatprep.subr.bf16.mxu1 %v17170_v20  ;;  %v1374_v19 = vld [vmem:[%s19120_s5 + $0x21b8] sm:$0xff]  ;;  %v17359_v20 = vcombine.low %v1325_v7, %v1341_v8  ;;  %v17392_v22 = vcombine.high %v1357_v16, %v1373_v17 }
 0x3e1   : > { %v17394_v23 = vcombine.high %v1358_v18, %v1374_v19  ;;  %v17393_v32 = vcombine.low %v1358_v18, %v1374_v19  ;;  %v1581_v19 = vld [vmem:[%s19120_s5 + $0x2830] sm:$0xff] }
 0x3e3   : > { %13687 = vmatpush1.bf16.msra.mxu0 %v17167_v26  ;;  %13851 = vmatpush1.bf16.msra.mxu1 %v17169_v28  ;;  %v1405_v26 = vld [vmem:[%s19120_s5 + $0x22b0] sm:$0xff]  ;;  %v1390_v28 = vld [vmem:[%s19120_s5 + $0x2238] sm:$0xff] }
 0x3e4   : > { %13688 = vmatprep.subr.bf16.mxu0 %v17200_v29  ;;  %13852 = vmatprep.subr.bf16.mxu1 %v17202_v31  ;;  %v1406_v29 = vld [vmem:[%s19120_s5 + $0x22b8] sm:$0xff]  ;;  %v17391_v31 = vcombine.low %v1357_v16, %v1373_v17  ;;  %v17424_v33 = vcombine.high %v1389_v25, %v1405_v26 }
 0x3e5   : > { %v17426_v34 = vcombine.high %v1390_v28, %v1406_v29  ;;  %v17425_v41 = vcombine.low %v1390_v28, %v1406_v29  ;;  %v1613_v29 = vld [vmem:[%s19120_s5 + $0x2930] sm:$0xff] }
 0x3e7   : > { %13689 = vmatpush1.bf16.msra.mxu0 %v17199_v36  ;;  %13853 = vmatpush1.bf16.msra.mxu1 %v17201_v38  ;;  %v1437_v36 = vld [vmem:[%s19120_s5 + $0x23b0] sm:$0xff]  ;;  %v1422_v38 = vld [vmem:[%s19120_s5 + $0x2338] sm:$0xff] }
 0x3e8   : > { %13690 = vmatprep.subr.bf16.mxu0 %v17232_v39  ;;  %13854 = vmatprep.subr.bf16.mxu1 %v17234_v40  ;;  %v1438_v39 = vld [vmem:[%s19120_s5 + $0x23b8] sm:$0xff]  ;;  %v17423_v40 = vcombine.low %v1389_v25, %v1405_v26  ;;  %v17456_v43 = vcombine.high %v1421_v35, %v1437_v36 }
 0x3e9   : > { %v17458_v45 = vcombine.high %v1422_v38, %v1438_v39  ;;  %v17457_v24 = vcombine.low %v1422_v38, %v1438_v39  ;;  %v1645_v39 = vld [vmem:[%s19120_s5 + $0x2a30] sm:$0xff] }
 0x3eb   : > { %13691 = vmatpush1.bf16.msra.mxu0 %v17231_v48  ;;  %13855 = vmatpush1.bf16.msra.mxu1 %v17233_v49  ;;  %v1469_v48 = vld [vmem:[%s19120_s5 + $0x24b0] sm:$0xff]  ;;  %v1454_v49 = vld [vmem:[%s19120_s5 + $0x2438] sm:$0xff] }
 0x3ec   : > { %13692 = vmatprep.subr.bf16.mxu0 %v17264_v50  ;;  %13856 = vmatprep.subr.bf16.mxu1 %v17266_v51  ;;  %v1470_v50 = vld [vmem:[%s19120_s5 + $0x24b8] sm:$0xff]  ;;  %v17455_v51 = vcombine.low %v1421_v35, %v1437_v36  ;;  %v17488_v52 = vcombine.high %v1453_v46, %v1469_v48 }
 0x3ed   : > { %v17490_v53 = vcombine.high %v1454_v49, %v1470_v50  ;;  %v17489_v62 = vcombine.low %v1454_v49, %v1470_v50  ;;  %v1677_v50 = vld [vmem:[%s19120_s5 + $0x2b30] sm:$0xff] }
 0x3ef   : > { %13693 = vmatpush1.bf16.msra.mxu0 %v17263_v55  ;;  %13857 = vmatpush1.bf16.msra.mxu1 %v17265_v56  ;;  %v1501_v55 = vld [vmem:[%s19120_s5 + $0x25b0] sm:$0xff]  ;;  %v1486_v56 = vld [vmem:[%s19120_s5 + $0x2538] sm:$0xff] }
 0x3f0   : > { %13694 = vmatprep.subr.bf16.mxu0 %v17296_v57  ;;  %13858 = vmatprep.subr.bf16.mxu1 %v17298_v58  ;;  %v1502_v57 = vld [vmem:[%s19120_s5 + $0x25b8] sm:$0xff]  ;;  %v17487_v58 = vcombine.low %v1453_v46, %v1469_v48  ;;  %v17520_v63 = vcombine.high %v1485_v54, %v1501_v55 }
 0x3f1   : > { %v17522_v0 = vcombine.high %v1486_v56, %v1502_v57  ;;  %v17521_v7 = vcombine.low %v1486_v56, %v1502_v57  ;;  %v1709_v57 = vld [vmem:[%s19120_s5 + $0x2c30] sm:$0xff] }
 0x3f3   : > { %13695 = vmatpush1.bf16.msra.mxu0 %v17295_v3  ;;  %13859 = vmatpush1.bf16.msra.mxu1 %v17297_v4  ;;  %v1533_v3 = vld [vmem:[%s19120_s5 + $0x26b0] sm:$0xff]  ;;  %v1518_v4 = vld [vmem:[%s19120_s5 + $0x2638] sm:$0xff] }
 0x3f4   : > { %13696 = vmatprep.subr.bf16.mxu0 %v17328_v5  ;;  %13860 = vmatprep.subr.bf16.mxu1 %v17330_v6  ;;  %v1534_v5 = vld [vmem:[%s19120_s5 + $0x26b8] sm:$0xff]  ;;  %v17519_v6 = vcombine.low %v1485_v54, %v1501_v55  ;;  %v17552_v8 = vcombine.high %v1517_v1, %v1533_v3 }
 0x3f5   : > { %v17554_v9 = vcombine.high %v1518_v4, %v1534_v5  ;;  %v17553_v16 = vcombine.low %v1518_v4, %v1534_v5  ;;  %v1741_v5 = vld [vmem:[%s19120_s5 + $0x2d30] sm:$0xff] }
 0x3f7   : > { %13697 = vmatpush1.bf16.msra.mxu0 %v17327_v11  ;;  %13861 = vmatpush1.bf16.msra.mxu1 %v17329_v12  ;;  %v1565_v11 = vld [vmem:[%s19120_s5 + $0x27b0] sm:$0xff]  ;;  %v1550_v12 = vld [vmem:[%s19120_s5 + $0x2738] sm:$0xff] }
 0x3f8   : > { %13707 = vmatprep.subr.bf16.mxu0 %v17360_v13  ;;  %13871 = vmatprep.subr.bf16.mxu1 %v17362_v15  ;;  %v1566_v13 = vld [vmem:[%s19120_s5 + $0x27b8] sm:$0xff]  ;;  %v17551_v15 = vcombine.low %v1517_v1, %v1533_v3  ;;  %v17584_v17 = vcombine.high %v1549_v10, %v1565_v11 }
 0x3f9   : > { %v17586_v18 = vcombine.high %v1550_v12, %v1566_v13  ;;  %v17585_v25 = vcombine.low %v1550_v12, %v1566_v13  ;;  %v1773_v13 = vld [vmem:[%s19120_s5 + $0x2e30] sm:$0xff] }
 0x3fa   : > { %13699 = vmatmul.mubr.bf16.vlgmr.msra.gmra.mrb[12].mxu0 %v19342_v2  ;;  %13863 = vmatmul.mubr.bf16.vlgmr.msra.gmra.mrb[12].mxu1 %v19342_v2 }
 0x3fb   : > { %13708 = vmatpush1.bf16.msra.mxu0 %v17359_v20  ;;  %13872 = vmatpush1.bf16.msra.mxu1 %v17361_v21  ;;  %v1597_v20 = vld [vmem:[%s19120_s5 + $0x28b0] sm:$0xff]  ;;  %v1582_v21 = vld [vmem:[%s19120_s5 + $0x2838] sm:$0xff] }
 0x3fc   : > { %13709 = vmatprep.subr.bf16.mxu0 %v17392_v22  ;;  %13873 = vmatprep.subr.bf16.mxu1 %v17394_v23  ;;  %v1598_v22 = vld [vmem:[%s19120_s5 + $0x28b8] sm:$0xff]  ;;  %v17583_v23 = vcombine.low %v1549_v10, %v1565_v11  ;;  %v17616_v26 = vcombine.high %v1581_v19, %v1597_v20 }
 0x3fd   : > { %13739 = vmatprep.mubr.bf16.mxu0 %v19274_v60  ;;  %13903 = vmatprep.mubr.bf16.mxu1 %v19274_v60  ;;  %v17618_v28 = vcombine.high %v1582_v21, %v1598_v22  ;;  %v17617_v35 = vcombine.low %v1582_v21, %v1598_v22  ;;  %v1805_v22 = vld [vmem:[%s19120_s5 + $0x2f30] sm:$0xff] }
 0x3ff   : > { %13710 = vmatpush1.bf16.msra.mxu0 %v17391_v31  ;;  %13874 = vmatpush1.bf16.msra.mxu1 %v17393_v32  ;;  %v1629_v31 = vld [vmem:[%s19120_s5 + $0x29b0] sm:$0xff]  ;;  %v1614_v32 = vld [vmem:[%s19120_s5 + $0x2938] sm:$0xff] }
 0x400   : > { %13711 = vmatprep.subr.bf16.mxu0 %v17424_v33  ;;  %13875 = vmatprep.subr.bf16.mxu1 %v17426_v34  ;;  %v1630_v33 = vld [vmem:[%s19120_s5 + $0x29b8] sm:$0xff]  ;;  %v17615_v34 = vcombine.low %v1581_v19, %v1597_v20  ;;  %v17648_v36 = vcombine.high %v1613_v29, %v1629_v31 }
 0x401   : > { %v17650_v38 = vcombine.high %v1614_v32, %v1630_v33  ;;  %v17649_v46 = vcombine.low %v1614_v32, %v1630_v33  ;;  %v1837_v33 = vld [vmem:[%s19120_s5 + $0x3030] sm:$0xff] }
 0x403   : > { %13712 = vmatpush1.bf16.msra.mxu0 %v17423_v40  ;;  %13876 = vmatpush1.bf16.msra.mxu1 %v17425_v41  ;;  %v1661_v40 = vld [vmem:[%s19120_s5 + $0x2ab0] sm:$0xff]  ;;  %v1646_v41 = vld [vmem:[%s19120_s5 + $0x2a38] sm:$0xff] }
 0x404   : > { %13713 = vmatprep.subr.bf16.mxu0 %v17456_v43  ;;  %13877 = vmatprep.subr.bf16.mxu1 %v17458_v45  ;;  %v1662_v43 = vld [vmem:[%s19120_s5 + $0x2ab8] sm:$0xff]  ;;  %v17647_v45 = vcombine.low %v1613_v29, %v1629_v31  ;;  %v17680_v48 = vcombine.high %v1645_v39, %v1661_v40 }
 0x405   : > { %v17682_v49 = vcombine.high %v1646_v41, %v1662_v43  ;;  %v17681_v54 = vcombine.low %v1646_v41, %v1662_v43  ;;  %v1869_v43 = vld [vmem:[%s19120_s5 + $0x3130] sm:$0xff] }
 0x407   : > { %13714 = vmatpush1.bf16.msra.mxu0 %v17455_v51  ;;  %13878 = vmatpush1.bf16.msra.mxu1 %v17457_v24  ;;  %v1693_v51 = vld [vmem:[%s19120_s5 + $0x2bb0] sm:$0xff]  ;;  %v1678_v24 = vld [vmem:[%s19120_s5 + $0x2b38] sm:$0xff] }
 0x408   : > { %13715 = vmatprep.subr.bf16.mxu0 %v17488_v52  ;;  %13879 = vmatprep.subr.bf16.mxu1 %v17490_v53  ;;  %v1694_v52 = vld [vmem:[%s19120_s5 + $0x2bb8] sm:$0xff]  ;;  %v17679_v53 = vcombine.low %v1645_v39, %v1661_v40  ;;  %v17712_v55 = vcombine.high %v1677_v50, %v1693_v51 }
 0x409   : > { %v17714_v56 = vcombine.high %v1678_v24, %v1694_v52  ;;  %v17713_v1 = vcombine.low %v1678_v24, %v1694_v52  ;;  %v1901_v52 = vld [vmem:[%s19120_s5 + $0x3230] sm:$0xff] }
 0x40b   : > { %13716 = vmatpush1.bf16.msra.mxu0 %v17487_v58  ;;  %13880 = vmatpush1.bf16.msra.mxu1 %v17489_v62  ;;  %v1725_v58 = vld [vmem:[%s19120_s5 + $0x2cb0] sm:$0xff]  ;;  %v1710_v62 = vld [vmem:[%s19120_s5 + $0x2c38] sm:$0xff] }
 0x40c   : > { %13717 = vmatprep.subr.bf16.mxu0 %v17520_v63  ;;  %13881 = vmatprep.subr.bf16.mxu1 %v17522_v0  ;;  %v1726_v63 = vld [vmem:[%s19120_s5 + $0x2cb8] sm:$0xff]  ;;  %v17711_v0 = vcombine.low %v1677_v50, %v1693_v51  ;;  %v17744_v3 = vcombine.high %v1709_v57, %v1725_v58 }
 0x40d   : > { %v17746_v4 = vcombine.high %v1710_v62, %v1726_v63  ;;  %v17745_v10 = vcombine.low %v1710_v62, %v1726_v63  ;;  %v1933_v63 = vld [vmem:[%s19120_s5 + $0x3330] sm:$0xff] }
 0x40f   : > { %13718 = vmatpush1.bf16.msra.mxu0 %v17519_v6  ;;  %13882 = vmatpush1.bf16.msra.mxu1 %v17521_v7  ;;  %v1757_v6 = vld [vmem:[%s19120_s5 + $0x2db0] sm:$0xff]  ;;  %v1742_v7 = vld [vmem:[%s19120_s5 + $0x2d38] sm:$0xff] }
 0x410   : > { %13719 = vmatprep.subr.bf16.mxu0 %v17552_v8  ;;  %13883 = vmatprep.subr.bf16.mxu1 %v17554_v9  ;;  %v1758_v8 = vld [vmem:[%s19120_s5 + $0x2db8] sm:$0xff]  ;;  %v17743_v9 = vcombine.low %v1709_v57, %v1725_v58  ;;  %v17776_v11 = vcombine.high %v1741_v5, %v1757_v6 }
 0x411   : > { %v17778_v12 = vcombine.high %v1742_v7, %v1758_v8  ;;  %v17777_v19 = vcombine.low %v1742_v7, %v1758_v8  ;;  %v1965_v8 = vld [vmem:[%s19120_s5 + $0x3430] sm:$0xff] }
 0x413   : > { %13720 = vmatpush1.bf16.msra.mxu0 %v17551_v15  ;;  %13884 = vmatpush1.bf16.msra.mxu1 %v17553_v16  ;;  %v1789_v15 = vld [vmem:[%s19120_s5 + $0x2eb0] sm:$0xff]  ;;  %v1774_v16 = vld [vmem:[%s19120_s5 + $0x2e38] sm:$0xff] }
 0x414   : > { %13721 = vmatprep.subr.bf16.mxu0 %v17584_v17  ;;  %13885 = vmatprep.subr.bf16.mxu1 %v17586_v18  ;;  %v1790_v17 = vld [vmem:[%s19120_s5 + $0x2eb8] sm:$0xff]  ;;  %v17775_v18 = vcombine.low %v1741_v5, %v1757_v6  ;;  %v17808_v20 = vcombine.high %v1773_v13, %v1789_v15 }
 0x415   : > { %v17810_v21 = vcombine.high %v1774_v16, %v1790_v17  ;;  %v17809_v29 = vcombine.low %v1774_v16, %v1790_v17  ;;  %v1997_v17 = vld [vmem:[%s19120_s5 + $0x3530] sm:$0xff] }
 0x417   : > { %13722 = vmatpush1.bf16.msra.mxu0 %v17583_v23  ;;  %13886 = vmatpush1.bf16.msra.mxu1 %v17585_v25  ;;  %v1821_v23 = vld [vmem:[%s19120_s5 + $0x2fb0] sm:$0xff]  ;;  %v1806_v25 = vld [vmem:[%s19120_s5 + $0x2f38] sm:$0xff] }
 0x418   : > { %13723 = vmatprep.subr.bf16.mxu0 %v17616_v26  ;;  %13887 = vmatprep.subr.bf16.mxu1 %v17618_v28  ;;  %v1822_v26 = vld [vmem:[%s19120_s5 + $0x2fb8] sm:$0xff]  ;;  %v17807_v28 = vcombine.low %v1773_v13, %v1789_v15  ;;  %v17840_v31 = vcombine.high %v1805_v22, %v1821_v23 }
 0x419   : > { %v17842_v32 = vcombine.high %v1806_v25, %v1822_v26  ;;  %v17841_v39 = vcombine.low %v1806_v25, %v1822_v26  ;;  %v2029_v26 = vld [vmem:[%s19120_s5 + $0x3630] sm:$0xff] }
 0x41b   : > { %13724 = vmatpush1.bf16.msra.mxu0 %v17615_v34  ;;  %13888 = vmatpush1.bf16.msra.mxu1 %v17617_v35  ;;  %v1853_v34 = vld [vmem:[%s19120_s5 + $0x30b0] sm:$0xff]  ;;  %v1838_v35 = vld [vmem:[%s19120_s5 + $0x3038] sm:$0xff] }
 0x41c   : > { %13725 = vmatprep.subr.bf16.mxu0 %v17648_v36  ;;  %13889 = vmatprep.subr.bf16.mxu1 %v17650_v38  ;;  %v1854_v36 = vld [vmem:[%s19120_s5 + $0x30b8] sm:$0xff]  ;;  %v17839_v38 = vcombine.low %v1805_v22, %v1821_v23  ;;  %v17872_v40 = vcombine.high %v1837_v33, %v1853_v34 }
 0x41d   : > { %v17874_v41 = vcombine.high %v1838_v35, %v1854_v36  ;;  %v17873_v50 = vcombine.low %v1838_v35, %v1854_v36 }
 0x41f   : > { %13726 = vmatpush1.bf16.msra.mxu0 %v17647_v45  ;;  %13890 = vmatpush1.bf16.msra.mxu1 %v17649_v46  ;;  %v1885_v45 = vld [vmem:[%s19120_s5 + $0x31b0] sm:$0xff]  ;;  %v1870_v46 = vld [vmem:[%s19120_s5 + $0x3138] sm:$0xff] }
 0x420   : > { %13727 = vmatprep.subr.bf16.mxu0 %v17680_v48  ;;  %13891 = vmatprep.subr.bf16.mxu1 %v17682_v49  ;;  %v1886_v48 = vld [vmem:[%s19120_s5 + $0x31b8] sm:$0xff]  ;;  %v17871_v49 = vcombine.low %v1837_v33, %v1853_v34  ;;  %v17904_v51 = vcombine.high %v1869_v43, %v1885_v45 }
 0x421   : > { %v17906_v24 = vcombine.high %v1870_v46, %v1886_v48  ;;  %v17905_v57 = vcombine.low %v1870_v46, %v1886_v48 }
 0x423   : > { %13728 = vmatpush1.bf16.msra.mxu0 %v17679_v53  ;;  %13892 = vmatpush1.bf16.msra.mxu1 %v17681_v54  ;;  %v1917_v53 = vld [vmem:[%s19120_s5 + $0x32b0] sm:$0xff]  ;;  %v1902_v54 = vld [vmem:[%s19120_s5 + $0x3238] sm:$0xff] }
 0x424   : > { %13729 = vmatprep.subr.bf16.mxu0 %v17712_v55  ;;  %13893 = vmatprep.subr.bf16.mxu1 %v17714_v56  ;;  %v1918_v55 = vld [vmem:[%s19120_s5 + $0x32b8] sm:$0xff]  ;;  %v17903_v56 = vcombine.low %v1869_v43, %v1885_v45  ;;  %v17936_v58 = vcombine.high %v1901_v52, %v1917_v53 }
 0x425   : > { %v17938_v62 = vcombine.high %v1902_v54, %v1918_v55  ;;  %v17937_v5 = vcombine.low %v1902_v54, %v1918_v55  ;;  %v2062_v43 = vld [vmem:[%s19120_s5 + $0x3738] sm:$0xff] }
 0x426   : > { %v2078_v45 = vld [vmem:[%s19120_s5 + $0x37b8] sm:$0xff] }
 0x427   : > { %13730 = vmatpush1.bf16.msra.mxu0 %v17711_v0  ;;  %13894 = vmatpush1.bf16.msra.mxu1 %v17713_v1  ;;  %v1949_v0 = vld [vmem:[%s19120_s5 + $0x33b0] sm:$0xff]  ;;  %v1934_v1 = vld [vmem:[%s19120_s5 + $0x3338] sm:$0xff] }
 0x428   : > { %13731 = vmatprep.subr.bf16.mxu0 %v17744_v3  ;;  %13895 = vmatprep.subr.bf16.mxu1 %v17746_v4  ;;  %v1950_v3 = vld [vmem:[%s19120_s5 + $0x33b8] sm:$0xff]  ;;  %v17935_v4 = vcombine.low %v1901_v52, %v1917_v53  ;;  %v17968_v6 = vcombine.high %v1933_v63, %v1949_v0 }
 0x429   : > { %v17970_v7 = vcombine.high %v1934_v1, %v1950_v3  ;;  %v17969_v13 = vcombine.low %v1934_v1, %v1950_v3  ;;  %v2110_v1 = vld [vmem:[%s19120_s5 + $0x38b8] sm:$0xff]  ;;  %v289_v3 = vld [vmem:[#allocation3 + $0x10] sm:$0xff] }
 0x42b   : > { %13732 = vmatpush1.bf16.msra.mxu0 %v17743_v9  ;;  %13896 = vmatpush1.bf16.msra.mxu1 %v17745_v10  ;;  %v1981_v9 = vld [vmem:[%s19120_s5 + $0x34b0] sm:$0xff]  ;;  %v1966_v10 = vld [vmem:[%s19120_s5 + $0x3438] sm:$0xff] }
 0x42c   : > { %13733 = vmatprep.subr.bf16.mxu0 %v17776_v11  ;;  %13897 = vmatprep.subr.bf16.mxu1 %v17778_v12  ;;  %v1982_v11 = vld [vmem:[%s19120_s5 + $0x34b8] sm:$0xff]  ;;  %v17967_v12 = vcombine.low %v1933_v63, %v1949_v0  ;;  %v18000_v15 = vcombine.high %v1965_v8, %v1981_v9 }
 0x42d   : > { %v18002_v16 = vcombine.high %v1966_v10, %v1982_v11  ;;  %v18001_v22 = vcombine.low %v1966_v10, %v1982_v11  ;;  %v2094_v0 = vld [vmem:[%s19120_s5 + $0x3838] sm:$0xff]  ;;  %v2141_v10 = vld [vmem:[%s19120_s5 + $0x39b0] sm:$0xff] }
 0x42f   : > { %13734 = vmatpush1.bf16.msra.mxu0 %v17775_v18  ;;  %13898 = vmatpush1.bf16.msra.mxu1 %v17777_v19  ;;  %v2013_v18 = vld [vmem:[%s19120_s5 + $0x35b0] sm:$0xff]  ;;  %v1998_v19 = vld [vmem:[%s19120_s5 + $0x3538] sm:$0xff] }
 0x430   : > { %13735 = vmatprep.subr.bf16.mxu0 %v17808_v20  ;;  %13899 = vmatprep.subr.bf16.mxu1 %v17810_v21  ;;  %v2014_v20 = vld [vmem:[%s19120_s5 + $0x35b8] sm:$0xff]  ;;  %v17999_v21 = vcombine.low %v1965_v8, %v1981_v9  ;;  %v18032_v23 = vcombine.high %v1997_v17, %v2013_v18  ;;  %v18130_v8 = vcombine.high %v2094_v0, %v2110_v1  ;;  %v2125_v9 = vld [vmem:[%s19120_s5 + $0x3930] sm:$0xff] }
 0x431   : > { %v18034_v25 = vcombine.high %v1998_v19, %v2014_v20  ;;  %v18033_v33 = vcombine.low %v1998_v19, %v2014_v20  ;;  %v2157_v19 = vld [vmem:[%s19120_s5 + $0x3a30] sm:$0xff] }
 0x432   : > { %v2173_v20 = vld [vmem:[%s19120_s5 + $0x3ab0] sm:$0xff] }
 0x433   : > { %13736 = vmatpush1.bf16.msra.mxu0 %v17807_v28  ;;  %13900 = vmatpush1.bf16.msra.mxu1 %v17809_v29  ;;  %v2045_v28 = vld [vmem:[%s19120_s5 + $0x36b0] sm:$0xff]  ;;  %v2030_v29 = vld [vmem:[%s19120_s5 + $0x3638] sm:$0xff] }
 0x434   : > { %13737 = vmatprep.subr.bf16.mxu0 %v17840_v31  ;;  %13901 = vmatprep.subr.bf16.mxu1 %v17842_v32  ;;  %v2046_v31 = vld [vmem:[%s19120_s5 + $0x36b8] sm:$0xff]  ;;  %v18031_v32 = vcombine.low %v1997_v17, %v2013_v18  ;;  %v18064_v34 = vcombine.high %v2029_v26, %v2045_v28  ;;  %v18160_v17 = vcombine.high %v2125_v9, %v2141_v10 }
 0x435   : > { %v18066_v36 = vcombine.high %v2030_v29, %v2046_v31  ;;  %v18065_v53 = vcombine.low %v2030_v29, %v2046_v31  ;;  %v2189_v29 = vld [vmem:[%s19120_s5 + $0x3b30] sm:$0xff] }
 0x436   : > { %v2205_v31 = vld [vmem:[%s19120_s5 + $0x3bb0] sm:$0xff] }
 0x437   : > { %13738 = vmatpush1.bf16.msra.mxu0 %v17839_v38  ;;  %13902 = vmatpush1.bf16.msra.mxu1 %v17841_v39  ;;  %v2061_v38 = vld [vmem:[%s19120_s5 + $0x3730] sm:$0xff] }
 0x438   : > { %13748 = vmatprep.subr.bf16.mxu0 %v17872_v40  ;;  %13912 = vmatprep.subr.bf16.mxu1 %v17874_v41  ;;  %v2077_v39 = vld [vmem:[%s19120_s5 + $0x37b0] sm:$0xff] }
 0x439   : > { %v18096_v54 = vcombine.high %v2061_v38, %v2077_v39 }
 0x43a   : > { %13740 = vmatmul.mubr.bf16.vlgmr.msra.gmra.mrb[12].mxu0 %v19277_v61  ;;  %13904 = vmatmul.mubr.bf16.vlgmr.msra.gmra.mrb[12].mxu1 %v19277_v61 }
 0x43b   : > { %13749 = vmatpush1.bf16.msra.mxu0 %v17871_v49  ;;  %13913 = vmatpush1.bf16.msra.mxu1 %v17873_v50  ;;  %v18063_v50 = vcombine.low %v2029_v26, %v2045_v28  ;;  %v18192_v26 = vcombine.high %v2157_v19, %v2173_v20 }
 0x43c   : > { %13750 = vmatprep.subr.bf16.mxu0 %v17904_v51  ;;  %13914 = vmatprep.subr.bf16.mxu1 %v17906_v24 }
 0x43d   : > { %13780 = vmatprep.mubr.bf16.mxu0 %v19418_v30  ;;  %13944 = vmatprep.mubr.bf16.mxu1 %v19418_v30 }
 0x43f   : > { %13751 = vmatpush1.bf16.msra.mxu0 %v17903_v56  ;;  %13915 = vmatpush1.bf16.msra.mxu1 %v17905_v57  ;;  %v18098_v57 = vcombine.high %v2062_v43, %v2078_v45 }
 0x440   : > { %13752 = vmatprep.subr.bf16.mxu0 %v17936_v58  ;;  %13916 = vmatprep.subr.bf16.mxu1 %v17938_v62  ;;  %v2093_v58 = vld [vmem:[%s19120_s5 + $0x3830] sm:$0xff] }
 0x441   : > { %v2109_v62 = vld [vmem:[%s19120_s5 + $0x38b0] sm:$0xff] }
 0x443   : > { %13753 = vmatpush1.bf16.msra.mxu0 %v17935_v4  ;;  %13917 = vmatpush1.bf16.msra.mxu1 %v17937_v5  ;;  %v18095_v4 = vcombine.low %v2061_v38, %v2077_v39  ;;  %v2221_v39 = vld [vmem:[%s19120_s5 + $0x3c30] sm:$0xff] }
 0x444   : > { %13754 = vmatprep.subr.bf16.mxu0 %v17968_v6  ;;  %13918 = vmatprep.subr.bf16.mxu1 %v17970_v7  ;;  %v18097_v6 = vcombine.low %v2062_v43, %v2078_v45  ;;  %v18128_v7 = vcombine.high %v2093_v58, %v2109_v62  ;;  %v2238_v43 = vld [vmem:[%s19120_s5 + $0x3cb8] sm:$0xff]  ;;  %v18223_v45 = vcombine.low %v2189_v29, %v2205_v31 }
 0x447   : > { %13755 = vmatpush1.bf16.msra.mxu0 %v17967_v12  ;;  %13919 = vmatpush1.bf16.msra.mxu1 %v17969_v13  ;;  %v2126_v12 = vld [vmem:[%s19120_s5 + $0x3938] sm:$0xff] }
 0x448   : > { %13756 = vmatprep.subr.bf16.mxu0 %v18000_v15  ;;  %13920 = vmatprep.subr.bf16.mxu1 %v18002_v16  ;;  %v2142_v13 = vld [vmem:[%s19120_s5 + $0x39b8] sm:$0xff]  ;;  %v18127_v15 = vcombine.low %v2093_v58, %v2109_v62  ;;  %v18129_v16 = vcombine.low %v2094_v0, %v2110_v1  ;;  %v2301_v58 = vld [vmem:[%s19120_s5 + $0x3eb0] sm:$0xff] }
 0x449   : > { %v18162_v18 = vcombine.high %v2126_v12, %v2142_v13  ;;  %v2286_v62 = vld [vmem:[%s19120_s5 + $0x3e38] sm:$0xff] }
 0x44b   : > { %13757 = vmatpush1.bf16.msra.mxu0 %v17999_v21  ;;  %13921 = vmatpush1.bf16.msra.mxu1 %v18001_v22  ;;  %v2158_v21 = vld [vmem:[%s19120_s5 + $0x3a38] sm:$0xff] }
 0x44c   : > { %13758 = vmatprep.subr.bf16.mxu0 %v18032_v23  ;;  %13922 = vmatprep.subr.bf16.mxu1 %v18034_v25  ;;  %v2174_v22 = vld [vmem:[%s19120_s5 + $0x3ab8] sm:$0xff]  ;;  %v18159_v23 = vcombine.low %v2125_v9, %v2141_v10  ;;  %v18161_v25 = vcombine.low %v2126_v12, %v2142_v13  ;;  %v303_v13 = vld [vmem:[%s19120_s5 + $0x40] sm:$0xff] }
 0x44d   : > { %v13454_v35 = vpop.f32.mrb[8].mxu0  ;;  %v13618_v40 = vpop.f32.mrb[8].mxu1  ;;  %v18194_v28 = vcombine.high %v2158_v21, %v2174_v22 }
 0x44e   : > { %v13456_v41 = vpop.f32.mrb[9].mxu0  ;;  %v13620_v48 = vpop.f32.mrb[9].mxu1 }
 0x44f   : > { %v15331_v46 = vcombine.low %v13454_v35, %v13456_v41  ;;  %v13458_v49 = vpop.f32.mrb[10].mxu0  ;;  %13759 = vmatpush1.bf16.msra.mxu0 %v18031_v32  ;;  %v15332_v51 = vcombine.low %v13618_v40, %v13620_v48  ;;  %v13622_v24 = vpop.f32.mrb[10].mxu1  ;;  %13923 = vmatpush1.bf16.msra.mxu1 %v18033_v33  ;;  %v2190_v32 = vld [vmem:[%s19120_s5 + $0x3b38] sm:$0xff]  ;;  %v18193_v35 = vcombine.low %v2158_v21, %v2174_v22  ;;  %v2237_v40 = vld [vmem:[%s19120_s5 + $0x3cb0] sm:$0xff]  ;;  %v335_v22 = vld [vmem:[%s19120_s5 + $0x140] sm:$0xff] }
 0x450   : > { %v13459_v52 = vpop.f32.mrb[11].mxu0  ;;  %13760 = vmatprep.subr.bf16.mxu0 %v18064_v34  ;;  %v13623_v56 = vpop.f32.mrb[11].mxu1  ;;  %13924 = vmatprep.subr.bf16.mxu1 %v18066_v36  ;;  %v2206_v33 = vld [vmem:[%s19120_s5 + $0x3bb8] sm:$0xff]  ;;  %v18191_v34 = vcombine.low %v2157_v19, %v2173_v20  ;;  %v18224_v36 = vcombine.high %v2189_v29, %v2205_v31  ;;  %v18256_v48 = vcombine.high %v2221_v39, %v2237_v40 }
 0x451   : > { %v15339_v55 = vrot.slane %v15331_v46, %v19719_v44  ;;  %v15346_v63 = vrot.slane %v15332_v51, %v19719_v44  ;;  %v18226_v38 = vcombine.high %v2190_v32, %v2206_v33  ;;  %v2222_v41 = vld [vmem:[%s19120_s5 + $0x3c38] sm:$0xff]  ;;  %v18225_v46 = vcombine.low %v2190_v32, %v2206_v33  ;;  %v2269_v51 = vld [vmem:[%s19120_s5 + $0x3db0] sm:$0xff]  ;;  %v367_v33 = vld [vmem:[%s19120_s5 + $0x240] sm:$0xff] }
 0x452   : > { %v18258_v49 = vcombine.high %v2222_v41, %v2238_v43  ;;  %v2254_v24 = vld [vmem:[%s19120_s5 + $0x3d38] sm:$0xff] }
 0x453   : > { %13761 = vmatpush1.bf16.msra.mxu0 %v18063_v50  ;;  %v15347_v5 = vcombine.low %v15339_v55, %v15346_v63  ;;  %13925 = vmatpush1.bf16.msra.mxu1 %v18065_v53  ;;  %v2253_v50 = vld [vmem:[%s19120_s5 + $0x3d30] sm:$0xff]  ;;  %v2270_v52 = vld [vmem:[%s19120_s5 + $0x3db8] sm:$0xff]  ;;  %v18255_v53 = vcombine.low %v2221_v39, %v2237_v40 }
 0x454   : > { %13762 = vmatprep.subr.bf16.mxu0 %v18096_v54  ;;  %13926 = vmatprep.subr.bf16.mxu1 %v18098_v57  ;;  %v18257_v54 = vcombine.low %v2222_v41, %v2238_v43  ;;  %v18288_v55 = vcombine.high %v2253_v50, %v2269_v51  ;;  %v18290_v56 = vcombine.high %v2254_v24, %v2270_v52  ;;  %v2285_v57 = vld [vmem:[%s19120_s5 + $0x3e30] sm:$0xff]  ;;  %v2302_v63 = vld [vmem:[%s19120_s5 + $0x3eb8] sm:$0xff]  ;;  %v399_v43 = vld [vmem:[%s19120_s5 + $0x340] sm:$0xff] }
 0x455   : > { %v15443_v11 = vadd.f32 %v15347_v5, %v289_v3  ;;  %v18287_v0 = vcombine.low %v2253_v50, %v2269_v51  ;;  %v18289_v1 = vcombine.low %v2254_v24, %v2270_v52  ;;  %v18320_v3 = vcombine.high %v2285_v57, %v2301_v58  ;;  %v2317_v5 = vld [vmem:[%s19120_s5 + $0x3f30] sm:$0xff]  ;;  %v431_v52 = vld [vmem:[%s19120_s5 + $0x440] sm:$0xff] }
 0x456   : > { %v18319_v9 = vcombine.low %v2285_v57, %v2301_v58  ;;  %v18321_v10 = vcombine.low %v2286_v62, %v2302_v63 }
 0x457   : > { %13763 = vmatpush1.bf16.msra.mxu0 %v18095_v4  ;;  %15451 = vst [vmem:[#allocation3 + $0x10] sm:$0xff] %v15443_v11  ;;  %13927 = vmatpush1.bf16.msra.mxu1 %v18097_v6  ;;  %v18322_v4 = vcombine.high %v2286_v62, %v2302_v63  ;;  %v2333_v6 = vld [vmem:[%s19120_s5 + $0x3fb0] sm:$0xff]  ;;  %v463_v63 = vld [vmem:[%s19120_s5 + $0x540] sm:$0xff] }
 0x458   : > { %13764 = vmatprep.subr.bf16.mxu0 %v18128_v7  ;;  %13928 = vmatprep.subr.bf16.mxu1 %v18130_v8  ;;  %v2318_v7 = vld [vmem:[%s19120_s5 + $0x3f38] sm:$0xff]  ;;  %v18352_v11 = vcombine.high %v2317_v5, %v2333_v6 }
 0x459   : > { %v2334_v8 = vld [vmem:[%s19120_s5 + $0x3fb8] sm:$0xff] }
 0x45a   : > { %v18354_v12 = vcombine.high %v2318_v7, %v2334_v8  ;;  %v18353_v19 = vcombine.low %v2318_v7, %v2334_v8  ;;  %v495_v8 = vld [vmem:[%s19120_s5 + $0x640] sm:$0xff] }
 0x45b   : > { %13765 = vmatpush1.bf16.msra.mxu0 %v18127_v15  ;;  %13929 = vmatpush1.bf16.msra.mxu1 %v18129_v16  ;;  %v319_v15 = vld [vmem:[%s19120_s5 + $0xc0] sm:$0xff]  ;;  %v304_v16 = vld [vmem:[%s19120_s5 + $0x48] sm:$0xff] }
 0x45c   : > { %13766 = vmatprep.subr.bf16.mxu0 %v18160_v17  ;;  %13930 = vmatprep.subr.bf16.mxu1 %v18162_v18  ;;  %v320_v17 = vld [vmem:[%s19120_s5 + $0xc8] sm:$0xff]  ;;  %v18351_v18 = vcombine.low %v2317_v5, %v2333_v6  ;;  %v16340_v20 = vcombine.high %v303_v13, %v319_v15 }
 0x45d   : > { %v16342_v21 = vcombine.high %v304_v16, %v320_v17  ;;  %v16341_v29 = vcombine.low %v304_v16, %v320_v17  ;;  %v527_v17 = vld [vmem:[%s19120_s5 + $0x740] sm:$0xff] }
 0x45f   : > { %13767 = vmatpush1.bf16.msra.mxu0 %v18159_v23  ;;  %13931 = vmatpush1.bf16.msra.mxu1 %v18161_v25  ;;  %v351_v23 = vld [vmem:[%s19120_s5 + $0x1c0] sm:$0xff]  ;;  %v336_v25 = vld [vmem:[%s19120_s5 + $0x148] sm:$0xff] }
 0x460   : > { %13768 = vmatprep.subr.bf16.mxu0 %v18192_v26  ;;  %13932 = vmatprep.subr.bf16.mxu1 %v18194_v28  ;;  %v352_v26 = vld [vmem:[%s19120_s5 + $0x1c8] sm:$0xff]  ;;  %v16339_v28 = vcombine.low %v303_v13, %v319_v15  ;;  %v16372_v31 = vcombine.high %v335_v22, %v351_v23 }
 0x461   : > { %v16374_v32 = vcombine.high %v336_v25, %v352_v26  ;;  %v16373_v39 = vcombine.low %v336_v25, %v352_v26  ;;  %v559_v26 = vld [vmem:[%s19120_s5 + $0x840] sm:$0xff] }
 0x463   : > { %13769 = vmatpush1.bf16.msra.mxu0 %v18191_v34  ;;  %13933 = vmatpush1.bf16.msra.mxu1 %v18193_v35  ;;  %v383_v34 = vld [vmem:[%s19120_s5 + $0x2c0] sm:$0xff]  ;;  %v368_v35 = vld [vmem:[%s19120_s5 + $0x248] sm:$0xff] }
 0x464   : > { %13770 = vmatprep.subr.bf16.mxu0 %v18224_v36  ;;  %13934 = vmatprep.subr.bf16.mxu1 %v18226_v38  ;;  %v384_v36 = vld [vmem:[%s19120_s5 + $0x2c8] sm:$0xff]  ;;  %v16371_v38 = vcombine.low %v335_v22, %v351_v23  ;;  %v16404_v40 = vcombine.high %v367_v33, %v383_v34 }
 0x465   : > { %v16406_v41 = vcombine.high %v368_v35, %v384_v36  ;;  %v16405_v50 = vcombine.low %v368_v35, %v384_v36  ;;  %v591_v36 = vld [vmem:[%s19120_s5 + $0x940] sm:$0xff] }
 0x467   : > { %13771 = vmatpush1.bf16.msra.mxu0 %v18223_v45  ;;  %13935 = vmatpush1.bf16.msra.mxu1 %v18225_v46  ;;  %v415_v45 = vld [vmem:[%s19120_s5 + $0x3c0] sm:$0xff]  ;;  %v400_v46 = vld [vmem:[%s19120_s5 + $0x348] sm:$0xff] }
 0x468   : > { %13772 = vmatprep.subr.bf16.mxu0 %v18256_v48  ;;  %13936 = vmatprep.subr.bf16.mxu1 %v18258_v49  ;;  %v416_v48 = vld [vmem:[%s19120_s5 + $0x3c8] sm:$0xff]  ;;  %v16403_v49 = vcombine.low %v367_v33, %v383_v34  ;;  %v16436_v51 = vcombine.high %v399_v43, %v415_v45 }
 0x469   : > { %v16438_v24 = vcombine.high %v400_v46, %v416_v48  ;;  %v16437_v57 = vcombine.low %v400_v46, %v416_v48  ;;  %v623_v48 = vld [vmem:[%s19120_s5 + $0xa40] sm:$0xff] }
 0x46b   : > { %13773 = vmatpush1.bf16.msra.mxu0 %v18255_v53  ;;  %13937 = vmatpush1.bf16.msra.mxu1 %v18257_v54  ;;  %v447_v53 = vld [vmem:[%s19120_s5 + $0x4c0] sm:$0xff]  ;;  %v432_v54 = vld [vmem:[%s19120_s5 + $0x448] sm:$0xff] }
 0x46c   : > { %13774 = vmatprep.subr.bf16.mxu0 %v18288_v55  ;;  %13938 = vmatprep.subr.bf16.mxu1 %v18290_v56  ;;  %v448_v55 = vld [vmem:[%s19120_s5 + $0x4c8] sm:$0xff]  ;;  %v16435_v56 = vcombine.low %v399_v43, %v415_v45  ;;  %v16468_v58 = vcombine.high %v431_v52, %v447_v53 }
 0x46d   : > { %v16470_v62 = vcombine.high %v432_v54, %v448_v55  ;;  %v16469_v5 = vcombine.low %v432_v54, %v448_v55  ;;  %v655_v55 = vld [vmem:[%s19120_s5 + $0xb40] sm:$0xff] }
 0x46f   : > { %13775 = vmatpush1.bf16.msra.mxu0 %v18287_v0  ;;  %13939 = vmatpush1.bf16.msra.mxu1 %v18289_v1  ;;  %v479_v0 = vld [vmem:[%s19120_s5 + $0x5c0] sm:$0xff]  ;;  %v464_v1 = vld [vmem:[%s19120_s5 + $0x548] sm:$0xff] }
 0x470   : > { %13776 = vmatprep.subr.bf16.mxu0 %v18320_v3  ;;  %13940 = vmatprep.subr.bf16.mxu1 %v18322_v4  ;;  %v480_v3 = vld [vmem:[%s19120_s5 + $0x5c8] sm:$0xff]  ;;  %v16467_v4 = vcombine.low %v431_v52, %v447_v53  ;;  %v16500_v6 = vcombine.high %v463_v63, %v479_v0 }
 0x471   : > { %v16502_v7 = vcombine.high %v464_v1, %v480_v3  ;;  %v16501_v13 = vcombine.low %v464_v1, %v480_v3  ;;  %v687_v3 = vld [vmem:[%s19120_s5 + $0xc40] sm:$0xff] }
 0x473   : > { %13777 = vmatpush1.bf16.msra.mxu0 %v18319_v9  ;;  %13941 = vmatpush1.bf16.msra.mxu1 %v18321_v10  ;;  %v511_v9 = vld [vmem:[%s19120_s5 + $0x6c0] sm:$0xff]  ;;  %v496_v10 = vld [vmem:[%s19120_s5 + $0x648] sm:$0xff] }
 0x474   : > { %13778 = vmatprep.subr.bf16.mxu0 %v18352_v11  ;;  %13942 = vmatprep.subr.bf16.mxu1 %v18354_v12  ;;  %v512_v11 = vld [vmem:[%s19120_s5 + $0x6c8] sm:$0xff]  ;;  %v16499_v12 = vcombine.low %v463_v63, %v479_v0  ;;  %v16532_v15 = vcombine.high %v495_v8, %v511_v9 }
 0x475   : > { %v16534_v16 = vcombine.high %v496_v10, %v512_v11  ;;  %v16533_v22 = vcombine.low %v496_v10, %v512_v11  ;;  %v719_v11 = vld [vmem:[%s19120_s5 + $0xd40] sm:$0xff] }
 0x477   : > { %13779 = vmatpush1.bf16.msra.mxu0 %v18351_v18  ;;  %13943 = vmatpush1.bf16.msra.mxu1 %v18353_v19  ;;  %v543_v18 = vld [vmem:[%s19120_s5 + $0x7c0] sm:$0xff]  ;;  %v528_v19 = vld [vmem:[%s19120_s5 + $0x748] sm:$0xff] }
 0x478   : > { %13953 = vmatprep.subr.bf16.mxu0 %v16340_v20  ;;  %14117 = vmatprep.subr.bf16.mxu1 %v16342_v21  ;;  %v544_v20 = vld [vmem:[%s19120_s5 + $0x7c8] sm:$0xff]  ;;  %v16531_v21 = vcombine.low %v495_v8, %v511_v9  ;;  %v16564_v23 = vcombine.high %v527_v17, %v543_v18 }
 0x479   : > { %v16566_v25 = vcombine.high %v528_v19, %v544_v20  ;;  %v16565_v33 = vcombine.low %v528_v19, %v544_v20  ;;  %v751_v20 = vld [vmem:[%s19120_s5 + $0xe40] sm:$0xff] }
 0x47a   : > { %13781 = vmatmul.mubr.bf16.vlgmr.msra.gmra.mrb[12].mxu0 %v19486_v42  ;;  %13945 = vmatmul.mubr.bf16.vlgmr.msra.gmra.mrb[12].mxu1 %v19486_v42 }
 0x47b   : > { %13954 = vmatpush1.bf16.msra.mxu0 %v16339_v28  ;;  %14118 = vmatpush1.bf16.msra.mxu1 %v16341_v29  ;;  %v575_v28 = vld [vmem:[%s19120_s5 + $0x8c0] sm:$0xff]  ;;  %v560_v29 = vld [vmem:[%s19120_s5 + $0x848] sm:$0xff] }
 0x47c   : > { %13955 = vmatprep.subr.bf16.mxu0 %v16372_v31  ;;  %14119 = vmatprep.subr.bf16.mxu1 %v16374_v32  ;;  %v576_v31 = vld [vmem:[%s19120_s5 + $0x8c8] sm:$0xff]  ;;  %v16563_v32 = vcombine.low %v527_v17, %v543_v18  ;;  %v16596_v34 = vcombine.high %v559_v26, %v575_v28 }
 0x47d   : > { %13985 = vmatprep.mubr.bf16.mxu0 %v19217_v37  ;;  %14149 = vmatprep.mubr.bf16.mxu1 %v19217_v37  ;;  %v16598_v35 = vcombine.high %v560_v29, %v576_v31  ;;  %v16597_v43 = vcombine.low %v560_v29, %v576_v31  ;;  %v783_v31 = vld [vmem:[%s19120_s5 + $0xf40] sm:$0xff] }
 0x47f   : > { %13956 = vmatpush1.bf16.msra.mxu0 %v16371_v38  ;;  %14120 = vmatpush1.bf16.msra.mxu1 %v16373_v39  ;;  %v607_v38 = vld [vmem:[%s19120_s5 + $0x9c0] sm:$0xff]  ;;  %v592_v39 = vld [vmem:[%s19120_s5 + $0x948] sm:$0xff] }
 0x480   : > { %13957 = vmatprep.subr.bf16.mxu0 %v16404_v40  ;;  %14121 = vmatprep.subr.bf16.mxu1 %v16406_v41  ;;  %v608_v40 = vld [vmem:[%s19120_s5 + $0x9c8] sm:$0xff]  ;;  %v16595_v41 = vcombine.low %v559_v26, %v575_v28  ;;  %v16628_v45 = vcombine.high %v591_v36, %v607_v38 }
 0x481   : > { %v16630_v46 = vcombine.high %v592_v39, %v608_v40  ;;  %v16629_v52 = vcombine.low %v592_v39, %v608_v40  ;;  %v815_v40 = vld [vmem:[%s19120_s5 + $0x1040] sm:$0xff] }
 0x483   : > { %13958 = vmatpush1.bf16.msra.mxu0 %v16403_v49  ;;  %14122 = vmatpush1.bf16.msra.mxu1 %v16405_v50  ;;  %v639_v49 = vld [vmem:[%s19120_s5 + $0xac0] sm:$0xff]  ;;  %v624_v50 = vld [vmem:[%s19120_s5 + $0xa48] sm:$0xff] }
 0x484   : > { %13959 = vmatprep.subr.bf16.mxu0 %v16436_v51  ;;  %14123 = vmatprep.subr.bf16.mxu1 %v16438_v24  ;;  %v640_v51 = vld [vmem:[%s19120_s5 + $0xac8] sm:$0xff]  ;;  %v16627_v24 = vcombine.low %v591_v36, %v607_v38  ;;  %v16660_v53 = vcombine.high %v623_v48, %v639_v49 }
 0x485   : > { %v16662_v54 = vcombine.high %v624_v50, %v640_v51  ;;  %v16661_v63 = vcombine.low %v624_v50, %v640_v51  ;;  %v847_v51 = vld [vmem:[%s19120_s5 + $0x1140] sm:$0xff] }
 0x487   : > { %13960 = vmatpush1.bf16.msra.mxu0 %v16435_v56  ;;  %14124 = vmatpush1.bf16.msra.mxu1 %v16437_v57  ;;  %v671_v56 = vld [vmem:[%s19120_s5 + $0xbc0] sm:$0xff]  ;;  %v656_v57 = vld [vmem:[%s19120_s5 + $0xb48] sm:$0xff] }
 0x488   : > { %13961 = vmatprep.subr.bf16.mxu0 %v16468_v58  ;;  %14125 = vmatprep.subr.bf16.mxu1 %v16470_v62  ;;  %v672_v58 = vld [vmem:[%s19120_s5 + $0xbc8] sm:$0xff]  ;;  %v16659_v62 = vcombine.low %v623_v48, %v639_v49  ;;  %v16692_v0 = vcombine.high %v655_v55, %v671_v56 }
 0x489   : > { %v16694_v1 = vcombine.high %v656_v57, %v672_v58  ;;  %v16693_v8 = vcombine.low %v656_v57, %v672_v58  ;;  %v879_v58 = vld [vmem:[%s19120_s5 + $0x1240] sm:$0xff] }
 0x48b   : > { %13962 = vmatpush1.bf16.msra.mxu0 %v16467_v4  ;;  %14126 = vmatpush1.bf16.msra.mxu1 %v16469_v5  ;;  %v703_v4 = vld [vmem:[%s19120_s5 + $0xcc0] sm:$0xff]  ;;  %v688_v5 = vld [vmem:[%s19120_s5 + $0xc48] sm:$0xff] }
 0x48c   : > { %13963 = vmatprep.subr.bf16.mxu0 %v16500_v6  ;;  %14127 = vmatprep.subr.bf16.mxu1 %v16502_v7  ;;  %v704_v6 = vld [vmem:[%s19120_s5 + $0xcc8] sm:$0xff]  ;;  %v16691_v7 = vcombine.low %v655_v55, %v671_v56  ;;  %v16724_v9 = vcombine.high %v687_v3, %v703_v4 }
 0x48d   : > { %v16726_v10 = vcombine.high %v688_v5, %v704_v6  ;;  %v16725_v17 = vcombine.low %v688_v5, %v704_v6  ;;  %v911_v6 = vld [vmem:[%s19120_s5 + $0x1340] sm:$0xff] }
 0x48f   : > { %13964 = vmatpush1.bf16.msra.mxu0 %v16499_v12  ;;  %14128 = vmatpush1.bf16.msra.mxu1 %v16501_v13  ;;  %v735_v12 = vld [vmem:[%s19120_s5 + $0xdc0] sm:$0xff]  ;;  %v720_v13 = vld [vmem:[%s19120_s5 + $0xd48] sm:$0xff] }
 0x490   : > { %13965 = vmatprep.subr.bf16.mxu0 %v16532_v15  ;;  %14129 = vmatprep.subr.bf16.mxu1 %v16534_v16  ;;  %v736_v15 = vld [vmem:[%s19120_s5 + $0xdc8] sm:$0xff]  ;;  %v16723_v16 = vcombine.low %v687_v3, %v703_v4  ;;  %v16756_v18 = vcombine.high %v719_v11, %v735_v12 }
 0x491   : > { %v16758_v19 = vcombine.high %v720_v13, %v736_v15  ;;  %v16757_v26 = vcombine.low %v720_v13, %v736_v15  ;;  %v943_v15 = vld [vmem:[%s19120_s5 + $0x1440] sm:$0xff] }
 0x493   : > { %13966 = vmatpush1.bf16.msra.mxu0 %v16531_v21  ;;  %14130 = vmatpush1.bf16.msra.mxu1 %v16533_v22  ;;  %v767_v21 = vld [vmem:[%s19120_s5 + $0xec0] sm:$0xff]  ;;  %v752_v22 = vld [vmem:[%s19120_s5 + $0xe48] sm:$0xff] }
 0x494   : > { %13967 = vmatprep.subr.bf16.mxu0 %v16564_v23  ;;  %14131 = vmatprep.subr.bf16.mxu1 %v16566_v25  ;;  %v768_v23 = vld [vmem:[%s19120_s5 + $0xec8] sm:$0xff]  ;;  %v16755_v25 = vcombine.low %v719_v11, %v735_v12  ;;  %v16788_v28 = vcombine.high %v751_v20, %v767_v21 }
 0x495   : > { %v16790_v29 = vcombine.high %v752_v22, %v768_v23  ;;  %v16789_v36 = vcombine.low %v752_v22, %v768_v23  ;;  %v975_v23 = vld [vmem:[%s19120_s5 + $0x1540] sm:$0xff] }
 0x497   : > { %13968 = vmatpush1.bf16.msra.mxu0 %v16563_v32  ;;  %14132 = vmatpush1.bf16.msra.mxu1 %v16565_v33  ;;  %v799_v32 = vld [vmem:[%s19120_s5 + $0xfc0] sm:$0xff]  ;;  %v784_v33 = vld [vmem:[%s19120_s5 + $0xf48] sm:$0xff] }
 0x498   : > { %13969 = vmatprep.subr.bf16.mxu0 %v16596_v34  ;;  %14133 = vmatprep.subr.bf16.mxu1 %v16598_v35  ;;  %v800_v34 = vld [vmem:[%s19120_s5 + $0xfc8] sm:$0xff]  ;;  %v16787_v35 = vcombine.low %v751_v20, %v767_v21  ;;  %v16820_v38 = vcombine.high %v783_v31, %v799_v32 }
 0x499   : > { %v16822_v39 = vcombine.high %v784_v33, %v800_v34  ;;  %v16821_v48 = vcombine.low %v784_v33, %v800_v34  ;;  %v1007_v34 = vld [vmem:[%s19120_s5 + $0x1640] sm:$0xff] }
 0x49b   : > { %13970 = vmatpush1.bf16.msra.mxu0 %v16595_v41  ;;  %14134 = vmatpush1.bf16.msra.mxu1 %v16597_v43  ;;  %v831_v41 = vld [vmem:[%s19120_s5 + $0x10c0] sm:$0xff]  ;;  %v816_v43 = vld [vmem:[%s19120_s5 + $0x1048] sm:$0xff] }
 0x49c   : > { %13971 = vmatprep.subr.bf16.mxu0 %v16628_v45  ;;  %14135 = vmatprep.subr.bf16.mxu1 %v16630_v46  ;;  %v832_v45 = vld [vmem:[%s19120_s5 + $0x10c8] sm:$0xff]  ;;  %v16819_v46 = vcombine.low %v783_v31, %v799_v32  ;;  %v16852_v49 = vcombine.high %v815_v40, %v831_v41 }
 0x49d   : > { %v16854_v50 = vcombine.high %v816_v43, %v832_v45  ;;  %v16853_v55 = vcombine.low %v816_v43, %v832_v45  ;;  %v1039_v45 = vld [vmem:[%s19120_s5 + $0x1740] sm:$0xff] }
 0x49f   : > { %13972 = vmatpush1.bf16.msra.mxu0 %v16627_v24  ;;  %14136 = vmatpush1.bf16.msra.mxu1 %v16629_v52  ;;  %v863_v24 = vld [vmem:[%s19120_s5 + $0x11c0] sm:$0xff]  ;;  %v848_v52 = vld [vmem:[%s19120_s5 + $0x1148] sm:$0xff] }
 0x4a0   : > { %13973 = vmatprep.subr.bf16.mxu0 %v16660_v53  ;;  %14137 = vmatprep.subr.bf16.mxu1 %v16662_v54  ;;  %v864_v53 = vld [vmem:[%s19120_s5 + $0x11c8] sm:$0xff]  ;;  %v16851_v54 = vcombine.low %v815_v40, %v831_v41  ;;  %v16884_v56 = vcombine.high %v847_v51, %v863_v24 }
 0x4a1   : > { %v16886_v57 = vcombine.high %v848_v52, %v864_v53  ;;  %v16885_v3 = vcombine.low %v848_v52, %v864_v53  ;;  %v1071_v53 = vld [vmem:[%s19120_s5 + $0x1840] sm:$0xff] }
 0x4a3   : > { %13974 = vmatpush1.bf16.msra.mxu0 %v16659_v62  ;;  %14138 = vmatpush1.bf16.msra.mxu1 %v16661_v63  ;;  %v895_v62 = vld [vmem:[%s19120_s5 + $0x12c0] sm:$0xff]  ;;  %v880_v63 = vld [vmem:[%s19120_s5 + $0x1248] sm:$0xff] }
 0x4a4   : > { %13975 = vmatprep.subr.bf16.mxu0 %v16692_v0  ;;  %14139 = vmatprep.subr.bf16.mxu1 %v16694_v1  ;;  %v896_v0 = vld [vmem:[%s19120_s5 + $0x12c8] sm:$0xff]  ;;  %v16883_v1 = vcombine.low %v847_v51, %v863_v24  ;;  %v16916_v4 = vcombine.high %v879_v58, %v895_v62 }
 0x4a5   : > { %v16918_v5 = vcombine.high %v880_v63, %v896_v0  ;;  %v16917_v11 = vcombine.low %v880_v63, %v896_v0  ;;  %v1103_v0 = vld [vmem:[%s19120_s5 + $0x1940] sm:$0xff] }
 0x4a7   : > { %13976 = vmatpush1.bf16.msra.mxu0 %v16691_v7  ;;  %14140 = vmatpush1.bf16.msra.mxu1 %v16693_v8  ;;  %v927_v7 = vld [vmem:[%s19120_s5 + $0x13c0] sm:$0xff]  ;;  %v912_v8 = vld [vmem:[%s19120_s5 + $0x1348] sm:$0xff] }
 0x4a8   : > { %13977 = vmatprep.subr.bf16.mxu0 %v16724_v9  ;;  %14141 = vmatprep.subr.bf16.mxu1 %v16726_v10  ;;  %v928_v9 = vld [vmem:[%s19120_s5 + $0x13c8] sm:$0xff]  ;;  %v16915_v10 = vcombine.low %v879_v58, %v895_v62  ;;  %v16948_v12 = vcombine.high %v911_v6, %v927_v7 }
 0x4a9   : > { %v16950_v13 = vcombine.high %v912_v8, %v928_v9  ;;  %v16949_v20 = vcombine.low %v912_v8, %v928_v9  ;;  %v1135_v9 = vld [vmem:[%s19120_s5 + $0x1a40] sm:$0xff] }
 0x4ab   : > { %13978 = vmatpush1.bf16.msra.mxu0 %v16723_v16  ;;  %14142 = vmatpush1.bf16.msra.mxu1 %v16725_v17  ;;  %v959_v16 = vld [vmem:[%s19120_s5 + $0x14c0] sm:$0xff]  ;;  %v944_v17 = vld [vmem:[%s19120_s5 + $0x1448] sm:$0xff] }
 0x4ac   : > { %13979 = vmatprep.subr.bf16.mxu0 %v16756_v18  ;;  %14143 = vmatprep.subr.bf16.mxu1 %v16758_v19  ;;  %v960_v18 = vld [vmem:[%s19120_s5 + $0x14c8] sm:$0xff]  ;;  %v16947_v19 = vcombine.low %v911_v6, %v927_v7  ;;  %v16980_v21 = vcombine.high %v943_v15, %v959_v16 }
 0x4ad   : > { %v16982_v22 = vcombine.high %v944_v17, %v960_v18  ;;  %v16981_v31 = vcombine.low %v944_v17, %v960_v18  ;;  %v1167_v18 = vld [vmem:[%s19120_s5 + $0x1b40] sm:$0xff] }
 0x4af   : > { %13980 = vmatpush1.bf16.msra.mxu0 %v16755_v25  ;;  %14144 = vmatpush1.bf16.msra.mxu1 %v16757_v26  ;;  %v991_v25 = vld [vmem:[%s19120_s5 + $0x15c0] sm:$0xff]  ;;  %v976_v26 = vld [vmem:[%s19120_s5 + $0x1548] sm:$0xff] }
 0x4b0   : > { %13981 = vmatprep.subr.bf16.mxu0 %v16788_v28  ;;  %14145 = vmatprep.subr.bf16.mxu1 %v16790_v29  ;;  %v992_v28 = vld [vmem:[%s19120_s5 + $0x15c8] sm:$0xff]  ;;  %v16979_v29 = vcombine.low %v943_v15, %v959_v16  ;;  %v17012_v32 = vcombine.high %v975_v23, %v991_v25 }
 0x4b1   : > { %v17014_v33 = vcombine.high %v976_v26, %v992_v28  ;;  %v17013_v40 = vcombine.low %v976_v26, %v992_v28  ;;  %v1199_v28 = vld [vmem:[%s19120_s5 + $0x1c40] sm:$0xff] }
 0x4b3   : > { %13982 = vmatpush1.bf16.msra.mxu0 %v16787_v35  ;;  %14146 = vmatpush1.bf16.msra.mxu1 %v16789_v36  ;;  %v1023_v35 = vld [vmem:[%s19120_s5 + $0x16c0] sm:$0xff]  ;;  %v1008_v36 = vld [vmem:[%s19120_s5 + $0x1648] sm:$0xff] }
 0x4b4   : > { %13983 = vmatprep.subr.bf16.mxu0 %v16820_v38  ;;  %14147 = vmatprep.subr.bf16.mxu1 %v16822_v39  ;;  %v1024_v38 = vld [vmem:[%s19120_s5 + $0x16c8] sm:$0xff]  ;;  %v17011_v39 = vcombine.low %v975_v23, %v991_v25  ;;  %v17044_v41 = vcombine.high %v1007_v34, %v1023_v35 }
 0x4b5   : > { %v17046_v43 = vcombine.high %v1008_v36, %v1024_v38  ;;  %v17045_v51 = vcombine.low %v1008_v36, %v1024_v38  ;;  %v1231_v38 = vld [vmem:[%s19120_s5 + $0x1d40] sm:$0xff] }
 0x4b7   : > { %13984 = vmatpush1.bf16.msra.mxu0 %v16819_v46  ;;  %14148 = vmatpush1.bf16.msra.mxu1 %v16821_v48  ;;  %v1055_v46 = vld [vmem:[%s19120_s5 + $0x17c0] sm:$0xff]  ;;  %v1040_v48 = vld [vmem:[%s19120_s5 + $0x1748] sm:$0xff] }
 0x4b8   : > { %13994 = vmatprep.subr.bf16.mxu0 %v16852_v49  ;;  %14158 = vmatprep.subr.bf16.mxu1 %v16854_v50  ;;  %v1056_v49 = vld [vmem:[%s19120_s5 + $0x17c8] sm:$0xff]  ;;  %v17043_v50 = vcombine.low %v1007_v34, %v1023_v35  ;;  %v17076_v24 = vcombine.high %v1039_v45, %v1055_v46 }
 0x4b9   : > { %v17078_v52 = vcombine.high %v1040_v48, %v1056_v49  ;;  %v17077_v58 = vcombine.low %v1040_v48, %v1056_v49  ;;  %v1263_v49 = vld [vmem:[%s19120_s5 + $0x1e40] sm:$0xff] }
 0x4ba   : > { %13986 = vmatmul.mubr.bf16.vlgmr.msra.gmra.mrb[16].mxu0 %v19259_v47  ;;  %14150 = vmatmul.mubr.bf16.vlgmr.msra.gmra.mrb[16].mxu1 %v19259_v47 }
 0x4bb   : > { %13995 = vmatpush1.bf16.msra.mxu0 %v16851_v54  ;;  %14159 = vmatpush1.bf16.msra.mxu1 %v16853_v55  ;;  %v1087_v54 = vld [vmem:[%s19120_s5 + $0x18c0] sm:$0xff]  ;;  %v1072_v55 = vld [vmem:[%s19120_s5 + $0x1848] sm:$0xff] }
 0x4bc   : > { %13996 = vmatprep.subr.bf16.mxu0 %v16884_v56  ;;  %14160 = vmatprep.subr.bf16.mxu1 %v16886_v57  ;;  %v1088_v56 = vld [vmem:[%s19120_s5 + $0x18c8] sm:$0xff]  ;;  %v17075_v57 = vcombine.low %v1039_v45, %v1055_v46  ;;  %v17108_v62 = vcombine.high %v1071_v53, %v1087_v54 }
 0x4bd   : > { %14026 = vmatprep.mubr.bf16.mxu0 %v19268_v27  ;;  %14190 = vmatprep.mubr.bf16.mxu1 %v19268_v27  ;;  %v17110_v63 = vcombine.high %v1072_v55, %v1088_v56  ;;  %v17109_v6 = vcombine.low %v1072_v55, %v1088_v56  ;;  %v1295_v56 = vld [vmem:[%s19120_s5 + $0x1f40] sm:$0xff] }
 0x4bf   : > { %13997 = vmatpush1.bf16.msra.mxu0 %v16883_v1  ;;  %14161 = vmatpush1.bf16.msra.mxu1 %v16885_v3  ;;  %v1119_v1 = vld [vmem:[%s19120_s5 + $0x19c0] sm:$0xff]  ;;  %v1104_v3 = vld [vmem:[%s19120_s5 + $0x1948] sm:$0xff] }
 0x4c0   : > { %13998 = vmatprep.subr.bf16.mxu0 %v16916_v4  ;;  %14162 = vmatprep.subr.bf16.mxu1 %v16918_v5  ;;  %v1120_v4 = vld [vmem:[%s19120_s5 + $0x19c8] sm:$0xff]  ;;  %v17107_v5 = vcombine.low %v1071_v53, %v1087_v54  ;;  %v17140_v7 = vcombine.high %v1103_v0, %v1119_v1 }
 0x4c1   : > { %v17142_v8 = vcombine.high %v1104_v3, %v1120_v4  ;;  %v17141_v15 = vcombine.low %v1104_v3, %v1120_v4  ;;  %v1327_v4 = vld [vmem:[%s19120_s5 + $0x2040] sm:$0xff] }
 0x4c3   : > { %13999 = vmatpush1.bf16.msra.mxu0 %v16915_v10  ;;  %14163 = vmatpush1.bf16.msra.mxu1 %v16917_v11  ;;  %v1151_v10 = vld [vmem:[%s19120_s5 + $0x1ac0] sm:$0xff]  ;;  %v1136_v11 = vld [vmem:[%s19120_s5 + $0x1a48] sm:$0xff] }
 0x4c4   : > { %14000 = vmatprep.subr.bf16.mxu0 %v16948_v12  ;;  %14164 = vmatprep.subr.bf16.mxu1 %v16950_v13  ;;  %v1152_v12 = vld [vmem:[%s19120_s5 + $0x1ac8] sm:$0xff]  ;;  %v17139_v13 = vcombine.low %v1103_v0, %v1119_v1  ;;  %v17172_v16 = vcombine.high %v1135_v9, %v1151_v10 }
 0x4c5   : > { %v17174_v17 = vcombine.high %v1136_v11, %v1152_v12  ;;  %v17173_v23 = vcombine.low %v1136_v11, %v1152_v12  ;;  %v1359_v12 = vld [vmem:[%s19120_s5 + $0x2140] sm:$0xff] }
 0x4c7   : > { %14001 = vmatpush1.bf16.msra.mxu0 %v16947_v19  ;;  %14165 = vmatpush1.bf16.msra.mxu1 %v16949_v20  ;;  %v1183_v19 = vld [vmem:[%s19120_s5 + $0x1bc0] sm:$0xff]  ;;  %v1168_v20 = vld [vmem:[%s19120_s5 + $0x1b48] sm:$0xff] }
 0x4c8   : > { %14002 = vmatprep.subr.bf16.mxu0 %v16980_v21  ;;  %14166 = vmatprep.subr.bf16.mxu1 %v16982_v22  ;;  %v1184_v21 = vld [vmem:[%s19120_s5 + $0x1bc8] sm:$0xff]  ;;  %v17171_v22 = vcombine.low %v1135_v9, %v1151_v10  ;;  %v17204_v25 = vcombine.high %v1167_v18, %v1183_v19 }
 0x4c9   : > { %v17206_v26 = vcombine.high %v1168_v20, %v1184_v21  ;;  %v17205_v34 = vcombine.low %v1168_v20, %v1184_v21  ;;  %v1391_v21 = vld [vmem:[%s19120_s5 + $0x2240] sm:$0xff] }
 0x4cb   : > { %14003 = vmatpush1.bf16.msra.mxu0 %v16979_v29  ;;  %14167 = vmatpush1.bf16.msra.mxu1 %v16981_v31  ;;  %v1215_v29 = vld [vmem:[%s19120_s5 + $0x1cc0] sm:$0xff]  ;;  %v1200_v31 = vld [vmem:[%s19120_s5 + $0x1c48] sm:$0xff] }
 0x4cc   : > { %14004 = vmatprep.subr.bf16.mxu0 %v17012_v32  ;;  %14168 = vmatprep.subr.bf16.mxu1 %v17014_v33  ;;  %v1216_v32 = vld [vmem:[%s19120_s5 + $0x1cc8] sm:$0xff]  ;;  %v17203_v33 = vcombine.low %v1167_v18, %v1183_v19  ;;  %v17236_v35 = vcombine.high %v1199_v28, %v1215_v29 }
 0x4cd   : > { %v17238_v36 = vcombine.high %v1200_v31, %v1216_v32  ;;  %v17237_v45 = vcombine.low %v1200_v31, %v1216_v32  ;;  %v1423_v32 = vld [vmem:[%s19120_s5 + $0x2340] sm:$0xff] }
 0x4cf   : > { %14005 = vmatpush1.bf16.msra.mxu0 %v17011_v39  ;;  %14169 = vmatpush1.bf16.msra.mxu1 %v17013_v40  ;;  %v1247_v39 = vld [vmem:[%s19120_s5 + $0x1dc0] sm:$0xff]  ;;  %v1232_v40 = vld [vmem:[%s19120_s5 + $0x1d48] sm:$0xff] }
 0x4d0   : > { %14006 = vmatprep.subr.bf16.mxu0 %v17044_v41  ;;  %14170 = vmatprep.subr.bf16.mxu1 %v17046_v43  ;;  %v1248_v41 = vld [vmem:[%s19120_s5 + $0x1dc8] sm:$0xff]  ;;  %v17235_v43 = vcombine.low %v1199_v28, %v1215_v29  ;;  %v17268_v46 = vcombine.high %v1231_v38, %v1247_v39 }
 0x4d1   : > { %v17270_v48 = vcombine.high %v1232_v40, %v1248_v41  ;;  %v17269_v53 = vcombine.low %v1232_v40, %v1248_v41  ;;  %v1455_v41 = vld [vmem:[%s19120_s5 + $0x2440] sm:$0xff] }
 0x4d3   : > { %14007 = vmatpush1.bf16.msra.mxu0 %v17043_v50  ;;  %14171 = vmatpush1.bf16.msra.mxu1 %v17045_v51  ;;  %v1279_v50 = vld [vmem:[%s19120_s5 + $0x1ec0] sm:$0xff]  ;;  %v1264_v51 = vld [vmem:[%s19120_s5 + $0x1e48] sm:$0xff] }
 0x4d4   : > { %14008 = vmatprep.subr.bf16.mxu0 %v17076_v24  ;;  %14172 = vmatprep.subr.bf16.mxu1 %v17078_v52  ;;  %v1280_v24 = vld [vmem:[%s19120_s5 + $0x1ec8] sm:$0xff]  ;;  %v17267_v52 = vcombine.low %v1231_v38, %v1247_v39  ;;  %v17300_v54 = vcombine.high %v1263_v49, %v1279_v50 }
 0x4d5   : > { %v17302_v55 = vcombine.high %v1264_v51, %v1280_v24  ;;  %v17301_v0 = vcombine.low %v1264_v51, %v1280_v24  ;;  %v1487_v24 = vld [vmem:[%s19120_s5 + $0x2540] sm:$0xff] }
 0x4d7   : > { %14009 = vmatpush1.bf16.msra.mxu0 %v17075_v57  ;;  %14173 = vmatpush1.bf16.msra.mxu1 %v17077_v58  ;;  %v1311_v57 = vld [vmem:[%s19120_s5 + $0x1fc0] sm:$0xff]  ;;  %v1296_v58 = vld [vmem:[%s19120_s5 + $0x1f48] sm:$0xff] }
 0x4d8   : > { %14010 = vmatprep.subr.bf16.mxu0 %v17108_v62  ;;  %14174 = vmatprep.subr.bf16.mxu1 %v17110_v63  ;;  %v1312_v62 = vld [vmem:[%s19120_s5 + $0x1fc8] sm:$0xff]  ;;  %v17299_v63 = vcombine.low %v1263_v49, %v1279_v50  ;;  %v17332_v1 = vcombine.high %v1295_v56, %v1311_v57 }
 0x4d9   : > { %v17334_v3 = vcombine.high %v1296_v58, %v1312_v62  ;;  %v17333_v9 = vcombine.low %v1296_v58, %v1312_v62  ;;  %v1519_v62 = vld [vmem:[%s19120_s5 + $0x2640] sm:$0xff] }
 0x4db   : > { %14011 = vmatpush1.bf16.msra.mxu0 %v17107_v5  ;;  %14175 = vmatpush1.bf16.msra.mxu1 %v17109_v6  ;;  %v1343_v5 = vld [vmem:[%s19120_s5 + $0x20c0] sm:$0xff]  ;;  %v1328_v6 = vld [vmem:[%s19120_s5 + $0x2048] sm:$0xff] }
 0x4dc   : > { %14012 = vmatprep.subr.bf16.mxu0 %v17140_v7  ;;  %14176 = vmatprep.subr.bf16.mxu1 %v17142_v8  ;;  %v1344_v7 = vld [vmem:[%s19120_s5 + $0x20c8] sm:$0xff]  ;;  %v17331_v8 = vcombine.low %v1295_v56, %v1311_v57  ;;  %v17364_v10 = vcombine.high %v1327_v4, %v1343_v5 }
 0x4dd   : > { %v17366_v11 = vcombine.high %v1328_v6, %v1344_v7  ;;  %v17365_v18 = vcombine.low %v1328_v6, %v1344_v7  ;;  %v1551_v7 = vld [vmem:[%s19120_s5 + $0x2740] sm:$0xff] }
 0x4df   : > { %14013 = vmatpush1.bf16.msra.mxu0 %v17139_v13  ;;  %14177 = vmatpush1.bf16.msra.mxu1 %v17141_v15  ;;  %v1375_v13 = vld [vmem:[%s19120_s5 + $0x21c0] sm:$0xff]  ;;  %v1360_v15 = vld [vmem:[%s19120_s5 + $0x2148] sm:$0xff] }
 0x4e0   : > { %14014 = vmatprep.subr.bf16.mxu0 %v17172_v16  ;;  %14178 = vmatprep.subr.bf16.mxu1 %v17174_v17  ;;  %v1376_v16 = vld [vmem:[%s19120_s5 + $0x21c8] sm:$0xff]  ;;  %v17363_v17 = vcombine.low %v1327_v4, %v1343_v5  ;;  %v17396_v19 = vcombine.high %v1359_v12, %v1375_v13 }
 0x4e1   : > { %v17398_v20 = vcombine.high %v1360_v15, %v1376_v16  ;;  %v17397_v28 = vcombine.low %v1360_v15, %v1376_v16  ;;  %v1583_v16 = vld [vmem:[%s19120_s5 + $0x2840] sm:$0xff] }
 0x4e3   : > { %14015 = vmatpush1.bf16.msra.mxu0 %v17171_v22  ;;  %14179 = vmatpush1.bf16.msra.mxu1 %v17173_v23  ;;  %v1407_v22 = vld [vmem:[%s19120_s5 + $0x22c0] sm:$0xff]  ;;  %v1392_v23 = vld [vmem:[%s19120_s5 + $0x2248] sm:$0xff] }
 0x4e4   : > { %14016 = vmatprep.subr.bf16.mxu0 %v17204_v25  ;;  %14180 = vmatprep.subr.bf16.mxu1 %v17206_v26  ;;  %v1408_v25 = vld [vmem:[%s19120_s5 + $0x22c8] sm:$0xff]  ;;  %v17395_v26 = vcombine.low %v1359_v12, %v1375_v13  ;;  %v17428_v29 = vcombine.high %v1391_v21, %v1407_v22 }
 0x4e5   : > { %v17430_v31 = vcombine.high %v1392_v23, %v1408_v25  ;;  %v17429_v38 = vcombine.low %v1392_v23, %v1408_v25  ;;  %v1615_v25 = vld [vmem:[%s19120_s5 + $0x2940] sm:$0xff] }
 0x4e7   : > { %14017 = vmatpush1.bf16.msra.mxu0 %v17203_v33  ;;  %14181 = vmatpush1.bf16.msra.mxu1 %v17205_v34  ;;  %v1439_v33 = vld [vmem:[%s19120_s5 + $0x23c0] sm:$0xff]  ;;  %v1424_v34 = vld [vmem:[%s19120_s5 + $0x2348] sm:$0xff] }
 0x4e8   : > { %14018 = vmatprep.subr.bf16.mxu0 %v17236_v35  ;;  %14182 = vmatprep.subr.bf16.mxu1 %v17238_v36  ;;  %v1440_v35 = vld [vmem:[%s19120_s5 + $0x23c8] sm:$0xff]  ;;  %v17427_v36 = vcombine.low %v1391_v21, %v1407_v22  ;;  %v17460_v39 = vcombine.high %v1423_v32, %v1439_v33 }
 0x4e9   : > { %v17462_v40 = vcombine.high %v1424_v34, %v1440_v35  ;;  %v17461_v49 = vcombine.low %v1424_v34, %v1440_v35  ;;  %v1647_v35 = vld [vmem:[%s19120_s5 + $0x2a40] sm:$0xff] }
 0x4eb   : > { %14019 = vmatpush1.bf16.msra.mxu0 %v17235_v43  ;;  %14183 = vmatpush1.bf16.msra.mxu1 %v17237_v45  ;;  %v1471_v43 = vld [vmem:[%s19120_s5 + $0x24c0] sm:$0xff]  ;;  %v1456_v45 = vld [vmem:[%s19120_s5 + $0x2448] sm:$0xff] }
 0x4ec   : > { %14020 = vmatprep.subr.bf16.mxu0 %v17268_v46  ;;  %14184 = vmatprep.subr.bf16.mxu1 %v17270_v48  ;;  %v1472_v46 = vld [vmem:[%s19120_s5 + $0x24c8] sm:$0xff]  ;;  %v17459_v48 = vcombine.low %v1423_v32, %v1439_v33  ;;  %v17492_v50 = vcombine.high %v1455_v41, %v1471_v43 }
 0x4ed   : > { %v17494_v51 = vcombine.high %v1456_v45, %v1472_v46  ;;  %v17493_v56 = vcombine.low %v1456_v45, %v1472_v46  ;;  %v1679_v46 = vld [vmem:[%s19120_s5 + $0x2b40] sm:$0xff] }
 0x4ef   : > { %14021 = vmatpush1.bf16.msra.mxu0 %v17267_v52  ;;  %14185 = vmatpush1.bf16.msra.mxu1 %v17269_v53  ;;  %v1503_v52 = vld [vmem:[%s19120_s5 + $0x25c0] sm:$0xff]  ;;  %v1488_v53 = vld [vmem:[%s19120_s5 + $0x2548] sm:$0xff] }
 0x4f0   : > { %14022 = vmatprep.subr.bf16.mxu0 %v17300_v54  ;;  %14186 = vmatprep.subr.bf16.mxu1 %v17302_v55  ;;  %v1504_v54 = vld [vmem:[%s19120_s5 + $0x25c8] sm:$0xff]  ;;  %v17491_v55 = vcombine.low %v1455_v41, %v1471_v43  ;;  %v17524_v57 = vcombine.high %v1487_v24, %v1503_v52 }
 0x4f1   : > { %v17526_v58 = vcombine.high %v1488_v53, %v1504_v54  ;;  %v17525_v4 = vcombine.low %v1488_v53, %v1504_v54  ;;  %v1711_v54 = vld [vmem:[%s19120_s5 + $0x2c40] sm:$0xff] }
 0x4f3   : > { %14023 = vmatpush1.bf16.msra.mxu0 %v17299_v63  ;;  %14187 = vmatpush1.bf16.msra.mxu1 %v17301_v0  ;;  %v1535_v63 = vld [vmem:[%s19120_s5 + $0x26c0] sm:$0xff]  ;;  %v1520_v0 = vld [vmem:[%s19120_s5 + $0x2648] sm:$0xff] }
 0x4f4   : > { %14024 = vmatprep.subr.bf16.mxu0 %v17332_v1  ;;  %14188 = vmatprep.subr.bf16.mxu1 %v17334_v3  ;;  %v1536_v1 = vld [vmem:[%s19120_s5 + $0x26c8] sm:$0xff]  ;;  %v17523_v3 = vcombine.low %v1487_v24, %v1503_v52  ;;  %v17556_v5 = vcombine.high %v1519_v62, %v1535_v63 }
 0x4f5   : > { %v17558_v6 = vcombine.high %v1520_v0, %v1536_v1  ;;  %v17557_v12 = vcombine.low %v1520_v0, %v1536_v1  ;;  %v1743_v1 = vld [vmem:[%s19120_s5 + $0x2d40] sm:$0xff] }
 0x4f7   : > { %14025 = vmatpush1.bf16.msra.mxu0 %v17331_v8  ;;  %14189 = vmatpush1.bf16.msra.mxu1 %v17333_v9  ;;  %v1567_v8 = vld [vmem:[%s19120_s5 + $0x27c0] sm:$0xff]  ;;  %v1552_v9 = vld [vmem:[%s19120_s5 + $0x2748] sm:$0xff] }
 0x4f8   : > { %14035 = vmatprep.subr.bf16.mxu0 %v17364_v10  ;;  %14199 = vmatprep.subr.bf16.mxu1 %v17366_v11  ;;  %v1568_v10 = vld [vmem:[%s19120_s5 + $0x27c8] sm:$0xff]  ;;  %v17555_v11 = vcombine.low %v1519_v62, %v1535_v63  ;;  %v17588_v13 = vcombine.high %v1551_v7, %v1567_v8 }
 0x4f9   : > { %v17590_v15 = vcombine.high %v1552_v9, %v1568_v10  ;;  %v17589_v21 = vcombine.low %v1552_v9, %v1568_v10  ;;  %v1775_v10 = vld [vmem:[%s19120_s5 + $0x2e40] sm:$0xff] }
 0x4fa   : > { %14027 = vmatmul.mubr.bf16.vlgmr.msra.gmra.mrb[16].mxu0 %v19342_v2  ;;  %14191 = vmatmul.mubr.bf16.vlgmr.msra.gmra.mrb[16].mxu1 %v19342_v2 }
 0x4fb   : > { %14036 = vmatpush1.bf16.msra.mxu0 %v17363_v17  ;;  %14200 = vmatpush1.bf16.msra.mxu1 %v17365_v18  ;;  %v1599_v17 = vld [vmem:[%s19120_s5 + $0x28c0] sm:$0xff]  ;;  %v1584_v18 = vld [vmem:[%s19120_s5 + $0x2848] sm:$0xff] }
 0x4fc   : > { %14037 = vmatprep.subr.bf16.mxu0 %v17396_v19  ;;  %14201 = vmatprep.subr.bf16.mxu1 %v17398_v20  ;;  %v1600_v19 = vld [vmem:[%s19120_s5 + $0x28c8] sm:$0xff]  ;;  %v17587_v20 = vcombine.low %v1551_v7, %v1567_v8  ;;  %v17620_v22 = vcombine.high %v1583_v16, %v1599_v17 }
 0x4fd   : > { %14067 = vmatprep.mubr.bf16.mxu0 %v19274_v60  ;;  %14231 = vmatprep.mubr.bf16.mxu1 %v19274_v60  ;;  %v17622_v23 = vcombine.high %v1584_v18, %v1600_v19  ;;  %v17621_v32 = vcombine.low %v1584_v18, %v1600_v19  ;;  %v1807_v19 = vld [vmem:[%s19120_s5 + $0x2f40] sm:$0xff] }
 0x4ff   : > { %14038 = vmatpush1.bf16.msra.mxu0 %v17395_v26  ;;  %14202 = vmatpush1.bf16.msra.mxu1 %v17397_v28  ;;  %v1631_v26 = vld [vmem:[%s19120_s5 + $0x29c0] sm:$0xff]  ;;  %v1616_v28 = vld [vmem:[%s19120_s5 + $0x2948] sm:$0xff] }
 0x500   : > { %14039 = vmatprep.subr.bf16.mxu0 %v17428_v29  ;;  %14203 = vmatprep.subr.bf16.mxu1 %v17430_v31  ;;  %v1632_v29 = vld [vmem:[%s19120_s5 + $0x29c8] sm:$0xff]  ;;  %v17619_v31 = vcombine.low %v1583_v16, %v1599_v17  ;;  %v17652_v33 = vcombine.high %v1615_v25, %v1631_v26 }
 0x501   : > { %v17654_v34 = vcombine.high %v1616_v28, %v1632_v29  ;;  %v17653_v41 = vcombine.low %v1616_v28, %v1632_v29  ;;  %v1839_v29 = vld [vmem:[%s19120_s5 + $0x3040] sm:$0xff] }
 0x503   : > { %14040 = vmatpush1.bf16.msra.mxu0 %v17427_v36  ;;  %14204 = vmatpush1.bf16.msra.mxu1 %v17429_v38  ;;  %v1663_v36 = vld [vmem:[%s19120_s5 + $0x2ac0] sm:$0xff]  ;;  %v1648_v38 = vld [vmem:[%s19120_s5 + $0x2a48] sm:$0xff] }
 0x504   : > { %14041 = vmatprep.subr.bf16.mxu0 %v17460_v39  ;;  %14205 = vmatprep.subr.bf16.mxu1 %v17462_v40  ;;  %v1664_v39 = vld [vmem:[%s19120_s5 + $0x2ac8] sm:$0xff]  ;;  %v17651_v40 = vcombine.low %v1615_v25, %v1631_v26  ;;  %v17684_v43 = vcombine.high %v1647_v35, %v1663_v36 }
 0x505   : > { %v17686_v45 = vcombine.high %v1648_v38, %v1664_v39  ;;  %v17685_v24 = vcombine.low %v1648_v38, %v1664_v39  ;;  %v1871_v39 = vld [vmem:[%s19120_s5 + $0x3140] sm:$0xff] }
 0x507   : > { %14042 = vmatpush1.bf16.msra.mxu0 %v17459_v48  ;;  %14206 = vmatpush1.bf16.msra.mxu1 %v17461_v49  ;;  %v1695_v48 = vld [vmem:[%s19120_s5 + $0x2bc0] sm:$0xff]  ;;  %v1680_v49 = vld [vmem:[%s19120_s5 + $0x2b48] sm:$0xff] }
 0x508   : > { %14043 = vmatprep.subr.bf16.mxu0 %v17492_v50  ;;  %14207 = vmatprep.subr.bf16.mxu1 %v17494_v51  ;;  %v1696_v50 = vld [vmem:[%s19120_s5 + $0x2bc8] sm:$0xff]  ;;  %v17683_v51 = vcombine.low %v1647_v35, %v1663_v36  ;;  %v17716_v52 = vcombine.high %v1679_v46, %v1695_v48 }
 0x509   : > { %v17718_v53 = vcombine.high %v1680_v49, %v1696_v50  ;;  %v17717_v62 = vcombine.low %v1680_v49, %v1696_v50  ;;  %v1903_v50 = vld [vmem:[%s19120_s5 + $0x3240] sm:$0xff] }
 0x50b   : > { %14044 = vmatpush1.bf16.msra.mxu0 %v17491_v55  ;;  %14208 = vmatpush1.bf16.msra.mxu1 %v17493_v56  ;;  %v1727_v55 = vld [vmem:[%s19120_s5 + $0x2cc0] sm:$0xff]  ;;  %v1712_v56 = vld [vmem:[%s19120_s5 + $0x2c48] sm:$0xff] }
 0x50c   : > { %14045 = vmatprep.subr.bf16.mxu0 %v17524_v57  ;;  %14209 = vmatprep.subr.bf16.mxu1 %v17526_v58  ;;  %v1728_v57 = vld [vmem:[%s19120_s5 + $0x2cc8] sm:$0xff]  ;;  %v17715_v58 = vcombine.low %v1679_v46, %v1695_v48  ;;  %v17748_v63 = vcombine.high %v1711_v54, %v1727_v55 }
 0x50d   : > { %v17750_v0 = vcombine.high %v1712_v56, %v1728_v57  ;;  %v17749_v7 = vcombine.low %v1712_v56, %v1728_v57  ;;  %v1935_v57 = vld [vmem:[%s19120_s5 + $0x3340] sm:$0xff] }
 0x50f   : > { %14046 = vmatpush1.bf16.msra.mxu0 %v17523_v3  ;;  %14210 = vmatpush1.bf16.msra.mxu1 %v17525_v4  ;;  %v1759_v3 = vld [vmem:[%s19120_s5 + $0x2dc0] sm:$0xff]  ;;  %v1744_v4 = vld [vmem:[%s19120_s5 + $0x2d48] sm:$0xff] }
 0x510   : > { %14047 = vmatprep.subr.bf16.mxu0 %v17556_v5  ;;  %14211 = vmatprep.subr.bf16.mxu1 %v17558_v6  ;;  %v1760_v5 = vld [vmem:[%s19120_s5 + $0x2dc8] sm:$0xff]  ;;  %v17747_v6 = vcombine.low %v1711_v54, %v1727_v55  ;;  %v17780_v8 = vcombine.high %v1743_v1, %v1759_v3 }
 0x511   : > { %v17782_v9 = vcombine.high %v1744_v4, %v1760_v5  ;;  %v17781_v16 = vcombine.low %v1744_v4, %v1760_v5  ;;  %v1967_v5 = vld [vmem:[%s19120_s5 + $0x3440] sm:$0xff] }
 0x513   : > { %14048 = vmatpush1.bf16.msra.mxu0 %v17555_v11  ;;  %14212 = vmatpush1.bf16.msra.mxu1 %v17557_v12  ;;  %v1791_v11 = vld [vmem:[%s19120_s5 + $0x2ec0] sm:$0xff]  ;;  %v1776_v12 = vld [vmem:[%s19120_s5 + $0x2e48] sm:$0xff] }
 0x514   : > { %14049 = vmatprep.subr.bf16.mxu0 %v17588_v13  ;;  %14213 = vmatprep.subr.bf16.mxu1 %v17590_v15  ;;  %v1792_v13 = vld [vmem:[%s19120_s5 + $0x2ec8] sm:$0xff]  ;;  %v17779_v15 = vcombine.low %v1743_v1, %v1759_v3  ;;  %v17812_v17 = vcombine.high %v1775_v10, %v1791_v11 }
 0x515   : > { %v17814_v18 = vcombine.high %v1776_v12, %v1792_v13  ;;  %v17813_v25 = vcombine.low %v1776_v12, %v1792_v13  ;;  %v1999_v13 = vld [vmem:[%s19120_s5 + $0x3540] sm:$0xff] }
 0x517   : > { %14050 = vmatpush1.bf16.msra.mxu0 %v17587_v20  ;;  %14214 = vmatpush1.bf16.msra.mxu1 %v17589_v21  ;;  %v1823_v20 = vld [vmem:[%s19120_s5 + $0x2fc0] sm:$0xff]  ;;  %v1808_v21 = vld [vmem:[%s19120_s5 + $0x2f48] sm:$0xff] }
 0x518   : > { %14051 = vmatprep.subr.bf16.mxu0 %v17620_v22  ;;  %14215 = vmatprep.subr.bf16.mxu1 %v17622_v23  ;;  %v1824_v22 = vld [vmem:[%s19120_s5 + $0x2fc8] sm:$0xff]  ;;  %v17811_v23 = vcombine.low %v1775_v10, %v1791_v11  ;;  %v17844_v26 = vcombine.high %v1807_v19, %v1823_v20 }
 0x519   : > { %v17846_v28 = vcombine.high %v1808_v21, %v1824_v22  ;;  %v17845_v35 = vcombine.low %v1808_v21, %v1824_v22  ;;  %v2031_v22 = vld [vmem:[%s19120_s5 + $0x3640] sm:$0xff] }
 0x51b   : > { %14052 = vmatpush1.bf16.msra.mxu0 %v17619_v31  ;;  %14216 = vmatpush1.bf16.msra.mxu1 %v17621_v32  ;;  %v1855_v31 = vld [vmem:[%s19120_s5 + $0x30c0] sm:$0xff]  ;;  %v1840_v32 = vld [vmem:[%s19120_s5 + $0x3048] sm:$0xff] }
 0x51c   : > { %14053 = vmatprep.subr.bf16.mxu0 %v17652_v33  ;;  %14217 = vmatprep.subr.bf16.mxu1 %v17654_v34  ;;  %v1856_v33 = vld [vmem:[%s19120_s5 + $0x30c8] sm:$0xff]  ;;  %v17843_v34 = vcombine.low %v1807_v19, %v1823_v20  ;;  %v17876_v36 = vcombine.high %v1839_v29, %v1855_v31 }
 0x51d   : > { %v17878_v38 = vcombine.high %v1840_v32, %v1856_v33  ;;  %v17877_v46 = vcombine.low %v1840_v32, %v1856_v33 }
 0x51f   : > { %14054 = vmatpush1.bf16.msra.mxu0 %v17651_v40  ;;  %14218 = vmatpush1.bf16.msra.mxu1 %v17653_v41  ;;  %v1887_v40 = vld [vmem:[%s19120_s5 + $0x31c0] sm:$0xff]  ;;  %v1872_v41 = vld [vmem:[%s19120_s5 + $0x3148] sm:$0xff] }
 0x520   : > { %14055 = vmatprep.subr.bf16.mxu0 %v17684_v43  ;;  %14219 = vmatprep.subr.bf16.mxu1 %v17686_v45  ;;  %v1888_v43 = vld [vmem:[%s19120_s5 + $0x31c8] sm:$0xff]  ;;  %v17875_v45 = vcombine.low %v1839_v29, %v1855_v31  ;;  %v17908_v48 = vcombine.high %v1871_v39, %v1887_v40 }
 0x521   : > { %v17910_v49 = vcombine.high %v1872_v41, %v1888_v43  ;;  %v17909_v54 = vcombine.low %v1872_v41, %v1888_v43 }
 0x523   : > { %14056 = vmatpush1.bf16.msra.mxu0 %v17683_v51  ;;  %14220 = vmatpush1.bf16.msra.mxu1 %v17685_v24  ;;  %v1919_v51 = vld [vmem:[%s19120_s5 + $0x32c0] sm:$0xff]  ;;  %v1904_v24 = vld [vmem:[%s19120_s5 + $0x3248] sm:$0xff] }
 0x524   : > { %14057 = vmatprep.subr.bf16.mxu0 %v17716_v52  ;;  %14221 = vmatprep.subr.bf16.mxu1 %v17718_v53  ;;  %v1920_v52 = vld [vmem:[%s19120_s5 + $0x32c8] sm:$0xff]  ;;  %v17907_v53 = vcombine.low %v1871_v39, %v1887_v40  ;;  %v17940_v55 = vcombine.high %v1903_v50, %v1919_v51 }
 0x525   : > { %v17942_v56 = vcombine.high %v1904_v24, %v1920_v52  ;;  %v17941_v1 = vcombine.low %v1904_v24, %v1920_v52  ;;  %v2064_v39 = vld [vmem:[%s19120_s5 + $0x3748] sm:$0xff] }
 0x526   : > { %v2080_v40 = vld [vmem:[%s19120_s5 + $0x37c8] sm:$0xff] }
 0x527   : > { %14058 = vmatpush1.bf16.msra.mxu0 %v17715_v58  ;;  %14222 = vmatpush1.bf16.msra.mxu1 %v17717_v62  ;;  %v1951_v58 = vld [vmem:[%s19120_s5 + $0x33c0] sm:$0xff]  ;;  %v1936_v62 = vld [vmem:[%s19120_s5 + $0x3348] sm:$0xff] }
 0x528   : > { %14059 = vmatprep.subr.bf16.mxu0 %v17748_v63  ;;  %14223 = vmatprep.subr.bf16.mxu1 %v17750_v0  ;;  %v1952_v63 = vld [vmem:[%s19120_s5 + $0x33c8] sm:$0xff]  ;;  %v17939_v0 = vcombine.low %v1903_v50, %v1919_v51  ;;  %v17972_v3 = vcombine.high %v1935_v57, %v1951_v58 }
 0x529   : > { %v17974_v4 = vcombine.high %v1936_v62, %v1952_v63  ;;  %v17973_v10 = vcombine.low %v1936_v62, %v1952_v63  ;;  %v2112_v62 = vld [vmem:[%s19120_s5 + $0x38c8] sm:$0xff]  ;;  %v290_v63 = vld [vmem:[#allocation3 + $0x18] sm:$0xff] }
 0x52b   : > { %14060 = vmatpush1.bf16.msra.mxu0 %v17747_v6  ;;  %14224 = vmatpush1.bf16.msra.mxu1 %v17749_v7  ;;  %v1983_v6 = vld [vmem:[%s19120_s5 + $0x34c0] sm:$0xff]  ;;  %v1968_v7 = vld [vmem:[%s19120_s5 + $0x3448] sm:$0xff] }
 0x52c   : > { %14061 = vmatprep.subr.bf16.mxu0 %v17780_v8  ;;  %14225 = vmatprep.subr.bf16.mxu1 %v17782_v9  ;;  %v1984_v8 = vld [vmem:[%s19120_s5 + $0x34c8] sm:$0xff]  ;;  %v17971_v9 = vcombine.low %v1935_v57, %v1951_v58  ;;  %v18004_v11 = vcombine.high %v1967_v5, %v1983_v6 }
 0x52d   : > { %v18006_v12 = vcombine.high %v1968_v7, %v1984_v8  ;;  %v18005_v19 = vcombine.low %v1968_v7, %v1984_v8  ;;  %v2096_v58 = vld [vmem:[%s19120_s5 + $0x3848] sm:$0xff]  ;;  %v2143_v7 = vld [vmem:[%s19120_s5 + $0x39c0] sm:$0xff] }
 0x52f   : > { %14062 = vmatpush1.bf16.msra.mxu0 %v17779_v15  ;;  %14226 = vmatpush1.bf16.msra.mxu1 %v17781_v16  ;;  %v2015_v15 = vld [vmem:[%s19120_s5 + $0x35c0] sm:$0xff]  ;;  %v2000_v16 = vld [vmem:[%s19120_s5 + $0x3548] sm:$0xff] }
 0x530   : > { %14063 = vmatprep.subr.bf16.mxu0 %v17812_v17  ;;  %14227 = vmatprep.subr.bf16.mxu1 %v17814_v18  ;;  %v2016_v17 = vld [vmem:[%s19120_s5 + $0x35c8] sm:$0xff]  ;;  %v18003_v18 = vcombine.low %v1967_v5, %v1983_v6  ;;  %v18036_v20 = vcombine.high %v1999_v13, %v2015_v15  ;;  %v18134_v5 = vcombine.high %v2096_v58, %v2112_v62  ;;  %v2127_v6 = vld [vmem:[%s19120_s5 + $0x3940] sm:$0xff] }
 0x531   : > { %v18038_v21 = vcombine.high %v2000_v16, %v2016_v17  ;;  %v18037_v29 = vcombine.low %v2000_v16, %v2016_v17  ;;  %v2159_v16 = vld [vmem:[%s19120_s5 + $0x3a40] sm:$0xff] }
 0x532   : > { %v2175_v17 = vld [vmem:[%s19120_s5 + $0x3ac0] sm:$0xff] }
 0x533   : > { %14064 = vmatpush1.bf16.msra.mxu0 %v17811_v23  ;;  %14228 = vmatpush1.bf16.msra.mxu1 %v17813_v25  ;;  %v2047_v23 = vld [vmem:[%s19120_s5 + $0x36c0] sm:$0xff]  ;;  %v2032_v25 = vld [vmem:[%s19120_s5 + $0x3648] sm:$0xff] }
 0x534   : > { %14065 = vmatprep.subr.bf16.mxu0 %v17844_v26  ;;  %14229 = vmatprep.subr.bf16.mxu1 %v17846_v28  ;;  %v2048_v26 = vld [vmem:[%s19120_s5 + $0x36c8] sm:$0xff]  ;;  %v18035_v28 = vcombine.low %v1999_v13, %v2015_v15  ;;  %v18068_v31 = vcombine.high %v2031_v22, %v2047_v23  ;;  %v18164_v13 = vcombine.high %v2127_v6, %v2143_v7 }
 0x535   : > { %v18070_v33 = vcombine.high %v2032_v25, %v2048_v26  ;;  %v18069_v51 = vcombine.low %v2032_v25, %v2048_v26  ;;  %v2191_v25 = vld [vmem:[%s19120_s5 + $0x3b40] sm:$0xff] }
 0x536   : > { %v2207_v26 = vld [vmem:[%s19120_s5 + $0x3bc0] sm:$0xff] }
 0x537   : > { %14066 = vmatpush1.bf16.msra.mxu0 %v17843_v34  ;;  %14230 = vmatpush1.bf16.msra.mxu1 %v17845_v35  ;;  %v2063_v34 = vld [vmem:[%s19120_s5 + $0x3740] sm:$0xff] }
 0x538   : > { %14076 = vmatprep.subr.bf16.mxu0 %v17876_v36  ;;  %14240 = vmatprep.subr.bf16.mxu1 %v17878_v38  ;;  %v2079_v35 = vld [vmem:[%s19120_s5 + $0x37c0] sm:$0xff] }
 0x539   : > { %v18100_v24 = vcombine.high %v2063_v34, %v2079_v35 }
 0x53a   : > { %14068 = vmatmul.mubr.bf16.vlgmr.msra.gmra.mrb[16].mxu0 %v19277_v61  ;;  %14232 = vmatmul.mubr.bf16.vlgmr.msra.gmra.mrb[16].mxu1 %v19277_v61 }
 0x53b   : > { %14077 = vmatpush1.bf16.msra.mxu0 %v17875_v45  ;;  %14241 = vmatpush1.bf16.msra.mxu1 %v17877_v46  ;;  %v18067_v46 = vcombine.low %v2031_v22, %v2047_v23  ;;  %v18196_v22 = vcombine.high %v2159_v16, %v2175_v17 }
 0x53c   : > { %14078 = vmatprep.subr.bf16.mxu0 %v17908_v48  ;;  %14242 = vmatprep.subr.bf16.mxu1 %v17910_v49 }
 0x53d   : > { %14108 = vmatprep.mubr.bf16.mxu0 %v19418_v30  ;;  %14272 = vmatprep.mubr.bf16.mxu1 %v19418_v30 }
 0x53f   : > { %14079 = vmatpush1.bf16.msra.mxu0 %v17907_v53  ;;  %14243 = vmatpush1.bf16.msra.mxu1 %v17909_v54  ;;  %v18102_v54 = vcombine.high %v2064_v39, %v2080_v40 }
 0x540   : > { %14080 = vmatprep.subr.bf16.mxu0 %v17940_v55  ;;  %14244 = vmatprep.subr.bf16.mxu1 %v17942_v56  ;;  %v2095_v55 = vld [vmem:[%s19120_s5 + $0x3840] sm:$0xff] }
 0x541   : > { %v2111_v56 = vld [vmem:[%s19120_s5 + $0x38c0] sm:$0xff] }
 0x543   : > { %14081 = vmatpush1.bf16.msra.mxu0 %v17939_v0  ;;  %14245 = vmatpush1.bf16.msra.mxu1 %v17941_v1  ;;  %v18099_v0 = vcombine.low %v2063_v34, %v2079_v35  ;;  %v2223_v35 = vld [vmem:[%s19120_s5 + $0x3c40] sm:$0xff] }
 0x544   : > { %14082 = vmatprep.subr.bf16.mxu0 %v17972_v3  ;;  %14246 = vmatprep.subr.bf16.mxu1 %v17974_v4  ;;  %v18101_v3 = vcombine.low %v2064_v39, %v2080_v40  ;;  %v18132_v4 = vcombine.high %v2095_v55, %v2111_v56  ;;  %v2240_v39 = vld [vmem:[%s19120_s5 + $0x3cc8] sm:$0xff]  ;;  %v18227_v40 = vcombine.low %v2191_v25, %v2207_v26 }
 0x547   : > { %14083 = vmatpush1.bf16.msra.mxu0 %v17971_v9  ;;  %14247 = vmatpush1.bf16.msra.mxu1 %v17973_v10  ;;  %v2128_v9 = vld [vmem:[%s19120_s5 + $0x3948] sm:$0xff] }
 0x548   : > { %14084 = vmatprep.subr.bf16.mxu0 %v18004_v11  ;;  %14248 = vmatprep.subr.bf16.mxu1 %v18006_v12  ;;  %v2144_v10 = vld [vmem:[%s19120_s5 + $0x39c8] sm:$0xff]  ;;  %v18131_v11 = vcombine.low %v2095_v55, %v2111_v56  ;;  %v18133_v12 = vcombine.low %v2096_v58, %v2112_v62  ;;  %v2303_v55 = vld [vmem:[%s19120_s5 + $0x3ec0] sm:$0xff] }
 0x549   : > { %v18166_v15 = vcombine.high %v2128_v9, %v2144_v10  ;;  %v2288_v56 = vld [vmem:[%s19120_s5 + $0x3e48] sm:$0xff] }
 0x54b   : > { %14085 = vmatpush1.bf16.msra.mxu0 %v18003_v18  ;;  %14249 = vmatpush1.bf16.msra.mxu1 %v18005_v19  ;;  %v2160_v18 = vld [vmem:[%s19120_s5 + $0x3a48] sm:$0xff] }
 0x54c   : > { %14086 = vmatprep.subr.bf16.mxu0 %v18036_v20  ;;  %14250 = vmatprep.subr.bf16.mxu1 %v18038_v21  ;;  %v2176_v19 = vld [vmem:[%s19120_s5 + $0x3ac8] sm:$0xff]  ;;  %v18163_v20 = vcombine.low %v2127_v6, %v2143_v7  ;;  %v18165_v21 = vcombine.low %v2128_v9, %v2144_v10  ;;  %v305_v10 = vld [vmem:[%s19120_s5 + $0x50] sm:$0xff] }
 0x54d   : > { %v13782_v32 = vpop.f32.mrb[12].mxu0  ;;  %v13946_v36 = vpop.f32.mrb[12].mxu1  ;;  %v18198_v23 = vcombine.high %v2160_v18, %v2176_v19 }
 0x54e   : > { %v13784_v38 = vpop.f32.mrb[13].mxu0  ;;  %v13948_v43 = vpop.f32.mrb[13].mxu1 }
 0x54f   : > { %v15348_v41 = vcombine.low %v13782_v32, %v13784_v38  ;;  %v13786_v45 = vpop.f32.mrb[14].mxu0  ;;  %14087 = vmatpush1.bf16.msra.mxu0 %v18035_v28  ;;  %v15349_v48 = vcombine.low %v13946_v36, %v13948_v43  ;;  %v13950_v49 = vpop.f32.mrb[14].mxu1  ;;  %14251 = vmatpush1.bf16.msra.mxu1 %v18037_v29  ;;  %v2192_v28 = vld [vmem:[%s19120_s5 + $0x3b48] sm:$0xff]  ;;  %v18197_v32 = vcombine.low %v2160_v18, %v2176_v19  ;;  %v2239_v36 = vld [vmem:[%s19120_s5 + $0x3cc0] sm:$0xff]  ;;  %v337_v19 = vld [vmem:[%s19120_s5 + $0x150] sm:$0xff] }
 0x550   : > { %v13787_v50 = vpop.f32.mrb[15].mxu0  ;;  %14088 = vmatprep.subr.bf16.mxu0 %v18068_v31  ;;  %v13951_v53 = vpop.f32.mrb[15].mxu1  ;;  %14252 = vmatprep.subr.bf16.mxu1 %v18070_v33  ;;  %v2208_v29 = vld [vmem:[%s19120_s5 + $0x3bc8] sm:$0xff]  ;;  %v18195_v31 = vcombine.low %v2159_v16, %v2175_v17  ;;  %v18228_v33 = vcombine.high %v2191_v25, %v2207_v26  ;;  %v18260_v43 = vcombine.high %v2223_v35, %v2239_v36 }
 0x551   : > { %v15356_v52 = vrot.slane %v15348_v41, %v19719_v44  ;;  %v15363_v57 = vrot.slane %v15349_v48, %v19719_v44  ;;  %v18230_v34 = vcombine.high %v2192_v28, %v2208_v29  ;;  %v2224_v38 = vld [vmem:[%s19120_s5 + $0x3c48] sm:$0xff]  ;;  %v18229_v41 = vcombine.low %v2192_v28, %v2208_v29  ;;  %v2271_v48 = vld [vmem:[%s19120_s5 + $0x3dc0] sm:$0xff]  ;;  %v369_v29 = vld [vmem:[%s19120_s5 + $0x250] sm:$0xff] }
 0x552   : > { %v18262_v45 = vcombine.high %v2224_v38, %v2240_v39  ;;  %v2256_v49 = vld [vmem:[%s19120_s5 + $0x3d48] sm:$0xff] }
 0x553   : > { %14089 = vmatpush1.bf16.msra.mxu0 %v18067_v46  ;;  %v15364_v1 = vcombine.low %v15356_v52, %v15363_v57  ;;  %14253 = vmatpush1.bf16.msra.mxu1 %v18069_v51  ;;  %v2255_v46 = vld [vmem:[%s19120_s5 + $0x3d40] sm:$0xff]  ;;  %v2272_v50 = vld [vmem:[%s19120_s5 + $0x3dc8] sm:$0xff]  ;;  %v18259_v51 = vcombine.low %v2223_v35, %v2239_v36 }
 0x554   : > { %14090 = vmatprep.subr.bf16.mxu0 %v18100_v24  ;;  %14254 = vmatprep.subr.bf16.mxu1 %v18102_v54  ;;  %v18261_v24 = vcombine.low %v2224_v38, %v2240_v39  ;;  %v18292_v52 = vcombine.high %v2255_v46, %v2271_v48  ;;  %v18294_v53 = vcombine.high %v2256_v49, %v2272_v50  ;;  %v2287_v54 = vld [vmem:[%s19120_s5 + $0x3e40] sm:$0xff]  ;;  %v2304_v57 = vld [vmem:[%s19120_s5 + $0x3ec8] sm:$0xff]  ;;  %v401_v39 = vld [vmem:[%s19120_s5 + $0x350] sm:$0xff] }
 0x555   : > { %v15444_v8 = vadd.f32 %v15364_v1, %v290_v63  ;;  %v18291_v58 = vcombine.low %v2255_v46, %v2271_v48  ;;  %v18293_v62 = vcombine.low %v2256_v49, %v2272_v50  ;;  %v18324_v63 = vcombine.high %v2287_v54, %v2303_v55  ;;  %v2319_v1 = vld [vmem:[%s19120_s5 + $0x3f40] sm:$0xff]  ;;  %v433_v50 = vld [vmem:[%s19120_s5 + $0x450] sm:$0xff] }
 0x556   : > { %v18323_v6 = vcombine.low %v2287_v54, %v2303_v55  ;;  %v18325_v7 = vcombine.low %v2288_v56, %v2304_v57 }
 0x557   : > { %14091 = vmatpush1.bf16.msra.mxu0 %v18099_v0  ;;  %15452 = vst [vmem:[#allocation3 + $0x18] sm:$0xff] %v15444_v8  ;;  %14255 = vmatpush1.bf16.msra.mxu1 %v18101_v3  ;;  %v18326_v0 = vcombine.high %v2288_v56, %v2304_v57  ;;  %v2335_v3 = vld [vmem:[%s19120_s5 + $0x3fc0] sm:$0xff]  ;;  %v465_v57 = vld [vmem:[%s19120_s5 + $0x550] sm:$0xff] }
 0x558   : > { %14092 = vmatprep.subr.bf16.mxu0 %v18132_v4  ;;  %14256 = vmatprep.subr.bf16.mxu1 %v18134_v5  ;;  %v2320_v4 = vld [vmem:[%s19120_s5 + $0x3f48] sm:$0xff]  ;;  %v18356_v8 = vcombine.high %v2319_v1, %v2335_v3 }
 0x559   : > { %v2336_v5 = vld [vmem:[%s19120_s5 + $0x3fc8] sm:$0xff] }
 0x55a   : > { %v18358_v9 = vcombine.high %v2320_v4, %v2336_v5  ;;  %v18357_v16 = vcombine.low %v2320_v4, %v2336_v5  ;;  %v497_v5 = vld [vmem:[%s19120_s5 + $0x650] sm:$0xff] }
 0x55b   : > { %14093 = vmatpush1.bf16.msra.mxu0 %v18131_v11  ;;  %14257 = vmatpush1.bf16.msra.mxu1 %v18133_v12  ;;  %v321_v11 = vld [vmem:[%s19120_s5 + $0xd0] sm:$0xff]  ;;  %v306_v12 = vld [vmem:[%s19120_s5 + $0x58] sm:$0xff] }
 0x55c   : > { %14094 = vmatprep.subr.bf16.mxu0 %v18164_v13  ;;  %14258 = vmatprep.subr.bf16.mxu1 %v18166_v15  ;;  %v322_v13 = vld [vmem:[%s19120_s5 + $0xd8] sm:$0xff]  ;;  %v18355_v15 = vcombine.low %v2319_v1, %v2335_v3  ;;  %v16344_v17 = vcombine.high %v305_v10, %v321_v11 }
 0x55d   : > { %v16346_v18 = vcombine.high %v306_v12, %v322_v13  ;;  %v16345_v25 = vcombine.low %v306_v12, %v322_v13  ;;  %v529_v13 = vld [vmem:[%s19120_s5 + $0x750] sm:$0xff] }
 0x55f   : > { %14095 = vmatpush1.bf16.msra.mxu0 %v18163_v20  ;;  %14259 = vmatpush1.bf16.msra.mxu1 %v18165_v21  ;;  %v353_v20 = vld [vmem:[%s19120_s5 + $0x1d0] sm:$0xff]  ;;  %v338_v21 = vld [vmem:[%s19120_s5 + $0x158] sm:$0xff] }
 0x560   : > { %14096 = vmatprep.subr.bf16.mxu0 %v18196_v22  ;;  %14260 = vmatprep.subr.bf16.mxu1 %v18198_v23  ;;  %v354_v22 = vld [vmem:[%s19120_s5 + $0x1d8] sm:$0xff]  ;;  %v16343_v23 = vcombine.low %v305_v10, %v321_v11  ;;  %v16376_v26 = vcombine.high %v337_v19, %v353_v20 }
 0x561   : > { %v16378_v28 = vcombine.high %v338_v21, %v354_v22  ;;  %v16377_v35 = vcombine.low %v338_v21, %v354_v22  ;;  %v561_v22 = vld [vmem:[%s19120_s5 + $0x850] sm:$0xff] }
 0x563   : > { %14097 = vmatpush1.bf16.msra.mxu0 %v18195_v31  ;;  %14261 = vmatpush1.bf16.msra.mxu1 %v18197_v32  ;;  %v385_v31 = vld [vmem:[%s19120_s5 + $0x2d0] sm:$0xff]  ;;  %v370_v32 = vld [vmem:[%s19120_s5 + $0x258] sm:$0xff] }
 0x564   : > { %14098 = vmatprep.subr.bf16.mxu0 %v18228_v33  ;;  %14262 = vmatprep.subr.bf16.mxu1 %v18230_v34  ;;  %v386_v33 = vld [vmem:[%s19120_s5 + $0x2d8] sm:$0xff]  ;;  %v16375_v34 = vcombine.low %v337_v19, %v353_v20  ;;  %v16408_v36 = vcombine.high %v369_v29, %v385_v31 }
 0x565   : > { %v16410_v38 = vcombine.high %v370_v32, %v386_v33  ;;  %v16409_v46 = vcombine.low %v370_v32, %v386_v33  ;;  %v593_v33 = vld [vmem:[%s19120_s5 + $0x950] sm:$0xff] }
 0x567   : > { %14099 = vmatpush1.bf16.msra.mxu0 %v18227_v40  ;;  %14263 = vmatpush1.bf16.msra.mxu1 %v18229_v41  ;;  %v417_v40 = vld [vmem:[%s19120_s5 + $0x3d0] sm:$0xff]  ;;  %v402_v41 = vld [vmem:[%s19120_s5 + $0x358] sm:$0xff] }
 0x568   : > { %14100 = vmatprep.subr.bf16.mxu0 %v18260_v43  ;;  %14264 = vmatprep.subr.bf16.mxu1 %v18262_v45  ;;  %v418_v43 = vld [vmem:[%s19120_s5 + $0x3d8] sm:$0xff]  ;;  %v16407_v45 = vcombine.low %v369_v29, %v385_v31  ;;  %v16440_v48 = vcombine.high %v401_v39, %v417_v40 }
 0x569   : > { %v16442_v49 = vcombine.high %v402_v41, %v418_v43  ;;  %v16441_v54 = vcombine.low %v402_v41, %v418_v43  ;;  %v625_v43 = vld [vmem:[%s19120_s5 + $0xa50] sm:$0xff] }
 0x56b   : > { %14101 = vmatpush1.bf16.msra.mxu0 %v18259_v51  ;;  %14265 = vmatpush1.bf16.msra.mxu1 %v18261_v24  ;;  %v449_v51 = vld [vmem:[%s19120_s5 + $0x4d0] sm:$0xff]  ;;  %v434_v24 = vld [vmem:[%s19120_s5 + $0x458] sm:$0xff] }
 0x56c   : > { %14102 = vmatprep.subr.bf16.mxu0 %v18292_v52  ;;  %14266 = vmatprep.subr.bf16.mxu1 %v18294_v53  ;;  %v450_v52 = vld [vmem:[%s19120_s5 + $0x4d8] sm:$0xff]  ;;  %v16439_v53 = vcombine.low %v401_v39, %v417_v40  ;;  %v16472_v55 = vcombine.high %v433_v50, %v449_v51 }
 0x56d   : > { %v16474_v56 = vcombine.high %v434_v24, %v450_v52  ;;  %v16473_v1 = vcombine.low %v434_v24, %v450_v52  ;;  %v657_v52 = vld [vmem:[%s19120_s5 + $0xb50] sm:$0xff] }
 0x56f   : > { %14103 = vmatpush1.bf16.msra.mxu0 %v18291_v58  ;;  %14267 = vmatpush1.bf16.msra.mxu1 %v18293_v62  ;;  %v481_v58 = vld [vmem:[%s19120_s5 + $0x5d0] sm:$0xff]  ;;  %v466_v62 = vld [vmem:[%s19120_s5 + $0x558] sm:$0xff] }
 0x570   : > { %14104 = vmatprep.subr.bf16.mxu0 %v18324_v63  ;;  %14268 = vmatprep.subr.bf16.mxu1 %v18326_v0  ;;  %v482_v63 = vld [vmem:[%s19120_s5 + $0x5d8] sm:$0xff]  ;;  %v16471_v0 = vcombine.low %v433_v50, %v449_v51  ;;  %v16504_v3 = vcombine.high %v465_v57, %v481_v58 }
 0x571   : > { %v16506_v4 = vcombine.high %v466_v62, %v482_v63  ;;  %v16505_v10 = vcombine.low %v466_v62, %v482_v63  ;;  %v689_v63 = vld [vmem:[%s19120_s5 + $0xc50] sm:$0xff] }
 0x573   : > { %14105 = vmatpush1.bf16.msra.mxu0 %v18323_v6  ;;  %14269 = vmatpush1.bf16.msra.mxu1 %v18325_v7  ;;  %v513_v6 = vld [vmem:[%s19120_s5 + $0x6d0] sm:$0xff]  ;;  %v498_v7 = vld [vmem:[%s19120_s5 + $0x658] sm:$0xff] }
 0x574   : > { %14106 = vmatprep.subr.bf16.mxu0 %v18356_v8  ;;  %14270 = vmatprep.subr.bf16.mxu1 %v18358_v9  ;;  %v514_v8 = vld [vmem:[%s19120_s5 + $0x6d8] sm:$0xff]  ;;  %v16503_v9 = vcombine.low %v465_v57, %v481_v58  ;;  %v16536_v11 = vcombine.high %v497_v5, %v513_v6 }
 0x575   : > { %v16538_v12 = vcombine.high %v498_v7, %v514_v8  ;;  %v16537_v19 = vcombine.low %v498_v7, %v514_v8  ;;  %v721_v8 = vld [vmem:[%s19120_s5 + $0xd50] sm:$0xff] }
 0x577   : > { %14107 = vmatpush1.bf16.msra.mxu0 %v18355_v15  ;;  %14271 = vmatpush1.bf16.msra.mxu1 %v18357_v16  ;;  %v545_v15 = vld [vmem:[%s19120_s5 + $0x7d0] sm:$0xff]  ;;  %v530_v16 = vld [vmem:[%s19120_s5 + $0x758] sm:$0xff] }
 0x578   : > { %14281 = vmatprep.subr.bf16.mxu0 %v16344_v17  ;;  %14445 = vmatprep.subr.bf16.mxu1 %v16346_v18  ;;  %v546_v17 = vld [vmem:[%s19120_s5 + $0x7d8] sm:$0xff]  ;;  %v16535_v18 = vcombine.low %v497_v5, %v513_v6  ;;  %v16568_v20 = vcombine.high %v529_v13, %v545_v15 }
 0x579   : > { %v16570_v21 = vcombine.high %v530_v16, %v546_v17  ;;  %v16569_v29 = vcombine.low %v530_v16, %v546_v17  ;;  %v753_v17 = vld [vmem:[%s19120_s5 + $0xe50] sm:$0xff] }
 0x57a   : > { %14109 = vmatmul.mubr.bf16.vlgmr.msra.gmra.mrb[16].mxu0 %v19486_v42  ;;  %14273 = vmatmul.mubr.bf16.vlgmr.msra.gmra.mrb[16].mxu1 %v19486_v42 }
 0x57b   : > { %14282 = vmatpush1.bf16.msra.mxu0 %v16343_v23  ;;  %14446 = vmatpush1.bf16.msra.mxu1 %v16345_v25  ;;  %v577_v23 = vld [vmem:[%s19120_s5 + $0x8d0] sm:$0xff]  ;;  %v562_v25 = vld [vmem:[%s19120_s5 + $0x858] sm:$0xff] }
 0x57c   : > { %14283 = vmatprep.subr.bf16.mxu0 %v16376_v26  ;;  %14447 = vmatprep.subr.bf16.mxu1 %v16378_v28  ;;  %v578_v26 = vld [vmem:[%s19120_s5 + $0x8d8] sm:$0xff]  ;;  %v16567_v28 = vcombine.low %v529_v13, %v545_v15  ;;  %v16600_v31 = vcombine.high %v561_v22, %v577_v23 }
 0x57d   : > { %14313 = vmatprep.mubr.bf16.mxu0 %v19217_v37  ;;  %14477 = vmatprep.mubr.bf16.mxu1 %v19217_v37  ;;  %v16602_v32 = vcombine.high %v562_v25, %v578_v26  ;;  %v16601_v39 = vcombine.low %v562_v25, %v578_v26  ;;  %v785_v26 = vld [vmem:[%s19120_s5 + $0xf50] sm:$0xff] }
 0x57f   : > { %14284 = vmatpush1.bf16.msra.mxu0 %v16375_v34  ;;  %14448 = vmatpush1.bf16.msra.mxu1 %v16377_v35  ;;  %v609_v34 = vld [vmem:[%s19120_s5 + $0x9d0] sm:$0xff]  ;;  %v594_v35 = vld [vmem:[%s19120_s5 + $0x958] sm:$0xff] }
 0x580   : > { %14285 = vmatprep.subr.bf16.mxu0 %v16408_v36  ;;  %14449 = vmatprep.subr.bf16.mxu1 %v16410_v38  ;;  %v610_v36 = vld [vmem:[%s19120_s5 + $0x9d8] sm:$0xff]  ;;  %v16599_v38 = vcombine.low %v561_v22, %v577_v23  ;;  %v16632_v40 = vcombine.high %v593_v33, %v609_v34 }
 0x581   : > { %v16634_v41 = vcombine.high %v594_v35, %v610_v36  ;;  %v16633_v50 = vcombine.low %v594_v35, %v610_v36  ;;  %v817_v36 = vld [vmem:[%s19120_s5 + $0x1050] sm:$0xff] }
 0x583   : > { %14286 = vmatpush1.bf16.msra.mxu0 %v16407_v45  ;;  %14450 = vmatpush1.bf16.msra.mxu1 %v16409_v46  ;;  %v641_v45 = vld [vmem:[%s19120_s5 + $0xad0] sm:$0xff]  ;;  %v626_v46 = vld [vmem:[%s19120_s5 + $0xa58] sm:$0xff] }
 0x584   : > { %14287 = vmatprep.subr.bf16.mxu0 %v16440_v48  ;;  %14451 = vmatprep.subr.bf16.mxu1 %v16442_v49  ;;  %v642_v48 = vld [vmem:[%s19120_s5 + $0xad8] sm:$0xff]  ;;  %v16631_v49 = vcombine.low %v593_v33, %v609_v34  ;;  %v16664_v51 = vcombine.high %v625_v43, %v641_v45 }
 0x585   : > { %v16666_v24 = vcombine.high %v626_v46, %v642_v48  ;;  %v16665_v57 = vcombine.low %v626_v46, %v642_v48  ;;  %v849_v48 = vld [vmem:[%s19120_s5 + $0x1150] sm:$0xff] }
 0x587   : > { %14288 = vmatpush1.bf16.msra.mxu0 %v16439_v53  ;;  %14452 = vmatpush1.bf16.msra.mxu1 %v16441_v54  ;;  %v673_v53 = vld [vmem:[%s19120_s5 + $0xbd0] sm:$0xff]  ;;  %v658_v54 = vld [vmem:[%s19120_s5 + $0xb58] sm:$0xff] }
 0x588   : > { %14289 = vmatprep.subr.bf16.mxu0 %v16472_v55  ;;  %14453 = vmatprep.subr.bf16.mxu1 %v16474_v56  ;;  %v674_v55 = vld [vmem:[%s19120_s5 + $0xbd8] sm:$0xff]  ;;  %v16663_v56 = vcombine.low %v625_v43, %v641_v45  ;;  %v16696_v58 = vcombine.high %v657_v52, %v673_v53 }
 0x589   : > { %v16698_v62 = vcombine.high %v658_v54, %v674_v55  ;;  %v16697_v5 = vcombine.low %v658_v54, %v674_v55  ;;  %v881_v55 = vld [vmem:[%s19120_s5 + $0x1250] sm:$0xff] }
 0x58b   : > { %14290 = vmatpush1.bf16.msra.mxu0 %v16471_v0  ;;  %14454 = vmatpush1.bf16.msra.mxu1 %v16473_v1  ;;  %v705_v0 = vld [vmem:[%s19120_s5 + $0xcd0] sm:$0xff]  ;;  %v690_v1 = vld [vmem:[%s19120_s5 + $0xc58] sm:$0xff] }
 0x58c   : > { %14291 = vmatprep.subr.bf16.mxu0 %v16504_v3  ;;  %14455 = vmatprep.subr.bf16.mxu1 %v16506_v4  ;;  %v706_v3 = vld [vmem:[%s19120_s5 + $0xcd8] sm:$0xff]  ;;  %v16695_v4 = vcombine.low %v657_v52, %v673_v53  ;;  %v16728_v6 = vcombine.high %v689_v63, %v705_v0 }
 0x58d   : > { %v16730_v7 = vcombine.high %v690_v1, %v706_v3  ;;  %v16729_v13 = vcombine.low %v690_v1, %v706_v3  ;;  %v913_v3 = vld [vmem:[%s19120_s5 + $0x1350] sm:$0xff] }
 0x58f   : > { %14292 = vmatpush1.bf16.msra.mxu0 %v16503_v9  ;;  %14456 = vmatpush1.bf16.msra.mxu1 %v16505_v10  ;;  %v737_v9 = vld [vmem:[%s19120_s5 + $0xdd0] sm:$0xff]  ;;  %v722_v10 = vld [vmem:[%s19120_s5 + $0xd58] sm:$0xff] }
 0x590   : > { %14293 = vmatprep.subr.bf16.mxu0 %v16536_v11  ;;  %14457 = vmatprep.subr.bf16.mxu1 %v16538_v12  ;;  %v738_v11 = vld [vmem:[%s19120_s5 + $0xdd8] sm:$0xff]  ;;  %v16727_v12 = vcombine.low %v689_v63, %v705_v0  ;;  %v16760_v15 = vcombine.high %v721_v8, %v737_v9 }
 0x591   : > { %v16762_v16 = vcombine.high %v722_v10, %v738_v11  ;;  %v16761_v22 = vcombine.low %v722_v10, %v738_v11  ;;  %v945_v11 = vld [vmem:[%s19120_s5 + $0x1450] sm:$0xff] }
 0x593   : > { %14294 = vmatpush1.bf16.msra.mxu0 %v16535_v18  ;;  %14458 = vmatpush1.bf16.msra.mxu1 %v16537_v19  ;;  %v769_v18 = vld [vmem:[%s19120_s5 + $0xed0] sm:$0xff]  ;;  %v754_v19 = vld [vmem:[%s19120_s5 + $0xe58] sm:$0xff] }
 0x594   : > { %14295 = vmatprep.subr.bf16.mxu0 %v16568_v20  ;;  %14459 = vmatprep.subr.bf16.mxu1 %v16570_v21  ;;  %v770_v20 = vld [vmem:[%s19120_s5 + $0xed8] sm:$0xff]  ;;  %v16759_v21 = vcombine.low %v721_v8, %v737_v9  ;;  %v16792_v23 = vcombine.high %v753_v17, %v769_v18 }
 0x595   : > { %v16794_v25 = vcombine.high %v754_v19, %v770_v20  ;;  %v16793_v33 = vcombine.low %v754_v19, %v770_v20  ;;  %v977_v20 = vld [vmem:[%s19120_s5 + $0x1550] sm:$0xff] }
 0x597   : > { %14296 = vmatpush1.bf16.msra.mxu0 %v16567_v28  ;;  %14460 = vmatpush1.bf16.msra.mxu1 %v16569_v29  ;;  %v801_v28 = vld [vmem:[%s19120_s5 + $0xfd0] sm:$0xff]  ;;  %v786_v29 = vld [vmem:[%s19120_s5 + $0xf58] sm:$0xff] }
 0x598   : > { %14297 = vmatprep.subr.bf16.mxu0 %v16600_v31  ;;  %14461 = vmatprep.subr.bf16.mxu1 %v16602_v32  ;;  %v802_v31 = vld [vmem:[%s19120_s5 + $0xfd8] sm:$0xff]  ;;  %v16791_v32 = vcombine.low %v753_v17, %v769_v18  ;;  %v16824_v34 = vcombine.high %v785_v26, %v801_v28 }
 0x599   : > { %v16826_v35 = vcombine.high %v786_v29, %v802_v31  ;;  %v16825_v43 = vcombine.low %v786_v29, %v802_v31  ;;  %v1009_v31 = vld [vmem:[%s19120_s5 + $0x1650] sm:$0xff] }
 0x59b   : > { %14298 = vmatpush1.bf16.msra.mxu0 %v16599_v38  ;;  %14462 = vmatpush1.bf16.msra.mxu1 %v16601_v39  ;;  %v833_v38 = vld [vmem:[%s19120_s5 + $0x10d0] sm:$0xff]  ;;  %v818_v39 = vld [vmem:[%s19120_s5 + $0x1058] sm:$0xff] }
 0x59c   : > { %14299 = vmatprep.subr.bf16.mxu0 %v16632_v40  ;;  %14463 = vmatprep.subr.bf16.mxu1 %v16634_v41  ;;  %v834_v40 = vld [vmem:[%s19120_s5 + $0x10d8] sm:$0xff]  ;;  %v16823_v41 = vcombine.low %v785_v26, %v801_v28  ;;  %v16856_v45 = vcombine.high %v817_v36, %v833_v38 }
 0x59d   : > { %v16858_v46 = vcombine.high %v818_v39, %v834_v40  ;;  %v16857_v52 = vcombine.low %v818_v39, %v834_v40  ;;  %v1041_v40 = vld [vmem:[%s19120_s5 + $0x1750] sm:$0xff] }
 0x59f   : > { %14300 = vmatpush1.bf16.msra.mxu0 %v16631_v49  ;;  %14464 = vmatpush1.bf16.msra.mxu1 %v16633_v50  ;;  %v865_v49 = vld [vmem:[%s19120_s5 + $0x11d0] sm:$0xff]  ;;  %v850_v50 = vld [vmem:[%s19120_s5 + $0x1158] sm:$0xff] }
 0x5a0   : > { %14301 = vmatprep.subr.bf16.mxu0 %v16664_v51  ;;  %14465 = vmatprep.subr.bf16.mxu1 %v16666_v24  ;;  %v866_v51 = vld [vmem:[%s19120_s5 + $0x11d8] sm:$0xff]  ;;  %v16855_v24 = vcombine.low %v817_v36, %v833_v38  ;;  %v16888_v53 = vcombine.high %v849_v48, %v865_v49 }
 0x5a1   : > { %v16890_v54 = vcombine.high %v850_v50, %v866_v51  ;;  %v16889_v63 = vcombine.low %v850_v50, %v866_v51  ;;  %v1073_v51 = vld [vmem:[%s19120_s5 + $0x1850] sm:$0xff] }
 0x5a3   : > { %14302 = vmatpush1.bf16.msra.mxu0 %v16663_v56  ;;  %14466 = vmatpush1.bf16.msra.mxu1 %v16665_v57  ;;  %v897_v56 = vld [vmem:[%s19120_s5 + $0x12d0] sm:$0xff]  ;;  %v882_v57 = vld [vmem:[%s19120_s5 + $0x1258] sm:$0xff] }
 0x5a4   : > { %14303 = vmatprep.subr.bf16.mxu0 %v16696_v58  ;;  %14467 = vmatprep.subr.bf16.mxu1 %v16698_v62  ;;  %v898_v58 = vld [vmem:[%s19120_s5 + $0x12d8] sm:$0xff]  ;;  %v16887_v62 = vcombine.low %v849_v48, %v865_v49  ;;  %v16920_v0 = vcombine.high %v881_v55, %v897_v56 }
 0x5a5   : > { %v16922_v1 = vcombine.high %v882_v57, %v898_v58  ;;  %v16921_v8 = vcombine.low %v882_v57, %v898_v58  ;;  %v1105_v58 = vld [vmem:[%s19120_s5 + $0x1950] sm:$0xff] }
 0x5a7   : > { %14304 = vmatpush1.bf16.msra.mxu0 %v16695_v4  ;;  %14468 = vmatpush1.bf16.msra.mxu1 %v16697_v5  ;;  %v929_v4 = vld [vmem:[%s19120_s5 + $0x13d0] sm:$0xff]  ;;  %v914_v5 = vld [vmem:[%s19120_s5 + $0x1358] sm:$0xff] }
 0x5a8   : > { %14305 = vmatprep.subr.bf16.mxu0 %v16728_v6  ;;  %14469 = vmatprep.subr.bf16.mxu1 %v16730_v7  ;;  %v930_v6 = vld [vmem:[%s19120_s5 + $0x13d8] sm:$0xff]  ;;  %v16919_v7 = vcombine.low %v881_v55, %v897_v56  ;;  %v16952_v9 = vcombine.high %v913_v3, %v929_v4 }
 0x5a9   : > { %v16954_v10 = vcombine.high %v914_v5, %v930_v6  ;;  %v16953_v17 = vcombine.low %v914_v5, %v930_v6  ;;  %v1137_v6 = vld [vmem:[%s19120_s5 + $0x1a50] sm:$0xff] }
 0x5ab   : > { %14306 = vmatpush1.bf16.msra.mxu0 %v16727_v12  ;;  %14470 = vmatpush1.bf16.msra.mxu1 %v16729_v13  ;;  %v961_v12 = vld [vmem:[%s19120_s5 + $0x14d0] sm:$0xff]  ;;  %v946_v13 = vld [vmem:[%s19120_s5 + $0x1458] sm:$0xff] }
 0x5ac   : > { %14307 = vmatprep.subr.bf16.mxu0 %v16760_v15  ;;  %14471 = vmatprep.subr.bf16.mxu1 %v16762_v16  ;;  %v962_v15 = vld [vmem:[%s19120_s5 + $0x14d8] sm:$0xff]  ;;  %v16951_v16 = vcombine.low %v913_v3, %v929_v4  ;;  %v16984_v18 = vcombine.high %v945_v11, %v961_v12 }
 0x5ad   : > { %v16986_v19 = vcombine.high %v946_v13, %v962_v15  ;;  %v16985_v26 = vcombine.low %v946_v13, %v962_v15  ;;  %v1169_v15 = vld [vmem:[%s19120_s5 + $0x1b50] sm:$0xff] }
 0x5af   : > { %14308 = vmatpush1.bf16.msra.mxu0 %v16759_v21  ;;  %14472 = vmatpush1.bf16.msra.mxu1 %v16761_v22  ;;  %v993_v21 = vld [vmem:[%s19120_s5 + $0x15d0] sm:$0xff]  ;;  %v978_v22 = vld [vmem:[%s19120_s5 + $0x1558] sm:$0xff] }
 0x5b0   : > { %14309 = vmatprep.subr.bf16.mxu0 %v16792_v23  ;;  %14473 = vmatprep.subr.bf16.mxu1 %v16794_v25  ;;  %v994_v23 = vld [vmem:[%s19120_s5 + $0x15d8] sm:$0xff]  ;;  %v16983_v25 = vcombine.low %v945_v11, %v961_v12  ;;  %v17016_v28 = vcombine.high %v977_v20, %v993_v21 }
 0x5b1   : > { %v17018_v29 = vcombine.high %v978_v22, %v994_v23  ;;  %v17017_v36 = vcombine.low %v978_v22, %v994_v23  ;;  %v1201_v23 = vld [vmem:[%s19120_s5 + $0x1c50] sm:$0xff] }
 0x5b3   : > { %14310 = vmatpush1.bf16.msra.mxu0 %v16791_v32  ;;  %14474 = vmatpush1.bf16.msra.mxu1 %v16793_v33  ;;  %v1025_v32 = vld [vmem:[%s19120_s5 + $0x16d0] sm:$0xff]  ;;  %v1010_v33 = vld [vmem:[%s19120_s5 + $0x1658] sm:$0xff] }
 0x5b4   : > { %14311 = vmatprep.subr.bf16.mxu0 %v16824_v34  ;;  %14475 = vmatprep.subr.bf16.mxu1 %v16826_v35  ;;  %v1026_v34 = vld [vmem:[%s19120_s5 + $0x16d8] sm:$0xff]  ;;  %v17015_v35 = vcombine.low %v977_v20, %v993_v21  ;;  %v17048_v38 = vcombine.high %v1009_v31, %v1025_v32 }
 0x5b5   : > { %v17050_v39 = vcombine.high %v1010_v33, %v1026_v34  ;;  %v17049_v48 = vcombine.low %v1010_v33, %v1026_v34  ;;  %v1233_v34 = vld [vmem:[%s19120_s5 + $0x1d50] sm:$0xff] }
 0x5b7   : > { %14312 = vmatpush1.bf16.msra.mxu0 %v16823_v41  ;;  %14476 = vmatpush1.bf16.msra.mxu1 %v16825_v43  ;;  %v1057_v41 = vld [vmem:[%s19120_s5 + $0x17d0] sm:$0xff]  ;;  %v1042_v43 = vld [vmem:[%s19120_s5 + $0x1758] sm:$0xff] }
 0x5b8   : > { %14322 = vmatprep.subr.bf16.mxu0 %v16856_v45  ;;  %14486 = vmatprep.subr.bf16.mxu1 %v16858_v46  ;;  %v1058_v45 = vld [vmem:[%s19120_s5 + $0x17d8] sm:$0xff]  ;;  %v17047_v46 = vcombine.low %v1009_v31, %v1025_v32  ;;  %v17080_v49 = vcombine.high %v1041_v40, %v1057_v41 }
 0x5b9   : > { %v17082_v50 = vcombine.high %v1042_v43, %v1058_v45  ;;  %v17081_v55 = vcombine.low %v1042_v43, %v1058_v45  ;;  %v1265_v45 = vld [vmem:[%s19120_s5 + $0x1e50] sm:$0xff] }
 0x5ba   : > { %14314 = vmatmul.mubr.bf16.vlgmr.msra.gmra.mrb[20].mxu0 %v19259_v47  ;;  %14478 = vmatmul.mubr.bf16.vlgmr.msra.gmra.mrb[20].mxu1 %v19259_v47 }
 0x5bb   : > { %14323 = vmatpush1.bf16.msra.mxu0 %v16855_v24  ;;  %14487 = vmatpush1.bf16.msra.mxu1 %v16857_v52  ;;  %v1089_v24 = vld [vmem:[%s19120_s5 + $0x18d0] sm:$0xff]  ;;  %v1074_v52 = vld [vmem:[%s19120_s5 + $0x1858] sm:$0xff] }
 0x5bc   : > { %14324 = vmatprep.subr.bf16.mxu0 %v16888_v53  ;;  %14488 = vmatprep.subr.bf16.mxu1 %v16890_v54  ;;  %v1090_v53 = vld [vmem:[%s19120_s5 + $0x18d8] sm:$0xff]  ;;  %v17079_v54 = vcombine.low %v1041_v40, %v1057_v41  ;;  %v17112_v56 = vcombine.high %v1073_v51, %v1089_v24 }
 0x5bd   : > { %14354 = vmatprep.mubr.bf16.mxu0 %v19268_v27  ;;  %14518 = vmatprep.mubr.bf16.mxu1 %v19268_v27  ;;  %v17114_v57 = vcombine.high %v1074_v52, %v1090_v53  ;;  %v17113_v3 = vcombine.low %v1074_v52, %v1090_v53  ;;  %v1297_v53 = vld [vmem:[%s19120_s5 + $0x1f50] sm:$0xff] }
 0x5bf   : > { %14325 = vmatpush1.bf16.msra.mxu0 %v16887_v62  ;;  %14489 = vmatpush1.bf16.msra.mxu1 %v16889_v63  ;;  %v1121_v62 = vld [vmem:[%s19120_s5 + $0x19d0] sm:$0xff]  ;;  %v1106_v63 = vld [vmem:[%s19120_s5 + $0x1958] sm:$0xff] }
 0x5c0   : > { %14326 = vmatprep.subr.bf16.mxu0 %v16920_v0  ;;  %14490 = vmatprep.subr.bf16.mxu1 %v16922_v1  ;;  %v1122_v0 = vld [vmem:[%s19120_s5 + $0x19d8] sm:$0xff]  ;;  %v17111_v1 = vcombine.low %v1073_v51, %v1089_v24  ;;  %v17144_v4 = vcombine.high %v1105_v58, %v1121_v62 }
 0x5c1   : > { %v17146_v5 = vcombine.high %v1106_v63, %v1122_v0  ;;  %v17145_v11 = vcombine.low %v1106_v63, %v1122_v0  ;;  %v1329_v0 = vld [vmem:[%s19120_s5 + $0x2050] sm:$0xff] }
 0x5c3   : > { %14327 = vmatpush1.bf16.msra.mxu0 %v16919_v7  ;;  %14491 = vmatpush1.bf16.msra.mxu1 %v16921_v8  ;;  %v1153_v7 = vld [vmem:[%s19120_s5 + $0x1ad0] sm:$0xff]  ;;  %v1138_v8 = vld [vmem:[%s19120_s5 + $0x1a58] sm:$0xff] }
 0x5c4   : > { %14328 = vmatprep.subr.bf16.mxu0 %v16952_v9  ;;  %14492 = vmatprep.subr.bf16.mxu1 %v16954_v10  ;;  %v1154_v9 = vld [vmem:[%s19120_s5 + $0x1ad8] sm:$0xff]  ;;  %v17143_v10 = vcombine.low %v1105_v58, %v1121_v62  ;;  %v17176_v12 = vcombine.high %v1137_v6, %v1153_v7 }
 0x5c5   : > { %v17178_v13 = vcombine.high %v1138_v8, %v1154_v9  ;;  %v17177_v20 = vcombine.low %v1138_v8, %v1154_v9  ;;  %v1361_v9 = vld [vmem:[%s19120_s5 + $0x2150] sm:$0xff] }
 0x5c7   : > { %14329 = vmatpush1.bf16.msra.mxu0 %v16951_v16  ;;  %14493 = vmatpush1.bf16.msra.mxu1 %v16953_v17  ;;  %v1185_v16 = vld [vmem:[%s19120_s5 + $0x1bd0] sm:$0xff]  ;;  %v1170_v17 = vld [vmem:[%s19120_s5 + $0x1b58] sm:$0xff] }
 0x5c8   : > { %14330 = vmatprep.subr.bf16.mxu0 %v16984_v18  ;;  %14494 = vmatprep.subr.bf16.mxu1 %v16986_v19  ;;  %v1186_v18 = vld [vmem:[%s19120_s5 + $0x1bd8] sm:$0xff]  ;;  %v17175_v19 = vcombine.low %v1137_v6, %v1153_v7  ;;  %v17208_v21 = vcombine.high %v1169_v15, %v1185_v16 }
 0x5c9   : > { %v17210_v22 = vcombine.high %v1170_v17, %v1186_v18  ;;  %v17209_v31 = vcombine.low %v1170_v17, %v1186_v18  ;;  %v1393_v18 = vld [vmem:[%s19120_s5 + $0x2250] sm:$0xff] }
 0x5cb   : > { %14331 = vmatpush1.bf16.msra.mxu0 %v16983_v25  ;;  %14495 = vmatpush1.bf16.msra.mxu1 %v16985_v26  ;;  %v1217_v25 = vld [vmem:[%s19120_s5 + $0x1cd0] sm:$0xff]  ;;  %v1202_v26 = vld [vmem:[%s19120_s5 + $0x1c58] sm:$0xff] }
 0x5cc   : > { %14332 = vmatprep.subr.bf16.mxu0 %v17016_v28  ;;  %14496 = vmatprep.subr.bf16.mxu1 %v17018_v29  ;;  %v1218_v28 = vld [vmem:[%s19120_s5 + $0x1cd8] sm:$0xff]  ;;  %v17207_v29 = vcombine.low %v1169_v15, %v1185_v16  ;;  %v17240_v32 = vcombine.high %v1201_v23, %v1217_v25 }
 0x5cd   : > { %v17242_v33 = vcombine.high %v1202_v26, %v1218_v28  ;;  %v17241_v40 = vcombine.low %v1202_v26, %v1218_v28  ;;  %v1425_v28 = vld [vmem:[%s19120_s5 + $0x2350] sm:$0xff] }
 0x5cf   : > { %14333 = vmatpush1.bf16.msra.mxu0 %v17015_v35  ;;  %14497 = vmatpush1.bf16.msra.mxu1 %v17017_v36  ;;  %v1249_v35 = vld [vmem:[%s19120_s5 + $0x1dd0] sm:$0xff]  ;;  %v1234_v36 = vld [vmem:[%s19120_s5 + $0x1d58] sm:$0xff] }
 0x5d0   : > { %14334 = vmatprep.subr.bf16.mxu0 %v17048_v38  ;;  %14498 = vmatprep.subr.bf16.mxu1 %v17050_v39  ;;  %v1250_v38 = vld [vmem:[%s19120_s5 + $0x1dd8] sm:$0xff]  ;;  %v17239_v39 = vcombine.low %v1201_v23, %v1217_v25  ;;  %v17272_v41 = vcombine.high %v1233_v34, %v1249_v35 }
 0x5d1   : > { %v17274_v43 = vcombine.high %v1234_v36, %v1250_v38  ;;  %v17273_v51 = vcombine.low %v1234_v36, %v1250_v38  ;;  %v1457_v38 = vld [vmem:[%s19120_s5 + $0x2450] sm:$0xff] }
 0x5d3   : > { %14335 = vmatpush1.bf16.msra.mxu0 %v17047_v46  ;;  %14499 = vmatpush1.bf16.msra.mxu1 %v17049_v48  ;;  %v1281_v46 = vld [vmem:[%s19120_s5 + $0x1ed0] sm:$0xff]  ;;  %v1266_v48 = vld [vmem:[%s19120_s5 + $0x1e58] sm:$0xff] }
 0x5d4   : > { %14336 = vmatprep.subr.bf16.mxu0 %v17080_v49  ;;  %14500 = vmatprep.subr.bf16.mxu1 %v17082_v50  ;;  %v1282_v49 = vld [vmem:[%s19120_s5 + $0x1ed8] sm:$0xff]  ;;  %v17271_v50 = vcombine.low %v1233_v34, %v1249_v35  ;;  %v17304_v24 = vcombine.high %v1265_v45, %v1281_v46 }
 0x5d5   : > { %v17306_v52 = vcombine.high %v1266_v48, %v1282_v49  ;;  %v17305_v58 = vcombine.low %v1266_v48, %v1282_v49  ;;  %v1489_v49 = vld [vmem:[%s19120_s5 + $0x2550] sm:$0xff] }
 0x5d7   : > { %14337 = vmatpush1.bf16.msra.mxu0 %v17079_v54  ;;  %14501 = vmatpush1.bf16.msra.mxu1 %v17081_v55  ;;  %v1313_v54 = vld [vmem:[%s19120_s5 + $0x1fd0] sm:$0xff]  ;;  %v1298_v55 = vld [vmem:[%s19120_s5 + $0x1f58] sm:$0xff] }
 0x5d8   : > { %14338 = vmatprep.subr.bf16.mxu0 %v17112_v56  ;;  %14502 = vmatprep.subr.bf16.mxu1 %v17114_v57  ;;  %v1314_v56 = vld [vmem:[%s19120_s5 + $0x1fd8] sm:$0xff]  ;;  %v17303_v57 = vcombine.low %v1265_v45, %v1281_v46  ;;  %v17336_v62 = vcombine.high %v1297_v53, %v1313_v54 }
 0x5d9   : > { %v17338_v63 = vcombine.high %v1298_v55, %v1314_v56  ;;  %v17337_v6 = vcombine.low %v1298_v55, %v1314_v56  ;;  %v1521_v56 = vld [vmem:[%s19120_s5 + $0x2650] sm:$0xff] }
 0x5db   : > { %14339 = vmatpush1.bf16.msra.mxu0 %v17111_v1  ;;  %14503 = vmatpush1.bf16.msra.mxu1 %v17113_v3  ;;  %v1345_v1 = vld [vmem:[%s19120_s5 + $0x20d0] sm:$0xff]  ;;  %v1330_v3 = vld [vmem:[%s19120_s5 + $0x2058] sm:$0xff] }
 0x5dc   : > { %14340 = vmatprep.subr.bf16.mxu0 %v17144_v4  ;;  %14504 = vmatprep.subr.bf16.mxu1 %v17146_v5  ;;  %v1346_v4 = vld [vmem:[%s19120_s5 + $0x20d8] sm:$0xff]  ;;  %v17335_v5 = vcombine.low %v1297_v53, %v1313_v54  ;;  %v17368_v7 = vcombine.high %v1329_v0, %v1345_v1 }
 0x5dd   : > { %v17370_v8 = vcombine.high %v1330_v3, %v1346_v4  ;;  %v17369_v15 = vcombine.low %v1330_v3, %v1346_v4  ;;  %v1553_v4 = vld [vmem:[%s19120_s5 + $0x2750] sm:$0xff] }
 0x5df   : > { %14341 = vmatpush1.bf16.msra.mxu0 %v17143_v10  ;;  %14505 = vmatpush1.bf16.msra.mxu1 %v17145_v11  ;;  %v1377_v10 = vld [vmem:[%s19120_s5 + $0x21d0] sm:$0xff]  ;;  %v1362_v11 = vld [vmem:[%s19120_s5 + $0x2158] sm:$0xff] }
 0x5e0   : > { %14342 = vmatprep.subr.bf16.mxu0 %v17176_v12  ;;  %14506 = vmatprep.subr.bf16.mxu1 %v17178_v13  ;;  %v1378_v12 = vld [vmem:[%s19120_s5 + $0x21d8] sm:$0xff]  ;;  %v17367_v13 = vcombine.low %v1329_v0, %v1345_v1  ;;  %v17400_v16 = vcombine.high %v1361_v9, %v1377_v10 }
 0x5e1   : > { %v17402_v17 = vcombine.high %v1362_v11, %v1378_v12  ;;  %v17401_v23 = vcombine.low %v1362_v11, %v1378_v12  ;;  %v1585_v12 = vld [vmem:[%s19120_s5 + $0x2850] sm:$0xff] }
 0x5e3   : > { %14343 = vmatpush1.bf16.msra.mxu0 %v17175_v19  ;;  %14507 = vmatpush1.bf16.msra.mxu1 %v17177_v20  ;;  %v1409_v19 = vld [vmem:[%s19120_s5 + $0x22d0] sm:$0xff]  ;;  %v1394_v20 = vld [vmem:[%s19120_s5 + $0x2258] sm:$0xff] }
 0x5e4   : > { %14344 = vmatprep.subr.bf16.mxu0 %v17208_v21  ;;  %14508 = vmatprep.subr.bf16.mxu1 %v17210_v22  ;;  %v1410_v21 = vld [vmem:[%s19120_s5 + $0x22d8] sm:$0xff]  ;;  %v17399_v22 = vcombine.low %v1361_v9, %v1377_v10  ;;  %v17432_v25 = vcombine.high %v1393_v18, %v1409_v19 }
 0x5e5   : > { %v17434_v26 = vcombine.high %v1394_v20, %v1410_v21  ;;  %v17433_v34 = vcombine.low %v1394_v20, %v1410_v21  ;;  %v1617_v21 = vld [vmem:[%s19120_s5 + $0x2950] sm:$0xff] }
 0x5e7   : > { %14345 = vmatpush1.bf16.msra.mxu0 %v17207_v29  ;;  %14509 = vmatpush1.bf16.msra.mxu1 %v17209_v31  ;;  %v1441_v29 = vld [vmem:[%s19120_s5 + $0x23d0] sm:$0xff]  ;;  %v1426_v31 = vld [vmem:[%s19120_s5 + $0x2358] sm:$0xff] }
 0x5e8   : > { %14346 = vmatprep.subr.bf16.mxu0 %v17240_v32  ;;  %14510 = vmatprep.subr.bf16.mxu1 %v17242_v33  ;;  %v1442_v32 = vld [vmem:[%s19120_s5 + $0x23d8] sm:$0xff]  ;;  %v17431_v33 = vcombine.low %v1393_v18, %v1409_v19  ;;  %v17464_v35 = vcombine.high %v1425_v28, %v1441_v29 }
 0x5e9   : > { %v17466_v36 = vcombine.high %v1426_v31, %v1442_v32  ;;  %v17465_v45 = vcombine.low %v1426_v31, %v1442_v32  ;;  %v1649_v32 = vld [vmem:[%s19120_s5 + $0x2a50] sm:$0xff] }
 0x5eb   : > { %14347 = vmatpush1.bf16.msra.mxu0 %v17239_v39  ;;  %14511 = vmatpush1.bf16.msra.mxu1 %v17241_v40  ;;  %v1473_v39 = vld [vmem:[%s19120_s5 + $0x24d0] sm:$0xff]  ;;  %v1458_v40 = vld [vmem:[%s19120_s5 + $0x2458] sm:$0xff] }
 0x5ec   : > { %14348 = vmatprep.subr.bf16.mxu0 %v17272_v41  ;;  %14512 = vmatprep.subr.bf16.mxu1 %v17274_v43  ;;  %v1474_v41 = vld [vmem:[%s19120_s5 + $0x24d8] sm:$0xff]  ;;  %v17463_v43 = vcombine.low %v1425_v28, %v1441_v29  ;;  %v17496_v46 = vcombine.high %v1457_v38, %v1473_v39 }
 0x5ed   : > { %v17498_v48 = vcombine.high %v1458_v40, %v1474_v41  ;;  %v17497_v53 = vcombine.low %v1458_v40, %v1474_v41  ;;  %v1681_v41 = vld [vmem:[%s19120_s5 + $0x2b50] sm:$0xff] }
 0x5ef   : > { %14349 = vmatpush1.bf16.msra.mxu0 %v17271_v50  ;;  %14513 = vmatpush1.bf16.msra.mxu1 %v17273_v51  ;;  %v1505_v50 = vld [vmem:[%s19120_s5 + $0x25d0] sm:$0xff]  ;;  %v1490_v51 = vld [vmem:[%s19120_s5 + $0x2558] sm:$0xff] }
 0x5f0   : > { %14350 = vmatprep.subr.bf16.mxu0 %v17304_v24  ;;  %14514 = vmatprep.subr.bf16.mxu1 %v17306_v52  ;;  %v1506_v24 = vld [vmem:[%s19120_s5 + $0x25d8] sm:$0xff]  ;;  %v17495_v52 = vcombine.low %v1457_v38, %v1473_v39  ;;  %v17528_v54 = vcombine.high %v1489_v49, %v1505_v50 }
 0x5f1   : > { %v17530_v55 = vcombine.high %v1490_v51, %v1506_v24  ;;  %v17529_v0 = vcombine.low %v1490_v51, %v1506_v24  ;;  %v1713_v24 = vld [vmem:[%s19120_s5 + $0x2c50] sm:$0xff] }
 0x5f3   : > { %14351 = vmatpush1.bf16.msra.mxu0 %v17303_v57  ;;  %14515 = vmatpush1.bf16.msra.mxu1 %v17305_v58  ;;  %v1537_v57 = vld [vmem:[%s19120_s5 + $0x26d0] sm:$0xff]  ;;  %v1522_v58 = vld [vmem:[%s19120_s5 + $0x2658] sm:$0xff] }
 0x5f4   : > { %14352 = vmatprep.subr.bf16.mxu0 %v17336_v62  ;;  %14516 = vmatprep.subr.bf16.mxu1 %v17338_v63  ;;  %v1538_v62 = vld [vmem:[%s19120_s5 + $0x26d8] sm:$0xff]  ;;  %v17527_v63 = vcombine.low %v1489_v49, %v1505_v50  ;;  %v17560_v1 = vcombine.high %v1521_v56, %v1537_v57 }
 0x5f5   : > { %v17562_v3 = vcombine.high %v1522_v58, %v1538_v62  ;;  %v17561_v9 = vcombine.low %v1522_v58, %v1538_v62  ;;  %v1745_v62 = vld [vmem:[%s19120_s5 + $0x2d50] sm:$0xff] }
 0x5f7   : > { %14353 = vmatpush1.bf16.msra.mxu0 %v17335_v5  ;;  %14517 = vmatpush1.bf16.msra.mxu1 %v17337_v6  ;;  %v1569_v5 = vld [vmem:[%s19120_s5 + $0x27d0] sm:$0xff]  ;;  %v1554_v6 = vld [vmem:[%s19120_s5 + $0x2758] sm:$0xff] }
 0x5f8   : > { %14363 = vmatprep.subr.bf16.mxu0 %v17368_v7  ;;  %14527 = vmatprep.subr.bf16.mxu1 %v17370_v8  ;;  %v1570_v7 = vld [vmem:[%s19120_s5 + $0x27d8] sm:$0xff]  ;;  %v17559_v8 = vcombine.low %v1521_v56, %v1537_v57  ;;  %v17592_v10 = vcombine.high %v1553_v4, %v1569_v5 }
 0x5f9   : > { %v17594_v11 = vcombine.high %v1554_v6, %v1570_v7  ;;  %v17593_v18 = vcombine.low %v1554_v6, %v1570_v7  ;;  %v1777_v7 = vld [vmem:[%s19120_s5 + $0x2e50] sm:$0xff] }
 0x5fa   : > { %14355 = vmatmul.mubr.bf16.vlgmr.msra.gmra.mrb[20].mxu0 %v19342_v2  ;;  %14519 = vmatmul.mubr.bf16.vlgmr.msra.gmra.mrb[20].mxu1 %v19342_v2 }
 0x5fb   : > { %14364 = vmatpush1.bf16.msra.mxu0 %v17367_v13  ;;  %14528 = vmatpush1.bf16.msra.mxu1 %v17369_v15  ;;  %v1601_v13 = vld [vmem:[%s19120_s5 + $0x28d0] sm:$0xff]  ;;  %v1586_v15 = vld [vmem:[%s19120_s5 + $0x2858] sm:$0xff] }
 0x5fc   : > { %14365 = vmatprep.subr.bf16.mxu0 %v17400_v16  ;;  %14529 = vmatprep.subr.bf16.mxu1 %v17402_v17  ;;  %v1602_v16 = vld [vmem:[%s19120_s5 + $0x28d8] sm:$0xff]  ;;  %v17591_v17 = vcombine.low %v1553_v4, %v1569_v5  ;;  %v17624_v19 = vcombine.high %v1585_v12, %v1601_v13 }
 0x5fd   : > { %14395 = vmatprep.mubr.bf16.mxu0 %v19274_v60  ;;  %14559 = vmatprep.mubr.bf16.mxu1 %v19274_v60  ;;  %v17626_v20 = vcombine.high %v1586_v15, %v1602_v16  ;;  %v17625_v28 = vcombine.low %v1586_v15, %v1602_v16  ;;  %v1809_v16 = vld [vmem:[%s19120_s5 + $0x2f50] sm:$0xff] }
 0x5ff   : > { %14366 = vmatpush1.bf16.msra.mxu0 %v17399_v22  ;;  %14530 = vmatpush1.bf16.msra.mxu1 %v17401_v23  ;;  %v1633_v22 = vld [vmem:[%s19120_s5 + $0x29d0] sm:$0xff]  ;;  %v1618_v23 = vld [vmem:[%s19120_s5 + $0x2958] sm:$0xff] }
 0x600   : > { %14367 = vmatprep.subr.bf16.mxu0 %v17432_v25  ;;  %14531 = vmatprep.subr.bf16.mxu1 %v17434_v26  ;;  %v1634_v25 = vld [vmem:[%s19120_s5 + $0x29d8] sm:$0xff]  ;;  %v17623_v26 = vcombine.low %v1585_v12, %v1601_v13  ;;  %v17656_v29 = vcombine.high %v1617_v21, %v1633_v22 }
 0x601   : > { %v17658_v31 = vcombine.high %v1618_v23, %v1634_v25  ;;  %v17657_v38 = vcombine.low %v1618_v23, %v1634_v25  ;;  %v1841_v25 = vld [vmem:[%s19120_s5 + $0x3050] sm:$0xff] }
 0x603   : > { %14368 = vmatpush1.bf16.msra.mxu0 %v17431_v33  ;;  %14532 = vmatpush1.bf16.msra.mxu1 %v17433_v34  ;;  %v1665_v33 = vld [vmem:[%s19120_s5 + $0x2ad0] sm:$0xff]  ;;  %v1650_v34 = vld [vmem:[%s19120_s5 + $0x2a58] sm:$0xff] }
 0x604   : > { %14369 = vmatprep.subr.bf16.mxu0 %v17464_v35  ;;  %14533 = vmatprep.subr.bf16.mxu1 %v17466_v36  ;;  %v1666_v35 = vld [vmem:[%s19120_s5 + $0x2ad8] sm:$0xff]  ;;  %v17655_v36 = vcombine.low %v1617_v21, %v1633_v22  ;;  %v17688_v39 = vcombine.high %v1649_v32, %v1665_v33 }
 0x605   : > { %v17690_v40 = vcombine.high %v1650_v34, %v1666_v35  ;;  %v17689_v49 = vcombine.low %v1650_v34, %v1666_v35  ;;  %v1873_v35 = vld [vmem:[%s19120_s5 + $0x3150] sm:$0xff] }
 0x607   : > { %14370 = vmatpush1.bf16.msra.mxu0 %v17463_v43  ;;  %14534 = vmatpush1.bf16.msra.mxu1 %v17465_v45  ;;  %v1697_v43 = vld [vmem:[%s19120_s5 + $0x2bd0] sm:$0xff]  ;;  %v1682_v45 = vld [vmem:[%s19120_s5 + $0x2b58] sm:$0xff] }
 0x608   : > { %14371 = vmatprep.subr.bf16.mxu0 %v17496_v46  ;;  %14535 = vmatprep.subr.bf16.mxu1 %v17498_v48  ;;  %v1698_v46 = vld [vmem:[%s19120_s5 + $0x2bd8] sm:$0xff]  ;;  %v17687_v48 = vcombine.low %v1649_v32, %v1665_v33  ;;  %v17720_v50 = vcombine.high %v1681_v41, %v1697_v43 }
 0x609   : > { %v17722_v51 = vcombine.high %v1682_v45, %v1698_v46  ;;  %v17721_v56 = vcombine.low %v1682_v45, %v1698_v46  ;;  %v1905_v46 = vld [vmem:[%s19120_s5 + $0x3250] sm:$0xff] }
 0x60b   : > { %14372 = vmatpush1.bf16.msra.mxu0 %v17495_v52  ;;  %14536 = vmatpush1.bf16.msra.mxu1 %v17497_v53  ;;  %v1729_v52 = vld [vmem:[%s19120_s5 + $0x2cd0] sm:$0xff]  ;;  %v1714_v53 = vld [vmem:[%s19120_s5 + $0x2c58] sm:$0xff] }
 0x60c   : > { %14373 = vmatprep.subr.bf16.mxu0 %v17528_v54  ;;  %14537 = vmatprep.subr.bf16.mxu1 %v17530_v55  ;;  %v1730_v54 = vld [vmem:[%s19120_s5 + $0x2cd8] sm:$0xff]  ;;  %v17719_v55 = vcombine.low %v1681_v41, %v1697_v43  ;;  %v17752_v57 = vcombine.high %v1713_v24, %v1729_v52 }
 0x60d   : > { %v17754_v58 = vcombine.high %v1714_v53, %v1730_v54  ;;  %v17753_v4 = vcombine.low %v1714_v53, %v1730_v54  ;;  %v1937_v54 = vld [vmem:[%s19120_s5 + $0x3350] sm:$0xff] }
 0x60f   : > { %14374 = vmatpush1.bf16.msra.mxu0 %v17527_v63  ;;  %14538 = vmatpush1.bf16.msra.mxu1 %v17529_v0  ;;  %v1761_v63 = vld [vmem:[%s19120_s5 + $0x2dd0] sm:$0xff]  ;;  %v1746_v0 = vld [vmem:[%s19120_s5 + $0x2d58] sm:$0xff] }
 0x610   : > { %14375 = vmatprep.subr.bf16.mxu0 %v17560_v1  ;;  %14539 = vmatprep.subr.bf16.mxu1 %v17562_v3  ;;  %v1762_v1 = vld [vmem:[%s19120_s5 + $0x2dd8] sm:$0xff]  ;;  %v17751_v3 = vcombine.low %v1713_v24, %v1729_v52  ;;  %v17784_v5 = vcombine.high %v1745_v62, %v1761_v63 }
 0x611   : > { %v17786_v6 = vcombine.high %v1746_v0, %v1762_v1  ;;  %v17785_v12 = vcombine.low %v1746_v0, %v1762_v1  ;;  %v1969_v1 = vld [vmem:[%s19120_s5 + $0x3450] sm:$0xff] }
 0x613   : > { %14376 = vmatpush1.bf16.msra.mxu0 %v17559_v8  ;;  %14540 = vmatpush1.bf16.msra.mxu1 %v17561_v9  ;;  %v1793_v8 = vld [vmem:[%s19120_s5 + $0x2ed0] sm:$0xff]  ;;  %v1778_v9 = vld [vmem:[%s19120_s5 + $0x2e58] sm:$0xff] }
 0x614   : > { %14377 = vmatprep.subr.bf16.mxu0 %v17592_v10  ;;  %14541 = vmatprep.subr.bf16.mxu1 %v17594_v11  ;;  %v1794_v10 = vld [vmem:[%s19120_s5 + $0x2ed8] sm:$0xff]  ;;  %v17783_v11 = vcombine.low %v1745_v62, %v1761_v63  ;;  %v17816_v13 = vcombine.high %v1777_v7, %v1793_v8 }
 0x615   : > { %v17818_v15 = vcombine.high %v1778_v9, %v1794_v10  ;;  %v17817_v21 = vcombine.low %v1778_v9, %v1794_v10  ;;  %v2001_v10 = vld [vmem:[%s19120_s5 + $0x3550] sm:$0xff] }
 0x617   : > { %14378 = vmatpush1.bf16.msra.mxu0 %v17591_v17  ;;  %14542 = vmatpush1.bf16.msra.mxu1 %v17593_v18  ;;  %v1825_v17 = vld [vmem:[%s19120_s5 + $0x2fd0] sm:$0xff]  ;;  %v1810_v18 = vld [vmem:[%s19120_s5 + $0x2f58] sm:$0xff] }
 0x618   : > { %14379 = vmatprep.subr.bf16.mxu0 %v17624_v19  ;;  %14543 = vmatprep.subr.bf16.mxu1 %v17626_v20  ;;  %v1826_v19 = vld [vmem:[%s19120_s5 + $0x2fd8] sm:$0xff]  ;;  %v17815_v20 = vcombine.low %v1777_v7, %v1793_v8  ;;  %v17848_v22 = vcombine.high %v1809_v16, %v1825_v17 }
 0x619   : > { %v17850_v23 = vcombine.high %v1810_v18, %v1826_v19  ;;  %v17849_v32 = vcombine.low %v1810_v18, %v1826_v19  ;;  %v2033_v19 = vld [vmem:[%s19120_s5 + $0x3650] sm:$0xff] }
 0x61b   : > { %14380 = vmatpush1.bf16.msra.mxu0 %v17623_v26  ;;  %14544 = vmatpush1.bf16.msra.mxu1 %v17625_v28  ;;  %v1857_v26 = vld [vmem:[%s19120_s5 + $0x30d0] sm:$0xff]  ;;  %v1842_v28 = vld [vmem:[%s19120_s5 + $0x3058] sm:$0xff] }
 0x61c   : > { %14381 = vmatprep.subr.bf16.mxu0 %v17656_v29  ;;  %14545 = vmatprep.subr.bf16.mxu1 %v17658_v31  ;;  %v1858_v29 = vld [vmem:[%s19120_s5 + $0x30d8] sm:$0xff]  ;;  %v17847_v31 = vcombine.low %v1809_v16, %v1825_v17  ;;  %v17880_v33 = vcombine.high %v1841_v25, %v1857_v26 }
 0x61d   : > { %v17882_v34 = vcombine.high %v1842_v28, %v1858_v29  ;;  %v17881_v41 = vcombine.low %v1842_v28, %v1858_v29 }
 0x61f   : > { %14382 = vmatpush1.bf16.msra.mxu0 %v17655_v36  ;;  %14546 = vmatpush1.bf16.msra.mxu1 %v17657_v38  ;;  %v1889_v36 = vld [vmem:[%s19120_s5 + $0x31d0] sm:$0xff]  ;;  %v1874_v38 = vld [vmem:[%s19120_s5 + $0x3158] sm:$0xff] }
 0x620   : > { %14383 = vmatprep.subr.bf16.mxu0 %v17688_v39  ;;  %14547 = vmatprep.subr.bf16.mxu1 %v17690_v40  ;;  %v1890_v39 = vld [vmem:[%s19120_s5 + $0x31d8] sm:$0xff]  ;;  %v17879_v40 = vcombine.low %v1841_v25, %v1857_v26  ;;  %v17912_v43 = vcombine.high %v1873_v35, %v1889_v36 }
 0x621   : > { %v17914_v45 = vcombine.high %v1874_v38, %v1890_v39  ;;  %v17913_v24 = vcombine.low %v1874_v38, %v1890_v39 }
 0x623   : > { %14384 = vmatpush1.bf16.msra.mxu0 %v17687_v48  ;;  %14548 = vmatpush1.bf16.msra.mxu1 %v17689_v49  ;;  %v1921_v48 = vld [vmem:[%s19120_s5 + $0x32d0] sm:$0xff]  ;;  %v1906_v49 = vld [vmem:[%s19120_s5 + $0x3258] sm:$0xff] }
 0x624   : > { %14385 = vmatprep.subr.bf16.mxu0 %v17720_v50  ;;  %14549 = vmatprep.subr.bf16.mxu1 %v17722_v51  ;;  %v1922_v50 = vld [vmem:[%s19120_s5 + $0x32d8] sm:$0xff]  ;;  %v17911_v51 = vcombine.low %v1873_v35, %v1889_v36  ;;  %v17944_v52 = vcombine.high %v1905_v46, %v1921_v48 }
 0x625   : > { %v17946_v53 = vcombine.high %v1906_v49, %v1922_v50  ;;  %v17945_v62 = vcombine.low %v1906_v49, %v1922_v50  ;;  %v2066_v35 = vld [vmem:[%s19120_s5 + $0x3758] sm:$0xff] }
 0x626   : > { %v2082_v36 = vld [vmem:[%s19120_s5 + $0x37d8] sm:$0xff] }
 0x627   : > { %14386 = vmatpush1.bf16.msra.mxu0 %v17719_v55  ;;  %14550 = vmatpush1.bf16.msra.mxu1 %v17721_v56  ;;  %v1953_v55 = vld [vmem:[%s19120_s5 + $0x33d0] sm:$0xff]  ;;  %v1938_v56 = vld [vmem:[%s19120_s5 + $0x3358] sm:$0xff] }
 0x628   : > { %14387 = vmatprep.subr.bf16.mxu0 %v17752_v57  ;;  %14551 = vmatprep.subr.bf16.mxu1 %v17754_v58  ;;  %v1954_v57 = vld [vmem:[%s19120_s5 + $0x33d8] sm:$0xff]  ;;  %v17943_v58 = vcombine.low %v1905_v46, %v1921_v48  ;;  %v17976_v63 = vcombine.high %v1937_v54, %v1953_v55 }
 0x629   : > { %v17978_v0 = vcombine.high %v1938_v56, %v1954_v57  ;;  %v17977_v7 = vcombine.low %v1938_v56, %v1954_v57  ;;  %v2114_v56 = vld [vmem:[%s19120_s5 + $0x38d8] sm:$0xff]  ;;  %v291_v57 = vld [vmem:[#allocation3 + $0x20] sm:$0xff] }
 0x62b   : > { %14388 = vmatpush1.bf16.msra.mxu0 %v17751_v3  ;;  %14552 = vmatpush1.bf16.msra.mxu1 %v17753_v4  ;;  %v1985_v3 = vld [vmem:[%s19120_s5 + $0x34d0] sm:$0xff]  ;;  %v1970_v4 = vld [vmem:[%s19120_s5 + $0x3458] sm:$0xff] }
 0x62c   : > { %14389 = vmatprep.subr.bf16.mxu0 %v17784_v5  ;;  %14553 = vmatprep.subr.bf16.mxu1 %v17786_v6  ;;  %v1986_v5 = vld [vmem:[%s19120_s5 + $0x34d8] sm:$0xff]  ;;  %v17975_v6 = vcombine.low %v1937_v54, %v1953_v55  ;;  %v18008_v8 = vcombine.high %v1969_v1, %v1985_v3 }
 0x62d   : > { %v18010_v9 = vcombine.high %v1970_v4, %v1986_v5  ;;  %v18009_v16 = vcombine.low %v1970_v4, %v1986_v5  ;;  %v2098_v55 = vld [vmem:[%s19120_s5 + $0x3858] sm:$0xff]  ;;  %v2145_v4 = vld [vmem:[%s19120_s5 + $0x39d0] sm:$0xff] }
 0x62f   : > { %14390 = vmatpush1.bf16.msra.mxu0 %v17783_v11  ;;  %14554 = vmatpush1.bf16.msra.mxu1 %v17785_v12  ;;  %v2017_v11 = vld [vmem:[%s19120_s5 + $0x35d0] sm:$0xff]  ;;  %v2002_v12 = vld [vmem:[%s19120_s5 + $0x3558] sm:$0xff] }
 0x630   : > { %14391 = vmatprep.subr.bf16.mxu0 %v17816_v13  ;;  %14555 = vmatprep.subr.bf16.mxu1 %v17818_v15  ;;  %v2018_v13 = vld [vmem:[%s19120_s5 + $0x35d8] sm:$0xff]  ;;  %v18007_v15 = vcombine.low %v1969_v1, %v1985_v3  ;;  %v18040_v17 = vcombine.high %v2001_v10, %v2017_v11  ;;  %v18138_v1 = vcombine.high %v2098_v55, %v2114_v56  ;;  %v2129_v3 = vld [vmem:[%s19120_s5 + $0x3950] sm:$0xff] }
 0x631   : > { %v18042_v18 = vcombine.high %v2002_v12, %v2018_v13  ;;  %v18041_v25 = vcombine.low %v2002_v12, %v2018_v13  ;;  %v2161_v12 = vld [vmem:[%s19120_s5 + $0x3a50] sm:$0xff] }
 0x632   : > { %v2177_v13 = vld [vmem:[%s19120_s5 + $0x3ad0] sm:$0xff] }
 0x633   : > { %14392 = vmatpush1.bf16.msra.mxu0 %v17815_v20  ;;  %14556 = vmatpush1.bf16.msra.mxu1 %v17817_v21  ;;  %v2049_v20 = vld [vmem:[%s19120_s5 + $0x36d0] sm:$0xff]  ;;  %v2034_v21 = vld [vmem:[%s19120_s5 + $0x3658] sm:$0xff] }
 0x634   : > { %14393 = vmatprep.subr.bf16.mxu0 %v17848_v22  ;;  %14557 = vmatprep.subr.bf16.mxu1 %v17850_v23  ;;  %v2050_v22 = vld [vmem:[%s19120_s5 + $0x36d8] sm:$0xff]  ;;  %v18039_v23 = vcombine.low %v2001_v10, %v2017_v11  ;;  %v18072_v26 = vcombine.high %v2033_v19, %v2049_v20  ;;  %v18168_v10 = vcombine.high %v2129_v3, %v2145_v4 }
 0x635   : > { %v18074_v29 = vcombine.high %v2034_v21, %v2050_v22  ;;  %v18073_v48 = vcombine.low %v2034_v21, %v2050_v22  ;;  %v2193_v21 = vld [vmem:[%s19120_s5 + $0x3b50] sm:$0xff] }
 0x636   : > { %v2209_v22 = vld [vmem:[%s19120_s5 + $0x3bd0] sm:$0xff] }
 0x637   : > { %14394 = vmatpush1.bf16.msra.mxu0 %v17847_v31  ;;  %14558 = vmatpush1.bf16.msra.mxu1 %v17849_v32  ;;  %v2065_v31 = vld [vmem:[%s19120_s5 + $0x3750] sm:$0xff] }
 0x638   : > { %14404 = vmatprep.subr.bf16.mxu0 %v17880_v33  ;;  %14568 = vmatprep.subr.bf16.mxu1 %v17882_v34  ;;  %v2081_v32 = vld [vmem:[%s19120_s5 + $0x37d0] sm:$0xff] }
 0x639   : > { %v18104_v49 = vcombine.high %v2065_v31, %v2081_v32 }
 0x63a   : > { %14396 = vmatmul.mubr.bf16.vlgmr.msra.gmra.mrb[20].mxu0 %v19277_v61  ;;  %14560 = vmatmul.mubr.bf16.vlgmr.msra.gmra.mrb[20].mxu1 %v19277_v61 }
 0x63b   : > { %14405 = vmatpush1.bf16.msra.mxu0 %v17879_v40  ;;  %14569 = vmatpush1.bf16.msra.mxu1 %v17881_v41  ;;  %v18071_v41 = vcombine.low %v2033_v19, %v2049_v20  ;;  %v18200_v19 = vcombine.high %v2161_v12, %v2177_v13 }
 0x63c   : > { %14406 = vmatprep.subr.bf16.mxu0 %v17912_v43  ;;  %14570 = vmatprep.subr.bf16.mxu1 %v17914_v45 }
 0x63d   : > { %14436 = vmatprep.mubr.bf16.mxu0 %v19418_v30  ;;  %14600 = vmatprep.mubr.bf16.mxu1 %v19418_v30 }
 0x63f   : > { %14407 = vmatpush1.bf16.msra.mxu0 %v17911_v51  ;;  %14571 = vmatpush1.bf16.msra.mxu1 %v17913_v24  ;;  %v18106_v24 = vcombine.high %v2066_v35, %v2082_v36 }
 0x640   : > { %14408 = vmatprep.subr.bf16.mxu0 %v17944_v52  ;;  %14572 = vmatprep.subr.bf16.mxu1 %v17946_v53  ;;  %v2097_v52 = vld [vmem:[%s19120_s5 + $0x3850] sm:$0xff] }
 0x641   : > { %v2113_v53 = vld [vmem:[%s19120_s5 + $0x38d0] sm:$0xff] }
 0x643   : > { %14409 = vmatpush1.bf16.msra.mxu0 %v17943_v58  ;;  %14573 = vmatpush1.bf16.msra.mxu1 %v17945_v62  ;;  %v18103_v58 = vcombine.low %v2065_v31, %v2081_v32  ;;  %v2225_v32 = vld [vmem:[%s19120_s5 + $0x3c50] sm:$0xff] }
 0x644   : > { %14410 = vmatprep.subr.bf16.mxu0 %v17976_v63  ;;  %14574 = vmatprep.subr.bf16.mxu1 %v17978_v0  ;;  %v18105_v63 = vcombine.low %v2066_v35, %v2082_v36  ;;  %v18136_v0 = vcombine.high %v2097_v52, %v2113_v53  ;;  %v2242_v35 = vld [vmem:[%s19120_s5 + $0x3cd8] sm:$0xff]  ;;  %v18231_v36 = vcombine.low %v2193_v21, %v2209_v22 }
 0x647   : > { %14411 = vmatpush1.bf16.msra.mxu0 %v17975_v6  ;;  %14575 = vmatpush1.bf16.msra.mxu1 %v17977_v7  ;;  %v2130_v6 = vld [vmem:[%s19120_s5 + $0x3958] sm:$0xff] }
 0x648   : > { %14412 = vmatprep.subr.bf16.mxu0 %v18008_v8  ;;  %14576 = vmatprep.subr.bf16.mxu1 %v18010_v9  ;;  %v2146_v7 = vld [vmem:[%s19120_s5 + $0x39d8] sm:$0xff]  ;;  %v18135_v8 = vcombine.low %v2097_v52, %v2113_v53  ;;  %v18137_v9 = vcombine.low %v2098_v55, %v2114_v56  ;;  %v2305_v52 = vld [vmem:[%s19120_s5 + $0x3ed0] sm:$0xff] }
 0x649   : > { %v18170_v11 = vcombine.high %v2130_v6, %v2146_v7  ;;  %v2290_v53 = vld [vmem:[%s19120_s5 + $0x3e58] sm:$0xff] }
 0x64b   : > { %14413 = vmatpush1.bf16.msra.mxu0 %v18007_v15  ;;  %14577 = vmatpush1.bf16.msra.mxu1 %v18009_v16  ;;  %v2162_v15 = vld [vmem:[%s19120_s5 + $0x3a58] sm:$0xff] }
 0x64c   : > { %14414 = vmatprep.subr.bf16.mxu0 %v18040_v17  ;;  %14578 = vmatprep.subr.bf16.mxu1 %v18042_v18  ;;  %v2178_v16 = vld [vmem:[%s19120_s5 + $0x3ad8] sm:$0xff]  ;;  %v18167_v17 = vcombine.low %v2129_v3, %v2145_v4  ;;  %v18169_v18 = vcombine.low %v2130_v6, %v2146_v7  ;;  %v307_v7 = vld [vmem:[%s19120_s5 + $0x60] sm:$0xff] }
 0x64d   : > { %v14110_v28 = vpop.f32.mrb[16].mxu0  ;;  %v14274_v33 = vpop.f32.mrb[16].mxu1  ;;  %v18202_v20 = vcombine.high %v2162_v15, %v2178_v16 }
 0x64e   : > { %v14112_v34 = vpop.f32.mrb[17].mxu0  ;;  %v14276_v39 = vpop.f32.mrb[17].mxu1 }
 0x64f   : > { %v15365_v38 = vcombine.low %v14110_v28, %v14112_v34  ;;  %v14114_v40 = vpop.f32.mrb[18].mxu0  ;;  %14415 = vmatpush1.bf16.msra.mxu0 %v18039_v23  ;;  %v15366_v43 = vcombine.low %v14274_v33, %v14276_v39  ;;  %v14278_v45 = vpop.f32.mrb[18].mxu1  ;;  %14579 = vmatpush1.bf16.msra.mxu1 %v18041_v25  ;;  %v2194_v23 = vld [vmem:[%s19120_s5 + $0x3b58] sm:$0xff]  ;;  %v18201_v28 = vcombine.low %v2162_v15, %v2178_v16  ;;  %v2241_v33 = vld [vmem:[%s19120_s5 + $0x3cd0] sm:$0xff]  ;;  %v339_v16 = vld [vmem:[%s19120_s5 + $0x160] sm:$0xff] }
 0x650   : > { %v14115_v46 = vpop.f32.mrb[19].mxu0  ;;  %14416 = vmatprep.subr.bf16.mxu0 %v18072_v26  ;;  %v14279_v51 = vpop.f32.mrb[19].mxu1  ;;  %14580 = vmatprep.subr.bf16.mxu1 %v18074_v29  ;;  %v2210_v25 = vld [vmem:[%s19120_s5 + $0x3bd8] sm:$0xff]  ;;  %v18199_v26 = vcombine.low %v2161_v12, %v2177_v13  ;;  %v18232_v29 = vcombine.high %v2193_v21, %v2209_v22  ;;  %v18264_v39 = vcombine.high %v2225_v32, %v2241_v33 }
 0x651   : > { %v15373_v50 = vrot.slane %v15365_v38, %v19719_v44  ;;  %v15380_v54 = vrot.slane %v15366_v43, %v19719_v44  ;;  %v18234_v31 = vcombine.high %v2194_v23, %v2210_v25  ;;  %v2226_v34 = vld [vmem:[%s19120_s5 + $0x3c58] sm:$0xff]  ;;  %v18233_v38 = vcombine.low %v2194_v23, %v2210_v25  ;;  %v2273_v43 = vld [vmem:[%s19120_s5 + $0x3dd0] sm:$0xff]  ;;  %v371_v25 = vld [vmem:[%s19120_s5 + $0x260] sm:$0xff] }
 0x652   : > { %v18266_v40 = vcombine.high %v2226_v34, %v2242_v35  ;;  %v2258_v45 = vld [vmem:[%s19120_s5 + $0x3d58] sm:$0xff] }
 0x653   : > { %14417 = vmatpush1.bf16.msra.mxu0 %v18071_v41  ;;  %v15381_v62 = vcombine.low %v15373_v50, %v15380_v54  ;;  %14581 = vmatpush1.bf16.msra.mxu1 %v18073_v48  ;;  %v2257_v41 = vld [vmem:[%s19120_s5 + $0x3d50] sm:$0xff]  ;;  %v2274_v46 = vld [vmem:[%s19120_s5 + $0x3dd8] sm:$0xff]  ;;  %v18263_v48 = vcombine.low %v2225_v32, %v2241_v33 }
 0x654   : > { %14418 = vmatprep.subr.bf16.mxu0 %v18104_v49  ;;  %14582 = vmatprep.subr.bf16.mxu1 %v18106_v24  ;;  %v18265_v49 = vcombine.low %v2226_v34, %v2242_v35  ;;  %v18296_v50 = vcombine.high %v2257_v41, %v2273_v43  ;;  %v18298_v51 = vcombine.high %v2258_v45, %v2274_v46  ;;  %v2289_v24 = vld [vmem:[%s19120_s5 + $0x3e50] sm:$0xff]  ;;  %v2306_v54 = vld [vmem:[%s19120_s5 + $0x3ed8] sm:$0xff]  ;;  %v403_v35 = vld [vmem:[%s19120_s5 + $0x360] sm:$0xff] }
 0x655   : > { %v15445_v5 = vadd.f32 %v15381_v62, %v291_v57  ;;  %v18295_v55 = vcombine.low %v2257_v41, %v2273_v43  ;;  %v18297_v56 = vcombine.low %v2258_v45, %v2274_v46  ;;  %v18328_v57 = vcombine.high %v2289_v24, %v2305_v52  ;;  %v2321_v62 = vld [vmem:[%s19120_s5 + $0x3f50] sm:$0xff]  ;;  %v435_v46 = vld [vmem:[%s19120_s5 + $0x460] sm:$0xff] }
 0x656   : > { %v18327_v3 = vcombine.low %v2289_v24, %v2305_v52  ;;  %v18329_v4 = vcombine.low %v2290_v53, %v2306_v54 }
 0x657   : > { %14419 = vmatpush1.bf16.msra.mxu0 %v18103_v58  ;;  %15453 = vst [vmem:[#allocation3 + $0x20] sm:$0xff] %v15445_v5  ;;  %14583 = vmatpush1.bf16.msra.mxu1 %v18105_v63  ;;  %v18330_v58 = vcombine.high %v2290_v53, %v2306_v54  ;;  %v2337_v63 = vld [vmem:[%s19120_s5 + $0x3fd0] sm:$0xff]  ;;  %v467_v54 = vld [vmem:[%s19120_s5 + $0x560] sm:$0xff] }
 0x658   : > { %14420 = vmatprep.subr.bf16.mxu0 %v18136_v0  ;;  %14584 = vmatprep.subr.bf16.mxu1 %v18138_v1  ;;  %v2322_v0 = vld [vmem:[%s19120_s5 + $0x3f58] sm:$0xff]  ;;  %v18360_v5 = vcombine.high %v2321_v62, %v2337_v63 }
 0x659   : > { %v2338_v1 = vld [vmem:[%s19120_s5 + $0x3fd8] sm:$0xff] }
 0x65a   : > { %v18362_v6 = vcombine.high %v2322_v0, %v2338_v1  ;;  %v18361_v12 = vcombine.low %v2322_v0, %v2338_v1  ;;  %v499_v1 = vld [vmem:[%s19120_s5 + $0x660] sm:$0xff] }
 0x65b   : > { %14421 = vmatpush1.bf16.msra.mxu0 %v18135_v8  ;;  %14585 = vmatpush1.bf16.msra.mxu1 %v18137_v9  ;;  %v323_v8 = vld [vmem:[%s19120_s5 + $0xe0] sm:$0xff]  ;;  %v308_v9 = vld [vmem:[%s19120_s5 + $0x68] sm:$0xff] }
 0x65c   : > { %14422 = vmatprep.subr.bf16.mxu0 %v18168_v10  ;;  %14586 = vmatprep.subr.bf16.mxu1 %v18170_v11  ;;  %v324_v10 = vld [vmem:[%s19120_s5 + $0xe8] sm:$0xff]  ;;  %v18359_v11 = vcombine.low %v2321_v62, %v2337_v63  ;;  %v16348_v13 = vcombine.high %v307_v7, %v323_v8 }
 0x65d   : > { %v16350_v15 = vcombine.high %v308_v9, %v324_v10  ;;  %v16349_v21 = vcombine.low %v308_v9, %v324_v10  ;;  %v531_v10 = vld [vmem:[%s19120_s5 + $0x760] sm:$0xff] }
 0x65f   : > { %14423 = vmatpush1.bf16.msra.mxu0 %v18167_v17  ;;  %14587 = vmatpush1.bf16.msra.mxu1 %v18169_v18  ;;  %v355_v17 = vld [vmem:[%s19120_s5 + $0x1e0] sm:$0xff]  ;;  %v340_v18 = vld [vmem:[%s19120_s5 + $0x168] sm:$0xff] }
 0x660   : > { %14424 = vmatprep.subr.bf16.mxu0 %v18200_v19  ;;  %14588 = vmatprep.subr.bf16.mxu1 %v18202_v20  ;;  %v356_v19 = vld [vmem:[%s19120_s5 + $0x1e8] sm:$0xff]  ;;  %v16347_v20 = vcombine.low %v307_v7, %v323_v8  ;;  %v16380_v22 = vcombine.high %v339_v16, %v355_v17 }
 0x661   : > { %v16382_v23 = vcombine.high %v340_v18, %v356_v19  ;;  %v16381_v32 = vcombine.low %v340_v18, %v356_v19  ;;  %v563_v19 = vld [vmem:[%s19120_s5 + $0x860] sm:$0xff] }
 0x663   : > { %14425 = vmatpush1.bf16.msra.mxu0 %v18199_v26  ;;  %14589 = vmatpush1.bf16.msra.mxu1 %v18201_v28  ;;  %v387_v26 = vld [vmem:[%s19120_s5 + $0x2e0] sm:$0xff]  ;;  %v372_v28 = vld [vmem:[%s19120_s5 + $0x268] sm:$0xff] }
 0x664   : > { %14426 = vmatprep.subr.bf16.mxu0 %v18232_v29  ;;  %14590 = vmatprep.subr.bf16.mxu1 %v18234_v31  ;;  %v388_v29 = vld [vmem:[%s19120_s5 + $0x2e8] sm:$0xff]  ;;  %v16379_v31 = vcombine.low %v339_v16, %v355_v17  ;;  %v16412_v33 = vcombine.high %v371_v25, %v387_v26 }
 0x665   : > { %v16414_v34 = vcombine.high %v372_v28, %v388_v29  ;;  %v16413_v41 = vcombine.low %v372_v28, %v388_v29  ;;  %v595_v29 = vld [vmem:[%s19120_s5 + $0x960] sm:$0xff] }
 0x667   : > { %14427 = vmatpush1.bf16.msra.mxu0 %v18231_v36  ;;  %14591 = vmatpush1.bf16.msra.mxu1 %v18233_v38  ;;  %v419_v36 = vld [vmem:[%s19120_s5 + $0x3e0] sm:$0xff]  ;;  %v404_v38 = vld [vmem:[%s19120_s5 + $0x368] sm:$0xff] }
 0x668   : > { %14428 = vmatprep.subr.bf16.mxu0 %v18264_v39  ;;  %14592 = vmatprep.subr.bf16.mxu1 %v18266_v40  ;;  %v420_v39 = vld [vmem:[%s19120_s5 + $0x3e8] sm:$0xff]  ;;  %v16411_v40 = vcombine.low %v371_v25, %v387_v26  ;;  %v16444_v43 = vcombine.high %v403_v35, %v419_v36 }
 0x669   : > { %v16446_v45 = vcombine.high %v404_v38, %v420_v39  ;;  %v16445_v24 = vcombine.low %v404_v38, %v420_v39  ;;  %v627_v39 = vld [vmem:[%s19120_s5 + $0xa60] sm:$0xff] }
 0x66b   : > { %14429 = vmatpush1.bf16.msra.mxu0 %v18263_v48  ;;  %14593 = vmatpush1.bf16.msra.mxu1 %v18265_v49  ;;  %v451_v48 = vld [vmem:[%s19120_s5 + $0x4e0] sm:$0xff]  ;;  %v436_v49 = vld [vmem:[%s19120_s5 + $0x468] sm:$0xff] }
 0x66c   : > { %14430 = vmatprep.subr.bf16.mxu0 %v18296_v50  ;;  %14594 = vmatprep.subr.bf16.mxu1 %v18298_v51  ;;  %v452_v50 = vld [vmem:[%s19120_s5 + $0x4e8] sm:$0xff]  ;;  %v16443_v51 = vcombine.low %v403_v35, %v419_v36  ;;  %v16476_v52 = vcombine.high %v435_v46, %v451_v48 }
 0x66d   : > { %v16478_v53 = vcombine.high %v436_v49, %v452_v50  ;;  %v16477_v62 = vcombine.low %v436_v49, %v452_v50  ;;  %v659_v50 = vld [vmem:[%s19120_s5 + $0xb60] sm:$0xff] }
 0x66f   : > { %14431 = vmatpush1.bf16.msra.mxu0 %v18295_v55  ;;  %14595 = vmatpush1.bf16.msra.mxu1 %v18297_v56  ;;  %v483_v55 = vld [vmem:[%s19120_s5 + $0x5e0] sm:$0xff]  ;;  %v468_v56 = vld [vmem:[%s19120_s5 + $0x568] sm:$0xff] }
 0x670   : > { %14432 = vmatprep.subr.bf16.mxu0 %v18328_v57  ;;  %14596 = vmatprep.subr.bf16.mxu1 %v18330_v58  ;;  %v484_v57 = vld [vmem:[%s19120_s5 + $0x5e8] sm:$0xff]  ;;  %v16475_v58 = vcombine.low %v435_v46, %v451_v48  ;;  %v16508_v63 = vcombine.high %v467_v54, %v483_v55 }
 0x671   : > { %v16510_v0 = vcombine.high %v468_v56, %v484_v57  ;;  %v16509_v7 = vcombine.low %v468_v56, %v484_v57  ;;  %v691_v57 = vld [vmem:[%s19120_s5 + $0xc60] sm:$0xff] }
 0x673   : > { %14433 = vmatpush1.bf16.msra.mxu0 %v18327_v3  ;;  %14597 = vmatpush1.bf16.msra.mxu1 %v18329_v4  ;;  %v515_v3 = vld [vmem:[%s19120_s5 + $0x6e0] sm:$0xff]  ;;  %v500_v4 = vld [vmem:[%s19120_s5 + $0x668] sm:$0xff] }
 0x674   : > { %14434 = vmatprep.subr.bf16.mxu0 %v18360_v5  ;;  %14598 = vmatprep.subr.bf16.mxu1 %v18362_v6  ;;  %v516_v5 = vld [vmem:[%s19120_s5 + $0x6e8] sm:$0xff]  ;;  %v16507_v6 = vcombine.low %v467_v54, %v483_v55  ;;  %v16540_v8 = vcombine.high %v499_v1, %v515_v3 }
 0x675   : > { %v16542_v9 = vcombine.high %v500_v4, %v516_v5  ;;  %v16541_v16 = vcombine.low %v500_v4, %v516_v5  ;;  %v723_v5 = vld [vmem:[%s19120_s5 + $0xd60] sm:$0xff] }
 0x677   : > { %14435 = vmatpush1.bf16.msra.mxu0 %v18359_v11  ;;  %14599 = vmatpush1.bf16.msra.mxu1 %v18361_v12  ;;  %v547_v11 = vld [vmem:[%s19120_s5 + $0x7e0] sm:$0xff]  ;;  %v532_v12 = vld [vmem:[%s19120_s5 + $0x768] sm:$0xff] }
 0x678   : > { %14609 = vmatprep.subr.bf16.mxu0 %v16348_v13  ;;  %14773 = vmatprep.subr.bf16.mxu1 %v16350_v15  ;;  %v548_v13 = vld [vmem:[%s19120_s5 + $0x7e8] sm:$0xff]  ;;  %v16539_v15 = vcombine.low %v499_v1, %v515_v3  ;;  %v16572_v17 = vcombine.high %v531_v10, %v547_v11 }
 0x679   : > { %v16574_v18 = vcombine.high %v532_v12, %v548_v13  ;;  %v16573_v25 = vcombine.low %v532_v12, %v548_v13  ;;  %v755_v13 = vld [vmem:[%s19120_s5 + $0xe60] sm:$0xff] }
 0x67a   : > { %14437 = vmatmul.mubr.bf16.vlgmr.msra.gmra.mrb[20].mxu0 %v19486_v42  ;;  %14601 = vmatmul.mubr.bf16.vlgmr.msra.gmra.mrb[20].mxu1 %v19486_v42 }
 0x67b   : > { %14610 = vmatpush1.bf16.msra.mxu0 %v16347_v20  ;;  %14774 = vmatpush1.bf16.msra.mxu1 %v16349_v21  ;;  %v579_v20 = vld [vmem:[%s19120_s5 + $0x8e0] sm:$0xff]  ;;  %v564_v21 = vld [vmem:[%s19120_s5 + $0x868] sm:$0xff] }
 0x67c   : > { %14611 = vmatprep.subr.bf16.mxu0 %v16380_v22  ;;  %14775 = vmatprep.subr.bf16.mxu1 %v16382_v23  ;;  %v580_v22 = vld [vmem:[%s19120_s5 + $0x8e8] sm:$0xff]  ;;  %v16571_v23 = vcombine.low %v531_v10, %v547_v11  ;;  %v16604_v26 = vcombine.high %v563_v19, %v579_v20 }
 0x67d   : > { %14641 = vmatprep.mubr.bf16.mxu0 %v19217_v37  ;;  %14805 = vmatprep.mubr.bf16.mxu1 %v19217_v37  ;;  %v16606_v28 = vcombine.high %v564_v21, %v580_v22  ;;  %v16605_v35 = vcombine.low %v564_v21, %v580_v22  ;;  %v787_v22 = vld [vmem:[%s19120_s5 + $0xf60] sm:$0xff] }
 0x67f   : > { %14612 = vmatpush1.bf16.msra.mxu0 %v16379_v31  ;;  %14776 = vmatpush1.bf16.msra.mxu1 %v16381_v32  ;;  %v611_v31 = vld [vmem:[%s19120_s5 + $0x9e0] sm:$0xff]  ;;  %v596_v32 = vld [vmem:[%s19120_s5 + $0x968] sm:$0xff] }
 0x680   : > { %14613 = vmatprep.subr.bf16.mxu0 %v16412_v33  ;;  %14777 = vmatprep.subr.bf16.mxu1 %v16414_v34  ;;  %v612_v33 = vld [vmem:[%s19120_s5 + $0x9e8] sm:$0xff]  ;;  %v16603_v34 = vcombine.low %v563_v19, %v579_v20  ;;  %v16636_v36 = vcombine.high %v595_v29, %v611_v31 }
 0x681   : > { %v16638_v38 = vcombine.high %v596_v32, %v612_v33  ;;  %v16637_v46 = vcombine.low %v596_v32, %v612_v33  ;;  %v819_v33 = vld [vmem:[%s19120_s5 + $0x1060] sm:$0xff] }
 0x683   : > { %14614 = vmatpush1.bf16.msra.mxu0 %v16411_v40  ;;  %14778 = vmatpush1.bf16.msra.mxu1 %v16413_v41  ;;  %v643_v40 = vld [vmem:[%s19120_s5 + $0xae0] sm:$0xff]  ;;  %v628_v41 = vld [vmem:[%s19120_s5 + $0xa68] sm:$0xff] }
 0x684   : > { %14615 = vmatprep.subr.bf16.mxu0 %v16444_v43  ;;  %14779 = vmatprep.subr.bf16.mxu1 %v16446_v45  ;;  %v644_v43 = vld [vmem:[%s19120_s5 + $0xae8] sm:$0xff]  ;;  %v16635_v45 = vcombine.low %v595_v29, %v611_v31  ;;  %v16668_v48 = vcombine.high %v627_v39, %v643_v40 }
 0x685   : > { %v16670_v49 = vcombine.high %v628_v41, %v644_v43  ;;  %v16669_v54 = vcombine.low %v628_v41, %v644_v43  ;;  %v851_v43 = vld [vmem:[%s19120_s5 + $0x1160] sm:$0xff] }
 0x687   : > { %14616 = vmatpush1.bf16.msra.mxu0 %v16443_v51  ;;  %14780 = vmatpush1.bf16.msra.mxu1 %v16445_v24  ;;  %v675_v51 = vld [vmem:[%s19120_s5 + $0xbe0] sm:$0xff]  ;;  %v660_v24 = vld [vmem:[%s19120_s5 + $0xb68] sm:$0xff] }
 0x688   : > { %14617 = vmatprep.subr.bf16.mxu0 %v16476_v52  ;;  %14781 = vmatprep.subr.bf16.mxu1 %v16478_v53  ;;  %v676_v52 = vld [vmem:[%s19120_s5 + $0xbe8] sm:$0xff]  ;;  %v16667_v53 = vcombine.low %v627_v39, %v643_v40  ;;  %v16700_v55 = vcombine.high %v659_v50, %v675_v51 }
 0x689   : > { %v16702_v56 = vcombine.high %v660_v24, %v676_v52  ;;  %v16701_v1 = vcombine.low %v660_v24, %v676_v52  ;;  %v883_v52 = vld [vmem:[%s19120_s5 + $0x1260] sm:$0xff] }
 0x68b   : > { %14618 = vmatpush1.bf16.msra.mxu0 %v16475_v58  ;;  %14782 = vmatpush1.bf16.msra.mxu1 %v16477_v62  ;;  %v707_v58 = vld [vmem:[%s19120_s5 + $0xce0] sm:$0xff]  ;;  %v692_v62 = vld [vmem:[%s19120_s5 + $0xc68] sm:$0xff] }
 0x68c   : > { %14619 = vmatprep.subr.bf16.mxu0 %v16508_v63  ;;  %14783 = vmatprep.subr.bf16.mxu1 %v16510_v0  ;;  %v708_v63 = vld [vmem:[%s19120_s5 + $0xce8] sm:$0xff]  ;;  %v16699_v0 = vcombine.low %v659_v50, %v675_v51  ;;  %v16732_v3 = vcombine.high %v691_v57, %v707_v58 }
 0x68d   : > { %v16734_v4 = vcombine.high %v692_v62, %v708_v63  ;;  %v16733_v10 = vcombine.low %v692_v62, %v708_v63  ;;  %v915_v63 = vld [vmem:[%s19120_s5 + $0x1360] sm:$0xff] }
 0x68f   : > { %14620 = vmatpush1.bf16.msra.mxu0 %v16507_v6  ;;  %14784 = vmatpush1.bf16.msra.mxu1 %v16509_v7  ;;  %v739_v6 = vld [vmem:[%s19120_s5 + $0xde0] sm:$0xff]  ;;  %v724_v7 = vld [vmem:[%s19120_s5 + $0xd68] sm:$0xff] }
 0x690   : > { %14621 = vmatprep.subr.bf16.mxu0 %v16540_v8  ;;  %14785 = vmatprep.subr.bf16.mxu1 %v16542_v9  ;;  %v740_v8 = vld [vmem:[%s19120_s5 + $0xde8] sm:$0xff]  ;;  %v16731_v9 = vcombine.low %v691_v57, %v707_v58  ;;  %v16764_v11 = vcombine.high %v723_v5, %v739_v6 }
 0x691   : > { %v16766_v12 = vcombine.high %v724_v7, %v740_v8  ;;  %v16765_v19 = vcombine.low %v724_v7, %v740_v8  ;;  %v947_v8 = vld [vmem:[%s19120_s5 + $0x1460] sm:$0xff] }
 0x693   : > { %14622 = vmatpush1.bf16.msra.mxu0 %v16539_v15  ;;  %14786 = vmatpush1.bf16.msra.mxu1 %v16541_v16  ;;  %v771_v15 = vld [vmem:[%s19120_s5 + $0xee0] sm:$0xff]  ;;  %v756_v16 = vld [vmem:[%s19120_s5 + $0xe68] sm:$0xff] }
 0x694   : > { %14623 = vmatprep.subr.bf16.mxu0 %v16572_v17  ;;  %14787 = vmatprep.subr.bf16.mxu1 %v16574_v18  ;;  %v772_v17 = vld [vmem:[%s19120_s5 + $0xee8] sm:$0xff]  ;;  %v16763_v18 = vcombine.low %v723_v5, %v739_v6  ;;  %v16796_v20 = vcombine.high %v755_v13, %v771_v15 }
 0x695   : > { %v16798_v21 = vcombine.high %v756_v16, %v772_v17  ;;  %v16797_v29 = vcombine.low %v756_v16, %v772_v17  ;;  %v979_v17 = vld [vmem:[%s19120_s5 + $0x1560] sm:$0xff] }
 0x697   : > { %14624 = vmatpush1.bf16.msra.mxu0 %v16571_v23  ;;  %14788 = vmatpush1.bf16.msra.mxu1 %v16573_v25  ;;  %v803_v23 = vld [vmem:[%s19120_s5 + $0xfe0] sm:$0xff]  ;;  %v788_v25 = vld [vmem:[%s19120_s5 + $0xf68] sm:$0xff] }
 0x698   : > { %14625 = vmatprep.subr.bf16.mxu0 %v16604_v26  ;;  %14789 = vmatprep.subr.bf16.mxu1 %v16606_v28  ;;  %v804_v26 = vld [vmem:[%s19120_s5 + $0xfe8] sm:$0xff]  ;;  %v16795_v28 = vcombine.low %v755_v13, %v771_v15  ;;  %v16828_v31 = vcombine.high %v787_v22, %v803_v23 }
 0x699   : > { %v16830_v32 = vcombine.high %v788_v25, %v804_v26  ;;  %v16829_v39 = vcombine.low %v788_v25, %v804_v26  ;;  %v1011_v26 = vld [vmem:[%s19120_s5 + $0x1660] sm:$0xff] }
 0x69b   : > { %14626 = vmatpush1.bf16.msra.mxu0 %v16603_v34  ;;  %14790 = vmatpush1.bf16.msra.mxu1 %v16605_v35  ;;  %v835_v34 = vld [vmem:[%s19120_s5 + $0x10e0] sm:$0xff]  ;;  %v820_v35 = vld [vmem:[%s19120_s5 + $0x1068] sm:$0xff] }
 0x69c   : > { %14627 = vmatprep.subr.bf16.mxu0 %v16636_v36  ;;  %14791 = vmatprep.subr.bf16.mxu1 %v16638_v38  ;;  %v836_v36 = vld [vmem:[%s19120_s5 + $0x10e8] sm:$0xff]  ;;  %v16827_v38 = vcombine.low %v787_v22, %v803_v23  ;;  %v16860_v40 = vcombine.high %v819_v33, %v835_v34 }
 0x69d   : > { %v16862_v41 = vcombine.high %v820_v35, %v836_v36  ;;  %v16861_v50 = vcombine.low %v820_v35, %v836_v36  ;;  %v1043_v36 = vld [vmem:[%s19120_s5 + $0x1760] sm:$0xff] }
 0x69f   : > { %14628 = vmatpush1.bf16.msra.mxu0 %v16635_v45  ;;  %14792 = vmatpush1.bf16.msra.mxu1 %v16637_v46  ;;  %v867_v45 = vld [vmem:[%s19120_s5 + $0x11e0] sm:$0xff]  ;;  %v852_v46 = vld [vmem:[%s19120_s5 + $0x1168] sm:$0xff] }
 0x6a0   : > { %14629 = vmatprep.subr.bf16.mxu0 %v16668_v48  ;;  %14793 = vmatprep.subr.bf16.mxu1 %v16670_v49  ;;  %v868_v48 = vld [vmem:[%s19120_s5 + $0x11e8] sm:$0xff]  ;;  %v16859_v49 = vcombine.low %v819_v33, %v835_v34  ;;  %v16892_v51 = vcombine.high %v851_v43, %v867_v45 }
 0x6a1   : > { %v16894_v24 = vcombine.high %v852_v46, %v868_v48  ;;  %v16893_v57 = vcombine.low %v852_v46, %v868_v48  ;;  %v1075_v48 = vld [vmem:[%s19120_s5 + $0x1860] sm:$0xff] }
 0x6a3   : > { %14630 = vmatpush1.bf16.msra.mxu0 %v16667_v53  ;;  %14794 = vmatpush1.bf16.msra.mxu1 %v16669_v54  ;;  %v899_v53 = vld [vmem:[%s19120_s5 + $0x12e0] sm:$0xff]  ;;  %v884_v54 = vld [vmem:[%s19120_s5 + $0x1268] sm:$0xff] }
 0x6a4   : > { %14631 = vmatprep.subr.bf16.mxu0 %v16700_v55  ;;  %14795 = vmatprep.subr.bf16.mxu1 %v16702_v56  ;;  %v900_v55 = vld [vmem:[%s19120_s5 + $0x12e8] sm:$0xff]  ;;  %v16891_v56 = vcombine.low %v851_v43, %v867_v45  ;;  %v16924_v58 = vcombine.high %v883_v52, %v899_v53 }
 0x6a5   : > { %v16926_v62 = vcombine.high %v884_v54, %v900_v55  ;;  %v16925_v5 = vcombine.low %v884_v54, %v900_v55  ;;  %v1107_v55 = vld [vmem:[%s19120_s5 + $0x1960] sm:$0xff] }
 0x6a7   : > { %14632 = vmatpush1.bf16.msra.mxu0 %v16699_v0  ;;  %14796 = vmatpush1.bf16.msra.mxu1 %v16701_v1  ;;  %v931_v0 = vld [vmem:[%s19120_s5 + $0x13e0] sm:$0xff]  ;;  %v916_v1 = vld [vmem:[%s19120_s5 + $0x1368] sm:$0xff] }
 0x6a8   : > { %14633 = vmatprep.subr.bf16.mxu0 %v16732_v3  ;;  %14797 = vmatprep.subr.bf16.mxu1 %v16734_v4  ;;  %v932_v3 = vld [vmem:[%s19120_s5 + $0x13e8] sm:$0xff]  ;;  %v16923_v4 = vcombine.low %v883_v52, %v899_v53  ;;  %v16956_v6 = vcombine.high %v915_v63, %v931_v0 }
 0x6a9   : > { %v16958_v7 = vcombine.high %v916_v1, %v932_v3  ;;  %v16957_v13 = vcombine.low %v916_v1, %v932_v3  ;;  %v1139_v3 = vld [vmem:[%s19120_s5 + $0x1a60] sm:$0xff] }
 0x6ab   : > { %14634 = vmatpush1.bf16.msra.mxu0 %v16731_v9  ;;  %14798 = vmatpush1.bf16.msra.mxu1 %v16733_v10  ;;  %v963_v9 = vld [vmem:[%s19120_s5 + $0x14e0] sm:$0xff]  ;;  %v948_v10 = vld [vmem:[%s19120_s5 + $0x1468] sm:$0xff] }
 0x6ac   : > { %14635 = vmatprep.subr.bf16.mxu0 %v16764_v11  ;;  %14799 = vmatprep.subr.bf16.mxu1 %v16766_v12  ;;  %v964_v11 = vld [vmem:[%s19120_s5 + $0x14e8] sm:$0xff]  ;;  %v16955_v12 = vcombine.low %v915_v63, %v931_v0  ;;  %v16988_v15 = vcombine.high %v947_v8, %v963_v9 }
 0x6ad   : > { %v16990_v16 = vcombine.high %v948_v10, %v964_v11  ;;  %v16989_v22 = vcombine.low %v948_v10, %v964_v11  ;;  %v1171_v11 = vld [vmem:[%s19120_s5 + $0x1b60] sm:$0xff] }
 0x6af   : > { %14636 = vmatpush1.bf16.msra.mxu0 %v16763_v18  ;;  %14800 = vmatpush1.bf16.msra.mxu1 %v16765_v19  ;;  %v995_v18 = vld [vmem:[%s19120_s5 + $0x15e0] sm:$0xff]  ;;  %v980_v19 = vld [vmem:[%s19120_s5 + $0x1568] sm:$0xff] }
 0x6b0   : > { %14637 = vmatprep.subr.bf16.mxu0 %v16796_v20  ;;  %14801 = vmatprep.subr.bf16.mxu1 %v16798_v21  ;;  %v996_v20 = vld [vmem:[%s19120_s5 + $0x15e8] sm:$0xff]  ;;  %v16987_v21 = vcombine.low %v947_v8, %v963_v9  ;;  %v17020_v23 = vcombine.high %v979_v17, %v995_v18 }
 0x6b1   : > { %v17022_v25 = vcombine.high %v980_v19, %v996_v20  ;;  %v17021_v33 = vcombine.low %v980_v19, %v996_v20  ;;  %v1203_v20 = vld [vmem:[%s19120_s5 + $0x1c60] sm:$0xff] }
 0x6b3   : > { %14638 = vmatpush1.bf16.msra.mxu0 %v16795_v28  ;;  %14802 = vmatpush1.bf16.msra.mxu1 %v16797_v29  ;;  %v1027_v28 = vld [vmem:[%s19120_s5 + $0x16e0] sm:$0xff]  ;;  %v1012_v29 = vld [vmem:[%s19120_s5 + $0x1668] sm:$0xff] }
 0x6b4   : > { %14639 = vmatprep.subr.bf16.mxu0 %v16828_v31  ;;  %14803 = vmatprep.subr.bf16.mxu1 %v16830_v32  ;;  %v1028_v31 = vld [vmem:[%s19120_s5 + $0x16e8] sm:$0xff]  ;;  %v17019_v32 = vcombine.low %v979_v17, %v995_v18  ;;  %v17052_v34 = vcombine.high %v1011_v26, %v1027_v28 }
 0x6b5   : > { %v17054_v35 = vcombine.high %v1012_v29, %v1028_v31  ;;  %v17053_v43 = vcombine.low %v1012_v29, %v1028_v31  ;;  %v1235_v31 = vld [vmem:[%s19120_s5 + $0x1d60] sm:$0xff] }
 0x6b7   : > { %14640 = vmatpush1.bf16.msra.mxu0 %v16827_v38  ;;  %14804 = vmatpush1.bf16.msra.mxu1 %v16829_v39  ;;  %v1059_v38 = vld [vmem:[%s19120_s5 + $0x17e0] sm:$0xff]  ;;  %v1044_v39 = vld [vmem:[%s19120_s5 + $0x1768] sm:$0xff] }
 0x6b8   : > { %14650 = vmatprep.subr.bf16.mxu0 %v16860_v40  ;;  %14814 = vmatprep.subr.bf16.mxu1 %v16862_v41  ;;  %v1060_v40 = vld [vmem:[%s19120_s5 + $0x17e8] sm:$0xff]  ;;  %v17051_v41 = vcombine.low %v1011_v26, %v1027_v28  ;;  %v17084_v45 = vcombine.high %v1043_v36, %v1059_v38 }
 0x6b9   : > { %v17086_v46 = vcombine.high %v1044_v39, %v1060_v40  ;;  %v17085_v52 = vcombine.low %v1044_v39, %v1060_v40  ;;  %v1267_v40 = vld [vmem:[%s19120_s5 + $0x1e60] sm:$0xff] }
 0x6ba   : > { %14642 = vmatmul.mubr.bf16.vlgmr.msra.gmra.mrb[24].mxu0 %v19259_v47  ;;  %14806 = vmatmul.mubr.bf16.vlgmr.msra.gmra.mrb[24].mxu1 %v19259_v47 }
 0x6bb   : > { %14651 = vmatpush1.bf16.msra.mxu0 %v16859_v49  ;;  %14815 = vmatpush1.bf16.msra.mxu1 %v16861_v50  ;;  %v1091_v49 = vld [vmem:[%s19120_s5 + $0x18e0] sm:$0xff]  ;;  %v1076_v50 = vld [vmem:[%s19120_s5 + $0x1868] sm:$0xff] }
 0x6bc   : > { %14652 = vmatprep.subr.bf16.mxu0 %v16892_v51  ;;  %14816 = vmatprep.subr.bf16.mxu1 %v16894_v24  ;;  %v1092_v51 = vld [vmem:[%s19120_s5 + $0x18e8] sm:$0xff]  ;;  %v17083_v24 = vcombine.low %v1043_v36, %v1059_v38  ;;  %v17116_v53 = vcombine.high %v1075_v48, %v1091_v49 }
 0x6bd   : > { %14682 = vmatprep.mubr.bf16.mxu0 %v19268_v27  ;;  %14846 = vmatprep.mubr.bf16.mxu1 %v19268_v27  ;;  %v17118_v54 = vcombine.high %v1076_v50, %v1092_v51  ;;  %v17117_v63 = vcombine.low %v1076_v50, %v1092_v51  ;;  %v1299_v51 = vld [vmem:[%s19120_s5 + $0x1f60] sm:$0xff] }
 0x6bf   : > { %14653 = vmatpush1.bf16.msra.mxu0 %v16891_v56  ;;  %14817 = vmatpush1.bf16.msra.mxu1 %v16893_v57  ;;  %v1123_v56 = vld [vmem:[%s19120_s5 + $0x19e0] sm:$0xff]  ;;  %v1108_v57 = vld [vmem:[%s19120_s5 + $0x1968] sm:$0xff] }
 0x6c0   : > { %14654 = vmatprep.subr.bf16.mxu0 %v16924_v58  ;;  %14818 = vmatprep.subr.bf16.mxu1 %v16926_v62  ;;  %v1124_v58 = vld [vmem:[%s19120_s5 + $0x19e8] sm:$0xff]  ;;  %v17115_v62 = vcombine.low %v1075_v48, %v1091_v49  ;;  %v17148_v0 = vcombine.high %v1107_v55, %v1123_v56 }
 0x6c1   : > { %v17150_v1 = vcombine.high %v1108_v57, %v1124_v58  ;;  %v17149_v8 = vcombine.low %v1108_v57, %v1124_v58  ;;  %v1331_v58 = vld [vmem:[%s19120_s5 + $0x2060] sm:$0xff] }
 0x6c3   : > { %14655 = vmatpush1.bf16.msra.mxu0 %v16923_v4  ;;  %14819 = vmatpush1.bf16.msra.mxu1 %v16925_v5  ;;  %v1155_v4 = vld [vmem:[%s19120_s5 + $0x1ae0] sm:$0xff]  ;;  %v1140_v5 = vld [vmem:[%s19120_s5 + $0x1a68] sm:$0xff] }
 0x6c4   : > { %14656 = vmatprep.subr.bf16.mxu0 %v16956_v6  ;;  %14820 = vmatprep.subr.bf16.mxu1 %v16958_v7  ;;  %v1156_v6 = vld [vmem:[%s19120_s5 + $0x1ae8] sm:$0xff]  ;;  %v17147_v7 = vcombine.low %v1107_v55, %v1123_v56  ;;  %v17180_v9 = vcombine.high %v1139_v3, %v1155_v4 }
 0x6c5   : > { %v17182_v10 = vcombine.high %v1140_v5, %v1156_v6  ;;  %v17181_v17 = vcombine.low %v1140_v5, %v1156_v6  ;;  %v1363_v6 = vld [vmem:[%s19120_s5 + $0x2160] sm:$0xff] }
 0x6c7   : > { %14657 = vmatpush1.bf16.msra.mxu0 %v16955_v12  ;;  %14821 = vmatpush1.bf16.msra.mxu1 %v16957_v13  ;;  %v1187_v12 = vld [vmem:[%s19120_s5 + $0x1be0] sm:$0xff]  ;;  %v1172_v13 = vld [vmem:[%s19120_s5 + $0x1b68] sm:$0xff] }
 0x6c8   : > { %14658 = vmatprep.subr.bf16.mxu0 %v16988_v15  ;;  %14822 = vmatprep.subr.bf16.mxu1 %v16990_v16  ;;  %v1188_v15 = vld [vmem:[%s19120_s5 + $0x1be8] sm:$0xff]  ;;  %v17179_v16 = vcombine.low %v1139_v3, %v1155_v4  ;;  %v17212_v18 = vcombine.high %v1171_v11, %v1187_v12 }
 0x6c9   : > { %v17214_v19 = vcombine.high %v1172_v13, %v1188_v15  ;;  %v17213_v26 = vcombine.low %v1172_v13, %v1188_v15  ;;  %v1395_v15 = vld [vmem:[%s19120_s5 + $0x2260] sm:$0xff] }
 0x6cb   : > { %14659 = vmatpush1.bf16.msra.mxu0 %v16987_v21  ;;  %14823 = vmatpush1.bf16.msra.mxu1 %v16989_v22  ;;  %v1219_v21 = vld [vmem:[%s19120_s5 + $0x1ce0] sm:$0xff]  ;;  %v1204_v22 = vld [vmem:[%s19120_s5 + $0x1c68] sm:$0xff] }
 0x6cc   : > { %14660 = vmatprep.subr.bf16.mxu0 %v17020_v23  ;;  %14824 = vmatprep.subr.bf16.mxu1 %v17022_v25  ;;  %v1220_v23 = vld [vmem:[%s19120_s5 + $0x1ce8] sm:$0xff]  ;;  %v17211_v25 = vcombine.low %v1171_v11, %v1187_v12  ;;  %v17244_v28 = vcombine.high %v1203_v20, %v1219_v21 }
 0x6cd   : > { %v17246_v29 = vcombine.high %v1204_v22, %v1220_v23  ;;  %v17245_v36 = vcombine.low %v1204_v22, %v1220_v23  ;;  %v1427_v23 = vld [vmem:[%s19120_s5 + $0x2360] sm:$0xff] }
 0x6cf   : > { %14661 = vmatpush1.bf16.msra.mxu0 %v17019_v32  ;;  %14825 = vmatpush1.bf16.msra.mxu1 %v17021_v33  ;;  %v1251_v32 = vld [vmem:[%s19120_s5 + $0x1de0] sm:$0xff]  ;;  %v1236_v33 = vld [vmem:[%s19120_s5 + $0x1d68] sm:$0xff] }
 0x6d0   : > { %14662 = vmatprep.subr.bf16.mxu0 %v17052_v34  ;;  %14826 = vmatprep.subr.bf16.mxu1 %v17054_v35  ;;  %v1252_v34 = vld [vmem:[%s19120_s5 + $0x1de8] sm:$0xff]  ;;  %v17243_v35 = vcombine.low %v1203_v20, %v1219_v21  ;;  %v17276_v38 = vcombine.high %v1235_v31, %v1251_v32 }
 0x6d1   : > { %v17278_v39 = vcombine.high %v1236_v33, %v1252_v34  ;;  %v17277_v48 = vcombine.low %v1236_v33, %v1252_v34  ;;  %v1459_v34 = vld [vmem:[%s19120_s5 + $0x2460] sm:$0xff] }
 0x6d3   : > { %14663 = vmatpush1.bf16.msra.mxu0 %v17051_v41  ;;  %14827 = vmatpush1.bf16.msra.mxu1 %v17053_v43  ;;  %v1283_v41 = vld [vmem:[%s19120_s5 + $0x1ee0] sm:$0xff]  ;;  %v1268_v43 = vld [vmem:[%s19120_s5 + $0x1e68] sm:$0xff] }
 0x6d4   : > { %14664 = vmatprep.subr.bf16.mxu0 %v17084_v45  ;;  %14828 = vmatprep.subr.bf16.mxu1 %v17086_v46  ;;  %v1284_v45 = vld [vmem:[%s19120_s5 + $0x1ee8] sm:$0xff]  ;;  %v17275_v46 = vcombine.low %v1235_v31, %v1251_v32  ;;  %v17308_v49 = vcombine.high %v1267_v40, %v1283_v41 }
 0x6d5   : > { %v17310_v50 = vcombine.high %v1268_v43, %v1284_v45  ;;  %v17309_v55 = vcombine.low %v1268_v43, %v1284_v45  ;;  %v1491_v45 = vld [vmem:[%s19120_s5 + $0x2560] sm:$0xff] }
 0x6d7   : > { %14665 = vmatpush1.bf16.msra.mxu0 %v17083_v24  ;;  %14829 = vmatpush1.bf16.msra.mxu1 %v17085_v52  ;;  %v1315_v24 = vld [vmem:[%s19120_s5 + $0x1fe0] sm:$0xff]  ;;  %v1300_v52 = vld [vmem:[%s19120_s5 + $0x1f68] sm:$0xff] }
 0x6d8   : > { %14666 = vmatprep.subr.bf16.mxu0 %v17116_v53  ;;  %14830 = vmatprep.subr.bf16.mxu1 %v17118_v54  ;;  %v1316_v53 = vld [vmem:[%s19120_s5 + $0x1fe8] sm:$0xff]  ;;  %v17307_v54 = vcombine.low %v1267_v40, %v1283_v41  ;;  %v17340_v56 = vcombine.high %v1299_v51, %v1315_v24 }
 0x6d9   : > { %v17342_v57 = vcombine.high %v1300_v52, %v1316_v53  ;;  %v17341_v3 = vcombine.low %v1300_v52, %v1316_v53  ;;  %v1523_v53 = vld [vmem:[%s19120_s5 + $0x2660] sm:$0xff] }
 0x6db   : > { %14667 = vmatpush1.bf16.msra.mxu0 %v17115_v62  ;;  %14831 = vmatpush1.bf16.msra.mxu1 %v17117_v63  ;;  %v1347_v62 = vld [vmem:[%s19120_s5 + $0x20e0] sm:$0xff]  ;;  %v1332_v63 = vld [vmem:[%s19120_s5 + $0x2068] sm:$0xff] }
 0x6dc   : > { %14668 = vmatprep.subr.bf16.mxu0 %v17148_v0  ;;  %14832 = vmatprep.subr.bf16.mxu1 %v17150_v1  ;;  %v1348_v0 = vld [vmem:[%s19120_s5 + $0x20e8] sm:$0xff]  ;;  %v17339_v1 = vcombine.low %v1299_v51, %v1315_v24  ;;  %v17372_v4 = vcombine.high %v1331_v58, %v1347_v62 }
 0x6dd   : > { %v17374_v5 = vcombine.high %v1332_v63, %v1348_v0  ;;  %v17373_v11 = vcombine.low %v1332_v63, %v1348_v0  ;;  %v1555_v0 = vld [vmem:[%s19120_s5 + $0x2760] sm:$0xff] }
 0x6df   : > { %14669 = vmatpush1.bf16.msra.mxu0 %v17147_v7  ;;  %14833 = vmatpush1.bf16.msra.mxu1 %v17149_v8  ;;  %v1379_v7 = vld [vmem:[%s19120_s5 + $0x21e0] sm:$0xff]  ;;  %v1364_v8 = vld [vmem:[%s19120_s5 + $0x2168] sm:$0xff] }
 0x6e0   : > { %14670 = vmatprep.subr.bf16.mxu0 %v17180_v9  ;;  %14834 = vmatprep.subr.bf16.mxu1 %v17182_v10  ;;  %v1380_v9 = vld [vmem:[%s19120_s5 + $0x21e8] sm:$0xff]  ;;  %v17371_v10 = vcombine.low %v1331_v58, %v1347_v62  ;;  %v17404_v12 = vcombine.high %v1363_v6, %v1379_v7 }
 0x6e1   : > { %v17406_v13 = vcombine.high %v1364_v8, %v1380_v9  ;;  %v17405_v20 = vcombine.low %v1364_v8, %v1380_v9  ;;  %v1587_v9 = vld [vmem:[%s19120_s5 + $0x2860] sm:$0xff] }
 0x6e3   : > { %14671 = vmatpush1.bf16.msra.mxu0 %v17179_v16  ;;  %14835 = vmatpush1.bf16.msra.mxu1 %v17181_v17  ;;  %v1411_v16 = vld [vmem:[%s19120_s5 + $0x22e0] sm:$0xff]  ;;  %v1396_v17 = vld [vmem:[%s19120_s5 + $0x2268] sm:$0xff] }
 0x6e4   : > { %14672 = vmatprep.subr.bf16.mxu0 %v17212_v18  ;;  %14836 = vmatprep.subr.bf16.mxu1 %v17214_v19  ;;  %v1412_v18 = vld [vmem:[%s19120_s5 + $0x22e8] sm:$0xff]  ;;  %v17403_v19 = vcombine.low %v1363_v6, %v1379_v7  ;;  %v17436_v21 = vcombine.high %v1395_v15, %v1411_v16 }
 0x6e5   : > { %v17438_v22 = vcombine.high %v1396_v17, %v1412_v18  ;;  %v17437_v31 = vcombine.low %v1396_v17, %v1412_v18  ;;  %v1619_v18 = vld [vmem:[%s19120_s5 + $0x2960] sm:$0xff] }
 0x6e7   : > { %14673 = vmatpush1.bf16.msra.mxu0 %v17211_v25  ;;  %14837 = vmatpush1.bf16.msra.mxu1 %v17213_v26  ;;  %v1443_v25 = vld [vmem:[%s19120_s5 + $0x23e0] sm:$0xff]  ;;  %v1428_v26 = vld [vmem:[%s19120_s5 + $0x2368] sm:$0xff] }
 0x6e8   : > { %14674 = vmatprep.subr.bf16.mxu0 %v17244_v28  ;;  %14838 = vmatprep.subr.bf16.mxu1 %v17246_v29  ;;  %v1444_v28 = vld [vmem:[%s19120_s5 + $0x23e8] sm:$0xff]  ;;  %v17435_v29 = vcombine.low %v1395_v15, %v1411_v16  ;;  %v17468_v32 = vcombine.high %v1427_v23, %v1443_v25 }
 0x6e9   : > { %v17470_v33 = vcombine.high %v1428_v26, %v1444_v28  ;;  %v17469_v40 = vcombine.low %v1428_v26, %v1444_v28  ;;  %v1651_v28 = vld [vmem:[%s19120_s5 + $0x2a60] sm:$0xff] }
 0x6eb   : > { %14675 = vmatpush1.bf16.msra.mxu0 %v17243_v35  ;;  %14839 = vmatpush1.bf16.msra.mxu1 %v17245_v36  ;;  %v1475_v35 = vld [vmem:[%s19120_s5 + $0x24e0] sm:$0xff]  ;;  %v1460_v36 = vld [vmem:[%s19120_s5 + $0x2468] sm:$0xff] }
 0x6ec   : > { %14676 = vmatprep.subr.bf16.mxu0 %v17276_v38  ;;  %14840 = vmatprep.subr.bf16.mxu1 %v17278_v39  ;;  %v1476_v38 = vld [vmem:[%s19120_s5 + $0x24e8] sm:$0xff]  ;;  %v17467_v39 = vcombine.low %v1427_v23, %v1443_v25  ;;  %v17500_v41 = vcombine.high %v1459_v34, %v1475_v35 }
 0x6ed   : > { %v17502_v43 = vcombine.high %v1460_v36, %v1476_v38  ;;  %v17501_v51 = vcombine.low %v1460_v36, %v1476_v38  ;;  %v1683_v38 = vld [vmem:[%s19120_s5 + $0x2b60] sm:$0xff] }
 0x6ef   : > { %14677 = vmatpush1.bf16.msra.mxu0 %v17275_v46  ;;  %14841 = vmatpush1.bf16.msra.mxu1 %v17277_v48  ;;  %v1507_v46 = vld [vmem:[%s19120_s5 + $0x25e0] sm:$0xff]  ;;  %v1492_v48 = vld [vmem:[%s19120_s5 + $0x2568] sm:$0xff] }
 0x6f0   : > { %14678 = vmatprep.subr.bf16.mxu0 %v17308_v49  ;;  %14842 = vmatprep.subr.bf16.mxu1 %v17310_v50  ;;  %v1508_v49 = vld [vmem:[%s19120_s5 + $0x25e8] sm:$0xff]  ;;  %v17499_v50 = vcombine.low %v1459_v34, %v1475_v35  ;;  %v17532_v24 = vcombine.high %v1491_v45, %v1507_v46 }
 0x6f1   : > { %v17534_v52 = vcombine.high %v1492_v48, %v1508_v49  ;;  %v17533_v58 = vcombine.low %v1492_v48, %v1508_v49  ;;  %v1715_v49 = vld [vmem:[%s19120_s5 + $0x2c60] sm:$0xff] }
 0x6f3   : > { %14679 = vmatpush1.bf16.msra.mxu0 %v17307_v54  ;;  %14843 = vmatpush1.bf16.msra.mxu1 %v17309_v55  ;;  %v1539_v54 = vld [vmem:[%s19120_s5 + $0x26e0] sm:$0xff]  ;;  %v1524_v55 = vld [vmem:[%s19120_s5 + $0x2668] sm:$0xff] }
 0x6f4   : > { %14680 = vmatprep.subr.bf16.mxu0 %v17340_v56  ;;  %14844 = vmatprep.subr.bf16.mxu1 %v17342_v57  ;;  %v1540_v56 = vld [vmem:[%s19120_s5 + $0x26e8] sm:$0xff]  ;;  %v17531_v57 = vcombine.low %v1491_v45, %v1507_v46  ;;  %v17564_v62 = vcombine.high %v1523_v53, %v1539_v54 }
 0x6f5   : > { %v17566_v63 = vcombine.high %v1524_v55, %v1540_v56  ;;  %v17565_v6 = vcombine.low %v1524_v55, %v1540_v56  ;;  %v1747_v56 = vld [vmem:[%s19120_s5 + $0x2d60] sm:$0xff] }
 0x6f7   : > { %14681 = vmatpush1.bf16.msra.mxu0 %v17339_v1  ;;  %14845 = vmatpush1.bf16.msra.mxu1 %v17341_v3  ;;  %v1571_v1 = vld [vmem:[%s19120_s5 + $0x27e0] sm:$0xff]  ;;  %v1556_v3 = vld [vmem:[%s19120_s5 + $0x2768] sm:$0xff] }
 0x6f8   : > { %14691 = vmatprep.subr.bf16.mxu0 %v17372_v4  ;;  %14855 = vmatprep.subr.bf16.mxu1 %v17374_v5  ;;  %v1572_v4 = vld [vmem:[%s19120_s5 + $0x27e8] sm:$0xff]  ;;  %v17563_v5 = vcombine.low %v1523_v53, %v1539_v54  ;;  %v17596_v7 = vcombine.high %v1555_v0, %v1571_v1 }
 0x6f9   : > { %v17598_v8 = vcombine.high %v1556_v3, %v1572_v4  ;;  %v17597_v15 = vcombine.low %v1556_v3, %v1572_v4  ;;  %v1779_v4 = vld [vmem:[%s19120_s5 + $0x2e60] sm:$0xff] }
 0x6fa   : > { %14683 = vmatmul.mubr.bf16.vlgmr.msra.gmra.mrb[24].mxu0 %v19342_v2  ;;  %14847 = vmatmul.mubr.bf16.vlgmr.msra.gmra.mrb[24].mxu1 %v19342_v2 }
 0x6fb   : > { %14692 = vmatpush1.bf16.msra.mxu0 %v17371_v10  ;;  %14856 = vmatpush1.bf16.msra.mxu1 %v17373_v11  ;;  %v1603_v10 = vld [vmem:[%s19120_s5 + $0x28e0] sm:$0xff]  ;;  %v1588_v11 = vld [vmem:[%s19120_s5 + $0x2868] sm:$0xff] }
 0x6fc   : > { %14693 = vmatprep.subr.bf16.mxu0 %v17404_v12  ;;  %14857 = vmatprep.subr.bf16.mxu1 %v17406_v13  ;;  %v1604_v12 = vld [vmem:[%s19120_s5 + $0x28e8] sm:$0xff]  ;;  %v17595_v13 = vcombine.low %v1555_v0, %v1571_v1  ;;  %v17628_v16 = vcombine.high %v1587_v9, %v1603_v10 }
 0x6fd   : > { %14723 = vmatprep.mubr.bf16.mxu0 %v19274_v60  ;;  %14887 = vmatprep.mubr.bf16.mxu1 %v19274_v60  ;;  %v17630_v17 = vcombine.high %v1588_v11, %v1604_v12  ;;  %v17629_v23 = vcombine.low %v1588_v11, %v1604_v12  ;;  %v1811_v12 = vld [vmem:[%s19120_s5 + $0x2f60] sm:$0xff] }
 0x6ff   : > { %14694 = vmatpush1.bf16.msra.mxu0 %v17403_v19  ;;  %14858 = vmatpush1.bf16.msra.mxu1 %v17405_v20  ;;  %v1635_v19 = vld [vmem:[%s19120_s5 + $0x29e0] sm:$0xff]  ;;  %v1620_v20 = vld [vmem:[%s19120_s5 + $0x2968] sm:$0xff] }
 0x700   : > { %14695 = vmatprep.subr.bf16.mxu0 %v17436_v21  ;;  %14859 = vmatprep.subr.bf16.mxu1 %v17438_v22  ;;  %v1636_v21 = vld [vmem:[%s19120_s5 + $0x29e8] sm:$0xff]  ;;  %v17627_v22 = vcombine.low %v1587_v9, %v1603_v10  ;;  %v17660_v25 = vcombine.high %v1619_v18, %v1635_v19 }
 0x701   : > { %v17662_v26 = vcombine.high %v1620_v20, %v1636_v21  ;;  %v17661_v34 = vcombine.low %v1620_v20, %v1636_v21  ;;  %v1843_v21 = vld [vmem:[%s19120_s5 + $0x3060] sm:$0xff] }
 0x703   : > { %14696 = vmatpush1.bf16.msra.mxu0 %v17435_v29  ;;  %14860 = vmatpush1.bf16.msra.mxu1 %v17437_v31  ;;  %v1667_v29 = vld [vmem:[%s19120_s5 + $0x2ae0] sm:$0xff]  ;;  %v1652_v31 = vld [vmem:[%s19120_s5 + $0x2a68] sm:$0xff] }
 0x704   : > { %14697 = vmatprep.subr.bf16.mxu0 %v17468_v32  ;;  %14861 = vmatprep.subr.bf16.mxu1 %v17470_v33  ;;  %v1668_v32 = vld [vmem:[%s19120_s5 + $0x2ae8] sm:$0xff]  ;;  %v17659_v33 = vcombine.low %v1619_v18, %v1635_v19  ;;  %v17692_v35 = vcombine.high %v1651_v28, %v1667_v29 }
 0x705   : > { %v17694_v36 = vcombine.high %v1652_v31, %v1668_v32  ;;  %v17693_v45 = vcombine.low %v1652_v31, %v1668_v32  ;;  %v1875_v32 = vld [vmem:[%s19120_s5 + $0x3160] sm:$0xff] }
 0x707   : > { %14698 = vmatpush1.bf16.msra.mxu0 %v17467_v39  ;;  %14862 = vmatpush1.bf16.msra.mxu1 %v17469_v40  ;;  %v1699_v39 = vld [vmem:[%s19120_s5 + $0x2be0] sm:$0xff]  ;;  %v1684_v40 = vld [vmem:[%s19120_s5 + $0x2b68] sm:$0xff] }
 0x708   : > { %14699 = vmatprep.subr.bf16.mxu0 %v17500_v41  ;;  %14863 = vmatprep.subr.bf16.mxu1 %v17502_v43  ;;  %v1700_v41 = vld [vmem:[%s19120_s5 + $0x2be8] sm:$0xff]  ;;  %v17691_v43 = vcombine.low %v1651_v28, %v1667_v29  ;;  %v17724_v46 = vcombine.high %v1683_v38, %v1699_v39 }
 0x709   : > { %v17726_v48 = vcombine.high %v1684_v40, %v1700_v41  ;;  %v17725_v53 = vcombine.low %v1684_v40, %v1700_v41  ;;  %v1907_v41 = vld [vmem:[%s19120_s5 + $0x3260] sm:$0xff] }
 0x70b   : > { %14700 = vmatpush1.bf16.msra.mxu0 %v17499_v50  ;;  %14864 = vmatpush1.bf16.msra.mxu1 %v17501_v51  ;;  %v1731_v50 = vld [vmem:[%s19120_s5 + $0x2ce0] sm:$0xff]  ;;  %v1716_v51 = vld [vmem:[%s19120_s5 + $0x2c68] sm:$0xff] }
 0x70c   : > { %14701 = vmatprep.subr.bf16.mxu0 %v17532_v24  ;;  %14865 = vmatprep.subr.bf16.mxu1 %v17534_v52  ;;  %v1732_v24 = vld [vmem:[%s19120_s5 + $0x2ce8] sm:$0xff]  ;;  %v17723_v52 = vcombine.low %v1683_v38, %v1699_v39  ;;  %v17756_v54 = vcombine.high %v1715_v49, %v1731_v50 }
 0x70d   : > { %v17758_v55 = vcombine.high %v1716_v51, %v1732_v24  ;;  %v17757_v0 = vcombine.low %v1716_v51, %v1732_v24  ;;  %v1939_v24 = vld [vmem:[%s19120_s5 + $0x3360] sm:$0xff] }
 0x70f   : > { %14702 = vmatpush1.bf16.msra.mxu0 %v17531_v57  ;;  %14866 = vmatpush1.bf16.msra.mxu1 %v17533_v58  ;;  %v1763_v57 = vld [vmem:[%s19120_s5 + $0x2de0] sm:$0xff]  ;;  %v1748_v58 = vld [vmem:[%s19120_s5 + $0x2d68] sm:$0xff] }
 0x710   : > { %14703 = vmatprep.subr.bf16.mxu0 %v17564_v62  ;;  %14867 = vmatprep.subr.bf16.mxu1 %v17566_v63  ;;  %v1764_v62 = vld [vmem:[%s19120_s5 + $0x2de8] sm:$0xff]  ;;  %v17755_v63 = vcombine.low %v1715_v49, %v1731_v50  ;;  %v17788_v1 = vcombine.high %v1747_v56, %v1763_v57 }
 0x711   : > { %v17790_v3 = vcombine.high %v1748_v58, %v1764_v62  ;;  %v17789_v9 = vcombine.low %v1748_v58, %v1764_v62  ;;  %v1971_v62 = vld [vmem:[%s19120_s5 + $0x3460] sm:$0xff] }
 0x713   : > { %14704 = vmatpush1.bf16.msra.mxu0 %v17563_v5  ;;  %14868 = vmatpush1.bf16.msra.mxu1 %v17565_v6  ;;  %v1795_v5 = vld [vmem:[%s19120_s5 + $0x2ee0] sm:$0xff]  ;;  %v1780_v6 = vld [vmem:[%s19120_s5 + $0x2e68] sm:$0xff] }
 0x714   : > { %14705 = vmatprep.subr.bf16.mxu0 %v17596_v7  ;;  %14869 = vmatprep.subr.bf16.mxu1 %v17598_v8  ;;  %v1796_v7 = vld [vmem:[%s19120_s5 + $0x2ee8] sm:$0xff]  ;;  %v17787_v8 = vcombine.low %v1747_v56, %v1763_v57  ;;  %v17820_v10 = vcombine.high %v1779_v4, %v1795_v5 }
 0x715   : > { %v17822_v11 = vcombine.high %v1780_v6, %v1796_v7  ;;  %v17821_v18 = vcombine.low %v1780_v6, %v1796_v7  ;;  %v2003_v7 = vld [vmem:[%s19120_s5 + $0x3560] sm:$0xff] }
 0x717   : > { %14706 = vmatpush1.bf16.msra.mxu0 %v17595_v13  ;;  %14870 = vmatpush1.bf16.msra.mxu1 %v17597_v15  ;;  %v1827_v13 = vld [vmem:[%s19120_s5 + $0x2fe0] sm:$0xff]  ;;  %v1812_v15 = vld [vmem:[%s19120_s5 + $0x2f68] sm:$0xff] }
 0x718   : > { %14707 = vmatprep.subr.bf16.mxu0 %v17628_v16  ;;  %14871 = vmatprep.subr.bf16.mxu1 %v17630_v17  ;;  %v1828_v16 = vld [vmem:[%s19120_s5 + $0x2fe8] sm:$0xff]  ;;  %v17819_v17 = vcombine.low %v1779_v4, %v1795_v5  ;;  %v17852_v19 = vcombine.high %v1811_v12, %v1827_v13 }
 0x719   : > { %v17854_v20 = vcombine.high %v1812_v15, %v1828_v16  ;;  %v17853_v28 = vcombine.low %v1812_v15, %v1828_v16  ;;  %v2035_v16 = vld [vmem:[%s19120_s5 + $0x3660] sm:$0xff] }
 0x71b   : > { %14708 = vmatpush1.bf16.msra.mxu0 %v17627_v22  ;;  %14872 = vmatpush1.bf16.msra.mxu1 %v17629_v23  ;;  %v1859_v22 = vld [vmem:[%s19120_s5 + $0x30e0] sm:$0xff]  ;;  %v1844_v23 = vld [vmem:[%s19120_s5 + $0x3068] sm:$0xff] }
 0x71c   : > { %14709 = vmatprep.subr.bf16.mxu0 %v17660_v25  ;;  %14873 = vmatprep.subr.bf16.mxu1 %v17662_v26  ;;  %v1860_v25 = vld [vmem:[%s19120_s5 + $0x30e8] sm:$0xff]  ;;  %v17851_v26 = vcombine.low %v1811_v12, %v1827_v13  ;;  %v17884_v29 = vcombine.high %v1843_v21, %v1859_v22 }
 0x71d   : > { %v17886_v31 = vcombine.high %v1844_v23, %v1860_v25  ;;  %v17885_v38 = vcombine.low %v1844_v23, %v1860_v25 }
 0x71f   : > { %14710 = vmatpush1.bf16.msra.mxu0 %v17659_v33  ;;  %14874 = vmatpush1.bf16.msra.mxu1 %v17661_v34  ;;  %v1891_v33 = vld [vmem:[%s19120_s5 + $0x31e0] sm:$0xff]  ;;  %v1876_v34 = vld [vmem:[%s19120_s5 + $0x3168] sm:$0xff] }
 0x720   : > { %14711 = vmatprep.subr.bf16.mxu0 %v17692_v35  ;;  %14875 = vmatprep.subr.bf16.mxu1 %v17694_v36  ;;  %v1892_v35 = vld [vmem:[%s19120_s5 + $0x31e8] sm:$0xff]  ;;  %v17883_v36 = vcombine.low %v1843_v21, %v1859_v22  ;;  %v17916_v39 = vcombine.high %v1875_v32, %v1891_v33 }
 0x721   : > { %v17918_v40 = vcombine.high %v1876_v34, %v1892_v35  ;;  %v17917_v49 = vcombine.low %v1876_v34, %v1892_v35 }
 0x723   : > { %14712 = vmatpush1.bf16.msra.mxu0 %v17691_v43  ;;  %14876 = vmatpush1.bf16.msra.mxu1 %v17693_v45  ;;  %v1923_v43 = vld [vmem:[%s19120_s5 + $0x32e0] sm:$0xff]  ;;  %v1908_v45 = vld [vmem:[%s19120_s5 + $0x3268] sm:$0xff] }
 0x724   : > { %14713 = vmatprep.subr.bf16.mxu0 %v17724_v46  ;;  %14877 = vmatprep.subr.bf16.mxu1 %v17726_v48  ;;  %v1924_v46 = vld [vmem:[%s19120_s5 + $0x32e8] sm:$0xff]  ;;  %v17915_v48 = vcombine.low %v1875_v32, %v1891_v33  ;;  %v17948_v50 = vcombine.high %v1907_v41, %v1923_v43 }
 0x725   : > { %v17950_v51 = vcombine.high %v1908_v45, %v1924_v46  ;;  %v17949_v56 = vcombine.low %v1908_v45, %v1924_v46  ;;  %v2068_v32 = vld [vmem:[%s19120_s5 + $0x3768] sm:$0xff] }
 0x726   : > { %v2084_v33 = vld [vmem:[%s19120_s5 + $0x37e8] sm:$0xff] }
 0x727   : > { %14714 = vmatpush1.bf16.msra.mxu0 %v17723_v52  ;;  %14878 = vmatpush1.bf16.msra.mxu1 %v17725_v53  ;;  %v1955_v52 = vld [vmem:[%s19120_s5 + $0x33e0] sm:$0xff]  ;;  %v1940_v53 = vld [vmem:[%s19120_s5 + $0x3368] sm:$0xff] }
 0x728   : > { %14715 = vmatprep.subr.bf16.mxu0 %v17756_v54  ;;  %14879 = vmatprep.subr.bf16.mxu1 %v17758_v55  ;;  %v1956_v54 = vld [vmem:[%s19120_s5 + $0x33e8] sm:$0xff]  ;;  %v17947_v55 = vcombine.low %v1907_v41, %v1923_v43  ;;  %v17980_v57 = vcombine.high %v1939_v24, %v1955_v52 }
 0x729   : > { %v17982_v58 = vcombine.high %v1940_v53, %v1956_v54  ;;  %v17981_v4 = vcombine.low %v1940_v53, %v1956_v54  ;;  %v2116_v53 = vld [vmem:[%s19120_s5 + $0x38e8] sm:$0xff] }
 0x72a   : > { %v292_v54 = vld [vmem:[#allocation3 + $0x28] sm:$0xff] }
 0x72b   : > { %14716 = vmatpush1.bf16.msra.mxu0 %v17755_v63  ;;  %14880 = vmatpush1.bf16.msra.mxu1 %v17757_v0  ;;  %v1987_v63 = vld [vmem:[%s19120_s5 + $0x34e0] sm:$0xff]  ;;  %v1972_v0 = vld [vmem:[%s19120_s5 + $0x3468] sm:$0xff] }
 0x72c   : > { %14717 = vmatprep.subr.bf16.mxu0 %v17788_v1  ;;  %14881 = vmatprep.subr.bf16.mxu1 %v17790_v3  ;;  %v1988_v1 = vld [vmem:[%s19120_s5 + $0x34e8] sm:$0xff]  ;;  %v17979_v3 = vcombine.low %v1939_v24, %v1955_v52  ;;  %v18012_v5 = vcombine.high %v1971_v62, %v1987_v63 }
 0x72d   : > { %v18014_v6 = vcombine.high %v1972_v0, %v1988_v1  ;;  %v18013_v12 = vcombine.low %v1972_v0, %v1988_v1  ;;  %v2100_v52 = vld [vmem:[%s19120_s5 + $0x3868] sm:$0xff]  ;;  %v2147_v0 = vld [vmem:[%s19120_s5 + $0x39e0] sm:$0xff] }
 0x72f   : > { %14718 = vmatpush1.bf16.msra.mxu0 %v17787_v8  ;;  %14882 = vmatpush1.bf16.msra.mxu1 %v17789_v9  ;;  %v2019_v8 = vld [vmem:[%s19120_s5 + $0x35e0] sm:$0xff]  ;;  %v2004_v9 = vld [vmem:[%s19120_s5 + $0x3568] sm:$0xff] }
 0x730   : > { %14719 = vmatprep.subr.bf16.mxu0 %v17820_v10  ;;  %14883 = vmatprep.subr.bf16.mxu1 %v17822_v11  ;;  %v2020_v10 = vld [vmem:[%s19120_s5 + $0x35e8] sm:$0xff]  ;;  %v18011_v11 = vcombine.low %v1971_v62, %v1987_v63  ;;  %v18044_v13 = vcombine.high %v2003_v7, %v2019_v8  ;;  %v18142_v62 = vcombine.high %v2100_v52, %v2116_v53  ;;  %v2131_v63 = vld [vmem:[%s19120_s5 + $0x3960] sm:$0xff] }
 0x731   : > { %v18046_v15 = vcombine.high %v2004_v9, %v2020_v10  ;;  %v18045_v21 = vcombine.low %v2004_v9, %v2020_v10  ;;  %v2163_v9 = vld [vmem:[%s19120_s5 + $0x3a60] sm:$0xff] }
 0x732   : > { %v2179_v10 = vld [vmem:[%s19120_s5 + $0x3ae0] sm:$0xff] }
 0x733   : > { %14720 = vmatpush1.bf16.msra.mxu0 %v17819_v17  ;;  %14884 = vmatpush1.bf16.msra.mxu1 %v17821_v18  ;;  %v2051_v17 = vld [vmem:[%s19120_s5 + $0x36e0] sm:$0xff]  ;;  %v2036_v18 = vld [vmem:[%s19120_s5 + $0x3668] sm:$0xff] }
 0x734   : > { %14721 = vmatprep.subr.bf16.mxu0 %v17852_v19  ;;  %14885 = vmatprep.subr.bf16.mxu1 %v17854_v20  ;;  %v2052_v19 = vld [vmem:[%s19120_s5 + $0x36e8] sm:$0xff]  ;;  %v18043_v20 = vcombine.low %v2003_v7, %v2019_v8  ;;  %v18076_v22 = vcombine.high %v2035_v16, %v2051_v17  ;;  %v18172_v7 = vcombine.high %v2131_v63, %v2147_v0 }
 0x735   : > { %v18078_v25 = vcombine.high %v2036_v18, %v2052_v19  ;;  %v18077_v43 = vcombine.low %v2036_v18, %v2052_v19  ;;  %v2195_v18 = vld [vmem:[%s19120_s5 + $0x3b60] sm:$0xff] }
 0x736   : > { %v2211_v19 = vld [vmem:[%s19120_s5 + $0x3be0] sm:$0xff] }
 0x737   : > { %14722 = vmatpush1.bf16.msra.mxu0 %v17851_v26  ;;  %14886 = vmatpush1.bf16.msra.mxu1 %v17853_v28  ;;  %v2067_v26 = vld [vmem:[%s19120_s5 + $0x3760] sm:$0xff] }
 0x738   : > { %14732 = vmatprep.subr.bf16.mxu0 %v17884_v29  ;;  %14896 = vmatprep.subr.bf16.mxu1 %v17886_v31  ;;  %v2083_v28 = vld [vmem:[%s19120_s5 + $0x37e0] sm:$0xff] }
 0x739   : > { %v18108_v45 = vcombine.high %v2067_v26, %v2083_v28 }
 0x73a   : > { %14724 = vmatmul.mubr.bf16.vlgmr.msra.gmra.mrb[24].mxu0 %v19277_v61  ;;  %14888 = vmatmul.mubr.bf16.vlgmr.msra.gmra.mrb[24].mxu1 %v19277_v61 }
 0x73b   : > { %14733 = vmatpush1.bf16.msra.mxu0 %v17883_v36  ;;  %14897 = vmatpush1.bf16.msra.mxu1 %v17885_v38  ;;  %v18075_v38 = vcombine.low %v2035_v16, %v2051_v17  ;;  %v18204_v16 = vcombine.high %v2163_v9, %v2179_v10 }
 0x73c   : > { %14734 = vmatprep.subr.bf16.mxu0 %v17916_v39  ;;  %14898 = vmatprep.subr.bf16.mxu1 %v17918_v40 }
 0x73d   : > { %14764 = vmatprep.mubr.bf16.mxu0 %v19418_v30  ;;  %14928 = vmatprep.mubr.bf16.mxu1 %v19418_v30 }
 0x73f   : > { %14735 = vmatpush1.bf16.msra.mxu0 %v17915_v48  ;;  %14899 = vmatpush1.bf16.msra.mxu1 %v17917_v49  ;;  %v18110_v49 = vcombine.high %v2068_v32, %v2084_v33 }
 0x740   : > { %14736 = vmatprep.subr.bf16.mxu0 %v17948_v50  ;;  %14900 = vmatprep.subr.bf16.mxu1 %v17950_v51  ;;  %v2099_v50 = vld [vmem:[%s19120_s5 + $0x3860] sm:$0xff] }
 0x741   : > { %v2115_v51 = vld [vmem:[%s19120_s5 + $0x38e0] sm:$0xff] }
 0x743   : > { %14737 = vmatpush1.bf16.msra.mxu0 %v17947_v55  ;;  %14901 = vmatpush1.bf16.msra.mxu1 %v17949_v56  ;;  %v18107_v55 = vcombine.low %v2067_v26, %v2083_v28  ;;  %v2227_v28 = vld [vmem:[%s19120_s5 + $0x3c60] sm:$0xff] }
 0x744   : > { %14738 = vmatprep.subr.bf16.mxu0 %v17980_v57  ;;  %14902 = vmatprep.subr.bf16.mxu1 %v17982_v58  ;;  %v18109_v57 = vcombine.low %v2068_v32, %v2084_v33  ;;  %v18140_v58 = vcombine.high %v2099_v50, %v2115_v51  ;;  %v2244_v32 = vld [vmem:[%s19120_s5 + $0x3ce8] sm:$0xff]  ;;  %v18235_v33 = vcombine.low %v2195_v18, %v2211_v19 }
 0x747   : > { %14739 = vmatpush1.bf16.msra.mxu0 %v17979_v3  ;;  %14903 = vmatpush1.bf16.msra.mxu1 %v17981_v4  ;;  %v2132_v3 = vld [vmem:[%s19120_s5 + $0x3968] sm:$0xff] }
 0x748   : > { %14740 = vmatprep.subr.bf16.mxu0 %v18012_v5  ;;  %14904 = vmatprep.subr.bf16.mxu1 %v18014_v6  ;;  %v2148_v4 = vld [vmem:[%s19120_s5 + $0x39e8] sm:$0xff]  ;;  %v18139_v5 = vcombine.low %v2099_v50, %v2115_v51  ;;  %v18141_v6 = vcombine.low %v2100_v52, %v2116_v53  ;;  %v2307_v50 = vld [vmem:[%s19120_s5 + $0x3ee0] sm:$0xff] }
 0x749   : > { %v18174_v8 = vcombine.high %v2132_v3, %v2148_v4  ;;  %v2292_v51 = vld [vmem:[%s19120_s5 + $0x3e68] sm:$0xff] }
 0x74b   : > { %14741 = vmatpush1.bf16.msra.mxu0 %v18011_v11  ;;  %14905 = vmatpush1.bf16.msra.mxu1 %v18013_v12  ;;  %v2164_v11 = vld [vmem:[%s19120_s5 + $0x3a68] sm:$0xff] }
 0x74c   : > { %14742 = vmatprep.subr.bf16.mxu0 %v18044_v13  ;;  %14906 = vmatprep.subr.bf16.mxu1 %v18046_v15  ;;  %v2180_v12 = vld [vmem:[%s19120_s5 + $0x3ae8] sm:$0xff]  ;;  %v18171_v13 = vcombine.low %v2131_v63, %v2147_v0  ;;  %v18173_v15 = vcombine.low %v2132_v3, %v2148_v4  ;;  %v309_v4 = vld [vmem:[%s19120_s5 + $0x70] sm:$0xff] }
 0x74d   : > { %v14438_v23 = vpop.f32.mrb[20].mxu0  ;;  %v14602_v29 = vpop.f32.mrb[20].mxu1  ;;  %v18206_v17 = vcombine.high %v2164_v11, %v2180_v12 }
 0x74e   : > { %v14440_v31 = vpop.f32.mrb[21].mxu0  ;;  %v14604_v35 = vpop.f32.mrb[21].mxu1 }
 0x74f   : > { %v15382_v34 = vcombine.low %v14438_v23, %v14440_v31  ;;  %v14442_v36 = vpop.f32.mrb[22].mxu0  ;;  %14743 = vmatpush1.bf16.msra.mxu0 %v18043_v20  ;;  %v15383_v39 = vcombine.low %v14602_v29, %v14604_v35  ;;  %v14606_v40 = vpop.f32.mrb[22].mxu1  ;;  %14907 = vmatpush1.bf16.msra.mxu1 %v18045_v21  ;;  %v2196_v20 = vld [vmem:[%s19120_s5 + $0x3b68] sm:$0xff]  ;;  %v18205_v23 = vcombine.low %v2164_v11, %v2180_v12  ;;  %v2243_v29 = vld [vmem:[%s19120_s5 + $0x3ce0] sm:$0xff]  ;;  %v341_v12 = vld [vmem:[%s19120_s5 + $0x170] sm:$0xff] }
 0x750   : > { %v14443_v41 = vpop.f32.mrb[23].mxu0  ;;  %14744 = vmatprep.subr.bf16.mxu0 %v18076_v22  ;;  %v14607_v48 = vpop.f32.mrb[23].mxu1  ;;  %14908 = vmatprep.subr.bf16.mxu1 %v18078_v25  ;;  %v2212_v21 = vld [vmem:[%s19120_s5 + $0x3be8] sm:$0xff]  ;;  %v18203_v22 = vcombine.low %v2163_v9, %v2179_v10  ;;  %v18236_v25 = vcombine.high %v2195_v18, %v2211_v19  ;;  %v18268_v35 = vcombine.high %v2227_v28, %v2243_v29 }
 0x751   : > { %v15390_v46 = vrot.slane %v15382_v34, %v19719_v44  ;;  %v15397_v24 = vrot.slane %v15383_v39, %v19719_v44  ;;  %v18238_v26 = vcombine.high %v2196_v20, %v2212_v21  ;;  %v2228_v31 = vld [vmem:[%s19120_s5 + $0x3c68] sm:$0xff]  ;;  %v18237_v34 = vcombine.low %v2196_v20, %v2212_v21  ;;  %v2275_v39 = vld [vmem:[%s19120_s5 + $0x3de0] sm:$0xff]  ;;  %v373_v21 = vld [vmem:[%s19120_s5 + $0x270] sm:$0xff] }
 0x752   : > { %v18270_v36 = vcombine.high %v2228_v31, %v2244_v32  ;;  %v2260_v40 = vld [vmem:[%s19120_s5 + $0x3d68] sm:$0xff] }
 0x753   : > { %14745 = vmatpush1.bf16.msra.mxu0 %v18075_v38  ;;  %v15398_v56 = vcombine.low %v15390_v46, %v15397_v24  ;;  %14909 = vmatpush1.bf16.msra.mxu1 %v18077_v43  ;;  %v2259_v38 = vld [vmem:[%s19120_s5 + $0x3d60] sm:$0xff]  ;;  %v2276_v41 = vld [vmem:[%s19120_s5 + $0x3de8] sm:$0xff]  ;;  %v18267_v43 = vcombine.low %v2227_v28, %v2243_v29 }
 0x754   : > { %14746 = vmatprep.subr.bf16.mxu0 %v18108_v45  ;;  %14910 = vmatprep.subr.bf16.mxu1 %v18110_v49  ;;  %v18269_v45 = vcombine.low %v2228_v31, %v2244_v32  ;;  %v18300_v46 = vcombine.high %v2259_v38, %v2275_v39  ;;  %v18302_v48 = vcombine.high %v2260_v40, %v2276_v41  ;;  %v2291_v49 = vld [vmem:[%s19120_s5 + $0x3e60] sm:$0xff]  ;;  %v2308_v24 = vld [vmem:[%s19120_s5 + $0x3ee8] sm:$0xff]  ;;  %v405_v32 = vld [vmem:[%s19120_s5 + $0x370] sm:$0xff] }
 0x755   : > { %v15446_v1 = vadd.f32 %v15398_v56, %v292_v54  ;;  %v18299_v52 = vcombine.low %v2259_v38, %v2275_v39  ;;  %v18301_v53 = vcombine.low %v2260_v40, %v2276_v41  ;;  %v18332_v54 = vcombine.high %v2291_v49, %v2307_v50  ;;  %v2323_v56 = vld [vmem:[%s19120_s5 + $0x3f60] sm:$0xff]  ;;  %v437_v41 = vld [vmem:[%s19120_s5 + $0x470] sm:$0xff] }
 0x756   : > { %v18331_v63 = vcombine.low %v2291_v49, %v2307_v50  ;;  %v18333_v0 = vcombine.low %v2292_v51, %v2308_v24 }
 0x757   : > { %14747 = vmatpush1.bf16.msra.mxu0 %v18107_v55  ;;  %15454 = vst [vmem:[#allocation3 + $0x28] sm:$0xff] %v15446_v1  ;;  %14911 = vmatpush1.bf16.msra.mxu1 %v18109_v57  ;;  %v18334_v55 = vcombine.high %v2292_v51, %v2308_v24  ;;  %v2339_v57 = vld [vmem:[%s19120_s5 + $0x3fe0] sm:$0xff]  ;;  %v469_v51 = vld [vmem:[%s19120_s5 + $0x570] sm:$0xff] }
 0x758   : > { %14748 = vmatprep.subr.bf16.mxu0 %v18140_v58  ;;  %14912 = vmatprep.subr.bf16.mxu1 %v18142_v62  ;;  %v2324_v58 = vld [vmem:[%s19120_s5 + $0x3f68] sm:$0xff]  ;;  %v18364_v1 = vcombine.high %v2323_v56, %v2339_v57  ;;  %v485_v24 = vld [vmem:[%s19120_s5 + $0x5f0] sm:$0xff] }
 0x759   : > { %v2340_v62 = vld [vmem:[%s19120_s5 + $0x3fe8] sm:$0xff] }
 0x75a   : > { %v18366_v3 = vcombine.high %v2324_v58, %v2340_v62  ;;  %v18365_v9 = vcombine.low %v2324_v58, %v2340_v62  ;;  %v501_v58 = vld [vmem:[%s19120_s5 + $0x670] sm:$0xff] }
 0x75b   : > { %14749 = vmatpush1.bf16.msra.mxu0 %v18139_v5  ;;  %14913 = vmatpush1.bf16.msra.mxu1 %v18141_v6  ;;  %v325_v5 = vld [vmem:[%s19120_s5 + $0xf0] sm:$0xff]  ;;  %v310_v6 = vld [vmem:[%s19120_s5 + $0x78] sm:$0xff] }
 0x75c   : > { %14750 = vmatprep.subr.bf16.mxu0 %v18172_v7  ;;  %14914 = vmatprep.subr.bf16.mxu1 %v18174_v8  ;;  %v326_v7 = vld [vmem:[%s19120_s5 + $0xf8] sm:$0xff]  ;;  %v18363_v8 = vcombine.low %v2323_v56, %v2339_v57  ;;  %v16352_v10 = vcombine.high %v309_v4, %v325_v5  ;;  %v16512_v56 = vcombine.high %v469_v51, %v485_v24  ;;  %v517_v62 = vld [vmem:[%s19120_s5 + $0x6f0] sm:$0xff] }
 0x75d   : > { %v16354_v11 = vcombine.high %v310_v6, %v326_v7  ;;  %v16353_v18 = vcombine.low %v310_v6, %v326_v7  ;;  %v533_v6 = vld [vmem:[%s19120_s5 + $0x770] sm:$0xff] }
 0x75e   : > { %v549_v7 = vld [vmem:[%s19120_s5 + $0x7f0] sm:$0xff] }
 0x75f   : > { %14751 = vmatpush1.bf16.msra.mxu0 %v18171_v13  ;;  %14915 = vmatpush1.bf16.msra.mxu1 %v18173_v15  ;;  %v357_v13 = vld [vmem:[%s19120_s5 + $0x1f0] sm:$0xff]  ;;  %v342_v15 = vld [vmem:[%s19120_s5 + $0x178] sm:$0xff] }
 0x760   : > { %14752 = vmatprep.subr.bf16.mxu0 %v18204_v16  ;;  %14916 = vmatprep.subr.bf16.mxu1 %v18206_v17  ;;  %v358_v16 = vld [vmem:[%s19120_s5 + $0x1f8] sm:$0xff]  ;;  %v16351_v17 = vcombine.low %v309_v4, %v325_v5  ;;  %v16384_v19 = vcombine.high %v341_v12, %v357_v13  ;;  %v16544_v4 = vcombine.high %v501_v58, %v517_v62 }
 0x761   : > { %v16386_v20 = vcombine.high %v342_v15, %v358_v16  ;;  %v16385_v28 = vcombine.low %v342_v15, %v358_v16  ;;  %v565_v15 = vld [vmem:[%s19120_s5 + $0x870] sm:$0xff] }
 0x762   : > { %v581_v16 = vld [vmem:[%s19120_s5 + $0x8f0] sm:$0xff] }
 0x763   : > { %14753 = vmatpush1.bf16.msra.mxu0 %v18203_v22  ;;  %14917 = vmatpush1.bf16.msra.mxu1 %v18205_v23  ;;  %v389_v22 = vld [vmem:[%s19120_s5 + $0x2f0] sm:$0xff]  ;;  %v374_v23 = vld [vmem:[%s19120_s5 + $0x278] sm:$0xff] }
 0x764   : > { %14754 = vmatprep.subr.bf16.mxu0 %v18236_v25  ;;  %14918 = vmatprep.subr.bf16.mxu1 %v18238_v26  ;;  %v390_v25 = vld [vmem:[%s19120_s5 + $0x2f8] sm:$0xff]  ;;  %v16383_v26 = vcombine.low %v341_v12, %v357_v13  ;;  %v16416_v29 = vcombine.high %v373_v21, %v389_v22  ;;  %v16576_v12 = vcombine.high %v533_v6, %v549_v7 }
 0x765   : > { %v16418_v31 = vcombine.high %v374_v23, %v390_v25  ;;  %v16417_v38 = vcombine.low %v374_v23, %v390_v25  ;;  %v597_v23 = vld [vmem:[%s19120_s5 + $0x970] sm:$0xff] }
 0x766   : > { %v613_v25 = vld [vmem:[%s19120_s5 + $0x9f0] sm:$0xff] }
 0x767   : > { %14755 = vmatpush1.bf16.msra.mxu0 %v18235_v33  ;;  %14919 = vmatpush1.bf16.msra.mxu1 %v18237_v34  ;;  %v421_v33 = vld [vmem:[%s19120_s5 + $0x3f0] sm:$0xff]  ;;  %v406_v34 = vld [vmem:[%s19120_s5 + $0x378] sm:$0xff] }
 0x768   : > { %14756 = vmatprep.subr.bf16.mxu0 %v18268_v35  ;;  %14920 = vmatprep.subr.bf16.mxu1 %v18270_v36  ;;  %v422_v35 = vld [vmem:[%s19120_s5 + $0x3f8] sm:$0xff]  ;;  %v16415_v36 = vcombine.low %v373_v21, %v389_v22  ;;  %v16448_v39 = vcombine.high %v405_v32, %v421_v33  ;;  %v16608_v21 = vcombine.high %v565_v15, %v581_v16 }
 0x769   : > { %v16450_v40 = vcombine.high %v406_v34, %v422_v35 }
 0x76b   : > { %14757 = vmatpush1.bf16.msra.mxu0 %v18267_v43  ;;  %14921 = vmatpush1.bf16.msra.mxu1 %v18269_v45  ;;  %v453_v43 = vld [vmem:[%s19120_s5 + $0x4f0] sm:$0xff]  ;;  %v438_v45 = vld [vmem:[%s19120_s5 + $0x478] sm:$0xff] }
 0x76c   : > { %14758 = vmatprep.subr.bf16.mxu0 %v18300_v46  ;;  %14922 = vmatprep.subr.bf16.mxu1 %v18302_v48  ;;  %v454_v46 = vld [vmem:[%s19120_s5 + $0x4f8] sm:$0xff]  ;;  %v16447_v48 = vcombine.low %v405_v32, %v421_v33  ;;  %v16480_v49 = vcombine.high %v437_v41, %v453_v43  ;;  %v16640_v32 = vcombine.high %v597_v23, %v613_v25 }
 0x76d   : > { %v16482_v50 = vcombine.high %v438_v45, %v454_v46 }
 0x76f   : > { %14759 = vmatpush1.bf16.msra.mxu0 %v18299_v52  ;;  %14923 = vmatpush1.bf16.msra.mxu1 %v18301_v53  ;;  %v470_v52 = vld [vmem:[%s19120_s5 + $0x578] sm:$0xff] }
 0x770   : > { %14760 = vmatprep.subr.bf16.mxu0 %v18332_v54  ;;  %14924 = vmatprep.subr.bf16.mxu1 %v18334_v55  ;;  %v486_v53 = vld [vmem:[%s19120_s5 + $0x5f8] sm:$0xff]  ;;  %v16479_v54 = vcombine.low %v437_v41, %v453_v43  ;;  %v16481_v55 = vcombine.low %v438_v45, %v454_v46  ;;  %v661_v45 = vld [vmem:[%s19120_s5 + $0xb70] sm:$0xff] }
 0x771   : > { %v16514_v57 = vcombine.high %v470_v52, %v486_v53  ;;  %v677_v46 = vld [vmem:[%s19120_s5 + $0xbf0] sm:$0xff] }
 0x773   : > { %14761 = vmatpush1.bf16.msra.mxu0 %v18331_v63  ;;  %14925 = vmatpush1.bf16.msra.mxu1 %v18333_v0  ;;  %v502_v63 = vld [vmem:[%s19120_s5 + $0x678] sm:$0xff] }
 0x774   : > { %14762 = vmatprep.subr.bf16.mxu0 %v18364_v1  ;;  %14926 = vmatprep.subr.bf16.mxu1 %v18366_v3  ;;  %v518_v0 = vld [vmem:[%s19120_s5 + $0x6f8] sm:$0xff]  ;;  %v16511_v1 = vcombine.low %v469_v51, %v485_v24  ;;  %v16513_v3 = vcombine.low %v470_v52, %v486_v53  ;;  %v16704_v51 = vcombine.high %v661_v45, %v677_v46  ;;  %v693_v52 = vld [vmem:[%s19120_s5 + $0xc70] sm:$0xff] }
 0x775   : > { %v16546_v5 = vcombine.high %v502_v63, %v518_v0  ;;  %v709_v53 = vld [vmem:[%s19120_s5 + $0xcf0] sm:$0xff] }
 0x777   : > { %14763 = vmatpush1.bf16.msra.mxu0 %v18363_v8  ;;  %14927 = vmatpush1.bf16.msra.mxu1 %v18365_v9  ;;  %v534_v8 = vld [vmem:[%s19120_s5 + $0x778] sm:$0xff] }
 0x778   : > { %14937 = vmatprep.subr.bf16.mxu0 %v16352_v10  ;;  %15101 = vmatprep.subr.bf16.mxu1 %v16354_v11  ;;  %v550_v9 = vld [vmem:[%s19120_s5 + $0x7f8] sm:$0xff]  ;;  %v16543_v10 = vcombine.low %v501_v58, %v517_v62  ;;  %v16545_v11 = vcombine.low %v502_v63, %v518_v0  ;;  %v16736_v58 = vcombine.high %v693_v52, %v709_v53  ;;  %v725_v63 = vld [vmem:[%s19120_s5 + $0xd70] sm:$0xff] }
 0x779   : > { %v16578_v13 = vcombine.high %v534_v8, %v550_v9  ;;  %v741_v0 = vld [vmem:[%s19120_s5 + $0xdf0] sm:$0xff] }
 0x77a   : > { %14765 = vmatmul.mubr.bf16.vlgmr.msra.gmra.mrb[24].mxu0 %v19486_v42  ;;  %14929 = vmatmul.mubr.bf16.vlgmr.msra.gmra.mrb[24].mxu1 %v19486_v42 }
 0x77b   : > { %14938 = vmatpush1.bf16.msra.mxu0 %v16351_v17  ;;  %15102 = vmatpush1.bf16.msra.mxu1 %v16353_v18  ;;  %v566_v17 = vld [vmem:[%s19120_s5 + $0x878] sm:$0xff] }
 0x77c   : > { %14939 = vmatprep.subr.bf16.mxu0 %v16384_v19  ;;  %15103 = vmatprep.subr.bf16.mxu1 %v16386_v20  ;;  %v582_v18 = vld [vmem:[%s19120_s5 + $0x8f8] sm:$0xff]  ;;  %v16575_v19 = vcombine.low %v533_v6, %v549_v7  ;;  %v16577_v20 = vcombine.low %v534_v8, %v550_v9  ;;  %v16768_v6 = vcombine.high %v725_v63, %v741_v0  ;;  %v757_v8 = vld [vmem:[%s19120_s5 + $0xe70] sm:$0xff] }
 0x77d   : > { %14969 = vmatprep.mubr.bf16.mxu0 %v19217_v37  ;;  %15133 = vmatprep.mubr.bf16.mxu1 %v19217_v37  ;;  %v16449_v37 = vcombine.low %v406_v34, %v422_v35  ;;  %v16610_v22 = vcombine.high %v566_v17, %v582_v18  ;;  %v629_v34 = vld [vmem:[%s19120_s5 + $0xa70] sm:$0xff] }
 0x77e   : > { %v645_v35 = vld [vmem:[%s19120_s5 + $0xaf0] sm:$0xff] }
 0x77f   : > { %14940 = vmatpush1.bf16.msra.mxu0 %v16383_v26  ;;  %15104 = vmatpush1.bf16.msra.mxu1 %v16385_v28  ;;  %v598_v26 = vld [vmem:[%s19120_s5 + $0x978] sm:$0xff]  ;;  %v16672_v41 = vcombine.high %v629_v34, %v645_v35  ;;  %v773_v9 = vld [vmem:[%s19120_s5 + $0xef0] sm:$0xff] }
 0x780   : > { %14941 = vmatprep.subr.bf16.mxu0 %v16416_v29  ;;  %15105 = vmatprep.subr.bf16.mxu1 %v16418_v31  ;;  %v614_v28 = vld [vmem:[%s19120_s5 + $0x9f8] sm:$0xff]  ;;  %v16607_v29 = vcombine.low %v565_v15, %v581_v16  ;;  %v16609_v31 = vcombine.low %v566_v17, %v582_v18  ;;  %v16800_v15 = vcombine.high %v757_v8, %v773_v9  ;;  %v789_v17 = vld [vmem:[%s19120_s5 + $0xf70] sm:$0xff] }
 0x781   : > { %v16642_v33 = vcombine.high %v598_v26, %v614_v28  ;;  %v805_v18 = vld [vmem:[%s19120_s5 + $0xff0] sm:$0xff] }
 0x783   : > { %14942 = vmatpush1.bf16.msra.mxu0 %v16415_v36  ;;  %15106 = vmatpush1.bf16.msra.mxu1 %v16417_v38  ;;  %v630_v36 = vld [vmem:[%s19120_s5 + $0xa78] sm:$0xff] }
 0x784   : > { %14943 = vmatprep.subr.bf16.mxu0 %v16448_v39  ;;  %15107 = vmatprep.subr.bf16.mxu1 %v16450_v40  ;;  %v646_v38 = vld [vmem:[%s19120_s5 + $0xaf8] sm:$0xff]  ;;  %v16639_v39 = vcombine.low %v597_v23, %v613_v25  ;;  %v16641_v40 = vcombine.low %v598_v26, %v614_v28  ;;  %v16832_v23 = vcombine.high %v789_v17, %v805_v18  ;;  %v821_v26 = vld [vmem:[%s19120_s5 + $0x1070] sm:$0xff] }
 0x785   : > { %v16674_v43 = vcombine.high %v630_v36, %v646_v38  ;;  %v837_v28 = vld [vmem:[%s19120_s5 + $0x10f0] sm:$0xff] }
 0x787   : > { %14944 = vmatpush1.bf16.msra.mxu0 %v16447_v48  ;;  %15108 = vmatpush1.bf16.msra.mxu1 %v16449_v37  ;;  %v662_v48 = vld [vmem:[%s19120_s5 + $0xb78] sm:$0xff] }
 0x788   : > { %14945 = vmatprep.subr.bf16.mxu0 %v16480_v49  ;;  %15109 = vmatprep.subr.bf16.mxu1 %v16482_v50  ;;  %v678_v37 = vld [vmem:[%s19120_s5 + $0xbf8] sm:$0xff]  ;;  %v16671_v49 = vcombine.low %v629_v34, %v645_v35  ;;  %v16673_v50 = vcombine.low %v630_v36, %v646_v38  ;;  %v16864_v34 = vcombine.high %v821_v26, %v837_v28  ;;  %v853_v36 = vld [vmem:[%s19120_s5 + $0x1170] sm:$0xff] }
 0x789   : > { %v16706_v24 = vcombine.high %v662_v48, %v678_v37  ;;  %v869_v38 = vld [vmem:[%s19120_s5 + $0x11f0] sm:$0xff] }
 0x78b   : > { %14946 = vmatpush1.bf16.msra.mxu0 %v16479_v54  ;;  %15110 = vmatpush1.bf16.msra.mxu1 %v16481_v55  ;;  %v694_v54 = vld [vmem:[%s19120_s5 + $0xc78] sm:$0xff] }
 0x78c   : > { %14947 = vmatprep.subr.bf16.mxu0 %v16512_v56  ;;  %15111 = vmatprep.subr.bf16.mxu1 %v16514_v57  ;;  %v710_v55 = vld [vmem:[%s19120_s5 + $0xcf8] sm:$0xff]  ;;  %v16703_v56 = vcombine.low %v661_v45, %v677_v46  ;;  %v16705_v57 = vcombine.low %v662_v48, %v678_v37  ;;  %v16896_v45 = vcombine.high %v853_v36, %v869_v38  ;;  %v885_v48 = vld [vmem:[%s19120_s5 + $0x1270] sm:$0xff] }
 0x78d   : > { %v16738_v62 = vcombine.high %v694_v54, %v710_v55  ;;  %v901_v37 = vld [vmem:[%s19120_s5 + $0x12f0] sm:$0xff] }
 0x78f   : > { %14948 = vmatpush1.bf16.msra.mxu0 %v16511_v1  ;;  %15112 = vmatpush1.bf16.msra.mxu1 %v16513_v3  ;;  %v726_v1 = vld [vmem:[%s19120_s5 + $0xd78] sm:$0xff] }
 0x790   : > { %14949 = vmatprep.subr.bf16.mxu0 %v16544_v4  ;;  %15113 = vmatprep.subr.bf16.mxu1 %v16546_v5  ;;  %v742_v3 = vld [vmem:[%s19120_s5 + $0xdf8] sm:$0xff]  ;;  %v16735_v4 = vcombine.low %v693_v52, %v709_v53  ;;  %v16737_v5 = vcombine.low %v694_v54, %v710_v55  ;;  %v16928_v52 = vcombine.high %v885_v48, %v901_v37  ;;  %v917_v54 = vld [vmem:[%s19120_s5 + $0x1370] sm:$0xff] }
 0x791   : > { %v16770_v7 = vcombine.high %v726_v1, %v742_v3  ;;  %v933_v55 = vld [vmem:[%s19120_s5 + $0x13f0] sm:$0xff] }
 0x793   : > { %14950 = vmatpush1.bf16.msra.mxu0 %v16543_v10  ;;  %15114 = vmatpush1.bf16.msra.mxu1 %v16545_v11  ;;  %v758_v10 = vld [vmem:[%s19120_s5 + $0xe78] sm:$0xff] }
 0x794   : > { %14951 = vmatprep.subr.bf16.mxu0 %v16576_v12  ;;  %15115 = vmatprep.subr.bf16.mxu1 %v16578_v13  ;;  %v774_v11 = vld [vmem:[%s19120_s5 + $0xef8] sm:$0xff]  ;;  %v16767_v12 = vcombine.low %v725_v63, %v741_v0  ;;  %v16769_v13 = vcombine.low %v726_v1, %v742_v3  ;;  %v949_v0 = vld [vmem:[%s19120_s5 + $0x1470] sm:$0xff] }
 0x795   : > { %v16802_v16 = vcombine.high %v758_v10, %v774_v11  ;;  %v965_v1 = vld [vmem:[%s19120_s5 + $0x14f0] sm:$0xff]  ;;  %v950_v3 = vld [vmem:[%s19120_s5 + $0x1478] sm:$0xff] }
 0x797   : > { %14952 = vmatpush1.bf16.msra.mxu0 %v16575_v19  ;;  %15116 = vmatpush1.bf16.msra.mxu1 %v16577_v20  ;;  %v790_v19 = vld [vmem:[%s19120_s5 + $0xf78] sm:$0xff] }
 0x798   : > { %14953 = vmatprep.subr.bf16.mxu0 %v16608_v21  ;;  %15117 = vmatprep.subr.bf16.mxu1 %v16610_v22  ;;  %v806_v20 = vld [vmem:[%s19120_s5 + $0xff8] sm:$0xff]  ;;  %v16799_v21 = vcombine.low %v757_v8, %v773_v9  ;;  %v16801_v22 = vcombine.low %v758_v10, %v774_v11  ;;  %v981_v8 = vld [vmem:[%s19120_s5 + $0x1570] sm:$0xff] }
 0x799   : > { %v16834_v25 = vcombine.high %v790_v19, %v806_v20  ;;  %v997_v9 = vld [vmem:[%s19120_s5 + $0x15f0] sm:$0xff]  ;;  %v982_v10 = vld [vmem:[%s19120_s5 + $0x1578] sm:$0xff] }
 0x79a   : > { %v998_v11 = vld [vmem:[%s19120_s5 + $0x15f8] sm:$0xff] }
 0x79b   : > { %14954 = vmatpush1.bf16.msra.mxu0 %v16607_v29  ;;  %15118 = vmatpush1.bf16.msra.mxu1 %v16609_v31  ;;  %v822_v29 = vld [vmem:[%s19120_s5 + $0x1078] sm:$0xff] }
 0x79c   : > { %14955 = vmatprep.subr.bf16.mxu0 %v16640_v32  ;;  %15119 = vmatprep.subr.bf16.mxu1 %v16642_v33  ;;  %v838_v31 = vld [vmem:[%s19120_s5 + $0x10f8] sm:$0xff]  ;;  %v16831_v32 = vcombine.low %v789_v17, %v805_v18  ;;  %v16833_v33 = vcombine.low %v790_v19, %v806_v20  ;;  %v1013_v17 = vld [vmem:[%s19120_s5 + $0x1670] sm:$0xff] }
 0x79d   : > { %v16866_v35 = vcombine.high %v822_v29, %v838_v31  ;;  %v1029_v18 = vld [vmem:[%s19120_s5 + $0x16f0] sm:$0xff]  ;;  %v1014_v19 = vld [vmem:[%s19120_s5 + $0x1678] sm:$0xff] }
 0x79e   : > { %v1030_v20 = vld [vmem:[%s19120_s5 + $0x16f8] sm:$0xff] }
 0x79f   : > { %14956 = vmatpush1.bf16.msra.mxu0 %v16639_v39  ;;  %15120 = vmatpush1.bf16.msra.mxu1 %v16641_v40  ;;  %v854_v39 = vld [vmem:[%s19120_s5 + $0x1178] sm:$0xff] }
 0x7a0   : > { %14957 = vmatprep.subr.bf16.mxu0 %v16672_v41  ;;  %15121 = vmatprep.subr.bf16.mxu1 %v16674_v43  ;;  %v870_v40 = vld [vmem:[%s19120_s5 + $0x11f8] sm:$0xff]  ;;  %v16863_v41 = vcombine.low %v821_v26, %v837_v28  ;;  %v16865_v43 = vcombine.low %v822_v29, %v838_v31  ;;  %v1045_v26 = vld [vmem:[%s19120_s5 + $0x1770] sm:$0xff] }
 0x7a1   : > { %v16898_v46 = vcombine.high %v854_v39, %v870_v40  ;;  %v1061_v28 = vld [vmem:[%s19120_s5 + $0x17f0] sm:$0xff]  ;;  %v1046_v29 = vld [vmem:[%s19120_s5 + $0x1778] sm:$0xff] }
 0x7a2   : > { %v1062_v31 = vld [vmem:[%s19120_s5 + $0x17f8] sm:$0xff] }
 0x7a3   : > { %14958 = vmatpush1.bf16.msra.mxu0 %v16671_v49  ;;  %15122 = vmatpush1.bf16.msra.mxu1 %v16673_v50  ;;  %v886_v49 = vld [vmem:[%s19120_s5 + $0x1278] sm:$0xff] }
 0x7a4   : > { %14959 = vmatprep.subr.bf16.mxu0 %v16704_v51  ;;  %15123 = vmatprep.subr.bf16.mxu1 %v16706_v24  ;;  %v902_v50 = vld [vmem:[%s19120_s5 + $0x12f8] sm:$0xff]  ;;  %v16895_v51 = vcombine.low %v853_v36, %v869_v38  ;;  %v16897_v24 = vcombine.low %v854_v39, %v870_v40  ;;  %v1077_v36 = vld [vmem:[%s19120_s5 + $0x1870] sm:$0xff] }
 0x7a5   : > { %v16930_v53 = vcombine.high %v886_v49, %v902_v50  ;;  %v1093_v38 = vld [vmem:[%s19120_s5 + $0x18f0] sm:$0xff]  ;;  %v1078_v39 = vld [vmem:[%s19120_s5 + $0x1878] sm:$0xff] }
 0x7a6   : > { %v1094_v40 = vld [vmem:[%s19120_s5 + $0x18f8] sm:$0xff] }
 0x7a7   : > { %14960 = vmatpush1.bf16.msra.mxu0 %v16703_v56  ;;  %15124 = vmatpush1.bf16.msra.mxu1 %v16705_v57  ;;  %v918_v56 = vld [vmem:[%s19120_s5 + $0x1378] sm:$0xff] }
 0x7a8   : > { %14961 = vmatprep.subr.bf16.mxu0 %v16736_v58  ;;  %15125 = vmatprep.subr.bf16.mxu1 %v16738_v62  ;;  %v934_v57 = vld [vmem:[%s19120_s5 + $0x13f8] sm:$0xff]  ;;  %v16929_v58 = vcombine.low %v886_v49, %v902_v50  ;;  %v16960_v62 = vcombine.high %v917_v54, %v933_v55 }
 0x7a9   : > { %v16962_v63 = vcombine.high %v918_v56, %v934_v57  ;;  %v1110_v49 = vld [vmem:[%s19120_s5 + $0x1978] sm:$0xff] }
 0x7aa   : > { %v1126_v50 = vld [vmem:[%s19120_s5 + $0x19f8] sm:$0xff] }
 0x7ab   : > { %14962 = vmatpush1.bf16.msra.mxu0 %v16735_v4  ;;  %15126 = vmatpush1.bf16.msra.mxu1 %v16737_v5  ;;  %v966_v4 = vld [vmem:[%s19120_s5 + $0x14f8] sm:$0xff]  ;;  %v16959_v5 = vcombine.low %v917_v54, %v933_v55  ;;  %v1141_v54 = vld [vmem:[%s19120_s5 + $0x1a70] sm:$0xff] }
 0x7ac   : > { %14963 = vmatprep.subr.bf16.mxu0 %v16768_v6  ;;  %15127 = vmatprep.subr.bf16.mxu1 %v16770_v7  ;;  %v16992_v6 = vcombine.high %v949_v0, %v965_v1  ;;  %v16994_v7 = vcombine.high %v950_v3, %v966_v4  ;;  %v1157_v55 = vld [vmem:[%s19120_s5 + $0x1af0] sm:$0xff] }
 0x7af   : > { %14964 = vmatpush1.bf16.msra.mxu0 %v16767_v12  ;;  %15128 = vmatpush1.bf16.msra.mxu1 %v16769_v13  ;;  %v16991_v12 = vcombine.low %v949_v0, %v965_v1  ;;  %v16993_v13 = vcombine.low %v950_v3, %v966_v4  ;;  %v1173_v0 = vld [vmem:[%s19120_s5 + $0x1b70] sm:$0xff]  ;;  %v1174_v3 = vld [vmem:[%s19120_s5 + $0x1b78] sm:$0xff] }
 0x7b0   : > { %14965 = vmatprep.subr.bf16.mxu0 %v16800_v15  ;;  %15129 = vmatprep.subr.bf16.mxu1 %v16802_v16  ;;  %v17024_v15 = vcombine.high %v981_v8, %v997_v9  ;;  %v17026_v16 = vcombine.high %v982_v10, %v998_v11  ;;  %v1189_v1 = vld [vmem:[%s19120_s5 + $0x1bf0] sm:$0xff]  ;;  %v1190_v4 = vld [vmem:[%s19120_s5 + $0x1bf8] sm:$0xff] }
 0x7b3   : > { %14966 = vmatpush1.bf16.msra.mxu0 %v16799_v21  ;;  %15130 = vmatpush1.bf16.msra.mxu1 %v16801_v22  ;;  %v17023_v21 = vcombine.low %v981_v8, %v997_v9  ;;  %v17025_v22 = vcombine.low %v982_v10, %v998_v11  ;;  %v1205_v8 = vld [vmem:[%s19120_s5 + $0x1c70] sm:$0xff]  ;;  %v1206_v10 = vld [vmem:[%s19120_s5 + $0x1c78] sm:$0xff] }
 0x7b4   : > { %14967 = vmatprep.subr.bf16.mxu0 %v16832_v23  ;;  %15131 = vmatprep.subr.bf16.mxu1 %v16834_v25  ;;  %v17056_v23 = vcombine.high %v1013_v17, %v1029_v18  ;;  %v17058_v25 = vcombine.high %v1014_v19, %v1030_v20  ;;  %v1221_v9 = vld [vmem:[%s19120_s5 + $0x1cf0] sm:$0xff]  ;;  %v1222_v11 = vld [vmem:[%s19120_s5 + $0x1cf8] sm:$0xff] }
 0x7b7   : > { %14968 = vmatpush1.bf16.msra.mxu0 %v16831_v32  ;;  %15132 = vmatpush1.bf16.msra.mxu1 %v16833_v33  ;;  %v17055_v32 = vcombine.low %v1013_v17, %v1029_v18  ;;  %v17057_v33 = vcombine.low %v1014_v19, %v1030_v20  ;;  %v1237_v17 = vld [vmem:[%s19120_s5 + $0x1d70] sm:$0xff]  ;;  %v1238_v19 = vld [vmem:[%s19120_s5 + $0x1d78] sm:$0xff] }
 0x7b8   : > { %14978 = vmatprep.subr.bf16.mxu0 %v16864_v34  ;;  %15142 = vmatprep.subr.bf16.mxu1 %v16866_v35  ;;  %v17088_v34 = vcombine.high %v1045_v26, %v1061_v28  ;;  %v17090_v35 = vcombine.high %v1046_v29, %v1062_v31  ;;  %v1253_v18 = vld [vmem:[%s19120_s5 + $0x1df0] sm:$0xff]  ;;  %v1254_v20 = vld [vmem:[%s19120_s5 + $0x1df8] sm:$0xff] }
 0x7ba   : > { %14970 = vmatmul.mubr.bf16.vlgmr.msra.gmra.mrb[28].mxu0 %v19259_v47  ;;  %15134 = vmatmul.mubr.bf16.vlgmr.msra.gmra.mrb[28].mxu1 %v19259_v47  ;;  %v16927_v47 = vcombine.low %v885_v48, %v901_v37  ;;  %v1109_v48 = vld [vmem:[%s19120_s5 + $0x1970] sm:$0xff] }
 0x7bb   : > { %14979 = vmatpush1.bf16.msra.mxu0 %v16863_v41  ;;  %15143 = vmatpush1.bf16.msra.mxu1 %v16865_v43  ;;  %v17087_v41 = vcombine.low %v1045_v26, %v1061_v28  ;;  %v17089_v43 = vcombine.low %v1046_v29, %v1062_v31  ;;  %v1125_v37 = vld [vmem:[%s19120_s5 + $0x19f0] sm:$0xff]  ;;  %v1270_v29 = vld [vmem:[%s19120_s5 + $0x1e78] sm:$0xff] }
 0x7bc   : > { %14980 = vmatprep.subr.bf16.mxu0 %v16896_v45  ;;  %15144 = vmatprep.subr.bf16.mxu1 %v16898_v46  ;;  %v17120_v45 = vcombine.high %v1077_v36, %v1093_v38  ;;  %v17122_v46 = vcombine.high %v1078_v39, %v1094_v40  ;;  %v1269_v26 = vld [vmem:[%s19120_s5 + $0x1e70] sm:$0xff]  ;;  %v1286_v31 = vld [vmem:[%s19120_s5 + $0x1ef8] sm:$0xff] }
 0x7bd   : > { %15010 = vmatprep.mubr.bf16.mxu0 %v19268_v27  ;;  %15174 = vmatprep.mubr.bf16.mxu1 %v19268_v27  ;;  %v16961_v27 = vcombine.low %v918_v56, %v934_v57  ;;  %v1142_v56 = vld [vmem:[%s19120_s5 + $0x1a78] sm:$0xff]  ;;  %v1285_v28 = vld [vmem:[%s19120_s5 + $0x1ef0] sm:$0xff] }
 0x7be   : > { %v1158_v57 = vld [vmem:[%s19120_s5 + $0x1af8] sm:$0xff] }
 0x7bf   : > { %14981 = vmatpush1.bf16.msra.mxu0 %v16895_v51  ;;  %15145 = vmatpush1.bf16.msra.mxu1 %v16897_v24  ;;  %v17119_v51 = vcombine.low %v1077_v36, %v1093_v38  ;;  %v17121_v24 = vcombine.low %v1078_v39, %v1094_v40  ;;  %v1301_v36 = vld [vmem:[%s19120_s5 + $0x1f70] sm:$0xff]  ;;  %v1302_v39 = vld [vmem:[%s19120_s5 + $0x1f78] sm:$0xff] }
 0x7c0   : > { %14982 = vmatprep.subr.bf16.mxu0 %v16928_v52  ;;  %15146 = vmatprep.subr.bf16.mxu1 %v16930_v53  ;;  %v17152_v52 = vcombine.high %v1109_v48, %v1125_v37  ;;  %v17154_v53 = vcombine.high %v1110_v49, %v1126_v50  ;;  %v1317_v38 = vld [vmem:[%s19120_s5 + $0x1ff0] sm:$0xff]  ;;  %v1318_v40 = vld [vmem:[%s19120_s5 + $0x1ff8] sm:$0xff] }
 0x7c3   : > { %14983 = vmatpush1.bf16.msra.mxu0 %v16927_v47  ;;  %15147 = vmatpush1.bf16.msra.mxu1 %v16929_v58  ;;  %v17151_v47 = vcombine.low %v1109_v48, %v1125_v37  ;;  %v17153_v58 = vcombine.low %v1110_v49, %v1126_v50  ;;  %v1333_v48 = vld [vmem:[%s19120_s5 + $0x2070] sm:$0xff]  ;;  %v1334_v49 = vld [vmem:[%s19120_s5 + $0x2078] sm:$0xff] }
 0x7c4   : > { %14984 = vmatprep.subr.bf16.mxu0 %v16960_v62  ;;  %15148 = vmatprep.subr.bf16.mxu1 %v16962_v63  ;;  %v17184_v62 = vcombine.high %v1141_v54, %v1157_v55  ;;  %v17186_v63 = vcombine.high %v1142_v56, %v1158_v57  ;;  %v1349_v37 = vld [vmem:[%s19120_s5 + $0x20f0] sm:$0xff]  ;;  %v1350_v50 = vld [vmem:[%s19120_s5 + $0x20f8] sm:$0xff] }
 0x7c7   : > { %14985 = vmatpush1.bf16.msra.mxu0 %v16959_v5  ;;  %15149 = vmatpush1.bf16.msra.mxu1 %v16961_v27  ;;  %v17183_v5 = vcombine.low %v1141_v54, %v1157_v55  ;;  %v17185_v27 = vcombine.low %v1142_v56, %v1158_v57  ;;  %v1365_v54 = vld [vmem:[%s19120_s5 + $0x2170] sm:$0xff]  ;;  %v1366_v56 = vld [vmem:[%s19120_s5 + $0x2178] sm:$0xff] }
 0x7c8   : > { %14986 = vmatprep.subr.bf16.mxu0 %v16992_v6  ;;  %15150 = vmatprep.subr.bf16.mxu1 %v16994_v7  ;;  %v17216_v6 = vcombine.high %v1173_v0, %v1189_v1  ;;  %v17218_v7 = vcombine.high %v1174_v3, %v1190_v4  ;;  %v1381_v55 = vld [vmem:[%s19120_s5 + $0x21f0] sm:$0xff]  ;;  %v1382_v57 = vld [vmem:[%s19120_s5 + $0x21f8] sm:$0xff] }
 0x7cb   : > { %14987 = vmatpush1.bf16.msra.mxu0 %v16991_v12  ;;  %15151 = vmatpush1.bf16.msra.mxu1 %v16993_v13  ;;  %v17215_v12 = vcombine.low %v1173_v0, %v1189_v1  ;;  %v17217_v13 = vcombine.low %v1174_v3, %v1190_v4  ;;  %v1397_v0 = vld [vmem:[%s19120_s5 + $0x2270] sm:$0xff]  ;;  %v1398_v3 = vld [vmem:[%s19120_s5 + $0x2278] sm:$0xff] }
 0x7cc   : > { %14988 = vmatprep.subr.bf16.mxu0 %v17024_v15  ;;  %15152 = vmatprep.subr.bf16.mxu1 %v17026_v16  ;;  %v17248_v15 = vcombine.high %v1205_v8, %v1221_v9  ;;  %v17250_v16 = vcombine.high %v1206_v10, %v1222_v11  ;;  %v1413_v1 = vld [vmem:[%s19120_s5 + $0x22f0] sm:$0xff]  ;;  %v1414_v4 = vld [vmem:[%s19120_s5 + $0x22f8] sm:$0xff] }
 0x7cf   : > { %14989 = vmatpush1.bf16.msra.mxu0 %v17023_v21  ;;  %15153 = vmatpush1.bf16.msra.mxu1 %v17025_v22  ;;  %v17247_v21 = vcombine.low %v1205_v8, %v1221_v9  ;;  %v17249_v22 = vcombine.low %v1206_v10, %v1222_v11  ;;  %v1429_v8 = vld [vmem:[%s19120_s5 + $0x2370] sm:$0xff]  ;;  %v1430_v10 = vld [vmem:[%s19120_s5 + $0x2378] sm:$0xff] }
 0x7d0   : > { %14990 = vmatprep.subr.bf16.mxu0 %v17056_v23  ;;  %15154 = vmatprep.subr.bf16.mxu1 %v17058_v25  ;;  %v17280_v23 = vcombine.high %v1237_v17, %v1253_v18  ;;  %v17282_v25 = vcombine.high %v1238_v19, %v1254_v20  ;;  %v1445_v9 = vld [vmem:[%s19120_s5 + $0x23f0] sm:$0xff]  ;;  %v1446_v11 = vld [vmem:[%s19120_s5 + $0x23f8] sm:$0xff] }
 0x7d3   : > { %14991 = vmatpush1.bf16.msra.mxu0 %v17055_v32  ;;  %15155 = vmatpush1.bf16.msra.mxu1 %v17057_v33  ;;  %v17279_v32 = vcombine.low %v1237_v17, %v1253_v18  ;;  %v17281_v33 = vcombine.low %v1238_v19, %v1254_v20  ;;  %v1477_v17 = vld [vmem:[%s19120_s5 + $0x24f0] sm:$0xff]  ;;  %v1462_v18 = vld [vmem:[%s19120_s5 + $0x2478] sm:$0xff]  ;;  %v17471_v20 = vcombine.low %v1429_v8, %v1445_v9 }
 0x7d4   : > { %14992 = vmatprep.subr.bf16.mxu0 %v17088_v34  ;;  %15156 = vmatprep.subr.bf16.mxu1 %v17090_v35  ;;  %v17312_v34 = vcombine.high %v1269_v26, %v1285_v28  ;;  %v17314_v35 = vcombine.high %v1270_v29, %v1286_v31  ;;  %v1478_v19 = vld [vmem:[%s19120_s5 + $0x24f8] sm:$0xff] }
 0x7d7   : > { %14993 = vmatpush1.bf16.msra.mxu0 %v17087_v41  ;;  %15157 = vmatpush1.bf16.msra.mxu1 %v17089_v43  ;;  %v17311_v41 = vcombine.low %v1269_v26, %v1285_v28  ;;  %v17313_v43 = vcombine.low %v1270_v29, %v1286_v31  ;;  %v1494_v26 = vld [vmem:[%s19120_s5 + $0x2578] sm:$0xff]  ;;  %v17505_v31 = vcombine.low %v1462_v18, %v1478_v19 }
 0x7d8   : > { %14994 = vmatprep.subr.bf16.mxu0 %v17120_v45  ;;  %15158 = vmatprep.subr.bf16.mxu1 %v17122_v46  ;;  %v17344_v45 = vcombine.high %v1301_v36, %v1317_v38  ;;  %v17346_v46 = vcombine.high %v1302_v39, %v1318_v40  ;;  %v1510_v28 = vld [vmem:[%s19120_s5 + $0x25f8] sm:$0xff] }
 0x7db   : > { %14995 = vmatpush1.bf16.msra.mxu0 %v17119_v51  ;;  %15159 = vmatpush1.bf16.msra.mxu1 %v17121_v24  ;;  %v17343_v51 = vcombine.low %v1301_v36, %v1317_v38  ;;  %v17345_v24 = vcombine.low %v1302_v39, %v1318_v40  ;;  %v1526_v36 = vld [vmem:[%s19120_s5 + $0x2678] sm:$0xff]  ;;  %v17537_v40 = vcombine.low %v1494_v26, %v1510_v28 }
 0x7dc   : > { %14996 = vmatprep.subr.bf16.mxu0 %v17152_v52  ;;  %15160 = vmatprep.subr.bf16.mxu1 %v17154_v53  ;;  %v17376_v52 = vcombine.high %v1333_v48, %v1349_v37  ;;  %v17378_v53 = vcombine.high %v1334_v49, %v1350_v50  ;;  %v1542_v38 = vld [vmem:[%s19120_s5 + $0x26f8] sm:$0xff] }
 0x7df   : > { %14997 = vmatpush1.bf16.msra.mxu0 %v17151_v47  ;;  %15161 = vmatpush1.bf16.msra.mxu1 %v17153_v58  ;;  %v17375_v47 = vcombine.low %v1333_v48, %v1349_v37  ;;  %v17377_v58 = vcombine.low %v1334_v49, %v1350_v50  ;;  %v1558_v48 = vld [vmem:[%s19120_s5 + $0x2778] sm:$0xff]  ;;  %v17569_v50 = vcombine.low %v1526_v36, %v1542_v38 }
 0x7e0   : > { %14998 = vmatprep.subr.bf16.mxu0 %v17184_v62  ;;  %15162 = vmatprep.subr.bf16.mxu1 %v17186_v63  ;;  %v17408_v62 = vcombine.high %v1365_v54, %v1381_v55  ;;  %v17410_v63 = vcombine.high %v1366_v56, %v1382_v57  ;;  %v1574_v37 = vld [vmem:[%s19120_s5 + $0x27f8] sm:$0xff] }
 0x7e3   : > { %14999 = vmatpush1.bf16.msra.mxu0 %v17183_v5  ;;  %15163 = vmatpush1.bf16.msra.mxu1 %v17185_v27  ;;  %v17407_v5 = vcombine.low %v1365_v54, %v1381_v55  ;;  %v17409_v27 = vcombine.low %v1366_v56, %v1382_v57  ;;  %v1590_v54 = vld [vmem:[%s19120_s5 + $0x2878] sm:$0xff]  ;;  %v17601_v57 = vcombine.low %v1558_v48, %v1574_v37 }
 0x7e4   : > { %15000 = vmatprep.subr.bf16.mxu0 %v17216_v6  ;;  %15164 = vmatprep.subr.bf16.mxu1 %v17218_v7  ;;  %v17440_v6 = vcombine.high %v1397_v0, %v1413_v1  ;;  %v17442_v7 = vcombine.high %v1398_v3, %v1414_v4  ;;  %v1606_v55 = vld [vmem:[%s19120_s5 + $0x28f8] sm:$0xff] }
 0x7e7   : > { %15001 = vmatpush1.bf16.msra.mxu0 %v17215_v12  ;;  %15165 = vmatpush1.bf16.msra.mxu1 %v17217_v13  ;;  %v17441_v12 = vcombine.low %v1398_v3, %v1414_v4  ;;  %v17472_v13 = vcombine.high %v1429_v8, %v1445_v9  ;;  %v17633_v4 = vcombine.low %v1590_v54, %v1606_v55  ;;  %v1654_v8 = vld [vmem:[%s19120_s5 + $0x2a78] sm:$0xff] }
 0x7e8   : > { %15002 = vmatprep.subr.bf16.mxu0 %v17248_v15  ;;  %15166 = vmatprep.subr.bf16.mxu1 %v17250_v16  ;;  %v17474_v15 = vcombine.high %v1430_v10, %v1446_v11  ;;  %v1461_v16 = vld [vmem:[%s19120_s5 + $0x2470] sm:$0xff]  ;;  %v1670_v9 = vld [vmem:[%s19120_s5 + $0x2af8] sm:$0xff] }
 0x7e9   : > { %v17503_v29 = vcombine.low %v1461_v16, %v1477_v17 }
 0x7eb   : > { %15003 = vmatpush1.bf16.msra.mxu0 %v17247_v21  ;;  %15167 = vmatpush1.bf16.msra.mxu1 %v17249_v22  ;;  %v17504_v21 = vcombine.high %v1461_v16, %v1477_v17  ;;  %v17506_v22 = vcombine.high %v1462_v18, %v1478_v19  ;;  %v1686_v16 = vld [vmem:[%s19120_s5 + $0x2b78] sm:$0xff]  ;;  %v17697_v19 = vcombine.low %v1654_v8, %v1670_v9 }
 0x7ec   : > { %15004 = vmatprep.subr.bf16.mxu0 %v17280_v23  ;;  %15168 = vmatprep.subr.bf16.mxu1 %v17282_v25  ;;  %v1493_v23 = vld [vmem:[%s19120_s5 + $0x2570] sm:$0xff]  ;;  %v1702_v17 = vld [vmem:[%s19120_s5 + $0x2bf8] sm:$0xff] }
 0x7ed   : > { %v1509_v25 = vld [vmem:[%s19120_s5 + $0x25f0] sm:$0xff] }
 0x7ee   : > { %v17535_v39 = vcombine.low %v1493_v23, %v1509_v25 }
 0x7ef   : > { %15005 = vmatpush1.bf16.msra.mxu0 %v17279_v32  ;;  %15169 = vmatpush1.bf16.msra.mxu1 %v17281_v33  ;;  %v17536_v32 = vcombine.high %v1493_v23, %v1509_v25  ;;  %v17538_v33 = vcombine.high %v1494_v26, %v1510_v28  ;;  %v1718_v23 = vld [vmem:[%s19120_s5 + $0x2c78] sm:$0xff]  ;;  %v17729_v28 = vcombine.low %v1686_v16, %v1702_v17 }
 0x7f0   : > { %15006 = vmatprep.subr.bf16.mxu0 %v17312_v34  ;;  %15170 = vmatprep.subr.bf16.mxu1 %v17314_v35  ;;  %v1525_v34 = vld [vmem:[%s19120_s5 + $0x2670] sm:$0xff]  ;;  %v1734_v25 = vld [vmem:[%s19120_s5 + $0x2cf8] sm:$0xff] }
 0x7f1   : > { %v1541_v35 = vld [vmem:[%s19120_s5 + $0x26f0] sm:$0xff] }
 0x7f2   : > { %v17567_v49 = vcombine.low %v1525_v34, %v1541_v35 }
 0x7f3   : > { %15007 = vmatpush1.bf16.msra.mxu0 %v17311_v41  ;;  %15171 = vmatpush1.bf16.msra.mxu1 %v17313_v43  ;;  %v17568_v41 = vcombine.high %v1525_v34, %v1541_v35  ;;  %v17570_v43 = vcombine.high %v1526_v36, %v1542_v38  ;;  %v1750_v34 = vld [vmem:[%s19120_s5 + $0x2d78] sm:$0xff]  ;;  %v17761_v38 = vcombine.low %v1718_v23, %v1734_v25 }
 0x7f4   : > { %15008 = vmatprep.subr.bf16.mxu0 %v17344_v45  ;;  %15172 = vmatprep.subr.bf16.mxu1 %v17346_v46  ;;  %v1557_v45 = vld [vmem:[%s19120_s5 + $0x2770] sm:$0xff]  ;;  %v1766_v35 = vld [vmem:[%s19120_s5 + $0x2df8] sm:$0xff] }
 0x7f5   : > { %v1573_v46 = vld [vmem:[%s19120_s5 + $0x27f0] sm:$0xff] }
 0x7f6   : > { %v17599_v56 = vcombine.low %v1557_v45, %v1573_v46 }
 0x7f7   : > { %15009 = vmatpush1.bf16.msra.mxu0 %v17343_v51  ;;  %15173 = vmatpush1.bf16.msra.mxu1 %v17345_v24  ;;  %v17600_v51 = vcombine.high %v1557_v45, %v1573_v46  ;;  %v17602_v24 = vcombine.high %v1558_v48, %v1574_v37  ;;  %v1782_v45 = vld [vmem:[%s19120_s5 + $0x2e78] sm:$0xff]  ;;  %v17793_v37 = vcombine.low %v1750_v34, %v1766_v35 }
 0x7f8   : > { %15019 = vmatprep.subr.bf16.mxu0 %v17376_v52  ;;  %15183 = vmatprep.subr.bf16.mxu1 %v17378_v53  ;;  %v1589_v52 = vld [vmem:[%s19120_s5 + $0x2870] sm:$0xff]  ;;  %v1798_v46 = vld [vmem:[%s19120_s5 + $0x2ef8] sm:$0xff] }
 0x7f9   : > { %v1605_v53 = vld [vmem:[%s19120_s5 + $0x28f0] sm:$0xff] }
 0x7fa   : > { %15011 = vmatmul.mubr.bf16.vlgmr.msra.gmra.mrb[28].mxu0 %v19342_v2  ;;  %15175 = vmatmul.mubr.bf16.vlgmr.msra.gmra.mrb[28].mxu1 %v19342_v2  ;;  %v17439_v2 = vcombine.low %v1397_v0, %v1413_v1  ;;  %v1622_v0 = vld [vmem:[%s19120_s5 + $0x2978] sm:$0xff]  ;;  %v17631_v3 = vcombine.low %v1589_v52, %v1605_v53 }
 0x7fb   : > { %15020 = vmatpush1.bf16.msra.mxu0 %v17375_v47  ;;  %15184 = vmatpush1.bf16.msra.mxu1 %v17377_v58  ;;  %v17632_v47 = vcombine.high %v1589_v52, %v1605_v53  ;;  %v17634_v58 = vcombine.high %v1590_v54, %v1606_v55  ;;  %v1638_v1 = vld [vmem:[%s19120_s5 + $0x29f8] sm:$0xff]  ;;  %v17825_v55 = vcombine.low %v1782_v45, %v1798_v46 }
 0x7fc   : > { %15021 = vmatprep.subr.bf16.mxu0 %v17408_v62  ;;  %15185 = vmatprep.subr.bf16.mxu1 %v17410_v63  ;;  %v1621_v62 = vld [vmem:[%s19120_s5 + $0x2970] sm:$0xff]  ;;  %v1814_v52 = vld [vmem:[%s19120_s5 + $0x2f78] sm:$0xff] }
 0x7fd   : > { %15051 = vmatprep.mubr.bf16.mxu0 %v19274_v60  ;;  %15215 = vmatprep.mubr.bf16.mxu1 %v19274_v60  ;;  %v17473_v60 = vcombine.low %v1430_v10, %v1446_v11  ;;  %v1637_v63 = vld [vmem:[%s19120_s5 + $0x29f0] sm:$0xff]  ;;  %v17665_v11 = vcombine.low %v1622_v0, %v1638_v1  ;;  %v1830_v53 = vld [vmem:[%s19120_s5 + $0x2ff8] sm:$0xff] }
 0x7fe   : > { %v17663_v10 = vcombine.low %v1621_v62, %v1637_v63 }
 0x7ff   : > { %15022 = vmatpush1.bf16.msra.mxu0 %v17407_v5  ;;  %15186 = vmatpush1.bf16.msra.mxu1 %v17409_v27  ;;  %v17664_v5 = vcombine.high %v1621_v62, %v1637_v63  ;;  %v17666_v27 = vcombine.high %v1622_v0, %v1638_v1  ;;  %v1846_v62 = vld [vmem:[%s19120_s5 + $0x3078] sm:$0xff]  ;;  %v17857_v1 = vcombine.low %v1814_v52, %v1830_v53 }
 0x800   : > { %15023 = vmatprep.subr.bf16.mxu0 %v17440_v6  ;;  %15187 = vmatprep.subr.bf16.mxu1 %v17442_v7  ;;  %v1653_v6 = vld [vmem:[%s19120_s5 + $0x2a70] sm:$0xff]  ;;  %v1862_v63 = vld [vmem:[%s19120_s5 + $0x30f8] sm:$0xff] }
 0x801   : > { %v1669_v7 = vld [vmem:[%s19120_s5 + $0x2af0] sm:$0xff] }
 0x802   : > { %v17695_v18 = vcombine.low %v1653_v6, %v1669_v7 }
 0x803   : > { %15024 = vmatpush1.bf16.msra.mxu0 %v17439_v2  ;;  %15188 = vmatpush1.bf16.msra.mxu1 %v17441_v12  ;;  %v17696_v2 = vcombine.high %v1653_v6, %v1669_v7  ;;  %v17698_v12 = vcombine.high %v1654_v8, %v1670_v9  ;;  %v1878_v6 = vld [vmem:[%s19120_s5 + $0x3178] sm:$0xff]  ;;  %v17889_v9 = vcombine.low %v1846_v62, %v1862_v63 }
 0x804   : > { %15025 = vmatprep.subr.bf16.mxu0 %v17472_v13  ;;  %15189 = vmatprep.subr.bf16.mxu1 %v17474_v15  ;;  %v1685_v13 = vld [vmem:[%s19120_s5 + $0x2b70] sm:$0xff]  ;;  %v1894_v7 = vld [vmem:[%s19120_s5 + $0x31f8] sm:$0xff] }
 0x805   : > { %v1701_v15 = vld [vmem:[%s19120_s5 + $0x2bf0] sm:$0xff] }
 0x806   : > { %v17727_v26 = vcombine.low %v1685_v13, %v1701_v15 }
 0x807   : > { %15026 = vmatpush1.bf16.msra.mxu0 %v17471_v20  ;;  %15190 = vmatpush1.bf16.msra.mxu1 %v17473_v60  ;;  %v17728_v20 = vcombine.high %v1685_v13, %v1701_v15  ;;  %v17730_v60 = vcombine.high %v1686_v16, %v1702_v17  ;;  %v1910_v13 = vld [vmem:[%s19120_s5 + $0x3278] sm:$0xff]  ;;  %v17921_v17 = vcombine.low %v1878_v6, %v1894_v7 }
 0x808   : > { %15027 = vmatprep.subr.bf16.mxu0 %v17504_v21  ;;  %15191 = vmatprep.subr.bf16.mxu1 %v17506_v22  ;;  %v1717_v21 = vld [vmem:[%s19120_s5 + $0x2c70] sm:$0xff]  ;;  %v1926_v15 = vld [vmem:[%s19120_s5 + $0x32f8] sm:$0xff] }
 0x809   : > { %v1733_v22 = vld [vmem:[%s19120_s5 + $0x2cf0] sm:$0xff] }
 0x80a   : > { %v17759_v36 = vcombine.low %v1717_v21, %v1733_v22 }
 0x80b   : > { %15028 = vmatpush1.bf16.msra.mxu0 %v17503_v29  ;;  %15192 = vmatpush1.bf16.msra.mxu1 %v17505_v31  ;;  %v17760_v29 = vcombine.high %v1717_v21, %v1733_v22  ;;  %v17762_v31 = vcombine.high %v1718_v23, %v1734_v25  ;;  %v1942_v21 = vld [vmem:[%s19120_s5 + $0x3378] sm:$0xff]  ;;  %v17953_v23 = vcombine.low %v1910_v13, %v1926_v15 }
 0x80c   : > { %15029 = vmatprep.subr.bf16.mxu0 %v17536_v32  ;;  %15193 = vmatprep.subr.bf16.mxu1 %v17538_v33  ;;  %v1749_v32 = vld [vmem:[%s19120_s5 + $0x2d70] sm:$0xff]  ;;  %v1958_v22 = vld [vmem:[%s19120_s5 + $0x33f8] sm:$0xff] }
 0x80d   : > { %v1765_v33 = vld [vmem:[%s19120_s5 + $0x2df0] sm:$0xff] }
 0x80e   : > { %v17791_v48 = vcombine.low %v1749_v32, %v1765_v33 }
 0x80f   : > { %15030 = vmatpush1.bf16.msra.mxu0 %v17535_v39  ;;  %15194 = vmatpush1.bf16.msra.mxu1 %v17537_v40  ;;  %v17792_v39 = vcombine.high %v1749_v32, %v1765_v33  ;;  %v17794_v40 = vcombine.high %v1750_v34, %v1766_v35  ;;  %v1990_v32 = vld [vmem:[%s19120_s5 + $0x34f8] sm:$0xff] }
 0x810   : > { %15031 = vmatprep.subr.bf16.mxu0 %v17568_v41  ;;  %15195 = vmatprep.subr.bf16.mxu1 %v17570_v43  ;;  %v1781_v41 = vld [vmem:[%s19120_s5 + $0x2e70] sm:$0xff] }
 0x811   : > { %v1797_v43 = vld [vmem:[%s19120_s5 + $0x2ef0] sm:$0xff] }
 0x812   : > { %v17823_v54 = vcombine.low %v1781_v41, %v1797_v43 }
 0x813   : > { %15032 = vmatpush1.bf16.msra.mxu0 %v17567_v49  ;;  %15196 = vmatpush1.bf16.msra.mxu1 %v17569_v50  ;;  %v17824_v49 = vcombine.high %v1781_v41, %v1797_v43  ;;  %v17826_v50 = vcombine.high %v1782_v45, %v1798_v46 }
 0x814   : > { %15033 = vmatprep.subr.bf16.mxu0 %v17600_v51  ;;  %15197 = vmatprep.subr.bf16.mxu1 %v17602_v24  ;;  %v1813_v51 = vld [vmem:[%s19120_s5 + $0x2f70] sm:$0xff] }
 0x815   : > { %v1829_v24 = vld [vmem:[%s19120_s5 + $0x2ff0] sm:$0xff] }
 0x816   : > { %v17855_v0 = vcombine.low %v1813_v51, %v1829_v24 }
 0x817   : > { %15034 = vmatpush1.bf16.msra.mxu0 %v17599_v56  ;;  %15198 = vmatpush1.bf16.msra.mxu1 %v17601_v57  ;;  %v17856_v56 = vcombine.high %v1813_v51, %v1829_v24  ;;  %v17858_v57 = vcombine.high %v1814_v52, %v1830_v53 }
 0x818   : > { %15035 = vmatprep.subr.bf16.mxu0 %v17632_v47  ;;  %15199 = vmatprep.subr.bf16.mxu1 %v17634_v58  ;;  %v1845_v47 = vld [vmem:[%s19120_s5 + $0x3070] sm:$0xff] }
 0x819   : > { %v1861_v58 = vld [vmem:[%s19120_s5 + $0x30f0] sm:$0xff] }
 0x81a   : > { %v17887_v8 = vcombine.low %v1845_v47, %v1861_v58 }
 0x81b   : > { %15036 = vmatpush1.bf16.msra.mxu0 %v17631_v3  ;;  %15200 = vmatpush1.bf16.msra.mxu1 %v17633_v4  ;;  %v17888_v3 = vcombine.high %v1845_v47, %v1861_v58  ;;  %v17890_v4 = vcombine.high %v1846_v62, %v1862_v63  ;;  %v2070_v58 = vld [vmem:[%s19120_s5 + $0x3778] sm:$0xff] }
 0x81c   : > { %15037 = vmatprep.subr.bf16.mxu0 %v17664_v5  ;;  %15201 = vmatprep.subr.bf16.mxu1 %v17666_v27  ;;  %v1877_v5 = vld [vmem:[%s19120_s5 + $0x3170] sm:$0xff]  ;;  %v2086_v62 = vld [vmem:[%s19120_s5 + $0x37f8] sm:$0xff] }
 0x81d   : > { %v1893_v27 = vld [vmem:[%s19120_s5 + $0x31f0] sm:$0xff] }
 0x81e   : > { %v17919_v16 = vcombine.low %v1877_v5, %v1893_v27 }
 0x81f   : > { %15038 = vmatpush1.bf16.msra.mxu0 %v17663_v10  ;;  %15202 = vmatpush1.bf16.msra.mxu1 %v17665_v11  ;;  %v17920_v10 = vcombine.high %v1877_v5, %v1893_v27  ;;  %v17922_v11 = vcombine.high %v1878_v6, %v1894_v7 }
 0x820   : > { %15039 = vmatprep.subr.bf16.mxu0 %v17696_v2  ;;  %15203 = vmatprep.subr.bf16.mxu1 %v17698_v12  ;;  %v1909_v2 = vld [vmem:[%s19120_s5 + $0x3270] sm:$0xff] }
 0x821   : > { %v1925_v12 = vld [vmem:[%s19120_s5 + $0x32f0] sm:$0xff] }
 0x823   : > { %15040 = vmatpush1.bf16.msra.mxu0 %v17695_v18  ;;  %15204 = vmatpush1.bf16.msra.mxu1 %v17697_v19  ;;  %v17952_v18 = vcombine.high %v1909_v2, %v1925_v12  ;;  %v17954_v19 = vcombine.high %v1910_v13, %v1926_v15  ;;  %v2102_v13 = vld [vmem:[%s19120_s5 + $0x3878] sm:$0xff] }
 0x824   : > { %15041 = vmatprep.subr.bf16.mxu0 %v17728_v20  ;;  %15205 = vmatprep.subr.bf16.mxu1 %v17730_v60  ;;  %v1941_v20 = vld [vmem:[%s19120_s5 + $0x3370] sm:$0xff]  ;;  %v2118_v15 = vld [vmem:[%s19120_s5 + $0x38f8] sm:$0xff] }
 0x825   : > { %v1957_v60 = vld [vmem:[%s19120_s5 + $0x33f0] sm:$0xff] }
 0x826   : > { %v17984_v25 = vcombine.high %v1941_v20, %v1957_v60  ;;  %v17983_v33 = vcombine.low %v1941_v20, %v1957_v60  ;;  %v18146_v60 = vcombine.high %v2102_v13, %v2118_v15 }
 0x827   : > { %15042 = vmatpush1.bf16.msra.mxu0 %v17727_v26  ;;  %15206 = vmatpush1.bf16.msra.mxu1 %v17729_v28  ;;  %v17986_v26 = vcombine.high %v1942_v21, %v1958_v22  ;;  %v1973_v28 = vld [vmem:[%s19120_s5 + $0x3470] sm:$0xff] }
 0x828   : > { %15043 = vmatprep.subr.bf16.mxu0 %v17760_v29  ;;  %15207 = vmatprep.subr.bf16.mxu1 %v17762_v31  ;;  %v1989_v29 = vld [vmem:[%s19120_s5 + $0x34f0] sm:$0xff]  ;;  %v1974_v31 = vld [vmem:[%s19120_s5 + $0x3478] sm:$0xff] }
 0x829   : > { %v18016_v34 = vcombine.high %v1973_v28, %v1989_v29  ;;  %v18018_v35 = vcombine.high %v1974_v31, %v1990_v32  ;;  %v18015_v41 = vcombine.low %v1973_v28, %v1989_v29  ;;  %v18017_v43 = vcombine.low %v1974_v31, %v1990_v32  ;;  %v2165_v32 = vld [vmem:[%s19120_s5 + $0x3a70] sm:$0xff] }
 0x82a   : > { %v18145_v28 = vcombine.low %v2102_v13, %v2118_v15  ;;  %v2342_v13 = vld [vmem:[%s19120_s5 + $0x3ff8] sm:$0xff] }
 0x82b   : > { %15044 = vmatpush1.bf16.msra.mxu0 %v17759_v36  ;;  %15208 = vmatpush1.bf16.msra.mxu1 %v17761_v38  ;;  %v2005_v36 = vld [vmem:[%s19120_s5 + $0x3570] sm:$0xff] }
 0x82c   : > { %15045 = vmatprep.subr.bf16.mxu0 %v17792_v39  ;;  %15209 = vmatprep.subr.bf16.mxu1 %v17794_v40  ;;  %v2021_v38 = vld [vmem:[%s19120_s5 + $0x35f0] sm:$0xff]  ;;  %v2006_v39 = vld [vmem:[%s19120_s5 + $0x3578] sm:$0xff] }
 0x82d   : > { %v2022_v40 = vld [vmem:[%s19120_s5 + $0x35f8] sm:$0xff]  ;;  %v18048_v45 = vcombine.high %v2005_v36, %v2021_v38  ;;  %v18047_v51 = vcombine.low %v2005_v36, %v2021_v38 }
 0x82e   : > { %v18050_v46 = vcombine.high %v2006_v39, %v2022_v40  ;;  %v18049_v24 = vcombine.low %v2006_v39, %v2022_v40  ;;  %v2197_v40 = vld [vmem:[%s19120_s5 + $0x3b70] sm:$0xff] }
 0x82f   : > { %15046 = vmatpush1.bf16.msra.mxu0 %v17791_v48  ;;  %15210 = vmatpush1.bf16.msra.mxu1 %v17793_v37  ;;  %v2037_v48 = vld [vmem:[%s19120_s5 + $0x3670] sm:$0xff] }
 0x830   : > { %15047 = vmatprep.subr.bf16.mxu0 %v17824_v49  ;;  %15211 = vmatprep.subr.bf16.mxu1 %v17826_v50  ;;  %v2053_v37 = vld [vmem:[%s19120_s5 + $0x36f0] sm:$0xff]  ;;  %v2038_v49 = vld [vmem:[%s19120_s5 + $0x3678] sm:$0xff] }
 0x831   : > { %v2054_v50 = vld [vmem:[%s19120_s5 + $0x36f8] sm:$0xff]  ;;  %v18080_v52 = vcombine.high %v2037_v48, %v2053_v37 }
 0x832   : > { %v18081_v6 = vcombine.low %v2038_v49, %v2054_v50 }
 0x833   : > { %15048 = vmatpush1.bf16.msra.mxu0 %v17823_v54  ;;  %15212 = vmatpush1.bf16.msra.mxu1 %v17825_v55  ;;  %v18082_v54 = vcombine.high %v2038_v49, %v2054_v50  ;;  %v2069_v55 = vld [vmem:[%s19120_s5 + $0x3770] sm:$0xff] }
 0x834   : > { %15049 = vmatprep.subr.bf16.mxu0 %v17856_v56  ;;  %15213 = vmatprep.subr.bf16.mxu1 %v17858_v57  ;;  %v2085_v56 = vld [vmem:[%s19120_s5 + $0x37f0] sm:$0xff] }
 0x835   : > { %v18112_v7 = vcombine.high %v2069_v55, %v2085_v56  ;;  %v2229_v50 = vld [vmem:[%s19120_s5 + $0x3c70] sm:$0xff] }
 0x837   : > { %15050 = vmatpush1.bf16.msra.mxu0 %v17855_v0  ;;  %15214 = vmatpush1.bf16.msra.mxu1 %v17857_v1 }
 0x838   : > { %15060 = vmatprep.subr.bf16.mxu0 %v17888_v3  ;;  %15224 = vmatprep.subr.bf16.mxu1 %v17890_v4  ;;  %v18079_v3 = vcombine.low %v2037_v48, %v2053_v37 }
 0x83a   : > { %15052 = vmatmul.mubr.bf16.vlgmr.msra.gmra.mrb[28].mxu0 %v19277_v61  ;;  %15216 = vmatmul.mubr.bf16.vlgmr.msra.gmra.mrb[28].mxu1 %v19277_v61  ;;  %v17951_v61 = vcombine.low %v1909_v2, %v1925_v12  ;;  %v2117_v2 = vld [vmem:[%s19120_s5 + $0x38f0] sm:$0xff] }
 0x83b   : > { %15061 = vmatpush1.bf16.msra.mxu0 %v17887_v8  ;;  %15225 = vmatpush1.bf16.msra.mxu1 %v17889_v9 }
 0x83c   : > { %15062 = vmatprep.subr.bf16.mxu0 %v17920_v10  ;;  %15226 = vmatprep.subr.bf16.mxu1 %v17922_v11  ;;  %v18114_v10 = vcombine.high %v2070_v58, %v2086_v62  ;;  %v2101_v11 = vld [vmem:[%s19120_s5 + $0x3870] sm:$0xff] }
 0x83d   : > { %15092 = vmatprep.mubr.bf16.mxu0 %v19418_v30  ;;  %15256 = vmatprep.mubr.bf16.mxu1 %v19418_v30  ;;  %v17985_v30 = vcombine.low %v1942_v21, %v1958_v22  ;;  %v18144_v20 = vcombine.high %v2101_v11, %v2117_v2  ;;  %v2133_v21 = vld [vmem:[%s19120_s5 + $0x3970] sm:$0xff] }
 0x83e   : > { %v2149_v22 = vld [vmem:[%s19120_s5 + $0x39f0] sm:$0xff] }
 0x83f   : > { %15063 = vmatpush1.bf16.msra.mxu0 %v17919_v16  ;;  %15227 = vmatpush1.bf16.msra.mxu1 %v17921_v17  ;;  %v293_v16 = vld [vmem:[#allocation3 + $0x30] sm:$0xff]  ;;  %v18111_v17 = vcombine.low %v2069_v55, %v2085_v56  ;;  %v18176_v29 = vcombine.high %v2133_v21, %v2149_v22 }
 0x840   : > { %15064 = vmatprep.subr.bf16.mxu0 %v17952_v18  ;;  %15228 = vmatprep.subr.bf16.mxu1 %v17954_v19  ;;  %v18113_v19 = vcombine.low %v2070_v58, %v2086_v62  ;;  %v2262_v58 = vld [vmem:[%s19120_s5 + $0x3d78] sm:$0xff] }
 0x841   : > { %v2278_v62 = vld [vmem:[%s19120_s5 + $0x3df8] sm:$0xff] }
 0x843   : > { %15065 = vmatpush1.bf16.msra.mxu0 %v17951_v61  ;;  %15229 = vmatpush1.bf16.msra.mxu1 %v17953_v23  ;;  %v2134_v23 = vld [vmem:[%s19120_s5 + $0x3978] sm:$0xff] }
 0x844   : > { %15066 = vmatprep.subr.bf16.mxu0 %v17984_v25  ;;  %15230 = vmatprep.subr.bf16.mxu1 %v17986_v26  ;;  %v2150_v25 = vld [vmem:[%s19120_s5 + $0x39f8] sm:$0xff]  ;;  %v18143_v26 = vcombine.low %v2101_v11, %v2117_v2  ;;  %v2325_v11 = vld [vmem:[%s19120_s5 + $0x3f70] sm:$0xff] }
 0x845   : > { %v18178_v31 = vcombine.high %v2134_v23, %v2150_v25  ;;  %v18177_v36 = vcombine.low %v2134_v23, %v2150_v25  ;;  %v2341_v2 = vld [vmem:[%s19120_s5 + $0x3ff0] sm:$0xff] }
 0x847   : > { %15067 = vmatpush1.bf16.msra.mxu0 %v17983_v33  ;;  %15231 = vmatpush1.bf16.msra.mxu1 %v17985_v30  ;;  %v2181_v33 = vld [vmem:[%s19120_s5 + $0x3af0] sm:$0xff]  ;;  %v2166_v30 = vld [vmem:[%s19120_s5 + $0x3a78] sm:$0xff] }
 0x848   : > { %15068 = vmatprep.subr.bf16.mxu0 %v18016_v34  ;;  %15232 = vmatprep.subr.bf16.mxu1 %v18018_v35  ;;  %v2182_v34 = vld [vmem:[%s19120_s5 + $0x3af8] sm:$0xff]  ;;  %v18175_v35 = vcombine.low %v2133_v21, %v2149_v22  ;;  %v18208_v38 = vcombine.high %v2165_v32, %v2181_v33 }
 0x849   : > { %v18210_v39 = vcombine.high %v2166_v30, %v2182_v34  ;;  %v18209_v48 = vcombine.low %v2166_v30, %v2182_v34  ;;  %v294_v30 = vld [vmem:[#allocation3 + $0x38] sm:$0xff] }
 0x84b   : > { %15069 = vmatpush1.bf16.msra.mxu0 %v18015_v41  ;;  %15233 = vmatpush1.bf16.msra.mxu1 %v18017_v43  ;;  %v2213_v41 = vld [vmem:[%s19120_s5 + $0x3bf0] sm:$0xff]  ;;  %v2198_v43 = vld [vmem:[%s19120_s5 + $0x3b78] sm:$0xff] }
 0x84c   : > { %15070 = vmatprep.subr.bf16.mxu0 %v18048_v45  ;;  %15234 = vmatprep.subr.bf16.mxu1 %v18050_v46  ;;  %v2214_v45 = vld [vmem:[%s19120_s5 + $0x3bf8] sm:$0xff]  ;;  %v18207_v46 = vcombine.low %v2165_v32, %v2181_v33  ;;  %v18240_v37 = vcombine.high %v2197_v40, %v2213_v41 }
 0x84d   : > { %v14766_v53 = vpop.f32.mrb[24].mxu0  ;;  %v14930_v57 = vpop.f32.mrb[24].mxu1  ;;  %v18242_v49 = vcombine.high %v2198_v43, %v2214_v45 }
 0x84e   : > { %v14768_v47 = vpop.f32.mrb[25].mxu0  ;;  %v14932_v0 = vpop.f32.mrb[25].mxu1 }
 0x84f   : > { %v15399_v63 = vcombine.low %v14766_v53, %v14768_v47  ;;  %v14770_v1 = vpop.f32.mrb[26].mxu0  ;;  %15071 = vmatpush1.bf16.msra.mxu0 %v18047_v51  ;;  %v15400_v4 = vcombine.low %v14930_v57, %v14932_v0  ;;  %v14934_v5 = vpop.f32.mrb[26].mxu1  ;;  %15235 = vmatpush1.bf16.msra.mxu1 %v18049_v24  ;;  %v2245_v51 = vld [vmem:[%s19120_s5 + $0x3cf0] sm:$0xff]  ;;  %v2230_v24 = vld [vmem:[%s19120_s5 + $0x3c78] sm:$0xff]  ;;  %v18239_v53 = vcombine.low %v2197_v40, %v2213_v41  ;;  %v21419_v40 = vsub.s32 (!%p18371_p1), 3, %v19179_v59 }
 0x850   : > { %v14771_v27 = vpop.f32.mrb[27].mxu0  ;;  %15072 = vmatprep.subr.bf16.mxu0 %v18080_v52  ;;  %v14935_v9 = vpop.f32.mrb[27].mxu1  ;;  %15236 = vmatprep.subr.bf16.mxu1 %v18082_v54  ;;  %v2246_v52 = vld [vmem:[%s19120_s5 + $0x3cf8] sm:$0xff]  ;;  %v18241_v54 = vcombine.low %v2198_v43, %v2214_v45  ;;  %v18272_v55 = vcombine.high %v2229_v50, %v2245_v51  ;;  %v2261_v57 = vld [vmem:[%s19120_s5 + $0x3d70] sm:$0xff]  ;;  %v21422_v41 = vsub.s32 (!%p18371_p1), 4, %v19179_v59  ;;  %v21425_v43 = vsub.s32 (!%p18371_p1), 5, %v19179_v59 }
 0x851   : > { %v15407_v8 = vrot.slane %v15399_v63, %v19719_v44  ;;  %v15414_v12 = vrot.slane %v15400_v4, %v19719_v44  ;;  %v18274_v56 = vcombine.high %v2230_v24, %v2246_v52  ;;  %v2277_v47 = vld [vmem:[%s19120_s5 + $0x3df0] sm:$0xff]  ;;  %v18271_v63 = vcombine.low %v2229_v50, %v2245_v51  ;;  %v2294_v27 = vld [vmem:[%s19120_s5 + $0x3e78] sm:$0xff]  ;;  %v15469_v50 = vld [vmem:[%s19127_s6 + $0x8] sm:$0xff] (!%p18371_p1) }
 0x852   : > { %v18273_v0 = vcombine.low %v2230_v24, %v2246_v52  ;;  %v18304_v1 = vcombine.high %v2261_v57, %v2277_v47  ;;  %v2293_v4 = vld [vmem:[%s19120_s5 + $0x3e70] sm:$0xff]  ;;  %v21428_v45 = vsub.s32 (!%p18371_p1), 6, %v19179_v59 }
 0x853   : > { %15073 = vmatpush1.bf16.msra.mxu0 %v18079_v3  ;;  %v15415_v18 = vcombine.low %v15407_v8, %v15414_v12  ;;  %15237 = vmatpush1.bf16.msra.mxu1 %v18081_v6  ;;  %v18306_v3 = vcombine.high %v2262_v58, %v2278_v62  ;;  %v2309_v5 = vld [vmem:[%s19120_s5 + $0x3ef0] sm:$0xff]  ;;  %v2310_v6 = vld [vmem:[%s19120_s5 + $0x3ef8] sm:$0xff]  ;;  %v18305_v8 = vcombine.low %v2262_v58, %v2278_v62 }
 0x854   : > { %15074 = vmatprep.subr.bf16.mxu0 %v18112_v7  ;;  %15238 = vmatprep.subr.bf16.mxu1 %v18114_v10  ;;  %v18303_v7 = vcombine.low %v2261_v57, %v2277_v47  ;;  %v18336_v9 = vcombine.high %v2293_v4, %v2309_v5  ;;  %v18338_v10 = vcombine.high %v2294_v27, %v2310_v6  ;;  %v2326_v12 = vld [vmem:[%s19120_s5 + $0x3f78] sm:$0xff] }
 0x855   : > { %v15447_v61 = vadd.f32 %v15415_v18, %v293_v16  ;;  %v18335_v15 = vcombine.low %v2293_v4, %v2309_v5  ;;  %v18337_v16 = vcombine.low %v2294_v27, %v2310_v6  ;;  %v18370_v18 = vcombine.high %v2326_v12, %v2342_v13  ;;  %v21450_v4 = vld [vmem:[%s19127_s6 + $0x10] sm:$0xff] (!%p18371_p1) }
 0x856   : > { %v15523_v62 = vrot.slane (!%p18371_p1), %v15469_v50, %v21419_v40  ;;  %v15535_v6 = vrot.slane (!%p18371_p1), %v15469_v50, %v21428_v45 }
 0x857   : > { %15075 = vmatpush1.bf16.msra.mxu0 %v18111_v17  ;;  %15455 = vst [vmem:[#allocation3 + $0x30] sm:$0xff] %v15447_v61  ;;  %15239 = vmatpush1.bf16.msra.mxu1 %v18113_v19  ;;  %v18368_v17 = vcombine.high %v2325_v11, %v2341_v2  ;;  %v18367_v19 = vcombine.low %v2325_v11, %v2341_v2 }
 0x858   : > { %15076 = vmatprep.subr.bf16.mxu0 %v18144_v20  ;;  %15240 = vmatprep.subr.bf16.mxu1 %v18146_v60  ;;  %v18369_v20 = vcombine.low %v2326_v12, %v2342_v13  ;;  %v15461_v12 = vld [vmem:[#allocation3 + $0x8] sm:$0xff] (!%p18371_p1) }
 0x85b   : > { %15077 = vmatpush1.bf16.msra.mxu0 %v18143_v26  ;;  %15241 = vmatpush1.bf16.msra.mxu1 %v18145_v28 }
 0x85c   : > { %15078 = vmatprep.subr.bf16.mxu0 %v18176_v29  ;;  %15242 = vmatprep.subr.bf16.mxu1 %v18178_v31 }
 0x85f   : > { %15079 = vmatpush1.bf16.msra.mxu0 %v18175_v35  ;;  %15243 = vmatpush1.bf16.msra.mxu1 %v18177_v36  ;;  %v21410_v36 = vsub.s32 (!%p18371_p1), 0, %v19179_v59 }
 0x860   : > { %15080 = vmatprep.subr.bf16.mxu0 %v18208_v38  ;;  %15244 = vmatprep.subr.bf16.mxu1 %v18210_v39  ;;  %v21413_v38 = vsub.s32 (!%p18371_p1), 1, %v19179_v59  ;;  %v21416_v39 = vsub.s32 (!%p18371_p1), 2, %v19179_v59 }
 0x862   : > { %v15515_v57 = vrot.slane (!%p18371_p1), %v15469_v50, %v21413_v38  ;;  %v15519_v58 = vrot.slane (!%p18371_p1), %v15469_v50, %v21416_v39 }
 0x863   : > { %15081 = vmatpush1.bf16.msra.mxu0 %v18207_v46  ;;  %15245 = vmatpush1.bf16.msra.mxu1 %v18209_v48 }
 0x864   : > { %15082 = vmatprep.subr.bf16.mxu0 %v18240_v37  ;;  %15246 = vmatprep.subr.bf16.mxu1 %v18242_v49  ;;  %v21434_v49 = vsub.s32 (!%p18371_p1), 7, %v19179_v59  ;;  %v15639_v11 = vcombine.low (!%p18371_p1), %v15519_v58, %v15523_v62 }
 0x867   : > { %15083 = vmatpush1.bf16.msra.mxu0 %v18239_v53  ;;  %15247 = vmatpush1.bf16.msra.mxu1 %v18241_v54 }
 0x868   : > { %15084 = vmatprep.subr.bf16.mxu0 %v18272_v55  ;;  %15248 = vmatprep.subr.bf16.mxu1 %v18274_v56  ;;  %v15511_v56 = vrot.slane (!%p18371_p1), %v15469_v50, %v21410_v36 }
 0x86b   : > { %15085 = vmatpush1.bf16.msra.mxu0 %v18271_v63  ;;  %15249 = vmatpush1.bf16.msra.mxu1 %v18273_v0 }
 0x86c   : > { %15086 = vmatprep.subr.bf16.mxu0 %v18304_v1  ;;  %15250 = vmatprep.subr.bf16.mxu1 %v18306_v3  ;;  %v15527_v1 = vrot.slane (!%p18371_p1), %v15469_v50, %v21422_v41  ;;  %v15531_v3 = vrot.slane (!%p18371_p1), %v15469_v50, %v21425_v43 }
 0x86e   : > { %v15655_v2 = vcombine.low (!%p18371_p1), %v15527_v1, %v15531_v3 }
 0x86f   : > { %15087 = vmatpush1.bf16.msra.mxu0 %v18303_v7  ;;  %15251 = vmatpush1.bf16.msra.mxu1 %v18305_v8  ;;  %v15539_v7 = vrot.slane (!%p18371_p1), %v15469_v50, %v21434_v49  ;;  %v15460_v8 = vld [vmem:[#allocation3] sm:$0xff] (!%p18371_p1) }
 0x870   : > { %15088 = vmatprep.subr.bf16.mxu0 %v18336_v9  ;;  %15252 = vmatprep.subr.bf16.mxu1 %v18338_v10  ;;  %v15638_v10 = vcombine.low (!%p18371_p1), %v15511_v56, %v15515_v57 }
 0x873   : > { %15089 = vmatpush1.bf16.msra.mxu0 %v18335_v15  ;;  %15253 = vmatpush1.bf16.msra.mxu1 %v18337_v16  ;;  %v15656_v15 = vcombine.low (!%p18371_p1), %v15535_v6, %v15539_v7  ;;  %v15543_v16 = vrot.slane (!%p18371_p1), %v21450_v4, %v21410_v36 }
 0x874   : > { %15090 = vmatprep.subr.bf16.mxu0 %v18368_v17  ;;  %15254 = vmatprep.subr.bf16.mxu1 %v18370_v18  ;;  %v15547_v17 = vrot.slane (!%p18371_p1), %v21450_v4, %v21413_v38 }
 0x877   : > { %15091 = vmatpush1.bf16.msra.mxu0 %v18367_v19  ;;  %15255 = vmatpush1.bf16.msra.mxu1 %v18369_v20  ;;  %v15646_v19 = vrot.slane (!%p18371_p1), %v15638_v10, %v19719_v44  ;;  %v15653_v20 = vrot.slane (!%p18371_p1), %v15639_v11, %v19719_v44 }
 0x87a   : > { %15093 = vmatmul.mubr.bf16.vlgmr.msra.gmra.mrb[28].mxu0 %v19486_v42  ;;  %15257 = vmatmul.mubr.bf16.vlgmr.msra.gmra.mrb[28].mxu1 %v19486_v42  ;;  %v15468_v42 = vld [vmem:[%s19127_s6] sm:$0xff] (!%p18371_p1) }
 0x87b   : > { %v15479_v46 = vrot.slane (!%p18371_p1), %v15468_v42, %v21410_v36  ;;  %v15483_v48 = vrot.slane (!%p18371_p1), %v15468_v42, %v21413_v38  ;;  %v15487_v37 = vrot.slane (!%p18371_p1), %v15468_v42, %v21416_v39  ;;  %v15491_v51 = vrot.slane (!%p18371_p1), %v15468_v42, %v21419_v40 }
 0x87c   : > { %v15495_v24 = vrot.slane (!%p18371_p1), %v15468_v42, %v21422_v41  ;;  %v15499_v52 = vrot.slane (!%p18371_p1), %v15468_v42, %v21425_v43  ;;  %v15503_v53 = vrot.slane (!%p18371_p1), %v15468_v42, %v21428_v45  ;;  %v15507_v54 = vrot.slane (!%p18371_p1), %v15468_v42, %v21434_v49 }
 0x87d   : > { %v15604_v55 = vcombine.low (!%p18371_p1), %v15479_v46, %v15483_v48  ;;  %v15605_v47 = vcombine.low (!%p18371_p1), %v15487_v37, %v15491_v51  ;;  %v15672_v48 = vcombine.low (!%p18371_p1), %v15543_v16, %v15547_v17 }
 0x87e   : > { %v15621_v59 = vcombine.low (!%p18371_p1), %v15495_v24, %v15499_v52  ;;  %v15622_v0 = vcombine.low (!%p18371_p1), %v15503_v53, %v15507_v54 }
 0x87f   : > { %v15612_v63 = vrot.slane (!%p18371_p1), %v15604_v55, %v19719_v44  ;;  %v15619_v5 = vrot.slane (!%p18371_p1), %v15605_v47, %v19719_v44  ;;  %v15680_v56 = vrot.slane (!%p18371_p1), %v15672_v48, %v19719_v44 }
 0x880   : > { %v15629_v27 = vrot.slane (!%p18371_p1), %v15621_v59, %v19719_v44  ;;  %v15636_v9 = vrot.slane (!%p18371_p1), %v15622_v0, %v19719_v44 }
 0x881   : > { %v15620_v13 = vcombine.low (!%p18371_p1), %v15612_v63, %v15619_v5 }
 0x882   : > { %v15637_v18 = vcombine.low (!%p18371_p1), %v15629_v27, %v15636_v9 }
 0x94d   : > { %v15094_v60 = vpop.f32.mrb[28].mxu0  ;;  %v15258_v21 = vpop.f32.mrb[28].mxu1 }
 0x94e   : > { %v15096_v22 = vpop.f32.mrb[29].mxu0  ;;  %v15260_v23 = vpop.f32.mrb[29].mxu1 }
 0x94f   : > { %v15416_v61 = vcombine.low %v15094_v60, %v15096_v22  ;;  %v15098_v25 = vpop.f32.mrb[30].mxu0  ;;  %v15417_v26 = vcombine.low %v15258_v21, %v15260_v23  ;;  %v15262_v28 = vpop.f32.mrb[30].mxu1  ;;  %v15663_v60 = vrot.slane (!%p18371_p1), %v15655_v2, %v19719_v44  ;;  %v15748_v21 = vadd.f32 (!%p18371_p1), %v15620_v13, %v15460_v8  ;;  %v15462_v22 = vld [vmem:[#allocation3 + $0x10] sm:$0xff] (!%p18371_p1) }
 0x950   : > { %v15099_v29 = vpop.f32.mrb[31].mxu0  ;;  %v15263_v32 = vpop.f32.mrb[31].mxu1  ;;  %v15551_v23 = vrot.slane (!%p18371_p1), %v21450_v4, %v21416_v39  ;;  %v15555_v25 = vrot.slane (!%p18371_p1), %v21450_v4, %v21419_v40  ;;  %v15463_v28 = vld [vmem:[#allocation3 + $0x18] sm:$0xff] (!%p18371_p1) }
 0x951   : > { %v15424_v31 = vrot.slane %v15416_v61, %v19719_v44  ;;  %v15431_v33 = vrot.slane %v15417_v26, %v19719_v44  ;;  %15459 = sbr.rel (%p18371_p1) target bundleno = 2437 (0x985), region = 52  ;;  %v15670_v61 = vrot.slane (!%p18371_p1), %v15656_v15, %v19719_v44  ;;  %v15749_v26 = vadd.f32 (!%p18371_p1), %v15637_v18, %v15461_v12 }
 0x952   : > { %v15654_v29 = vcombine.low (!%p18371_p1), %v15646_v19, %v15653_v20  ;;  %v15563_v32 = vrot.slane (!%p18371_p1), %v21450_v4, %v21425_v43  ;;  %v15673_v37 = vcombine.low (!%p18371_p1), %v15551_v23, %v15555_v25 }
 0x953   : > { %v15432_v34 = vcombine.low %v15424_v31, %v15431_v33  ;;  %v15559_v31 = vrot.slane (!%p18371_p1), %v21450_v4, %v21422_v41  ;;  %v21473_v33 = vmax.f32 (!%p18371_p1), %v15748_v21, 0.0  ;;  %v15757_v42 = vmax.f32 (!%p18371_p1), %v15749_v26, 0.0  ;;  %v15471_v26 = vld [vmem:[%s19127_s6 + $0x18] sm:$0xff] (!%p18371_p1) }
 0x954   : > { %v15750_v46 = vadd.f32 (!%p18371_p1), %v15654_v29, %v15462_v22  ;;  %v15687_v58 = vrot.slane (!%p18371_p1), %v15673_v37, %v19719_v44 }
 0x955   : > { %v15448_v35 = vadd.f32 %v15432_v34, %v294_v30  ;;  %v15671_v30 = vcombine.low (!%p18371_p1), %v15663_v60, %v15670_v61  ;;  %v15567_v34 = vrot.slane (!%p18371_p1), %v21450_v4, %v21428_v45  ;;  %v15772_v50 = vcombine.high (!%p18371_p1), %v21473_v33, %v21473_v33  ;;  %v15464_v60 = vld [vmem:[#allocation3 + $0x20] sm:$0xff] (!%p18371_p1) }
 0x956   : > { %v15779_v51 = vrot.slane (!%p18371_p1), %v21473_v33, %v19719_v44  ;;  %v15689_v52 = vcombine.low (!%p18371_p1), %v15559_v31, %v15563_v32  ;;  %v15789_v53 = vcombine.high (!%p18371_p1), %v15757_v42, %v15757_v42  ;;  %v15796_v54 = vrot.slane (!%p18371_p1), %v15757_v42, %v19719_v44 }
 0x957   : > { %15456 = vst [vmem:[#allocation3 + $0x38] sm:$0xff] %v15448_v35  ;;  %v15571_v35 = vrot.slane (!%p18371_p1), %v21450_v4, %v21434_v49  ;;  %v15751_v24 = vadd.f32 (!%p18371_p1), %v15671_v30, %v15463_v28  ;;  %v15758_v55 = vmax.f32 (!%p18371_p1), %v15750_v46, 0.0  ;;  %v15786_v57 = vrot.slane (!%p18371_p1), %v15772_v50, %v19719_v44 }
 0x958   : > { %v15787_v47 = vcombine.high %v15779_v51, %v15779_v51  ;;  %v15803_v62 = vrot.slane %v15789_v53, %v19719_v44  ;;  %v15804_v63 = vcombine.high %v15796_v54, %v15796_v54  ;;  %v15688_v21 = vcombine.low %v15680_v56, %v15687_v58  ;;  %16212 = vst [vmem:[#allocation9] sm:$0x3] (!%p18388_p6), %v21473_v33 }
 0x959   : > { %v15759_v59 = vmax.f32 %v15751_v24, 0.0  ;;  %v15806_v0 = vcombine.high %v15758_v55, %v15758_v55  ;;  %v15813_v1 = vrot.slane %v15758_v55, %v19719_v44  ;;  %v15788_v3 = vcombine.high %v15786_v57, %v15786_v57 }
 0x95a   : > { %v18372_v4 = vpack.c.bf16 %v15787_v47, %v15779_v51  ;;  %v15805_v6 = vcombine.high %v15803_v62, %v15803_v62  ;;  %v18374_v7 = vpack.c.bf16 %v15804_v63, %v15796_v54  ;;  %v15690_v25 = vcombine.low %v15567_v34, %v15571_v35  ;;  %v15465_v51 = vld [vmem:[#allocation3 + $0x28] sm:$0xff] }
 0x95b   : > { %v15823_v5 = vcombine.high %v15759_v59, %v15759_v59  ;;  %v15830_v27 = vrot.slane %v15759_v59, %v19719_v44  ;;  %v15820_v8 = vrot.slane %v15806_v0, %v19719_v44  ;;  %v15821_v9 = vcombine.high %v15813_v1, %v15813_v1 }
 0x95c   : > { %v18373_v10 = vpack.c.bf16 %v15788_v3, %v15786_v57  ;;  %v16014_v11 = vrot.slane %v18372_v4, %v19195_v14  ;;  %v18375_v13 = vpack.c.bf16 %v15805_v6, %v15803_v62  ;;  %v16028_v15 = vrot.slane %v18374_v7, %v19195_v14 }
 0x95d   : > { %v15837_v2 = vrot.slane %v15823_v5, %v19719_v44  ;;  %v15838_v12 = vcombine.high %v15830_v27, %v15830_v27  ;;  %v15822_v16 = vcombine.high %v15820_v8, %v15820_v8  ;;  %v18376_v17 = vpack.c.bf16 %v15821_v9, %v15813_v1 }
 0x95e   : > { %v16021_v18 = vrot.slane %v18373_v10, %v19195_v14  ;;  %v16035_v22 = vrot.slane %v18375_v13, %v19195_v14  ;;  %v15697_v32 = vrot.slane %v15689_v52, %v19719_v44  ;;  %v15704_v46 = vrot.slane %v15690_v25, %v19719_v44 }
 0x95f   : > { %v15839_v19 = vcombine.high %v15837_v2, %v15837_v2  ;;  %v18378_v20 = vpack.c.bf16 %v15838_v12, %v15830_v27  ;;  %v18377_v61 = vpack.c.bf16 %v15822_v16, %v15820_v8  ;;  %v16063_v23 = vrot.slane %v18376_v17, %v19195_v14 }
 0x960   : > { %v16036_v28 = vcombine.low %v16014_v11, %v16021_v18  ;;  %v16037_v30 = vcombine.low %v16028_v15, %v16035_v22  ;;  %v15752_v48 = vadd.f32 %v15688_v21, %v15464_v60  ;;  %v15575_v34 = vrot.slane %v15471_v26, %v21410_v36  ;;  %v15466_v15 = vld [vmem:[#allocation3 + $0x30] sm:$0xff]  ;;  %v15467_v21 = vld [vmem:[#allocation3 + $0x38] sm:$0xff] }
 0x961   : > { %v18379_v29 = vpack.c.bf16 %v15839_v19, %v15837_v2  ;;  %v16077_v31 = vrot.slane %v18378_v20, %v19195_v14  ;;  %v16070_v42 = vrot.slane %v18377_v61, %v19195_v14  ;;  %v15579_v35 = vrot.slane %v15471_v26, %v21413_v38 }
 0x962   : > { %v16044_v37 = vrot.slane %v16036_v28, %v19195_v14  ;;  %v16051_v24 = vrot.slane %v16037_v30, %v19195_v14  ;;  %v15705_v54 = vcombine.low %v15697_v32, %v15704_v46  ;;  %v15760_v52 = vmax.f32 %v15752_v48, 0.0 }
 0x963   : > { %v16084_v50 = vrot.slane %v18379_v29, %v19195_v14  ;;  %v16085_v53 = vcombine.low %v16063_v23, %v16070_v42  ;;  %v15583_v56 = vrot.slane %v15471_v26, %v21416_v39  ;;  %v15587_v57 = vrot.slane %v15471_v26, %v21419_v40 }
 0x964   : > { %v15591_v47 = vrot.slane %v15471_v26, %v21422_v41  ;;  %v16052_v59 = vcombine.low %v16044_v37, %v16051_v24  ;;  %v15753_v62 = vadd.f32 %v15705_v54, %v15465_v51  ;;  %v15840_v63 = vcombine.high %v15760_v52, %v15760_v52 }
 0x965   : > { %v16086_v55 = vcombine.low %v16077_v31, %v16084_v50  ;;  %v16093_v58 = vrot.slane %v16085_v53, %v19195_v14  ;;  %v15847_v38 = vrot.slane %v15760_v52, %v19719_v44  ;;  %v15595_v0 = vrot.slane %v15471_v26, %v21425_v43 }
 0x966   : > { %v15599_v1 = vrot.slane %v15471_v26, %v21428_v45  ;;  %16204 = vst [vmem:[#allocation2] sm:$0xff] %v16052_v59  ;;  %v15761_v3 = vmax.f32 %v15753_v62, 0.0  ;;  %v15854_v39 = vrot.slane %v15840_v63, %v19719_v44  ;;  %v15603_v40 = vrot.slane %v15471_v26, %v21434_v49 }
 0x967   : > { %v16100_v36 = vrot.slane %v16086_v55, %v19195_v14  ;;  %v15706_v41 = vcombine.low %v15575_v34, %v15579_v35  ;;  %v15855_v5 = vcombine.high %v15847_v38, %v15847_v38  ;;  %v15707_v27 = vcombine.low %v15583_v56, %v15587_v57 }
 0x968   : > { %v15723_v6 = vcombine.low %v15591_v47, %v15595_v0  ;;  %v15856_v7 = vcombine.high %v15854_v39, %v15854_v39  ;;  %v15857_v8 = vcombine.high %v15761_v3, %v15761_v3  ;;  %v15864_v9 = vrot.slane %v15761_v3, %v19719_v44 }
 0x969   : > { %v16101_v4 = vcombine.low %v16093_v58, %v16100_v36  ;;  %v15714_v10 = vrot.slane %v15706_v41, %v19719_v44  ;;  %v18380_v43 = vpack.c.bf16 %v15855_v5, %v15847_v38  ;;  %v15721_v45 = vrot.slane %v15707_v27, %v19719_v44 }
 0x96a   : > { %v15724_v11 = vcombine.low %v15599_v1, %v15603_v40  ;;  %v15731_v2 = vrot.slane %v15723_v6, %v19719_v44  ;;  %v15871_v49 = vrot.slane %v15857_v8, %v19719_v44  ;;  %v15872_v12 = vcombine.high %v15864_v9, %v15864_v9 }
 0x96b   : > { %16205 = vst [vmem:[#allocation2 + $0x8] sm:$0xff] %v16101_v4  ;;  %v18381_v13 = vpack.c.bf16 %v15856_v7, %v15854_v39  ;;  %v16112_v16 = vrot.slane %v18380_v43, %v19195_v14  ;;  %v15722_v17 = vcombine.low %v15714_v10, %v15721_v45 }
 0x96c   : > { %v15738_v18 = vrot.slane %v15724_v11, %v19719_v44  ;;  %v15873_v19 = vcombine.high %v15871_v49, %v15871_v49  ;;  %v18382_v20 = vpack.c.bf16 %v15872_v12, %v15864_v9 }
 0x96d   : > { %v16119_v60 = vrot.slane %v18381_v13, %v19195_v14  ;;  %v15754_v61 = vadd.f32 %v15722_v17, %v15466_v15 }
 0x96e   : > { %v15739_v22 = vcombine.low %v15731_v2, %v15738_v18  ;;  %v18383_v23 = vpack.c.bf16 %v15873_v19, %v15871_v49  ;;  %v16126_v25 = vrot.slane %v18382_v20, %v19195_v14 }
 0x96f   : > { %v16134_v26 = vcombine.low %v16112_v16, %v16119_v60  ;;  %v15762_v29 = vmax.f32 %v15754_v61, 0.0 }
 0x970   : > { %v15755_v28 = vadd.f32 %v15739_v22, %v15467_v21  ;;  %v16133_v31 = vrot.slane %v18383_v23, %v19195_v14 }
 0x971   : > { %v15874_v30 = vcombine.high %v15762_v29, %v15762_v29  ;;  %v15881_v42 = vrot.slane %v15762_v29, %v19719_v44  ;;  %v16142_v48 = vrot.slane %v16134_v26, %v19195_v14 }
 0x972   : > { %v15763_v32 = vmax.f32 %v15755_v28, 0.0  ;;  %v16135_v46 = vcombine.low %v16126_v25, %v16133_v31 }
 0x973   : > { %v15888_v37 = vrot.slane %v15874_v30, %v19719_v44  ;;  %v15889_v50 = vcombine.high %v15881_v42, %v15881_v42 }
 0x974   : > { %v15891_v51 = vcombine.high %v15763_v32, %v15763_v32  ;;  %v15898_v34 = vrot.slane %v15763_v32, %v19719_v44  ;;  %v16149_v35 = vrot.slane %v16135_v46, %v19195_v14 }
 0x975   : > { %v15890_v24 = vcombine.high %v15888_v37, %v15888_v37  ;;  %v18384_v52 = vpack.c.bf16 %v15889_v50, %v15881_v42 }
 0x976   : > { %v15905_v53 = vrot.slane %v15891_v51, %v19719_v44  ;;  %v15906_v54 = vcombine.high %v15898_v34, %v15898_v34  ;;  %v16150_v55 = vcombine.low %v16142_v48, %v16149_v35 }
 0x977   : > { %v18385_v57 = vpack.c.bf16 %v15890_v24, %v15888_v37  ;;  %v16161_v59 = vrot.slane %v18384_v52, %v19195_v14 }
 0x978   : > { %v15907_v56 = vcombine.high %v15905_v53, %v15905_v53  ;;  %v18386_v47 = vpack.c.bf16 %v15906_v54, %v15898_v34  ;;  %16206 = vst [vmem:[#allocation2 + $0x10] sm:$0xff] %v16150_v55 }
 0x979   : > { %v16168_v62 = vrot.slane %v18385_v57, %v19195_v14 }
 0x97a   : > { %v18387_v58 = vpack.c.bf16 %v15907_v56, %v15905_v53  ;;  %v16175_v63 = vrot.slane %v18386_v47, %v19195_v14 }
 0x97b   : > { %v16183_v38 = vcombine.low %v16161_v59, %v16168_v62 }
 0x97c   : > { %v16182_v36 = vrot.slane %v18387_v58, %v19195_v14 }
 0x97d   : > { %v16191_v44 = vrot.slane %v16183_v38, %v19195_v14 }
 0x97e   : > { %v16184_v0 = vcombine.low %v16175_v63, %v16182_v36  ;;  %16211 = sbr.rel (%p18388_p6) target bundleno = 2437 (0x985), region = 56 }
 0x980   : > { %v16198_v1 = vrot.slane %v16184_v0, %v19195_v14 }
 0x982   : > { %v16199_v3 = vcombine.low %v16191_v44, %v16198_v1 }
 0x984   : > { %16207 = vst [vmem:[#allocation2 + $0x18] sm:$0xff] %v16199_v3 }
 0x985 PF: > { %p21543_p3 = scmp.eq.s32.totalorder %s16308_s20, 39  ;;  %s18894_s5 = smov [#allocation9]  }
 0x986   : > { %s16220_s7 = sshll.u32 %s18894_s5, 4  ;;  %s16221_s7 = int_to_ptr.vmem [resolvable:$true] %s16220_s7 }
 0x987   : > { %s18760_s30 = scalar_lea.vmem %s16221_s7, 32  ;;  %p18767_p10 = scmp.lt.s32.totalorder %s16221_s7, %s16221_s7 }
 0x988   : > { %p18761_p4 = scmp.ne.s32.totalorder %s16221_s7, %s18760_s30  ;;  %p18768_p7 = scmp.lt.s32.totalorder %s18760_s30, %s18760_s30 }
 0x98a   : > { %p18762_p9 = pnand %p18761_p4, %p21543_p3  ;;  %p18769_p13 = por %p18768_p7, %p18767_p10 }
 0x98c   : > { %p18763_p2 = pneg %p18762_p9 }
 0x98e   : > { %p18770_p0 = pnand %p18769_p13, %p18763_p2 }
 0x990   : > { %18773 = shalt.err (!%p18770_p0)
}
 0x991   : > { %s18774_s20 = scalar_lea.hbm %s21605_s3, 32 }
 0x992   : > { %p18775_p12 = scmp.ne.s32.totalorder %s21605_s3, %s18774_s20  ;;  %p18780_p5 = scmp.lt.u32.totalorder %s18774_s20, %s21605_s3 }
 0x994   : > { %p18776_p8 = pnand %p18775_p12, %p21543_p3 }
 0x996   : > { %p18777_p11 = pneg %p18776_p8 }
 0x998   : > { %p18782_p1 = pnand %p18780_p5, %p18777_p11 }
 0x99a   : > { %18785 = shalt.err (!%p18782_p1)
}
 0x99b   : > { %18592 = dma.vmem_to_hbm [thread:$0]  (%p21543_p3), %s16221_s7, 32, %s21605_s3, [#allocation6]  }
 0x99c   : > { %18839 = dma.done.wait (%p21543_p3), [#allocation6], 32  }
 0x99d   : > { %18841 = vsyncadd (%p21543_p3), [#allocation6], 4294967264 }
 0x99e PF: > { %s20_s22 = sadd.s32 1, %s18884_s22   ;;  %s21631_s18 = sld [smem:[#allocation13_spill]] }
 0x99f   : > { %p17_p6 = scmp.ge.s32.totalorder %s20_s22, 42   ;;  %s21632_s20 = sld [smem:[#allocation14_spill]] }
 0x9a0   : > { %s21633_s8 = sld [smem:[#allocation15_spill]]  ;;  %s21634_s12 = smov %s18848_s13 }
 0x9a1   : > { %s21635_s13 = smov %s18852_s14  ;;  %s21636_s14 = smov %s19069_s23 }
 0x9a2   : > { %s21637_s15 = smov %s18860_s16  ;;  %s21638_s16 = smov %s18864_s17 }
 0x9a3   : > { %s21639_s17 = smov %s19001_s9  ;;  %s21640_s19 = smov %s18880_s21 }
 0x9a4   :  { %19 = sbr.rel (!%p17_p6) target bundleno = 10 (0xa), region = 98 }
 0x9a6   : > { %s21641_s21 = smov %s21633_s8 }
 0x9ab   :  { %16233 = vsyncpa [#allocation5], 1 }
 0x9ac   :  { %16235 = vsyncpa [#allocation5 + $0x1], 1 }
 0x9ad   :  { %16236 = vsyncpa [#allocation8], 1 }
 0x9ae   :  { %16238 = vsyncpa [#allocation8 + $0x1], 1 }
 0x9af   :  { %16239 = vsyncpa [#allocation6], 1 }
 0x9b0   :  { %16241 = vsyncpa [#allocation6 + $0x1], 1 }

</bundles_post_ra>
